<compile_context>
chip_gen: v7x
topology: tpu7x:2x2x1
jax: 0.10.0
libtpu: 0.0.40
codegen_flags: <defaults>
</compile_context>

<pallas_src>
import numpy as np
import jax
import jax.numpy as jnp
from jax.experimental import pallas as pl
from jax.experimental.pallas import tpu as pltpu


def _full_vmem_spec():
    # whole-array block resident in VMEM (only used for tiny operands)
    return pl.BlockSpec(memory_space=pltpu.MemorySpace.VMEM)


def _vmem_budget_bytes():
    # Generation-aware scoped-VMEM budget (~half of physical capacity).
    try:
        cap = int(pltpu.get_tpu_info().vmem_capacity_bytes)
    except Exception:
        cap = 64 * 1024 * 1024
    return max(32 * 1024 * 1024, min(cap // 2, 96 * 1024 * 1024))


def _choose_tile_p(P, N, npar, itemsize, vmem_limit):
    # Largest power-of-two multiple of 128 whose double-buffered A slab uses
    # at most ~1/4 of the VMEM budget and does not exceed the per-core share.
    per_part = -(-P // npar)
    tp = 128
    while (tp * 2 <= 512
           and 2 * (tp * 2) * N * itemsize <= vmem_limit // 4
           and tp * 2 <= per_part + 127):
        tp *= 2
    return tp


# --------------------------------------------------------------------------
# Hyper network: Linear(7,256) -> ReLU -> Linear(256,512) -> ReLU -> Linear(512,260)
# (tiny; single gridless call -- not a hot path)
# --------------------------------------------------------------------------
def _hyper_kernel(f_ref, w1_ref, b1_ref, w2_ref, b2_ref, w3_ref, b3_ref, out_ref):
    f = f_ref[...]
    h = jnp.dot(f, w1_ref[...], preferred_element_type=jnp.float32) + b1_ref[...]
    h = jnp.maximum(h, 0.0)
    # Dropout(p=0.5) -> identity in eval mode
    h = jnp.dot(h, w2_ref[...], preferred_element_type=jnp.float32) + b2_ref[...]
    h = jnp.maximum(h, 0.0)
    out_ref[...] = (
        jnp.dot(h, w3_ref[...], preferred_element_type=jnp.float32) + b3_ref[...]
    )


def hyper_forward(feature_vec, hp):
    B = feature_vec.shape[0]
    out = pl.pallas_call(
        _hyper_kernel,
        out_shape=jax.ShapeDtypeStruct((B, 260), jnp.float32),
        in_specs=[_full_vmem_spec() for _ in range(7)],
        out_specs=_full_vmem_spec(),
    )(feature_vec, hp["w1"], hp["b1"], hp["w2"], hp["b2"], hp["w3"], hp["b3"])
    return out[:, :130], out[:, 130:]


# --------------------------------------------------------------------------
# ConvBlock: conv3x3(1->64) FiLM ReLU | conv3x3(64->64) FiLM ReLU | conv3x3(64->1)
#
# Channel-major layout.  Feature maps live in a single scratch of shape
# [C, Hp*Wp] (flattened zero-padded image, pixels in lanes).  Every conv is
# 1 (conv1) or 9 (conv2/conv3) MXU matmuls against shifted lane windows of
# that scratch; FiLM scales are folded into the (tiny) weights; garbage at
# the inter-row pad columns is killed with a precomputed 0/1 mask row.
# gamma2/beta2 of the conv3 output is applied later in the combine kernel.
# --------------------------------------------------------------------------
def convblock_forward(x_padflat, gamma_col, beta_col, mask, cp, H, W):
    # TODO(synk): at realistic image sizes (>=256^2) the per-sample block must
    #             additionally be tiled over image rows (1-row halo) so the
    #             [C, Hp*Wp] scratch + live activations stay within VMEM
    #             (notably on v7x's 64 MiB).
    B = x_padflat.shape[0]
    Hp, Wp = H + 2, W + 2
    HpWp = Hp * Wp
    L = (H - 1) * Wp + W                # contiguous flat window covering interior
    p0 = Wp + 1                         # flat index of pixel (0, 0)
    C = cp["w1"].shape[0]
    offs = tuple(kh * Wp + kw for kh in range(3) for kw in range(3))

    def kernel(x_ref, g_ref, t_ref, w1_ref, b1_ref, w2_ref, b2_ref,
               w3_ref, b3_ref, m_ref, out_ref, hpad):
        # Per-sample FiLM parameters as [C, 1] columns.
        gcol = g_ref[0]                              # (2C, 1)
        tcol = t_ref[0]
        g0, g1 = gcol[0:C, :], gcol[C:2 * C, :]
        t0, t1 = tcol[0:C, :], tcol[C:2 * C, :]

        # Fold FiLM scales into the weights: (conv + b)*g + t == conv_scaled + (b*g + t)
        w1s = w1_ref[...] * g0                       # (C, 9)       [cout, tap]
        b1s = b1_ref[...] * g0 + t0                  # (C, 1)
        w2s = w2_ref[...] * g1                       # (9, C, C)    [tap, cout, cin]
        b2s = b2_ref[...] * g1 + t1                  # (C, 1)
        mask = m_ref[...]                            # (1, L) 0/1 interior mask

        # Keep the halo strips zero; the interior [p0, p0+L) is fully
        # overwritten every step (cheap: 2*(Wp+1)*C stores, megacore-safe).
        hpad[:, 0:p0] = jnp.zeros((C, p0), jnp.float32)
        hpad[:, p0 + L:HpWp] = jnp.zeros((C, HpWp - (p0 + L)), jnp.float32)

        # ---- conv1 on the MXU: [C, 9] x [9, L] over the padded input image ----
        xflat = x_ref[0]                             # (1, HpWp)
        xwin = jnp.concatenate([xflat[:, o:o + L] for o in offs], axis=0)   # (9, L)
        h1 = jnp.dot(w1s, xwin, preferred_element_type=jnp.float32) + b1s
        hpad[:, p0:p0 + L] = jnp.maximum(h1, 0.0) * mask

        # ---- conv2: 9 tap-wise accumulated [C, C] x [C, L] MXU matmuls ----
        h1p = hpad[...]
        acc2 = jnp.zeros((C, L), jnp.float32)
        for t, o in enumerate(offs):
            acc2 = acc2 + jnp.dot(w2s[t], h1p[:, o:o + L],
                                  preferred_element_type=jnp.float32)
        hpad[:, p0:p0 + L] = jnp.maximum(acc2 + b2s, 0.0) * mask

        # ---- conv3: 9 tap-wise [1, C] x [C, L]; lane-dense row output ----
        h2p = hpad[...]
        w3 = w3_ref[...]                             # (9, C)  [tap, cin]
        acc3 = jnp.zeros((1, L), jnp.float32)
        for t, o in enumerate(offs):
            acc3 = acc3 + jnp.dot(w3[t:t + 1, :], h2p[:, o:o + L],
                                  preferred_element_type=jnp.float32)
        # gamma2/beta2 FiLM of this output is applied in the combine kernel.
        out_ref[0] = acc3 + b3_ref[...]              # (1, L)

    return pl.pallas_call(
        kernel,
        out_shape=jax.ShapeDtypeStruct((B, 1, L), jnp.float32),
        grid=(B,),
        in_specs=[
            pl.BlockSpec((1, 1, HpWp), lambda b: (b, 0, 0)),   # padded image (lane-dense)
            pl.BlockSpec((1, 2 * C, 1), lambda b: (b, 0, 0)),  # gamma[:, 1:129] as columns
            pl.BlockSpec((1, 2 * C, 1), lambda b: (b, 0, 0)),  # beta[:, 1:129] as columns
            pl.BlockSpec((C, 9), lambda b: (0, 0)),            # w1  [cout, tap]
            pl.BlockSpec((C, 1), lambda b: (0, 0)),            # b1
            pl.BlockSpec((9, C, C), lambda b: (0, 0, 0)),      # w2  [tap, cout, cin]
            pl.BlockSpec((C, 1), lambda b: (0, 0)),            # b2
            pl.BlockSpec((9, C), lambda b: (0, 0)),            # w3  [tap, cin]
            pl.BlockSpec((1, 1), lambda b: (0, 0)),            # b3
            pl.BlockSpec((1, L), lambda b: (0, 0)),            # interior mask
        ],
        out_specs=pl.BlockSpec((1, 1, L), lambda b: (b, 0, 0)),
        scratch_shapes=[pltpu.VMEM((C, HpWp), jnp.float32)],
        compiler_params=pltpu.CompilerParams(
            dimension_semantics=("parallel",)),
    )(x_padflat, gamma_col, beta_col, cp["w1"], cp["b1"], cp["w2"], cp["b2"],
      cp["w3"], cp["b3"], mask)


# --------------------------------------------------------------------------
# prj_module data-fidelity: streamed-A back-projection of the residual.
#   projection     == x @ A^T          (per P-slab, full N contraction)
#   backprojection == resid @ A        (accumulated over P-slabs)
# A is streamed from HBM in low precision (bf16 by default); all math is f32.
# The P reduction is split over a leading "parallel" axis (both TCs on v7x);
# each partial accumulates into its own resident output block.
# --------------------------------------------------------------------------
def prj_backproject(x, proj_p, A_lp, *, npar, tile_p, vmem_limit):
    # TODO(synk): for very large N, additionally tile N (two-pass sino/backproj).
    # TODO(synk): when A fits on-chip, keep it resident across IterBlocks.
    B, N = x.shape
    Pp = A_lp.shape[0]
    nk = Pp // (npar * tile_p)

    def kernel(x_ref, proj_ref, a_ref, bp_ref):
        k = pl.program_id(1)

        @pl.when(k == 0)
        def _():
            bp_ref[...] = jnp.zeros_like(bp_ref)

        a = a_ref[...].astype(jnp.float32)            # [tp, N] (bf16 in HBM)
        xv = x_ref[...]                               # [B, N] f32 (never re-cast)
        sino = jax.lax.dot_general(xv, a, (((1,), (1,)), ((), ())),
                                   preferred_element_type=jnp.float32)   # [B, tp]
        resid = sino - proj_ref[...]                  # f32 residual
        bp_ref[...] += jax.lax.dot_general(resid, a, (((1,), (0,)), ((), ())),
                                           preferred_element_type=jnp.float32)

    return pl.pallas_call(
        kernel,
        out_shape=jax.ShapeDtypeStruct((npar, B, N), jnp.float32),
        grid=(npar, nk),
        in_specs=[
            pl.BlockSpec((B, N), lambda p, k: (0, 0)),                  # x (resident)
            pl.BlockSpec((B, tile_p), lambda p, k: (0, p * nk + k)),    # measured sinogram
            pl.BlockSpec((tile_p, N), lambda p, k: (p * nk + k, 0)),    # A slab (streamed)
        ],
        out_specs=pl.BlockSpec((1, B, N), lambda p, k: (p, 0, 0)),
        compiler_params=pltpu.CompilerParams(
            dimension_semantics=("parallel", "arbitrary"),
            vmem_limit_bytes=vmem_limit),
    )(x, proj_p, A_lp)


# --------------------------------------------------------------------------
# Fused epilogue: sum partial back-projections, data-fidelity step, conv FiLM
# (gamma2/beta2), tmp1 + tmp2 combine, ReLU.  Everything lane-dense [B, N].
# --------------------------------------------------------------------------
def prj_combine(x, bp_partials, tmp2, wgt, g2, t2):
    B, N = x.shape

    def kernel(x_ref, bp_ref, tmp2_ref, wgt_ref, g2_ref, t2_ref, out_ref):
        bp = jnp.sum(bp_ref[...], axis=0)                       # [B, N]
        tmp1 = x_ref[...] - wgt_ref[...] * bp                   # data-fidelity step
        tmp2v = g2_ref[...] * tmp2_ref[...] + t2_ref[...]       # FiLM of conv3 output
        out_ref[...] = jnp.maximum(tmp1 + tmp2v, 0.0)

    vspec = _full_vmem_spec()
    return pl.pallas_call(
        kernel,
        out_shape=jax.ShapeDtypeStruct((B, N), jnp.float32),
        in_specs=[vspec] * 6,
        out_specs=vspec,
    )(x, bp_partials, tmp2, wgt, g2, t2)


# --------------------------------------------------------------------------
# IterBlock / Learn wrappers (glue: slicing, tiny per-sample scalar math,
# free bitcast reshapes)
# --------------------------------------------------------------------------
W_FIX = jnp.array([[-0.8955], [0.0], [-2.6443], [0.5331], [1.5326], [0.0], [0.0]],
                  dtype=jnp.float32)        # prj_module.w  (shape [7, 1])
B_FIX = jnp.float32(1.0363)                 # prj_module.b


def iterblock_forward(x, proj_p, A_lp, gamma, beta, feature_vec, blk,
                      H, W, mask, npar, tile_p, vmem_limit):
    B = x.shape[0]
    Wp = W + 2
    C = blk["conv"]["w1"].shape[0]

    # prj_module clamped step size (per-sample scalar math -> plain JAX glue)
    gamma0, beta0 = gamma[:, 0:1], beta[:, 0:1]
    weight = blk["weight_fed"] * gamma0 + beta0                 # (B, 1)
    maxval = feature_vec @ W_FIX + B_FIX                        # (B, 1)
    le = (weight <= maxval).astype(jnp.float32)
    wgt = jnp.maximum(le * weight + (1.0 - le) * maxval, 0.01)  # (B, 1)

    # FiLM parameters: gamma[:, 1:1+2C] drive conv1/conv2, gamma[:, 1+2C] conv3.
    g_col = gamma[:, 1:1 + 2 * C].reshape(B, 2 * C, 1)
    b_col = beta[:, 1:1 + 2 * C].reshape(B, 2 * C, 1)
    g2 = gamma[:, 1 + 2 * C:2 + 2 * C]                          # (B, 1)
    t2 = beta[:, 1 + 2 * C:2 + 2 * C]

    # ConvBlock (channel-major, per-sample grid).  Output is a lane-dense row
    # in the flat-padded pixel coordinates; convert to [B, H*W] with cheap
    # wrapper reshapes/slices.
    x_pad = jnp.pad(x.reshape(B, H, W), ((0, 0), (1, 1), (1, 1)))
    x_padflat = x_pad.reshape(B, 1, (H + 2) * Wp)
    convL = convblock_forward(x_padflat, g_col, b_col, mask, blk["conv"], H, W)
    convL = convL.reshape(B, -1)                                # (B, L)
    tmp2 = jnp.pad(convL, ((0, 0), (0, H * Wp - convL.shape[1])))
    tmp2 = tmp2.reshape(B, H, Wp)[:, :, :W].reshape(B, H * W)

    # Streamed data-fidelity back-projection + fused combine/ReLU.
    bp = prj_backproject(x, proj_p, A_lp, npar=npar, tile_p=tile_p,
                         vmem_limit=vmem_limit)
    return prj_combine(x, bp, tmp2, wgt, g2, t2)


def learn_forward(params, input_nchw, proj, A, feature_vec, *,
                  a_dtype=jnp.bfloat16, npar=2):
    B, _, H, W = input_nchw.shape
    N = H * W
    Wp = W + 2
    x = input_nchw.reshape(B, N).astype(jnp.float32)   # C == 1 -> free flatten

    gamma, beta = hyper_forward(feature_vec, params["hyper"])

    vmem_limit = _vmem_budget_bytes()
    # Surrogate CT operator streamed in low precision (dominant HBM traffic);
    # residual / accumulation / step stay f32 in-kernel.
    # TODO(synk): per-generation quantization of A (int8 + scales on v5e/v6e,
    #             fp8 e4m3 on v7x) would halve streamed bytes vs bf16.
    A_lp = A.astype(a_dtype)
    P = A.shape[0]
    tile_p = _choose_tile_p(P, N, npar, jnp.dtype(a_dtype).itemsize, vmem_limit)
    chunk = npar * tile_p
    Pp = -(-P // chunk) * chunk
    if Pp != P:            # zero-pad P so every slab is full (no whole-A fallback)
        A_lp = jnp.pad(A_lp, ((0, Pp - P), (0, 0)))
        proj_p = jnp.pad(proj, ((0, 0), (0, Pp - P)))
    else:
        proj_p = proj

    # Static 0/1 interior mask for the ConvBlock's flat-padded layout.
    L = (H - 1) * Wp + W
    col = (np.arange(L) + Wp + 1) % Wp
    mask = jnp.asarray(((col >= 1) & (col <= W)).astype(np.float32)[None, :])

    for blk in params["blocks"]:
        x = iterblock_forward(x, proj_p, A_lp, gamma, beta, feature_vec, blk,
                              H, W, mask, npar, tile_p, vmem_limit)
    return x.reshape(B, 1, H, W)


# --------------------------------------------------------------------------
# Deterministic synthetic parameter init (shapes from the module __init__).
# Conv weight layouts (mapping from torch OIHW, tap = kh*3 + kw):
#   w1[c, tap]        = W1[c, 0, kh, kw]
#   w2[tap, co, ci]   = W2[co, ci, kh, kw]
#   w3[tap, ci]       = W3[0, ci, kh, kw]
# --------------------------------------------------------------------------
def init_params(key, block_num, C=64):
    def lin(k, fin, fout):
        lim = 1.0 / np.sqrt(fin)
        kw, kb = jax.random.split(k)
        return (jax.random.uniform(kw, (fin, fout), jnp.float32, -lim, lim),
                jax.random.uniform(kb, (1, fout), jnp.float32, -lim, lim))

    keys = jax.random.split(key, 3 + block_num)
    hw1, hb1 = lin(keys[0], 7, 256)
    hw2, hb2 = lin(keys[1], 256, 512)
    hw3, hb3 = lin(keys[2], 512, 260)
    hyper = dict(w1=hw1, b1=hb1, w2=hw2, b2=hb2, w3=hw3, b3=hb3)

    blocks = []
    for i in range(block_num):
        k1, k2, k3, k4 = jax.random.split(keys[3 + i], 4)
        lim1 = 1.0 / np.sqrt(9 * 1)
        lim2 = 1.0 / np.sqrt(9 * C)
        w1 = jax.random.uniform(k1, (C, 9), jnp.float32, -lim1, lim1)
        b1 = jax.random.uniform(jax.random.fold_in(k1, 1), (C, 1), jnp.float32,
                                -lim1, lim1)
        w2 = jax.random.uniform(k2, (9, C, C), jnp.float32, -lim2, lim2)
        b2 = jax.random.uniform(jax.random.fold_in(k2, 1), (C, 1), jnp.float32,
                                -lim2, lim2)
        w3 = jax.random.uniform(k3, (9, C), jnp.float32, -lim2, lim2)
        b3 = jax.random.uniform(jax.random.fold_in(k3, 1), (1, 1), jnp.float32,
                                -lim2, lim2)
        blocks.append(dict(
            weight_fed=jax.random.normal(k4, (), jnp.float32) * 0.1,
            conv=dict(w1=w1, b1=b1, w2=w2, b2=b2, w3=w3, b3=b3)))
    return dict(hyper=hyper, blocks=blocks)


if __name__ == "__main__":
    key = jax.random.PRNGKey(0)
    B, H, W = 2, 16, 16
    N = H * W
    P = 384            # surrogate sinogram size (padded internally to the slab grid)
    block_num = 2

    k_in, k_proj, k_feat, k_A, k_params = jax.random.split(key, 5)
    input_data = jax.random.uniform(k_in, (B, 1, H, W), jnp.float32)   # NCHW like torch
    feature_vec = jax.random.uniform(k_feat, (B, 7), jnp.float32)
    A = jax.random.normal(k_A, (P, N), jnp.float32) / np.sqrt(N)       # surrogate CT operator
    proj = jax.random.normal(k_proj, (B, P), jnp.float32)
    params = init_params(k_params, block_num)

    out = jax.jit(learn_forward)(params, input_data, proj, A, feature_vec)
    out = jax.block_until_ready(out)
    assert out.shape == (B, 1, H, W), out.shape
    assert bool(jnp.all(jnp.isfinite(out)))
    print("KERNEL_OK")
</pallas_src>

<mosaic_0001>
module attributes {stable_mosaic.version = 11 : i64} {
  func.func @_hyper_kernel(%arg0: memref<2x7xf32, #tpu.memory_space<vmem>>, %arg1: memref<7x256xf32, #tpu.memory_space<vmem>>, %arg2: memref<1x256xf32, #tpu.memory_space<vmem>>, %arg3: memref<256x512xf32, #tpu.memory_space<vmem>>, %arg4: memref<1x512xf32, #tpu.memory_space<vmem>>, %arg5: memref<512x260xf32, #tpu.memory_space<vmem>>, %arg6: memref<1x260xf32, #tpu.memory_space<vmem>>, %arg7: memref<2x260xf32, #tpu.memory_space<vmem>>) attributes {dimension_semantics = [], scalar_prefetch = 0 : i64, scratch_operands = 0 : i64, tpu.core_type = #tpu.core_type<tc>} {
    %c0 = arith.constant 0 : index
    %c0_0 = arith.constant 0 : index
    %0 = vector.load %arg0[%c0, %c0_0] : memref<2x7xf32, #tpu.memory_space<vmem>>, vector<2x7xf32>
    %c0_1 = arith.constant 0 : index
    %c0_2 = arith.constant 0 : index
    %1 = vector.load %arg1[%c0_1, %c0_2] : memref<7x256xf32, #tpu.memory_space<vmem>>, vector<7x256xf32>
    %cst = arith.constant dense<0.000000e+00> : vector<2x256xf32>
    %2 = tpu.matmul %0, %1, %cst {dimension_numbers = #tpu.dot_dimension_numbers<[1], [0], [0], [1], [0, 0, 1, 1], [], []>} : vector<2x7xf32>, vector<7x256xf32>, vector<2x256xf32> -> vector<2x256xf32>
    %c0_3 = arith.constant 0 : index
    %c0_4 = arith.constant 0 : index
    %3 = vector.load %arg2[%c0_3, %c0_4] : memref<1x256xf32, #tpu.memory_space<vmem>>, vector<1x256xf32>
    %4 = vector.broadcast %3 : vector<1x256xf32> to vector<2x256xf32>
    %5 = arith.addf %2, %4 : vector<2x256xf32>
    %cst_5 = arith.constant 0.000000e+00 : f32
    %6 = vector.broadcast %cst_5 : f32 to vector<2x256xf32>
    %7 = arith.maximumf %5, %6 : vector<2x256xf32>
    %c0_6 = arith.constant 0 : index
    %c0_7 = arith.constant 0 : index
    %8 = vector.load %arg3[%c0_6, %c0_7] : memref<256x512xf32, #tpu.memory_space<vmem>>, vector<256x512xf32>
    %cst_8 = arith.constant dense<0.000000e+00> : vector<2x512xf32>
    %9 = tpu.matmul %7, %8, %cst_8 {dimension_numbers = #tpu.dot_dimension_numbers<[1], [0], [0], [1], [0, 0, 1, 1], [], []>} : vector<2x256xf32>, vector<256x512xf32>, vector<2x512xf32> -> vector<2x512xf32>
    %c0_9 = arith.constant 0 : index
    %c0_10 = arith.constant 0 : index
    %10 = vector.load %arg4[%c0_9, %c0_10] : memref<1x512xf32, #tpu.memory_space<vmem>>, vector<1x512xf32>
    %11 = vector.broadcast %10 : vector<1x512xf32> to vector<2x512xf32>
    %12 = arith.addf %9, %11 : vector<2x512xf32>
    %cst_11 = arith.constant 0.000000e+00 : f32
    %13 = vector.broadcast %cst_11 : f32 to vector<2x512xf32>
    %14 = arith.maximumf %12, %13 : vector<2x512xf32>
    %c0_12 = arith.constant 0 : index
    %c0_13 = arith.constant 0 : index
    %15 = vector.load %arg5[%c0_12, %c0_13] : memref<512x260xf32, #tpu.memory_space<vmem>>, vector<512x260xf32>
    %cst_14 = arith.constant dense<0.000000e+00> : vector<2x260xf32>
    %16 = tpu.matmul %14, %15, %cst_14 {dimension_numbers = #tpu.dot_dimension_numbers<[1], [0], [0], [1], [0, 0, 1, 1], [], []>} : vector<2x512xf32>, vector<512x260xf32>, vector<2x260xf32> -> vector<2x260xf32>
    %c0_15 = arith.constant 0 : index
    %c0_16 = arith.constant 0 : index
    %17 = vector.load %arg6[%c0_15, %c0_16] : memref<1x260xf32, #tpu.memory_space<vmem>>, vector<1x260xf32>
    %18 = vector.broadcast %17 : vector<1x260xf32> to vector<2x260xf32>
    %19 = arith.addf %16, %18 : vector<2x260xf32>
    %c0_17 = arith.constant 0 : index
    %c0_18 = arith.constant 0 : index
    %20 = vector.load %arg7[%c0_17, %c0_18] : memref<2x260xf32, #tpu.memory_space<vmem>>, vector<2x260xf32>
    tpu.vector_store %arg7[%c0_17, %c0_18], %19 {strides = array<i32>} : memref<2x260xf32, #tpu.memory_space<vmem>>, vector<2x260xf32>,
    return
  }
}

module attributes {stable_mosaic.version = 11 : i64} {
  func.func @kernel(%arg0: i32, %arg1: memref<1x1x324xf32, #tpu.memory_space<vmem>>, %arg2: memref<1x128x1xf32, #tpu.memory_space<vmem>>, %arg3: memref<1x128x1xf32, #tpu.memory_space<vmem>>, %arg4: memref<64x9xf32, #tpu.memory_space<vmem>>, %arg5: memref<64x1xf32, #tpu.memory_space<vmem>>, %arg6: memref<9x64x64xf32, #tpu.memory_space<vmem>>, %arg7: memref<64x1xf32, #tpu.memory_space<vmem>>, %arg8: memref<9x64xf32, #tpu.memory_space<vmem>>, %arg9: memref<1x1xf32, #tpu.memory_space<vmem>>, %arg10: memref<1x286xf32, #tpu.memory_space<vmem>>, %arg11: memref<1x1x286xf32, #tpu.memory_space<vmem>>, %arg12: memref<64x324xf32, #tpu.memory_space<vmem>>) attributes {dimension_semantics = [#tpu.dimension_semantics<parallel>], iteration_bounds = array<i64: 2>, scalar_prefetch = 0 : i64, scratch_operands = 1 : i64, tpu.core_type = #tpu.core_type<tc>, window_params = [{transform_indices = @transform_0, window_bounds = array<i64: 1, 1, 324>}, {transform_indices = @transform_1, window_bounds = array<i64: 1, 128, 1>}, {transform_indices = @transform_2, window_bounds = array<i64: 1, 128, 1>}, {pipeline_mode = #tpu.pipeline_mode<synchronous>, transform_indices = @transform_3, window_bounds = array<i64: 64, 9>}, {pipeline_mode = #tpu.pipeline_mode<synchronous>, transform_indices = @transform_4, window_bounds = array<i64: 64, 1>}, {pipeline_mode = #tpu.pipeline_mode<synchronous>, transform_indices = @transform_5, window_bounds = array<i64: 9, 64, 64>}, {pipeline_mode = #tpu.pipeline_mode<synchronous>, transform_indices = @transform_6, window_bounds = array<i64: 64, 1>}, {pipeline_mode = #tpu.pipeline_mode<synchronous>, transform_indices = @transform_7, window_bounds = array<i64: 9, 64>}, {pipeline_mode = #tpu.pipeline_mode<synchronous>, transform_indices = @transform_8, window_bounds = array<i64: 1, 1>}, {pipeline_mode = #tpu.pipeline_mode<synchronous>, transform_indices = @transform_9, window_bounds = array<i64: 1, 286>}, {transform_indices = @transform_10, window_bounds = array<i64: 1, 1, 286>}]} {
    %c0 = arith.constant 0 : index
    %c0_0 = arith.constant 0 : index
    %c0_1 = arith.constant 0 : index
    %0 = vector.load %arg2[%c0, %c0_0, %c0_1] : memref<1x128x1xf32, #tpu.memory_space<vmem>>, vector<1x128x1xf32>
    %1 = vector.shape_cast %0 : vector<1x128x1xf32> to vector<128x1xf32>
    %c0_2 = arith.constant 0 : index
    %c0_3 = arith.constant 0 : index
    %c0_4 = arith.constant 0 : index
    %2 = vector.load %arg3[%c0_2, %c0_3, %c0_4] : memref<1x128x1xf32, #tpu.memory_space<vmem>>, vector<1x128x1xf32>
    %3 = vector.shape_cast %2 : vector<1x128x1xf32> to vector<128x1xf32>
    %4 = vector.extract_strided_slice %1 {offsets = [0, 0], sizes = [64, 1], strides = [1, 1]} : vector<128x1xf32> to vector<64x1xf32>
    %5 = vector.extract_strided_slice %1 {offsets = [64, 0], sizes = [64, 1], strides = [1, 1]} : vector<128x1xf32> to vector<64x1xf32>
    %6 = vector.extract_strided_slice %3 {offsets = [0, 0], sizes = [64, 1], strides = [1, 1]} : vector<128x1xf32> to vector<64x1xf32>
    %7 = vector.extract_strided_slice %3 {offsets = [64, 0], sizes = [64, 1], strides = [1, 1]} : vector<128x1xf32> to vector<64x1xf32>
    %c0_5 = arith.constant 0 : index
    %c0_6 = arith.constant 0 : index
    %8 = vector.load %arg4[%c0_5, %c0_6] : memref<64x9xf32, #tpu.memory_space<vmem>>, vector<64x9xf32>
    %9 = vector.broadcast %4 : vector<64x1xf32> to vector<64x9xf32>
    %10 = arith.mulf %8, %9 : vector<64x9xf32>
    %c0_7 = arith.constant 0 : index
    %c0_8 = arith.constant 0 : index
    %11 = vector.load %arg5[%c0_7, %c0_8] : memref<64x1xf32, #tpu.memory_space<vmem>>, vector<64x1xf32>
    %12 = arith.mulf %11, %4 : vector<64x1xf32>
    %13 = arith.addf %12, %6 : vector<64x1xf32>
    %c0_9 = arith.constant 0 : index
    %c0_10 = arith.constant 0 : index
    %c0_11 = arith.constant 0 : index
    %14 = vector.load %arg6[%c0_9, %c0_10, %c0_11] : memref<9x64x64xf32, #tpu.memory_space<vmem>>, vector<9x64x64xf32>
    %15 = vector.shape_cast %5 : vector<64x1xf32> to vector<1x64x1xf32>
    %16 = vector.broadcast %15 : vector<1x64x1xf32> to vector<9x64x64xf32>
    %17 = arith.mulf %14, %16 : vector<9x64x64xf32>
    %c0_12 = arith.constant 0 : index
    %c0_13 = arith.constant 0 : index
    %18 = vector.load %arg7[%c0_12, %c0_13] : memref<64x1xf32, #tpu.memory_space<vmem>>, vector<64x1xf32>
    %19 = arith.mulf %18, %5 : vector<64x1xf32>
    %20 = arith.addf %19, %7 : vector<64x1xf32>
    %c0_14 = arith.constant 0 : index
    %c0_15 = arith.constant 0 : index
    %21 = vector.load %arg10[%c0_14, %c0_15] : memref<1x286xf32, #tpu.memory_space<vmem>>, vector<1x286xf32>
    %cst = arith.constant 0.000000e+00 : f32
    %22 = vector.broadcast %cst : f32 to vector<64x19xf32>
    %c0_16 = arith.constant 0 : index
    %c0_17 = arith.constant 0 : index
    %23 = vector.load %arg12[%c0_16, %c0_17] : memref<64x324xf32, #tpu.memory_space<vmem>>, vector<64x19xf32>
    tpu.vector_store %arg12[%c0_16, %c0_17], %22 {strides = array<i32>} : memref<64x324xf32, #tpu.memory_space<vmem>>, vector<64x19xf32>,
    %cst_18 = arith.constant 0.000000e+00 : f32
    %24 = vector.broadcast %cst_18 : f32 to vector<64x19xf32>
    %c0_19 = arith.constant 0 : index
    %c305 = arith.constant 305 : index
    %25 = vector.load %arg12[%c0_19, %c305] : memref<64x324xf32, #tpu.memory_space<vmem>>, vector<64x19xf32>
    tpu.vector_store %arg12[%c0_19, %c305], %24 {strides = array<i32>} : memref<64x324xf32, #tpu.memory_space<vmem>>, vector<64x19xf32>,
    %c0_20 = arith.constant 0 : index
    %c0_21 = arith.constant 0 : index
    %c0_22 = arith.constant 0 : index
    %26 = vector.load %arg1[%c0_20, %c0_21, %c0_22] : memref<1x1x324xf32, #tpu.memory_space<vmem>>, vector<1x1x324xf32>
    %27 = vector.shape_cast %26 : vector<1x1x324xf32> to vector<1x324xf32>
    %28 = vector.extract_strided_slice %27 {offsets = [0, 0], sizes = [1, 286], strides = [1, 1]} : vector<1x324xf32> to vector<1x286xf32>
    %29 = vector.extract_strided_slice %27 {offsets = [0, 1], sizes = [1, 286], strides = [1, 1]} : vector<1x324xf32> to vector<1x286xf32>
    %30 = vector.extract_strided_slice %27 {offsets = [0, 2], sizes = [1, 286], strides = [1, 1]} : vector<1x324xf32> to vector<1x286xf32>
    %31 = vector.extract_strided_slice %27 {offsets = [0, 18], sizes = [1, 286], strides = [1, 1]} : vector<1x324xf32> to vector<1x286xf32>
    %32 = vector.extract_strided_slice %27 {offsets = [0, 19], sizes = [1, 286], strides = [1, 1]} : vector<1x324xf32> to vector<1x286xf32>
    %33 = vector.extract_strided_slice %27 {offsets = [0, 20], sizes = [1, 286], strides = [1, 1]} : vector<1x324xf32> to vector<1x286xf32>
    %34 = vector.extract_strided_slice %27 {offsets = [0, 36], sizes = [1, 286], strides = [1, 1]} : vector<1x324xf32> to vector<1x286xf32>
    %35 = vector.extract_strided_slice %27 {offsets = [0, 37], sizes = [1, 286], strides = [1, 1]} : vector<1x324xf32> to vector<1x286xf32>
    %36 = vector.extract_strided_slice %27 {offsets = [0, 38], sizes = [1, 286], strides = [1, 1]} : vector<1x324xf32> to vector<1x286xf32>
    %37 = tpu.concatenate %28, %29, %30, %31, %32, %33, %34, %35, %36 in 0 : vector<1x286xf32>, vector<1x286xf32>, vector<1x286xf32>, vector<1x286xf32>, vector<1x286xf32>, vector<1x286xf32>, vector<1x286xf32>, vector<1x286xf32>, vector<1x286xf32> -> vector<9x286xf32>
    %cst_23 = arith.constant dense<0.000000e+00> : vector<64x286xf32>
    %38 = tpu.matmul %10, %37, %cst_23 {dimension_numbers = #tpu.dot_dimension_numbers<[1], [0], [0], [1], [0, 0, 1, 1], [], []>} : vector<64x9xf32>, vector<9x286xf32>, vector<64x286xf32> -> vector<64x286xf32>
    %39 = vector.broadcast %13 : vector<64x1xf32> to vector<64x286xf32>
    %40 = arith.addf %38, %39 : vector<64x286xf32>
    %cst_24 = arith.constant 0.000000e+00 : f32
    %41 = vector.broadcast %cst_24 : f32 to vector<64x286xf32>
    %42 = arith.maximumf %40, %41 : vector<64x286xf32>
    %43 = vector.broadcast %21 : vector<1x286xf32> to vector<64x286xf32>
    %44 = arith.mulf %42, %43 : vector<64x286xf32>
    %c0_25 = arith.constant 0 : index
    %c19 = arith.constant 19 : index
    %45 = vector.load %arg12[%c0_25, %c19] : memref<64x324xf32, #tpu.memory_space<vmem>>, vector<64x286xf32>
    tpu.vector_store %arg12[%c0_25, %c19], %44 {strides = array<i32>} : memref<64x324xf32, #tpu.memory_space<vmem>>, vector<64x286xf32>,
    %c0_26 = arith.constant 0 : index
    %c0_27 = arith.constant 0 : index
    %46 = vector.load %arg12[%c0_26, %c0_27] : memref<64x324xf32, #tpu.memory_space<vmem>>, vector<64x324xf32>
    %cst_28 = arith.constant 0.000000e+00 : f32
    %47 = vector.broadcast %cst_28 : f32 to vector<64x286xf32>
    %48 = vector.extract_strided_slice %17 {offsets = [0, 0, 0], sizes = [1, 64, 64], strides = [1, 1, 1]} : vector<9x64x64xf32> to vector<1x64x64xf32>
    %49 = vector.shape_cast %48 : vector<1x64x64xf32> to vector<64x64xf32>
    %50 = vector.extract_strided_slice %46 {offsets = [0, 0], sizes = [64, 286], strides = [1, 1]} : vector<64x324xf32> to vector<64x286xf32>
    %cst_29 = arith.constant dense<0.000000e+00> : vector<64x286xf32>
    %51 = tpu.matmul %49, %50, %cst_29 {dimension_numbers = #tpu.dot_dimension_numbers<[1], [0], [0], [1], [0, 0, 1, 1], [], []>} : vector<64x64xf32>, vector<64x286xf32>, vector<64x286xf32> -> vector<64x286xf32>
    %52 = arith.addf %47, %51 : vector<64x286xf32>
    %53 = vector.extract_strided_slice %17 {offsets = [1, 0, 0], sizes = [1, 64, 64], strides = [1, 1, 1]} : vector<9x64x64xf32> to vector<1x64x64xf32>
    %54 = vector.shape_cast %53 : vector<1x64x64xf32> to vector<64x64xf32>
    %55 = vector.extract_strided_slice %46 {offsets = [0, 1], sizes = [64, 286], strides = [1, 1]} : vector<64x324xf32> to vector<64x286xf32>
    %cst_30 = arith.constant dense<0.000000e+00> : vector<64x286xf32>
    %56 = tpu.matmul %54, %55, %cst_30 {dimension_numbers = #tpu.dot_dimension_numbers<[1], [0], [0], [1], [0, 0, 1, 1], [], []>} : vector<64x64xf32>, vector<64x286xf32>, vector<64x286xf32> -> vector<64x286xf32>
    %57 = arith.addf %52, %56 : vector<64x286xf32>
    %58 = vector.extract_strided_slice %17 {offsets = [2, 0, 0], sizes = [1, 64, 64], strides = [1, 1, 1]} : vector<9x64x64xf32> to vector<1x64x64xf32>
    %59 = vector.shape_cast %58 : vector<1x64x64xf32> to vector<64x64xf32>
    %60 = vector.extract_strided_slice %46 {offsets = [0, 2], sizes = [64, 286], strides = [1, 1]} : vector<64x324xf32> to vector<64x286xf32>
    %cst_31 = arith.constant dense<0.000000e+00> : vector<64x286xf32>
    %61 = tpu.matmul %59, %60, %cst_31 {dimension_numbers = #tpu.dot_dimension_numbers<[1], [0], [0], [1], [0, 0, 1, 1], [], []>} : vector<64x64xf32>, vector<64x286xf32>, vector<64x286xf32> -> vector<64x286xf32>
    %62 = arith.addf %57, %61 : vector<64x286xf32>
    %63 = vector.extract_strided_slice %17 {offsets = [3, 0, 0], sizes = [1, 64, 64], strides = [1, 1, 1]} : vector<9x64x64xf32> to vector<1x64x64xf32>
    %64 = vector.shape_cast %63 : vector<1x64x64xf32> to vector<64x64xf32>
    %65 = vector.extract_strided_slice %46 {offsets = [0, 18], sizes = [64, 286], strides = [1, 1]} : vector<64x324xf32> to vector<64x286xf32>
    %cst_32 = arith.constant dense<0.000000e+00> : vector<64x286xf32>
    %66 = tpu.matmul %64, %65, %cst_32 {dimension_numbers = #tpu.dot_dimension_numbers<[1], [0], [0], [1], [0, 0, 1, 1], [], []>} : vector<64x64xf32>, vector<64x286xf32>, vector<64x286xf32> -> vector<64x286xf32>
    %67 = arith.addf %62, %66 : vector<64x286xf32>
    %68 = vector.extract_strided_slice %17 {offsets = [4, 0, 0], sizes = [1, 64, 64], strides = [1, 1, 1]} : vector<9x64x64xf32> to vector<1x64x64xf32>
    %69 = vector.shape_cast %68 : vector<1x64x64xf32> to vector<64x64xf32>
    %70 = vector.extract_strided_slice %46 {offsets = [0, 19], sizes = [64, 286], strides = [1, 1]} : vector<64x324xf32> to vector<64x286xf32>
    %cst_33 = arith.constant dense<0.000000e+00> : vector<64x286xf32>
    %71 = tpu.matmul %69, %70, %cst_33 {dimension_numbers = #tpu.dot_dimension_numbers<[1], [0], [0], [1], [0, 0, 1, 1], [], []>} : vector<64x64xf32>, vector<64x286xf32>, vector<64x286xf32> -> vector<64x286xf32>
    %72 = arith.addf %67, %71 : vector<64x286xf32>
    %73 = vector.extract_strided_slice %17 {offsets = [5, 0, 0], sizes = [1, 64, 64], strides = [1, 1, 1]} : vector<9x64x64xf32> to vector<1x64x64xf32>
    %74 = vector.shape_cast %73 : vector<1x64x64xf32> to vector<64x64xf32>
    %75 = vector.extract_strided_slice %46 {offsets = [0, 20], sizes = [64, 286], strides = [1, 1]} : vector<64x324xf32> to vector<64x286xf32>
    %cst_34 = arith.constant dense<0.000000e+00> : vector<64x286xf32>
    %76 = tpu.matmul %74, %75, %cst_34 {dimension_numbers = #tpu.dot_dimension_numbers<[1], [0], [0], [1], [0, 0, 1, 1], [], []>} : vector<64x64xf32>, vector<64x286xf32>, vector<64x286xf32> -> vector<64x286xf32>
    %77 = arith.addf %72, %76 : vector<64x286xf32>
    %78 = vector.extract_strided_slice %17 {offsets = [6, 0, 0], sizes = [1, 64, 64], strides = [1, 1, 1]} : vector<9x64x64xf32> to vector<1x64x64xf32>
    %79 = vector.shape_cast %78 : vector<1x64x64xf32> to vector<64x64xf32>
    %80 = vector.extract_strided_slice %46 {offsets = [0, 36], sizes = [64, 286], strides = [1, 1]} : vector<64x324xf32> to vector<64x286xf32>
    %cst_35 = arith.constant dense<0.000000e+00> : vector<64x286xf32>
    %81 = tpu.matmul %79, %80, %cst_35 {dimension_numbers = #tpu.dot_dimension_numbers<[1], [0], [0], [1], [0, 0, 1, 1], [], []>} : vector<64x64xf32>, vector<64x286xf32>, vector<64x286xf32> -> vector<64x286xf32>
    %82 = arith.addf %77, %81 : vector<64x286xf32>
    %83 = vector.extract_strided_slice %17 {offsets = [7, 0, 0], sizes = [1, 64, 64], strides = [1, 1, 1]} : vector<9x64x64xf32> to vector<1x64x64xf32>
    %84 = vector.shape_cast %83 : vector<1x64x64xf32> to vector<64x64xf32>
    %85 = vector.extract_strided_slice %46 {offsets = [0, 37], sizes = [64, 286], strides = [1, 1]} : vector<64x324xf32> to vector<64x286xf32>
    %cst_36 = arith.constant dense<0.000000e+00> : vector<64x286xf32>
    %86 = tpu.matmul %84, %85, %cst_36 {dimension_numbers = #tpu.dot_dimension_numbers<[1], [0], [0], [1], [0, 0, 1, 1], [], []>} : vector<64x64xf32>, vector<64x286xf32>, vector<64x286xf32> -> vector<64x286xf32>
    %87 = arith.addf %82, %86 : vector<64x286xf32>
    %88 = vector.extract_strided_slice %17 {offsets = [8, 0, 0], sizes = [1, 64, 64], strides = [1, 1, 1]} : vector<9x64x64xf32> to vector<1x64x64xf32>
    %89 = vector.shape_cast %88 : vector<1x64x64xf32> to vector<64x64xf32>
    %90 = vector.extract_strided_slice %46 {offsets = [0, 38], sizes = [64, 286], strides = [1, 1]} : vector<64x324xf32> to vector<64x286xf32>
    %cst_37 = arith.constant dense<0.000000e+00> : vector<64x286xf32>
    %91 = tpu.matmul %89, %90, %cst_37 {dimension_numbers = #tpu.dot_dimension_numbers<[1], [0], [0], [1], [0, 0, 1, 1], [], []>} : vector<64x64xf32>, vector<64x286xf32>, vector<64x286xf32> -> vector<64x286xf32>
    %92 = arith.addf %87, %91 : vector<64x286xf32>
    %93 = vector.broadcast %20 : vector<64x1xf32> to vector<64x286xf32>
    %94 = arith.addf %92, %93 : vector<64x286xf32>
    %cst_38 = arith.constant 0.000000e+00 : f32
    %95 = vector.broadcast %cst_38 : f32 to vector<64x286xf32>
    %96 = arith.maximumf %94, %95 : vector<64x286xf32>
    %97 = vector.broadcast %21 : vector<1x286xf32> to vector<64x286xf32>
    %98 = arith.mulf %96, %97 : vector<64x286xf32>
    %c0_39 = arith.constant 0 : index
    %c19_40 = arith.constant 19 : index
    %99 = vector.load %arg12[%c0_39, %c19_40] : memref<64x324xf32, #tpu.memory_space<vmem>>, vector<64x286xf32>
    tpu.vector_store %arg12[%c0_39, %c19_40], %98 {strides = array<i32>} : memref<64x324xf32, #tpu.memory_space<vmem>>, vector<64x286xf32>,
    %c0_41 = arith.constant 0 : index
    %c0_42 = arith.constant 0 : index
    %100 = vector.load %arg12[%c0_41, %c0_42] : memref<64x324xf32, #tpu.memory_space<vmem>>, vector<64x324xf32>
    %c0_43 = arith.constant 0 : index
    %c0_44 = arith.constant 0 : index
    %101 = vector.load %arg8[%c0_43, %c0_44] : memref<9x64xf32, #tpu.memory_space<vmem>>, vector<9x64xf32>
    %cst_45 = arith.constant 0.000000e+00 : f32
    %102 = vector.broadcast %cst_45 : f32 to vector<1x286xf32>
    %103 = vector.extract_strided_slice %101 {offsets = [0, 0], sizes = [1, 64], strides = [1, 1]} : vector<9x64xf32> to vector<1x64xf32>
    %104 = vector.extract_strided_slice %100 {offsets = [0, 0], sizes = [64, 286], strides = [1, 1]} : vector<64x324xf32> to vector<64x286xf32>
    %cst_46 = arith.constant dense<0.000000e+00> : vector<1x286xf32>
    %105 = tpu.matmul %103, %104, %cst_46 {dimension_numbers = #tpu.dot_dimension_numbers<[1], [0], [0], [1], [0, 0, 1, 1], [], []>} : vector<1x64xf32>, vector<64x286xf32>, vector<1x286xf32> -> vector<1x286xf32>
    %106 = arith.addf %102, %105 : vector<1x286xf32>
    %107 = vector.extract_strided_slice %101 {offsets = [1, 0], sizes = [1, 64], strides = [1, 1]} : vector<9x64xf32> to vector<1x64xf32>
    %108 = vector.extract_strided_slice %100 {offsets = [0, 1], sizes = [64, 286], strides = [1, 1]} : vector<64x324xf32> to vector<64x286xf32>
    %cst_47 = arith.constant dense<0.000000e+00> : vector<1x286xf32>
    %109 = tpu.matmul %107, %108, %cst_47 {dimension_numbers = #tpu.dot_dimension_numbers<[1], [0], [0], [1], [0, 0, 1, 1], [], []>} : vector<1x64xf32>, vector<64x286xf32>, vector<1x286xf32> -> vector<1x286xf32>
    %110 = arith.addf %106, %109 : vector<1x286xf32>
    %111 = vector.extract_strided_slice %101 {offsets = [2, 0], sizes = [1, 64], strides = [1, 1]} : vector<9x64xf32> to vector<1x64xf32>
    %112 = vector.extract_strided_slice %100 {offsets = [0, 2], sizes = [64, 286], strides = [1, 1]} : vector<64x324xf32> to vector<64x286xf32>
    %cst_48 = arith.constant dense<0.000000e+00> : vector<1x286xf32>
    %113 = tpu.matmul %111, %112, %cst_48 {dimension_numbers = #tpu.dot_dimension_numbers<[1], [0], [0], [1], [0, 0, 1, 1], [], []>} : vector<1x64xf32>, vector<64x286xf32>, vector<1x286xf32> -> vector<1x286xf32>
    %114 = arith.addf %110, %113 : vector<1x286xf32>
    %115 = vector.extract_strided_slice %101 {offsets = [3, 0], sizes = [1, 64], strides = [1, 1]} : vector<9x64xf32> to vector<1x64xf32>
    %116 = vector.extract_strided_slice %100 {offsets = [0, 18], sizes = [64, 286], strides = [1, 1]} : vector<64x324xf32> to vector<64x286xf32>
    %cst_49 = arith.constant dense<0.000000e+00> : vector<1x286xf32>
    %117 = tpu.matmul %115, %116, %cst_49 {dimension_numbers = #tpu.dot_dimension_numbers<[1], [0], [0], [1], [0, 0, 1, 1], [], []>} : vector<1x64xf32>, vector<64x286xf32>, vector<1x286xf32> -> vector<1x286xf32>
    %118 = arith.addf %114, %117 : vector<1x286xf32>
    %119 = vector.extract_strided_slice %101 {offsets = [4, 0], sizes = [1, 64], strides = [1, 1]} : vector<9x64xf32> to vector<1x64xf32>
    %120 = vector.extract_strided_slice %100 {offsets = [0, 19], sizes = [64, 286], strides = [1, 1]} : vector<64x324xf32> to vector<64x286xf32>
    %cst_50 = arith.constant dense<0.000000e+00> : vector<1x286xf32>
    %121 = tpu.matmul %119, %120, %cst_50 {dimension_numbers = #tpu.dot_dimension_numbers<[1], [0], [0], [1], [0, 0, 1, 1], [], []>} : vector<1x64xf32>, vector<64x286xf32>, vector<1x286xf32> -> vector<1x286xf32>
    %122 = arith.addf %118, %121 : vector<1x286xf32>
    %123 = vector.extract_strided_slice %101 {offsets = [5, 0], sizes = [1, 64], strides = [1, 1]} : vector<9x64xf32> to vector<1x64xf32>
    %124 = vector.extract_strided_slice %100 {offsets = [0, 20], sizes = [64, 286], strides = [1, 1]} : vector<64x324xf32> to vector<64x286xf32>
    %cst_51 = arith.constant dense<0.000000e+00> : vector<1x286xf32>
    %125 = tpu.matmul %123, %124, %cst_51 {dimension_numbers = #tpu.dot_dimension_numbers<[1], [0], [0], [1], [0, 0, 1, 1], [], []>} : vector<1x64xf32>, vector<64x286xf32>, vector<1x286xf32> -> vector<1x286xf32>
    %126 = arith.addf %122, %125 : vector<1x286xf32>
    %127 = vector.extract_strided_slice %101 {offsets = [6, 0], sizes = [1, 64], strides = [1, 1]} : vector<9x64xf32> to vector<1x64xf32>
    %128 = vector.extract_strided_slice %100 {offsets = [0, 36], sizes = [64, 286], strides = [1, 1]} : vector<64x324xf32> to vector<64x286xf32>
    %cst_52 = arith.constant dense<0.000000e+00> : vector<1x286xf32>
    %129 = tpu.matmul %127, %128, %cst_52 {dimension_numbers = #tpu.dot_dimension_numbers<[1], [0], [0], [1], [0, 0, 1, 1], [], []>} : vector<1x64xf32>, vector<64x286xf32>, vector<1x286xf32> -> vector<1x286xf32>
    %130 = arith.addf %126, %129 : vector<1x286xf32>
    %131 = vector.extract_strided_slice %101 {offsets = [7, 0], sizes = [1, 64], strides = [1, 1]} : vector<9x64xf32> to vector<1x64xf32>
    %132 = vector.extract_strided_slice %100 {offsets = [0, 37], sizes = [64, 286], strides = [1, 1]} : vector<64x324xf32> to vector<64x286xf32>
    %cst_53 = arith.constant dense<0.000000e+00> : vector<1x286xf32>
    %133 = tpu.matmul %131, %132, %cst_53 {dimension_numbers = #tpu.dot_dimension_numbers<[1], [0], [0], [1], [0, 0, 1, 1], [], []>} : vector<1x64xf32>, vector<64x286xf32>, vector<1x286xf32> -> vector<1x286xf32>
    %134 = arith.addf %130, %133 : vector<1x286xf32>
    %135 = vector.extract_strided_slice %101 {offsets = [8, 0], sizes = [1, 64], strides = [1, 1]} : vector<9x64xf32> to vector<1x64xf32>
    %136 = vector.extract_strided_slice %100 {offsets = [0, 38], sizes = [64, 286], strides = [1, 1]} : vector<64x324xf32> to vector<64x286xf32>
    %cst_54 = arith.constant dense<0.000000e+00> : vector<1x286xf32>
    %137 = tpu.matmul %135, %136, %cst_54 {dimension_numbers = #tpu.dot_dimension_numbers<[1], [0], [0], [1], [0, 0, 1, 1], [], []>} : vector<1x64xf32>, vector<64x286xf32>, vector<1x286xf32> -> vector<1x286xf32>
    %138 = arith.addf %134, %137 : vector<1x286xf32>
    %c0_55 = arith.constant 0 : index
    %c0_56 = arith.constant 0 : index
    %139 = vector.load %arg9[%c0_55, %c0_56] : memref<1x1xf32, #tpu.memory_space<vmem>>, vector<1x1xf32>
    %140 = vector.broadcast %139 : vector<1x1xf32> to vector<1x286xf32>
    %141 = arith.addf %138, %140 : vector<1x286xf32>
    %c0_57 = arith.constant 0 : index
    %c0_58 = arith.constant 0 : index
    %c0_59 = arith.constant 0 : index
    %142 = vector.load %arg11[%c0_57, %c0_58, %c0_59] : memref<1x1x286xf32, #tpu.memory_space<vmem>>, vector<1x1x286xf32>
    %143 = vector.shape_cast %142 : vector<1x1x286xf32> to vector<1x286xf32>
    %144 = vector.shape_cast %141 : vector<1x286xf32> to vector<1x1x286xf32>
    tpu.vector_store %arg11[%c0_57, %c0_58, %c0_59], %144 {strides = array<i32>} : memref<1x1x286xf32, #tpu.memory_space<vmem>>, vector<1x1x286xf32>,
    return
  }
  func.func @transform_0(%arg0: i32) -> (i32, i32, i32) {
    %c0_i32 = arith.constant 0 : i32
    %c0_i32_0 = arith.constant 0 : i32
    %c0_i32_1 = arith.constant 0 : i32
    return %arg0, %c0_i32, %c0_i32_0 : i32, i32, i32
  }
  func.func @transform_1(%arg0: i32) -> (i32, i32, i32) {
    %c0_i32 = arith.constant 0 : i32
    %c0_i32_0 = arith.constant 0 : i32
    %c0_i32_1 = arith.constant 0 : i32
    return %arg0, %c0_i32, %c0_i32_0 : i32, i32, i32
  }
  func.func @transform_2(%arg0: i32) -> (i32, i32, i32) {
    %c0_i32 = arith.constant 0 : i32
    %c0_i32_0 = arith.constant 0 : i32
    %c0_i32_1 = arith.constant 0 : i32
    return %arg0, %c0_i32, %c0_i32_0 : i32, i32, i32
  }
  func.func @transform_3(%arg0: i32) -> (i32, i32) {
    %c0_i32 = arith.constant 0 : i32
    %c0_i32_0 = arith.constant 0 : i32
    %c0_i32_1 = arith.constant 0 : i32
    return %c0_i32, %c0_i32_0 : i32, i32
  }
  func.func @transform_4(%arg0: i32) -> (i32, i32) {
    %c0_i32 = arith.constant 0 : i32
    %c0_i32_0 = arith.constant 0 : i32
    %c0_i32_1 = arith.constant 0 : i32
    return %c0_i32, %c0_i32_0 : i32, i32
  }
  func.func @transform_5(%arg0: i32) -> (i32, i32, i32) {
    %c0_i32 = arith.constant 0 : i32
    %c0_i32_0 = arith.constant 0 : i32
    %c0_i32_1 = arith.constant 0 : i32
    %c0_i32_2 = arith.constant 0 : i32
    return %c0_i32, %c0_i32_0, %c0_i32_1 : i32, i32, i32
  }
  func.func @transform_6(%arg0: i32) -> (i32, i32) {
    %c0_i32 = arith.constant 0 : i32
    %c0_i32_0 = arith.constant 0 : i32
    %c0_i32_1 = arith.constant 0 : i32
    return %c0_i32, %c0_i32_0 : i32, i32
  }
  func.func @transform_7(%arg0: i32) -> (i32, i32) {
    %c0_i32 = arith.constant 0 : i32
    %c0_i32_0 = arith.constant 0 : i32
    %c0_i32_1 = arith.constant 0 : i32
    return %c0_i32, %c0_i32_0 : i32, i32
  }
  func.func @transform_8(%arg0: i32) -> (i32, i32) {
    %c0_i32 = arith.constant 0 : i32
    %c0_i32_0 = arith.constant 0 : i32
    %c0_i32_1 = arith.constant 0 : i32
    return %c0_i32, %c0_i32_0 : i32, i32
  }
  func.func @transform_9(%arg0: i32) -> (i32, i32) {
    %c0_i32 = arith.constant 0 : i32
    %c0_i32_0 = arith.constant 0 : i32
    %c0_i32_1 = arith.constant 0 : i32
    return %c0_i32, %c0_i32_0 : i32, i32
  }
  func.func @transform_10(%arg0: i32) -> (i32, i32, i32) {
    %c0_i32 = arith.constant 0 : i32
    %c0_i32_0 = arith.constant 0 : i32
    %c0_i32_1 = arith.constant 0 : i32
    return %arg0, %c0_i32, %c0_i32_0 : i32, i32, i32
  }
}

module attributes {stable_mosaic.version = 11 : i64} {
  func.func @kernel(%arg0: i32, %arg1: i32, %arg2: memref<2x256xf32, #tpu.memory_space<vmem>>, %arg3: memref<2x256xf32, #tpu.memory_space<vmem>>, %arg4: memref<256x256xbf16, #tpu.memory_space<vmem>>, %arg5: memref<1x2x256xf32, #tpu.memory_space<vmem>>) attributes {dimension_semantics = [#tpu.dimension_semantics<parallel>, #tpu.dimension_semantics<arbitrary>], iteration_bounds = array<i64: 2, 1>, scalar_prefetch = 0 : i64, scratch_operands = 0 : i64, tpu.core_type = #tpu.core_type<tc>, window_params = [{pipeline_mode = #tpu.pipeline_mode<synchronous>, transform_indices = @transform_0, window_bounds = array<i64: 2, 256>}, {transform_indices = @transform_1, window_bounds = array<i64: 2, 256>}, {transform_indices = @transform_2, window_bounds = array<i64: 256, 256>}, {transform_indices = @transform_3, window_bounds = array<i64: 1, 2, 256>}]} {
    %c0_i32 = arith.constant 0 : i32
    %0 = arith.cmpi eq, %arg1, %c0_i32 : i32
    %1 = arith.extui %0 : i1 to i32
    %c0_i32_0 = arith.constant 0 : i32
    %2 = arith.cmpi ne, %1, %c0_i32_0 : i32
    scf.if %2 {
      %cst_13 = arith.constant 0.000000e+00 : f32
      %14 = vector.broadcast %cst_13 : f32 to vector<1x2x256xf32>
      %c0_14 = arith.constant 0 : index
      %c0_15 = arith.constant 0 : index
      %c0_16 = arith.constant 0 : index
      %15 = vector.load %arg5[%c0_14, %c0_15, %c0_16] : memref<1x2x256xf32, #tpu.memory_space<vmem>>, vector<1x2x256xf32>
      tpu.vector_store %arg5[%c0_14, %c0_15, %c0_16], %14 {strides = array<i32>} : memref<1x2x256xf32, #tpu.memory_space<vmem>>, vector<1x2x256xf32>,
    } else {
    }
    %c0 = arith.constant 0 : index
    %c0_1 = arith.constant 0 : index
    %3 = vector.load %arg4[%c0, %c0_1] : memref<256x256xbf16, #tpu.memory_space<vmem>>, vector<256x256xbf16>
    %4 = arith.extf %3 : vector<256x256xbf16> to vector<256x256xf32>
    %c0_2 = arith.constant 0 : index
    %c0_3 = arith.constant 0 : index
    %5 = vector.load %arg2[%c0_2, %c0_3] : memref<2x256xf32, #tpu.memory_space<vmem>>, vector<2x256xf32>
    %cst = arith.constant dense<0.000000e+00> : vector<2x256xf32>
    %6 = tpu.matmul %5, %4, %cst {dimension_numbers = #tpu.dot_dimension_numbers<[1], [1], [0], [0], [0, 0, 1, 0], [], []>} : vector<2x256xf32>, vector<256x256xf32>, vector<2x256xf32> -> vector<2x256xf32>
    %c0_4 = arith.constant 0 : index
    %c0_5 = arith.constant 0 : index
    %7 = vector.load %arg3[%c0_4, %c0_5] : memref<2x256xf32, #tpu.memory_space<vmem>>, vector<2x256xf32>
    %8 = arith.subf %6, %7 : vector<2x256xf32>
    %c0_6 = arith.constant 0 : index
    %c0_7 = arith.constant 0 : index
    %c0_8 = arith.constant 0 : index
    %9 = vector.load %arg5[%c0_6, %c0_7, %c0_8] : memref<1x2x256xf32, #tpu.memory_space<vmem>>, vector<1x2x256xf32>
    %cst_9 = arith.constant dense<0.000000e+00> : vector<2x256xf32>
    %10 = tpu.matmul %8, %4, %cst_9 {dimension_numbers = #tpu.dot_dimension_numbers<[1], [0], [0], [1], [0, 0, 1, 1], [], []>} : vector<2x256xf32>, vector<256x256xf32>, vector<2x256xf32> -> vector<2x256xf32>
    %11 = vector.shape_cast %10 : vector<2x256xf32> to vector<1x2x256xf32>
    %12 = arith.addf %9, %11 : vector<1x2x256xf32>
    %c0_10 = arith.constant 0 : index
    %c0_11 = arith.constant 0 : index
    %c0_12 = arith.constant 0 : index
    %13 = vector.load %arg5[%c0_10, %c0_11, %c0_12] : memref<1x2x256xf32, #tpu.memory_space<vmem>>, vector<1x2x256xf32>
    tpu.vector_store %arg5[%c0_10, %c0_11, %c0_12], %12 {strides = array<i32>} : memref<1x2x256xf32, #tpu.memory_space<vmem>>, vector<1x2x256xf32>,
    return
  }
  func.func @transform_0(%arg0: i32, %arg1: i32) -> (i32, i32) {
    %c0_i32 = arith.constant 0 : i32
    %c0_i32_0 = arith.constant 0 : i32
    %c0_i32_1 = arith.constant 0 : i32
    return %c0_i32, %c0_i32_0 : i32, i32
  }
  func.func @transform_1(%arg0: i32, %arg1: i32) -> (i32, i32) {
    %c1_i32 = arith.constant 1 : i32
    %0 = arith.muli %arg0, %c1_i32 : i32
    %1 = arith.addi %0, %arg1 : i32
    %c0_i32 = arith.constant 0 : i32
    %c0_i32_0 = arith.constant 0 : i32
    return %c0_i32, %1 : i32, i32
  }
  func.func @transform_2(%arg0: i32, %arg1: i32) -> (i32, i32) {
    %c1_i32 = arith.constant 1 : i32
    %0 = arith.muli %arg0, %c1_i32 : i32
    %1 = arith.addi %0, %arg1 : i32
    %c0_i32 = arith.constant 0 : i32
    %c0_i32_0 = arith.constant 0 : i32
    return %1, %c0_i32 : i32, i32
  }
  func.func @transform_3(%arg0: i32, %arg1: i32) -> (i32, i32, i32) {
    %c0_i32 = arith.constant 0 : i32
    %c0_i32_0 = arith.constant 0 : i32
    %c0_i32_1 = arith.constant 0 : i32
    return %arg0, %c0_i32, %c0_i32_0 : i32, i32, i32
  }
}

module attributes {stable_mosaic.version = 11 : i64} {
  func.func @kernel(%arg0: memref<2x256xf32, #tpu.memory_space<vmem>>, %arg1: memref<2x2x256xf32, #tpu.memory_space<vmem>>, %arg2: memref<2x256xf32, #tpu.memory_space<vmem>>, %arg3: memref<2x1xf32, #tpu.memory_space<vmem>>, %arg4: memref<2x1xf32, #tpu.memory_space<vmem>>, %arg5: memref<2x1xf32, #tpu.memory_space<vmem>>, %arg6: memref<2x256xf32, #tpu.memory_space<vmem>>) attributes {dimension_semantics = [], scalar_prefetch = 0 : i64, scratch_operands = 0 : i64, tpu.core_type = #tpu.core_type<tc>} {
    %c0 = arith.constant 0 : index
    %c0_0 = arith.constant 0 : index
    %c0_1 = arith.constant 0 : index
    %0 = vector.load %arg1[%c0, %c0_0, %c0_1] : memref<2x2x256xf32, #tpu.memory_space<vmem>>, vector<2x2x256xf32>
    %cst = arith.constant dense<0.000000e+00> : vector<2x256xf32>
    %1 = vector.multi_reduction <add>, %0, %cst [0] : vector<2x2x256xf32> to vector<2x256xf32>
    %c0_2 = arith.constant 0 : index
    %c0_3 = arith.constant 0 : index
    %2 = vector.load %arg0[%c0_2, %c0_3] : memref<2x256xf32, #tpu.memory_space<vmem>>, vector<2x256xf32>
    %c0_4 = arith.constant 0 : index
    %c0_5 = arith.constant 0 : index
    %3 = vector.load %arg3[%c0_4, %c0_5] : memref<2x1xf32, #tpu.memory_space<vmem>>, vector<2x1xf32>
    %4 = vector.broadcast %3 : vector<2x1xf32> to vector<2x256xf32>
    %5 = arith.mulf %4, %1 : vector<2x256xf32>
    %6 = arith.subf %2, %5 : vector<2x256xf32>
    %c0_6 = arith.constant 0 : index
    %c0_7 = arith.constant 0 : index
    %7 = vector.load %arg4[%c0_6, %c0_7] : memref<2x1xf32, #tpu.memory_space<vmem>>, vector<2x1xf32>
    %c0_8 = arith.constant 0 : index
    %c0_9 = arith.constant 0 : index
    %8 = vector.load %arg2[%c0_8, %c0_9] : memref<2x256xf32, #tpu.memory_space<vmem>>, vector<2x256xf32>
    %9 = vector.broadcast %7 : vector<2x1xf32> to vector<2x256xf32>
    %10 = arith.mulf %9, %8 : vector<2x256xf32>
    %c0_10 = arith.constant 0 : index
    %c0_11 = arith.constant 0 : index
    %11 = vector.load %arg5[%c0_10, %c0_11] : memref<2x1xf32, #tpu.memory_space<vmem>>, vector<2x1xf32>
    %12 = vector.broadcast %11 : vector<2x1xf32> to vector<2x256xf32>
    %13 = arith.addf %10, %12 : vector<2x256xf32>
    %14 = arith.addf %6, %13 : vector<2x256xf32>
    %cst_12 = arith.constant 0.000000e+00 : f32
    %15 = vector.broadcast %cst_12 : f32 to vector<2x256xf32>
    %16 = arith.maximumf %14, %15 : vector<2x256xf32>
    %c0_13 = arith.constant 0 : index
    %c0_14 = arith.constant 0 : index
    %17 = vector.load %arg6[%c0_13, %c0_14] : memref<2x256xf32, #tpu.memory_space<vmem>>, vector<2x256xf32>
    tpu.vector_store %arg6[%c0_13, %c0_14], %16 {strides = array<i32>} : memref<2x256xf32, #tpu.memory_space<vmem>>, vector<2x256xf32>,
    return
  }
}

</mosaic_0001>

<bundles_post_ra>
// kernel: learn_forward.7
= control target key start
LH: loop header
LB: loop body
LE: loop exit
PB: predicated region body
PF: predicated region fallthrough
CT: control target
= control target key end

     0   :  { %vm45_vm0 = vcmask 1046528   ;;  %vm41_vm1 = vcmask 56320   ;;  %v1341_v2 = vmov 0.0   ;;  %vm932_vm2 = vcmask 1041408   ;;  %s2398_s1 = inlined_call_operand.vmem [shape: f32[7,256], index: 1, kind: input, shape index: {}]   ;;  %s2399_s0 = inlined_call_operand.vmem [shape: f32[2,7], index: 0, kind: input, shape index: {}]   ;;  %s2400_s3 = inlined_call_operand.vmem [shape: f32[256,512], index: 3, kind: input, shape index: {}]   ;;  %s2401_s5 = inlined_call_operand.vmem [shape: f32[512,260], index: 5, kind: input, shape index: {}]   ;;  %s2402_s2 = inlined_call_operand.vmem [shape: f32[1,256], index: 2, kind: input, shape index: {}]   ;;  %s2403_s4 = inlined_call_operand.vmem [shape: f32[1,512], index: 4, kind: input, shape index: {}]   ;;  %s2404_s6 = inlined_call_operand.vmem [shape: f32[1,260], index: 6, kind: input, shape index: {}]   ;;  %s2405_s7 = inlined_call_operand.vmem [shape: f32[2,260], index: 7, kind: output, shape index: {}]  }
   0x1   :  { %v28_v0 = vld [vmem:[%s2398_s1 + $0x8] sm:$0x7f]  ;;  %v27_v1 = vld [vmem:[%s2398_s1] sm:$0x7f]  ;;  %116 = vmatprep.mubr.f32.mxu0 %v1341_v2  ;;  %v128_v6 = vld [vmem:[%s2400_s3 + $0x18] sm:$0xff]  ;;  %vm933_vm3 = vcmask 1043458  }
   0x2   :  { %v26_v3 = vld [vmem:[%s2399_s0] sm:$0x3]  ;;  %942 = vmatprep.subr.msk.mxu0 %vm45_vm0, %v28_v0  ;;  %v126_v4 = vld [vmem:[%s2400_s3 + $0x8] sm:$0xff]  ;;  %v132_v8 = vld [vmem:[%s2400_s3 + $0x38] sm:$0xff]  ;;  %vm935_vm5 = vcmask 29700  }
   0x3   :  { %v130_v5 = vld [vmem:[%s2400_s3 + $0x28] sm:$0xff]  ;;  %943 = vmatpush1.msk.msra.mxu0 %vm45_vm0, %v27_v1  ;;  %v125_v9 = vld [vmem:[%s2400_s3] sm:$0xff]  ;;  %v1079_v11 = vpack.c.bf16 %v132_v8, %v128_v6  ;;  %v127_v13 = vld [vmem:[%s2400_s3 + $0x10] sm:$0xff] }
   0x4   :  { %v1015_v7 = vpack.c.bf16 %v130_v5, %v126_v4  ;;  %v129_v10 = vld [vmem:[%s2400_s3 + $0x20] sm:$0xff]  ;;  %944 = vmatmul.mubr.msk.f32.vlgmr.msra.gmra.mrb[0].mxu0 %vm41_vm1, %v26_v3  ;;  %v131_v14 = vld [vmem:[%s2400_s3 + $0x30] sm:$0xff]  ;;  %v134_v15 = vld [vmem:[%s2400_s3 + $0x48] sm:$0xff] }
   0x5   :  { %v1017_v12 = vpack.c.bf16 %v129_v10, %v125_v9  ;;  %v1081_v16 = vpack.c.bf16 %v131_v14, %v127_v13  ;;  %v138_v17 = vld [vmem:[%s2400_s3 + $0x68] sm:$0xff]  ;;  %v136_v18 = vld [vmem:[%s2400_s3 + $0x58] sm:$0xff]  ;;  %1080 = vmatprep.subr.bf16.mxu0 %v1079_v11  ;;  %v133_v22 = vld [vmem:[%s2400_s3 + $0x40] sm:$0xff] }
   0x6   :  { %1016 = vmatprep.subr.bf16.mxu1 %v1015_v7  ;;  %v140_v19 = vld [vmem:[%s2400_s3 + $0x78] sm:$0xff]  ;;  %v1019_v20 = vpack.c.bf16 %v138_v17, %v134_v15  ;;  %v137_v23 = vld [vmem:[%s2400_s3 + $0x60] sm:$0xff]  ;;  %v135_v24 = vld [vmem:[%s2400_s3 + $0x50] sm:$0xff] }
   0x7   :  { %1018 = vmatpush1.bf16.msra.mxu1 %v1017_v12  ;;  %v1083_v21 = vpack.c.bf16 %v140_v19, %v136_v18  ;;  %1082 = vmatpush1.bf16.msra.mxu0 %v1081_v16  ;;  %v1021_v25 = vpack.c.bf16 %v137_v23, %v133_v22  ;;  %v139_v26 = vld [vmem:[%s2400_s3 + $0x70] sm:$0xff]  ;;  %v142_v27 = vld [vmem:[%s2400_s3 + $0x88] sm:$0xff]  ;;  %v144_v31 = vld [vmem:[%s2400_s3 + $0x98] sm:$0xff] }
   0x8   :  { %v146_v28 = vld [vmem:[%s2400_s3 + $0xa8] sm:$0xff]  ;;  %1020 = vmatprep.subr.bf16.mxu1 %v1019_v20  ;;  %v1085_v29 = vpack.c.bf16 %v139_v26, %v135_v24  ;;  %v148_v32 = vld [vmem:[%s2400_s3 + $0xb8] sm:$0xff]  ;;  %v141_v33 = vld [vmem:[%s2400_s3 + $0x80] sm:$0xff] }
   0x9   :  { %1084 = vmatprep.subr.bf16.mxu0 %v1083_v21  ;;  %v1023_v30 = vpack.c.bf16 %v146_v28, %v142_v27  ;;  %v1087_v34 = vpack.c.bf16 %v148_v32, %v144_v31  ;;  %v145_v35 = vld [vmem:[%s2400_s3 + $0xa0] sm:$0xff]  ;;  %v143_v36 = vld [vmem:[%s2400_s3 + $0x90] sm:$0xff]  ;;  %v150_v39 = vld [vmem:[%s2400_s3 + $0xc8] sm:$0xff] }
   0xa   :  { %v147_v37 = vld [vmem:[%s2400_s3 + $0xb0] sm:$0xff]  ;;  %v1025_v38 = vpack.c.bf16 %v145_v35, %v141_v33  ;;  %v154_v40 = vld [vmem:[%s2400_s3 + $0xe8] sm:$0xff]  ;;  %v152_v41 = vld [vmem:[%s2400_s3 + $0xd8] sm:$0xff] }
   0xb   :  { %1022 = vmatpush1.bf16.msra.mxu1 %v1021_v25  ;;  %1086 = vmatpush1.bf16.msra.mxu0 %v1085_v29  ;;  %v1089_v42 = vpack.c.bf16 %v147_v37, %v143_v36  ;;  %v1027_v43 = vpack.c.bf16 %v154_v40, %v150_v39  ;;  %v156_v44 = vld [vmem:[%s2400_s3 + $0xf8] sm:$0xff]  ;;  %v149_v45 = vld [vmem:[%s2400_s3 + $0xc0] sm:$0xff]  ;;  %v151_v48 = vld [vmem:[%s2400_s3 + $0xd0] sm:$0xff] }
   0xc   :  { %1024 = vmatprep.subr.bf16.mxu1 %v1023_v30  ;;  %v153_v46 = vld [vmem:[%s2400_s3 + $0xe0] sm:$0xff]  ;;  %1088 = vmatprep.subr.bf16.mxu0 %v1087_v34  ;;  %v1091_v47 = vpack.c.bf16 %v156_v44, %v152_v41  ;;  %v155_v49 = vld [vmem:[%s2400_s3 + $0xf0] sm:$0xff]  ;;  %v158_v50 = vld [vmem:[%s2400_s3 + $0x108] sm:$0xff] }
   0xd   :  { %v162_v51 = vld [vmem:[%s2400_s3 + $0x128] sm:$0xff]  ;;  %v160_v52 = vld [vmem:[%s2400_s3 + $0x118] sm:$0xff]  ;;  %v1029_v54 = vpack.c.bf16 %v153_v46, %v149_v45  ;;  %v1093_v55 = vpack.c.bf16 %v155_v49, %v151_v48  ;;  %v157_v57 = vld [vmem:[%s2400_s3 + $0x100] sm:$0xff] }
   0xe   :  { %v164_v53 = vld [vmem:[%s2400_s3 + $0x138] sm:$0xff]  ;;  %v1031_v56 = vpack.c.bf16 %v162_v51, %v158_v50  ;;  %v161_v58 = vld [vmem:[%s2400_s3 + $0x120] sm:$0xff]  ;;  %v159_v59 = vld [vmem:[%s2400_s3 + $0x110] sm:$0xff] }
   0xf   :  { %1026 = vmatpush1.bf16.msra.mxu1 %v1025_v38  ;;  %1090 = vmatpush1.bf16.msra.mxu0 %v1089_v42  ;;  %v1095_v60 = vpack.c.bf16 %v164_v53, %v160_v52  ;;  %v163_v61 = vld [vmem:[%s2400_s3 + $0x130] sm:$0xff]  ;;  %v166_v62 = vld [vmem:[%s2400_s3 + $0x148] sm:$0xff]  ;;  %v168_v0 = vld [vmem:[%s2400_s3 + $0x158] sm:$0xff]  ;;  %v1033_v2 = vpack.c.bf16 %v161_v58, %v157_v57 }
  0x10   :  { %1028 = vmatprep.subr.bf16.mxu1 %v1027_v43  ;;  %1092 = vmatprep.subr.bf16.mxu0 %v1091_v47  ;;  %v170_v63 = vld [vmem:[%s2400_s3 + $0x168] sm:$0xff]  ;;  %v172_v1 = vld [vmem:[%s2400_s3 + $0x178] sm:$0xff]  ;;  %v1097_v3 = vpack.c.bf16 %v163_v61, %v159_v59  ;;  %v165_v5 = vld [vmem:[%s2400_s3 + $0x140] sm:$0xff] }
  0x11   :  { %v1035_v4 = vpack.c.bf16 %v170_v63, %v166_v62  ;;  %v169_v6 = vld [vmem:[%s2400_s3 + $0x160] sm:$0xff]  ;;  %v167_v7 = vld [vmem:[%s2400_s3 + $0x150] sm:$0xff]  ;;  %v1099_v8 = vpack.c.bf16 %v172_v1, %v168_v0  ;;  %v174_v10 = vld [vmem:[%s2400_s3 + $0x188] sm:$0xff] }
  0x12   :  { %v171_v9 = vld [vmem:[%s2400_s3 + $0x170] sm:$0xff]  ;;  %v178_v11 = vld [vmem:[%s2400_s3 + $0x1a8] sm:$0xff]  ;;  %v176_v12 = vld [vmem:[%s2400_s3 + $0x198] sm:$0xff]  ;;  %v1037_v14 = vpack.c.bf16 %v169_v6, %v165_v5 }
  0x13   :  { %1030 = vmatpush1.bf16.msra.mxu1 %v1029_v54  ;;  %1094 = vmatpush1.bf16.msra.mxu0 %v1093_v55  ;;  %v180_v13 = vld [vmem:[%s2400_s3 + $0x1b8] sm:$0xff]  ;;  %v1101_v15 = vpack.c.bf16 %v171_v9, %v167_v7  ;;  %v1039_v16 = vpack.c.bf16 %v178_v11, %v174_v10  ;;  %v173_v17 = vld [vmem:[%s2400_s3 + $0x180] sm:$0xff]  ;;  %v175_v19 = vld [vmem:[%s2400_s3 + $0x190] sm:$0xff] }
  0x14   :  { %1032 = vmatprep.subr.bf16.mxu1 %v1031_v56  ;;  %1096 = vmatprep.subr.bf16.mxu0 %v1095_v60  ;;  %v177_v18 = vld [vmem:[%s2400_s3 + $0x1a0] sm:$0xff]  ;;  %v1103_v20 = vpack.c.bf16 %v180_v13, %v176_v12  ;;  %v179_v21 = vld [vmem:[%s2400_s3 + $0x1b0] sm:$0xff]  ;;  %v182_v22 = vld [vmem:[%s2400_s3 + $0x1c8] sm:$0xff] }
  0x15   :  { %v186_v23 = vld [vmem:[%s2400_s3 + $0x1e8] sm:$0xff]  ;;  %v184_v24 = vld [vmem:[%s2400_s3 + $0x1d8] sm:$0xff]  ;;  %v1041_v26 = vpack.c.bf16 %v177_v18, %v173_v17  ;;  %v1105_v27 = vpack.c.bf16 %v179_v21, %v175_v19  ;;  %v181_v29 = vld [vmem:[%s2400_s3 + $0x1c0] sm:$0xff] }
  0x16   :  { %v188_v25 = vld [vmem:[%s2400_s3 + $0x1f8] sm:$0xff]  ;;  %v1043_v28 = vpack.c.bf16 %v186_v23, %v182_v22  ;;  %v185_v30 = vld [vmem:[%s2400_s3 + $0x1e0] sm:$0xff]  ;;  %v183_v31 = vld [vmem:[%s2400_s3 + $0x1d0] sm:$0xff] }
  0x17   :  { %1034 = vmatpush1.bf16.msra.mxu1 %v1033_v2  ;;  %1098 = vmatpush1.bf16.msra.mxu0 %v1097_v3  ;;  %v1107_v32 = vpack.c.bf16 %v188_v25, %v184_v24  ;;  %v187_v33 = vld [vmem:[%s2400_s3 + $0x1f0] sm:$0xff]  ;;  %v190_v34 = vld [vmem:[%s2400_s3 + $0x208] sm:$0xff]  ;;  %v192_v36 = vld [vmem:[%s2400_s3 + $0x218] sm:$0xff]  ;;  %v1045_v38 = vpack.c.bf16 %v185_v30, %v181_v29 }
  0x18   :  { %1036 = vmatprep.subr.bf16.mxu1 %v1035_v4  ;;  %1100 = vmatprep.subr.bf16.mxu0 %v1099_v8  ;;  %v194_v35 = vld [vmem:[%s2400_s3 + $0x228] sm:$0xff]  ;;  %v196_v37 = vld [vmem:[%s2400_s3 + $0x238] sm:$0xff]  ;;  %v1109_v39 = vpack.c.bf16 %v187_v33, %v183_v31  ;;  %v189_v41 = vld [vmem:[%s2400_s3 + $0x200] sm:$0xff] }
  0x19   :  { %v1047_v40 = vpack.c.bf16 %v194_v35, %v190_v34  ;;  %v193_v42 = vld [vmem:[%s2400_s3 + $0x220] sm:$0xff]  ;;  %v191_v43 = vld [vmem:[%s2400_s3 + $0x210] sm:$0xff]  ;;  %v1111_v44 = vpack.c.bf16 %v196_v37, %v192_v36  ;;  %v198_v46 = vld [vmem:[%s2400_s3 + $0x248] sm:$0xff] }
  0x1a   :  { %v195_v45 = vld [vmem:[%s2400_s3 + $0x230] sm:$0xff]  ;;  %v202_v47 = vld [vmem:[%s2400_s3 + $0x268] sm:$0xff]  ;;  %v200_v48 = vld [vmem:[%s2400_s3 + $0x258] sm:$0xff]  ;;  %v1049_v50 = vpack.c.bf16 %v193_v42, %v189_v41 }
  0x1b   :  { %1038 = vmatpush1.bf16.msra.mxu1 %v1037_v14  ;;  %1102 = vmatpush1.bf16.msra.mxu0 %v1101_v15  ;;  %v204_v49 = vld [vmem:[%s2400_s3 + $0x278] sm:$0xff]  ;;  %v1113_v51 = vpack.c.bf16 %v195_v45, %v191_v43  ;;  %v1051_v52 = vpack.c.bf16 %v202_v47, %v198_v46  ;;  %v197_v53 = vld [vmem:[%s2400_s3 + $0x240] sm:$0xff]  ;;  %v199_v55 = vld [vmem:[%s2400_s3 + $0x250] sm:$0xff] }
  0x1c   :  { %1040 = vmatprep.subr.bf16.mxu1 %v1039_v16  ;;  %1104 = vmatprep.subr.bf16.mxu0 %v1103_v20  ;;  %v201_v54 = vld [vmem:[%s2400_s3 + $0x260] sm:$0xff]  ;;  %v1115_v56 = vpack.c.bf16 %v204_v49, %v200_v48  ;;  %v203_v57 = vld [vmem:[%s2400_s3 + $0x270] sm:$0xff]  ;;  %v206_v58 = vld [vmem:[%s2400_s3 + $0x288] sm:$0xff] }
  0x1d   :  { %v210_v59 = vld [vmem:[%s2400_s3 + $0x2a8] sm:$0xff]  ;;  %v208_v60 = vld [vmem:[%s2400_s3 + $0x298] sm:$0xff]  ;;  %v1053_v62 = vpack.c.bf16 %v201_v54, %v197_v53  ;;  %v1117_v63 = vpack.c.bf16 %v203_v57, %v199_v55  ;;  %v205_v1 = vld [vmem:[%s2400_s3 + $0x280] sm:$0xff] }
  0x1e   :  { %v212_v61 = vld [vmem:[%s2400_s3 + $0x2b8] sm:$0xff]  ;;  %v1055_v0 = vpack.c.bf16 %v210_v59, %v206_v58  ;;  %v209_v2 = vld [vmem:[%s2400_s3 + $0x2a0] sm:$0xff]  ;;  %v207_v3 = vld [vmem:[%s2400_s3 + $0x290] sm:$0xff] }
  0x1f   :  { %1042 = vmatpush1.bf16.msra.mxu1 %v1041_v26  ;;  %1106 = vmatpush1.bf16.msra.mxu0 %v1105_v27  ;;  %v1119_v4 = vpack.c.bf16 %v212_v61, %v208_v60  ;;  %v211_v5 = vld [vmem:[%s2400_s3 + $0x2b0] sm:$0xff]  ;;  %v214_v6 = vld [vmem:[%s2400_s3 + $0x2c8] sm:$0xff]  ;;  %v216_v8 = vld [vmem:[%s2400_s3 + $0x2d8] sm:$0xff]  ;;  %v1057_v10 = vpack.c.bf16 %v209_v2, %v205_v1 }
  0x20   :  { %1044 = vmatprep.subr.bf16.mxu1 %v1043_v28  ;;  %1108 = vmatprep.subr.bf16.mxu0 %v1107_v32  ;;  %v218_v7 = vld [vmem:[%s2400_s3 + $0x2e8] sm:$0xff]  ;;  %v220_v9 = vld [vmem:[%s2400_s3 + $0x2f8] sm:$0xff]  ;;  %v1121_v11 = vpack.c.bf16 %v211_v5, %v207_v3  ;;  %v213_v13 = vld [vmem:[%s2400_s3 + $0x2c0] sm:$0xff] }
  0x21   :  { %v1059_v12 = vpack.c.bf16 %v218_v7, %v214_v6  ;;  %v217_v14 = vld [vmem:[%s2400_s3 + $0x2e0] sm:$0xff]  ;;  %v215_v15 = vld [vmem:[%s2400_s3 + $0x2d0] sm:$0xff]  ;;  %v1123_v16 = vpack.c.bf16 %v220_v9, %v216_v8  ;;  %v222_v18 = vld [vmem:[%s2400_s3 + $0x308] sm:$0xff] }
  0x22   :  { %v219_v17 = vld [vmem:[%s2400_s3 + $0x2f0] sm:$0xff]  ;;  %v226_v19 = vld [vmem:[%s2400_s3 + $0x328] sm:$0xff]  ;;  %v224_v20 = vld [vmem:[%s2400_s3 + $0x318] sm:$0xff]  ;;  %v1061_v22 = vpack.c.bf16 %v217_v14, %v213_v13 }
  0x23   :  { %1046 = vmatpush1.bf16.msra.mxu1 %v1045_v38  ;;  %1110 = vmatpush1.bf16.msra.mxu0 %v1109_v39  ;;  %v228_v21 = vld [vmem:[%s2400_s3 + $0x338] sm:$0xff]  ;;  %v1125_v23 = vpack.c.bf16 %v219_v17, %v215_v15  ;;  %v1063_v24 = vpack.c.bf16 %v226_v19, %v222_v18  ;;  %v221_v25 = vld [vmem:[%s2400_s3 + $0x300] sm:$0xff]  ;;  %v223_v27 = vld [vmem:[%s2400_s3 + $0x310] sm:$0xff] }
  0x24   :  { %1048 = vmatprep.subr.bf16.mxu1 %v1047_v40  ;;  %1112 = vmatprep.subr.bf16.mxu0 %v1111_v44  ;;  %v225_v26 = vld [vmem:[%s2400_s3 + $0x320] sm:$0xff]  ;;  %v1127_v28 = vpack.c.bf16 %v228_v21, %v224_v20  ;;  %v227_v29 = vld [vmem:[%s2400_s3 + $0x330] sm:$0xff]  ;;  %v230_v30 = vld [vmem:[%s2400_s3 + $0x348] sm:$0xff] }
  0x25   :  { %v234_v31 = vld [vmem:[%s2400_s3 + $0x368] sm:$0xff]  ;;  %v232_v32 = vld [vmem:[%s2400_s3 + $0x358] sm:$0xff]  ;;  %v1065_v34 = vpack.c.bf16 %v225_v26, %v221_v25  ;;  %v1129_v35 = vpack.c.bf16 %v227_v29, %v223_v27  ;;  %v229_v37 = vld [vmem:[%s2400_s3 + $0x340] sm:$0xff] }
  0x26   :  { %v236_v33 = vld [vmem:[%s2400_s3 + $0x378] sm:$0xff]  ;;  %v1067_v36 = vpack.c.bf16 %v234_v31, %v230_v30  ;;  %v233_v38 = vld [vmem:[%s2400_s3 + $0x360] sm:$0xff]  ;;  %v231_v39 = vld [vmem:[%s2400_s3 + $0x350] sm:$0xff] }
  0x27   :  { %1050 = vmatpush1.bf16.msra.mxu1 %v1049_v50  ;;  %1114 = vmatpush1.bf16.msra.mxu0 %v1113_v51  ;;  %v1131_v40 = vpack.c.bf16 %v236_v33, %v232_v32  ;;  %v235_v41 = vld [vmem:[%s2400_s3 + $0x370] sm:$0xff]  ;;  %v238_v42 = vld [vmem:[%s2400_s3 + $0x388] sm:$0xff]  ;;  %v240_v44 = vld [vmem:[%s2400_s3 + $0x398] sm:$0xff]  ;;  %v1069_v46 = vpack.c.bf16 %v233_v38, %v229_v37 }
  0x28   :  { %1052 = vmatprep.subr.bf16.mxu1 %v1051_v52  ;;  %1116 = vmatprep.subr.bf16.mxu0 %v1115_v56  ;;  %v242_v43 = vld [vmem:[%s2400_s3 + $0x3a8] sm:$0xff]  ;;  %v244_v45 = vld [vmem:[%s2400_s3 + $0x3b8] sm:$0xff]  ;;  %v1133_v47 = vpack.c.bf16 %v235_v41, %v231_v39  ;;  %v237_v50 = vld [vmem:[%s2400_s3 + $0x380] sm:$0xff] }
  0x29   :  { %v1071_v48 = vpack.c.bf16 %v242_v43, %v238_v42  ;;  %v1135_v49 = vpack.c.bf16 %v244_v45, %v240_v44  ;;  %v241_v51 = vld [vmem:[%s2400_s3 + $0x3a0] sm:$0xff]  ;;  %v239_v52 = vld [vmem:[%s2400_s3 + $0x390] sm:$0xff]  ;;  %v246_v56 = vld [vmem:[%s2400_s3 + $0x3c8] sm:$0xff] }
  0x2a   :  { %v1073_v53 = vpack.c.bf16 %v241_v51, %v237_v50  ;;  %v243_v54 = vld [vmem:[%s2400_s3 + $0x3b0] sm:$0xff]  ;;  %v250_v57 = vld [vmem:[%s2400_s3 + $0x3e8] sm:$0xff]  ;;  %v248_v58 = vld [vmem:[%s2400_s3 + $0x3d8] sm:$0xff] }
  0x2b   :  { %1054 = vmatpush1.bf16.msra.mxu1 %v1053_v62  ;;  %1118 = vmatpush1.bf16.msra.mxu0 %v1117_v63  ;;  %v1137_v55 = vpack.c.bf16 %v243_v54, %v239_v52  ;;  %v1075_v59 = vpack.c.bf16 %v250_v57, %v246_v56  ;;  %v252_v60 = vld [vmem:[%s2400_s3 + $0x3f8] sm:$0xff]  ;;  %v245_v61 = vld [vmem:[%s2400_s3 + $0x3c0] sm:$0xff]  ;;  %v247_v1 = vld [vmem:[%s2400_s3 + $0x3d0] sm:$0xff] }
  0x2c   :  { %1056 = vmatprep.subr.bf16.mxu1 %v1055_v0  ;;  %1120 = vmatprep.subr.bf16.mxu0 %v1119_v4  ;;  %v249_v62 = vld [vmem:[%s2400_s3 + $0x3e0] sm:$0xff]  ;;  %v1139_v63 = vpack.c.bf16 %v252_v60, %v248_v58  ;;  %v251_v2 = vld [vmem:[%s2400_s3 + $0x3f0] sm:$0xff]  ;;  %v422_v4 = vld [vmem:[%s2401_s5 + $0x8] sm:$0xff] }
  0x2d   :  { %v1077_v0 = vpack.c.bf16 %v249_v62, %v245_v61  ;;  %v1141_v3 = vpack.c.bf16 %v251_v2, %v247_v1  ;;  %v425_v5 = vld [vmem:[%s2401_s5 + $0x20] sm:$0xff]  ;;  %v471_v7 = vld [vmem:[%s2401_s5 + $0x190] sm:$0xff]  ;;  %v474_v8 = vld [vmem:[%s2401_s5 + $0x1a8] sm:$0xff] }
  0x2e   :  { %v1143_v6 = vpack.c.bf16 %v425_v5, %v422_v4  ;;  %v1271_v9 = vpack.c.bf16 %v474_v8, %v471_v7  ;;  %v29_v13 = vld [vmem:[%s2402_s2] sm:$0x3]  ;;  %v424_v19 = vld [vmem:[%s2401_s5 + $0x18] sm:$0xff]  ;;  %v431_v26 = vld [vmem:[%s2401_s5 + $0x50] sm:$0xff] }
  0x2f   :  { %1058 = vmatpush1.bf16.msra.mxu1 %v1057_v10  ;;  %1122 = vmatpush1.bf16.msra.mxu0 %v1121_v11  ;;  %v31_v10 = vlaneseq  ;;  %v421_v18 = vld [vmem:[%s2401_s5] sm:$0xff]  ;;  %v427_v31 = vld [vmem:[%s2401_s5 + $0x30] sm:$0xff]  ;;  %v430_v32 = vld [vmem:[%s2401_s5 + $0x48] sm:$0xff] }
  0x30   :  { %1060 = vmatprep.subr.bf16.mxu1 %v1059_v12  ;;  %1124 = vmatprep.subr.bf16.mxu0 %v1123_v16  ;;  %v477_v27 = vld [vmem:[%s2401_s5 + $0x1c0] sm:$0xff]  ;;  %v1145_v30 = vpack.c.bf16 %v424_v19, %v421_v18  ;;  %v432_v39 = vld [vmem:[%s2401_s5 + $0x58] sm:$0xff]  ;;  %v483_v41 = vld [vmem:[%s2401_s5 + $0x1f0] sm:$0xff]  ;;  %v1149_v43 = vpack.c.bf16 %v430_v32, %v427_v31 }
  0x31   :  { %v1789_v11 = vshrl.u32 %v31_v10, 7  ;;  %v429_v38 = vld [vmem:[%s2401_s5 + $0x40] sm:$0xff]  ;;  %v486_v42 = vld [vmem:[%s2401_s5 + $0x208] sm:$0xff]  ;;  %v436_v45 = vld [vmem:[%s2401_s5 + $0x78] sm:$0xff] }
  0x32   :  { %v433_v44 = vld [vmem:[%s2401_s5 + $0x60] sm:$0xff]  ;;  %v435_v50 = vld [vmem:[%s2401_s5 + $0x70] sm:$0xff]  ;;  %v438_v51 = vld [vmem:[%s2401_s5 + $0x88] sm:$0xff] }
  0x33   :  { %1062 = vmatpush1.bf16.msra.mxu1 %v1061_v22  ;;  %1126 = vmatpush1.bf16.msra.mxu0 %v1125_v23  ;;  %v1792_v12 = vsub.s32 0, %v1789_v11  ;;  %v1798_v14 = vsub.s32 1, %v1789_v11  ;;  %v428_v22 = vld [vmem:[%s2401_s5 + $0x38] sm:$0xff]  ;;  %v423_v23 = vld [vmem:[%s2401_s5 + $0x10] sm:$0xff]  ;;  %v442_v57 = vld [vmem:[%s2401_s5 + $0xa8] sm:$0xff]  ;;  %v1281_v58 = vpack.c.bf16 %v438_v51, %v435_v50 }
  0x34   :  { %1064 = vmatprep.subr.bf16.mxu1 %v1063_v24  ;;  %1128 = vmatprep.subr.bf16.mxu0 %v1127_v28  ;;  %v426_v24 = vld [vmem:[%s2401_s5 + $0x28] sm:$0xff]  ;;  %v480_v28 = vld [vmem:[%s2401_s5 + $0x1d8] sm:$0xff]  ;;  %v443_v52 = vld [vmem:[%s2401_s5 + $0xb0] sm:$0xff] }
  0x35   :  { %v34_v15 = vrot.slane %v29_v13, %v1792_v12  ;;  %v38_v16 = vrot.slane %v29_v13, %v1798_v14  ;;  %v1273_v33 = vpack.c.bf16 %v426_v24, %v423_v23  ;;  %v1275_v37 = vpack.c.bf16 %v480_v28, %v477_v27  ;;  %v492_v54 = vld [vmem:[%s2401_s5 + $0x238] sm:$0xff]  ;;  %v439_v56 = vld [vmem:[%s2401_s5 + $0x90] sm:$0xff]  ;;  %v446_v60 = vld [vmem:[%s2401_s5 + $0xc8] sm:$0xff] }
  0x36   :  { %v441_v62 = vld [vmem:[%s2401_s5 + $0xa0] sm:$0xff]  ;;  %v495_v1 = vld [vmem:[%s2401_s5 + $0x250] sm:$0xff]  ;;  %v498_v2 = vld [vmem:[%s2401_s5 + $0x268] sm:$0xff] }
  0x37   :  { %1066 = vmatpush1.bf16.msra.mxu1 %v1065_v34  ;;  %1130 = vmatpush1.bf16.msra.mxu0 %v1129_v35  ;;  %v1147_v35 = vpack.c.bf16 %v431_v26, %v428_v22  ;;  %v445_v4 = vld [vmem:[%s2401_s5 + $0xc0] sm:$0xff]  ;;  %v448_v5 = vld [vmem:[%s2401_s5 + $0xd8] sm:$0xff]  ;;  %v447_v10 = vld [vmem:[%s2401_s5 + $0xd0] sm:$0xff] }
  0x38   :  { %1068 = vmatprep.subr.bf16.mxu1 %v1067_v36  ;;  %1132 = vmatprep.subr.bf16.mxu0 %v1131_v40  ;;  %v434_v36 = vld [vmem:[%s2401_s5 + $0x68] sm:$0xff]  ;;  %v437_v40 = vld [vmem:[%s2401_s5 + $0x80] sm:$0xff]  ;;  %v452_v8 = vld [vmem:[%s2401_s5 + $0xf8] sm:$0xff]  ;;  %v1161_v18 = vpack.c.bf16 %v448_v5, %v445_v4 }
  0x39   :  { %v450_v13 = vld [vmem:[%s2401_s5 + $0xe8] sm:$0xff]  ;;  %v451_v19 = vld [vmem:[%s2401_s5 + $0xf0] sm:$0xff]  ;;  %v456_v26 = vld [vmem:[%s2401_s5 + $0x118] sm:$0xff] }
  0x3a   :  { %v458_v23 = vld [vmem:[%s2401_s5 + $0x128] sm:$0xff]  ;;  %v461_v27 = vld [vmem:[%s2401_s5 + $0x140] sm:$0xff]  ;;  %v507_v28 = vld [vmem:[%s2401_s5 + $0x2b0] sm:$0xff] }
  0x3b   :  { %1070 = vmatpush1.bf16.msra.mxu1 %v1069_v46  ;;  %1134 = vmatpush1.bf16.msra.mxu0 %v1133_v47  ;;  %v1277_v46 = vpack.c.bf16 %v432_v39, %v429_v38  ;;  %v1151_v47 = vpack.c.bf16 %v437_v40, %v434_v36  ;;  %v457_v31 = vld [vmem:[%s2401_s5 + $0x120] sm:$0xff]  ;;  %v459_v36 = vld [vmem:[%s2401_s5 + $0x130] sm:$0xff]  ;;  %v464_v38 = vld [vmem:[%s2401_s5 + $0x158] sm:$0xff] }
  0x3c   :  { %1072 = vmatprep.subr.bf16.mxu1 %v1071_v48  ;;  %1136 = vmatprep.subr.bf16.mxu0 %v1135_v49  ;;  %v440_v48 = vld [vmem:[%s2401_s5 + $0x98] sm:$0xff]  ;;  %v1279_v49 = vpack.c.bf16 %v486_v42, %v483_v41  ;;  %v467_v39 = vld [vmem:[%s2401_s5 + $0x170] sm:$0xff]  ;;  %v490_v4 = vld [vmem:[%s2401_s5 + $0x228] sm:$0xff] }
  0x3d   :  { %v1171_v42 = vpack.c.bf16 %v467_v39, %v464_v38  ;;  %v472_v50 = vld [vmem:[%s2401_s5 + $0x198] sm:$0xff]  ;;  %v494_v5 = vld [vmem:[%s2401_s5 + $0x248] sm:$0xff]  ;;  %vm934_vm4 = vmor %vm933_vm3, %vm932_vm2 }
  0x3e   :  { %v476_v51 = vld [vmem:[%s2401_s5 + $0x1b8] sm:$0xff]  ;;  %v518_v39 = vld [vmem:[%s2401_s5 + $0x308] sm:$0xff]  ;;  %vm936_vm6 = vmor %vm935_vm5, %vm934_vm4 }
  0x3f   :  { %1074 = vmatpush1.bf16.msra.mxu1 %v1073_v53  ;;  %1138 = vmatpush1.bf16.msra.mxu0 %v1137_v55  ;;  %v489_v53 = vld [vmem:[%s2401_s5 + $0x220] sm:$0xff]  ;;  %v1153_v55 = vpack.c.bf16 %v436_v45, %v433_v44  ;;  %v466_v44 = vld [vmem:[%s2401_s5 + $0x168] sm:$0xff] }
  0x40   :  { %1076 = vmatprep.subr.bf16.mxu1 %v1075_v59  ;;  %1140 = vmatprep.subr.bf16.mxu0 %v1139_v63  ;;  %v1155_v59 = vpack.c.bf16 %v443_v52, %v440_v48  ;;  %v1283_v61 = vpack.c.bf16 %v492_v54, %v489_v53  ;;  %v444_v63 = vld [vmem:[%s2401_s5 + $0xb8] sm:$0xff]  ;;  %v470_v45 = vld [vmem:[%s2401_s5 + $0x188] sm:$0xff]  ;;  %v479_v52 = vld [vmem:[%s2401_s5 + $0x1d0] sm:$0xff] }
  0x41   :  { %v1179_v54 = vpack.c.bf16 %v479_v52, %v476_v51  ;;  %v517_v52 = vld [vmem:[%s2401_s5 + $0x300] sm:$0xff] }
  0x43   :  { %1078 = vmatpush1.bf16.msra.mxu1 %v1077_v0  ;;  %1142 = vmatpush1.bf16.msra.mxu0 %v1141_v3  ;;  %v449_v0 = vld [vmem:[%s2401_s5 + $0xe0] sm:$0xff]  ;;  %v1157_v3 = vpack.c.bf16 %v442_v57, %v439_v56  ;;  %v478_v56 = vld [vmem:[%s2401_s5 + $0x1c8] sm:$0xff] }
  0x44   :  { %1144 = vmatprep.subr.bf16.mxu1 %v1143_v6  ;;  %1272 = vmatprep.subr.bf16.mxu0 %v1271_v9  ;;  %v1285_v6 = vpack.c.bf16 %v444_v63, %v441_v62  ;;  %v1159_v7 = vpack.c.bf16 %v449_v0, %v446_v60  ;;  %v1287_v9 = vpack.c.bf16 %v498_v2, %v495_v1  ;;  %v482_v57 = vld [vmem:[%s2401_s5 + $0x1e8] sm:$0xff]  ;;  %v484_v62 = vld [vmem:[%s2401_s5 + $0x1f8] sm:$0xff]  ;;  %v491_v0 = vld [vmem:[%s2401_s5 + $0x230] sm:$0xff] }
  0x45   :  { %v488_v63 = vld [vmem:[%s2401_s5 + $0x218] sm:$0xff] }
  0x46   :  { %v1187_v2 = vpack.c.bf16 %v491_v0, %v488_v63  ;;  %v573_v63 = vld [vmem:[%s2401_s5 + $0x4c0] sm:$0xff]  ;;  %v576_v0 = vld [vmem:[%s2401_s5 + $0x4d8] sm:$0xff] }
  0xd7   :  { %v118_v17 = vpop.f32.mrb[0].mxu0 }
  0xd8   :  { %v119_v20 = vadd.f32 %v118_v17, %v34_v15  ;;  %v120_v21 = vpop.f32.mrb[1].mxu0  ;;  %v455_v15 = vld [vmem:[%s2401_s5 + $0x110] sm:$0xff]  ;;  %v504_v17 = vld [vmem:[%s2401_s5 + $0x298] sm:$0xff] }
  0xd9   :  { %v121_v25 = vadd.f32 %v120_v21, %v38_v16  ;;  %v501_v16 = vld [vmem:[%s2401_s5 + $0x280] sm:$0xff]  ;;  %v1289_v21 = vpack.c.bf16 %v450_v13, %v447_v10  ;;  %v1163_v22 = vpack.c.bf16 %v455_v15, %v452_v8  ;;  %v496_v10 = vld [vmem:[%s2401_s5 + $0x258] sm:$0xff]  ;;  %v503_v15 = vld [vmem:[%s2401_s5 + $0x290] sm:$0xff] }
  0xda   :  { %v123_v34 = vmax.f32 %v119_v20, 0.0  ;;  %v454_v20 = vld [vmem:[%s2401_s5 + $0x108] sm:$0xff]  ;;  %v1291_v24 = vpack.c.bf16 %v504_v17, %v501_v16  ;;  %v500_v13 = vld [vmem:[%s2401_s5 + $0x278] sm:$0xff] }
  0xdb   :  { %v124_v29 = vmax.f32 %v121_v25, 0.0  ;;  %v453_v25 = vld [vmem:[%s2401_s5 + $0x100] sm:$0xff]  ;;  %v1195_v17 = vpack.c.bf16 %v503_v15, %v500_v13  ;;  %v1307_v13 = vpack.c.bf16 %v576_v0, %v573_v63  ;;  %v552_v0 = vld [vmem:[%s2401_s5 + $0x418] sm:$0xff] }
  0xdc   :  { %v1293_v32 = vpack.c.bf16 %v456_v26, %v453_v25  ;;  %v508_v25 = vld [vmem:[%s2401_s5 + $0x2b8] sm:$0xff]  ;;  %v533_v15 = vld [vmem:[%s2401_s5 + $0x380] sm:$0xff] }
  0xdd   :  { %339 = vmatprep.mubr.f32.mxu1 %v124_v29  ;;  %410 = vmatprep.mubr.f32.mxu0 %v124_v29  ;;  %v510_v29 = vld [vmem:[%s2401_s5 + $0x2c8] sm:$0xff]  ;;  %v549_v63 = vld [vmem:[%s2401_s5 + $0x400] sm:$0xff] }
  0xde   :  { %340 = vmatmul.mubr.f32.vlgmr.msra.gmra.mrb[0].mxu1 %v123_v34  ;;  %411 = vmatmul.mubr.f32.vlgmr.msra.gmra.mrb[2].mxu0 %v123_v34  ;;  %v460_v34 = vld [vmem:[%s2401_s5 + $0x138] sm:$0xff] }
  0xdf   :  { %1146 = vmatpush1.bf16.msra.mxu1 %v1145_v30  ;;  %1274 = vmatpush3.bf16.msra.mxu0 %v1273_v33  ;;  %v1165_v30 = vpack.c.bf16 %v454_v20, %v451_v19  ;;  %v1167_v33 = vpack.c.bf16 %v461_v27, %v458_v23  ;;  %v1169_v40 = vpack.c.bf16 %v460_v34, %v457_v31  ;;  %v502_v19 = vld [vmem:[%s2401_s5 + $0x288] sm:$0xff]  ;;  %v512_v27 = vld [vmem:[%s2401_s5 + $0x2d8] sm:$0xff] }
  0xe0   :  { %1148 = vmatprep.subr.bf16.mxu1 %v1147_v35  ;;  %1276 = vmatprep.subr.bf16.mxu0 %v1275_v37  ;;  %v1295_v35 = vpack.c.bf16 %v510_v29, %v507_v28  ;;  %v462_v37 = vld [vmem:[%s2401_s5 + $0x148] sm:$0xff]  ;;  %v515_v28 = vld [vmem:[%s2401_s5 + $0x2f0] sm:$0xff]  ;;  %v513_v29 = vld [vmem:[%s2401_s5 + $0x2e0] sm:$0xff] }
  0xe1   :  { %v1297_v41 = vpack.c.bf16 %v462_v37, %v459_v36  ;;  %v506_v20 = vld [vmem:[%s2401_s5 + $0x2a8] sm:$0xff]  ;;  %v516_v31 = vld [vmem:[%s2401_s5 + $0x2f8] sm:$0xff]  ;;  %v465_v36 = vld [vmem:[%s2401_s5 + $0x160] sm:$0xff] }
  0xe2   :  { %v1299_v34 = vpack.c.bf16 %v516_v31, %v513_v29  ;;  %v468_v37 = vld [vmem:[%s2401_s5 + $0x178] sm:$0xff]  ;;  %v585_v29 = vld [vmem:[%s2401_s5 + $0x520] sm:$0xff] }
  0xe3   :  { %1150 = vmatpush1.bf16.msra.mxu1 %v1149_v43  ;;  %1278 = vmatpush3.bf16.msra.mxu0 %v1277_v46  ;;  %v463_v43 = vld [vmem:[%s2401_s5 + $0x150] sm:$0xff]  ;;  %v473_v46 = vld [vmem:[%s2401_s5 + $0x1a0] sm:$0xff]  ;;  %v1301_v38 = vpack.c.bf16 %v468_v37, %v465_v36 }
  0xe4   :  { %1152 = vmatprep.subr.bf16.mxu1 %v1151_v47  ;;  %1280 = vmatprep.subr.bf16.mxu0 %v1279_v49  ;;  %v1173_v47 = vpack.c.bf16 %v466_v44, %v463_v43  ;;  %v1175_v48 = vpack.c.bf16 %v473_v46, %v470_v45  ;;  %v469_v49 = vld [vmem:[%s2401_s5 + $0x180] sm:$0xff]  ;;  %v570_v43 = vld [vmem:[%s2401_s5 + $0x4a8] sm:$0xff]  ;;  %v269_v46 = vsub.s32 3, %v1789_v11 }
  0xe5   :  { %v1177_v53 = vpack.c.bf16 %v472_v50, %v469_v49  ;;  %v2093_v45 = vld [vmem:[%s2403_s4] sm:$0xf] }
  0xe6   :  { %v270_v49 = vrot.slane %v2093_v45, %v269_v46  ;;  %v537_v37 = vld [vmem:[%s2401_s5 + $0x3a0] sm:$0xff] }
  0xe7   :  { %1154 = vmatpush1.bf16.msra.mxu1 %v1153_v55  ;;  %1282 = vmatpush3.bf16.msra.mxu0 %v1281_v58  ;;  %v475_v55 = vld [vmem:[%s2401_s5 + $0x1b0] sm:$0xff]  ;;  %v485_v58 = vld [vmem:[%s2401_s5 + $0x200] sm:$0xff] }
  0xe8   :  { %1156 = vmatprep.subr.bf16.mxu1 %v1155_v59  ;;  %1284 = vmatprep.subr.bf16.mxu0 %v1283_v61  ;;  %v1181_v59 = vpack.c.bf16 %v478_v56, %v475_v55  ;;  %v1183_v60 = vpack.c.bf16 %v485_v58, %v482_v57  ;;  %v481_v61 = vld [vmem:[%s2401_s5 + $0x1e0] sm:$0xff]  ;;  %v520_v56 = vld [vmem:[%s2401_s5 + $0x318] sm:$0xff]  ;;  %v519_v57 = vld [vmem:[%s2401_s5 + $0x310] sm:$0xff] }
  0xe9   :  { %v1185_v1 = vpack.c.bf16 %v484_v62, %v481_v61  ;;  %v522_v58 = vld [vmem:[%s2401_s5 + $0x328] sm:$0xff]  ;;  %v527_v62 = vld [vmem:[%s2401_s5 + $0x350] sm:$0xff]  ;;  %v541_v46 = vld [vmem:[%s2401_s5 + $0x3c0] sm:$0xff] }
  0xeb   :  { %1158 = vmatpush1.bf16.msra.mxu1 %v1157_v3  ;;  %1286 = vmatpush3.bf16.msra.mxu0 %v1285_v6  ;;  %v487_v3 = vld [vmem:[%s2401_s5 + $0x210] sm:$0xff]  ;;  %v497_v6 = vld [vmem:[%s2401_s5 + $0x260] sm:$0xff] }
  0xec   :  { %1160 = vmatprep.subr.bf16.mxu1 %v1159_v7  ;;  %1288 = vmatprep.subr.bf16.mxu0 %v1287_v9  ;;  %v1189_v7 = vpack.c.bf16 %v490_v4, %v487_v3  ;;  %v1191_v8 = vpack.c.bf16 %v497_v6, %v494_v5  ;;  %v493_v9 = vld [vmem:[%s2401_s5 + $0x240] sm:$0xff]  ;;  %v1305_v3 = vpack.c.bf16 %v522_v58, %v519_v57  ;;  %v523_v4 = vld [vmem:[%s2401_s5 + $0x330] sm:$0xff]  ;;  %v526_v5 = vld [vmem:[%s2401_s5 + $0x348] sm:$0xff] }
  0xed   :  { %v1193_v16 = vpack.c.bf16 %v496_v10, %v493_v9  ;;  %v530_v9 = vld [vmem:[%s2401_s5 + $0x368] sm:$0xff] }
  0xef   :  { %1162 = vmatpush1.bf16.msra.mxu1 %v1161_v18  ;;  %1290 = vmatpush3.bf16.msra.mxu0 %v1289_v21  ;;  %v499_v18 = vld [vmem:[%s2401_s5 + $0x270] sm:$0xff]  ;;  %v509_v21 = vld [vmem:[%s2401_s5 + $0x2c0] sm:$0xff] }
  0xf0   :  { %1164 = vmatprep.subr.bf16.mxu1 %v1163_v22  ;;  %1292 = vmatprep.subr.bf16.mxu0 %v1291_v24  ;;  %v1197_v22 = vpack.c.bf16 %v502_v19, %v499_v18  ;;  %v1199_v23 = vpack.c.bf16 %v509_v21, %v506_v20  ;;  %v505_v24 = vld [vmem:[%s2401_s5 + $0x2a0] sm:$0xff]  ;;  %v1213_v19 = vpack.c.bf16 %v526_v5, %v523_v4  ;;  %v606_v4 = vld [vmem:[%s2401_s5 + $0x5c8] sm:$0xff] }
  0xf1   :  { %v1201_v26 = vpack.c.bf16 %v508_v25, %v505_v24  ;;  %v529_v21 = vld [vmem:[%s2401_s5 + $0x360] sm:$0xff]  ;;  %v531_v25 = vld [vmem:[%s2401_s5 + $0x370] sm:$0xff] }
  0xf3   :  { %1166 = vmatpush1.bf16.msra.mxu1 %v1165_v30  ;;  %1294 = vmatpush3.bf16.msra.mxu0 %v1293_v32  ;;  %v1203_v30 = vpack.c.bf16 %v515_v28, %v512_v27  ;;  %v511_v32 = vld [vmem:[%s2401_s5 + $0x2d0] sm:$0xff]  ;;  %v536_v27 = vld [vmem:[%s2401_s5 + $0x398] sm:$0xff] }
  0xf4   :  { %1168 = vmatprep.subr.bf16.mxu1 %v1167_v33  ;;  %1296 = vmatprep.subr.bf16.mxu0 %v1295_v35  ;;  %v514_v33 = vld [vmem:[%s2401_s5 + $0x2e8] sm:$0xff]  ;;  %v539_v28 = vld [vmem:[%s2401_s5 + $0x3b0] sm:$0xff] }
  0xf5   :  { %v1205_v35 = vpack.c.bf16 %v514_v33, %v511_v32  ;;  %v535_v33 = vld [vmem:[%s2401_s5 + $0x390] sm:$0xff] }
  0xf7   :  { %1170 = vmatpush1.bf16.msra.mxu1 %v1169_v40  ;;  %1298 = vmatpush3.bf16.msra.mxu0 %v1297_v41  ;;  %v521_v40 = vld [vmem:[%s2401_s5 + $0x320] sm:$0xff]  ;;  %v567_v41 = vld [vmem:[%s2401_s5 + $0x490] sm:$0xff] }
  0xf8   :  { %1172 = vmatprep.subr.bf16.mxu1 %v1171_v42  ;;  %1300 = vmatprep.subr.bf16.mxu0 %v1299_v34  ;;  %v1207_v42 = vpack.c.bf16 %v521_v40, %v518_v39  ;;  %v1303_v44 = vpack.c.bf16 %v570_v43, %v567_v41  ;;  %v538_v34 = vld [vmem:[%s2401_s5 + $0x3a8] sm:$0xff]  ;;  %v545_v40 = vld [vmem:[%s2401_s5 + $0x3e0] sm:$0xff]  ;;  %v591_v41 = vld [vmem:[%s2401_s5 + $0x550] sm:$0xff] }
  0xf9   :  { %v542_v39 = vld [vmem:[%s2401_s5 + $0x3c8] sm:$0xff]  ;;  %v1221_v43 = vpack.c.bf16 %v538_v34, %v535_v33 }
  0xfb   :  { %1174 = vmatpush1.bf16.msra.mxu1 %v1173_v47  ;;  %1302 = vmatpush3.bf16.msra.mxu0 %v1301_v38  ;;  %v258_v47 = vrot.slane %v2093_v45, %v1792_v12  ;;  %v540_v38 = vld [vmem:[%s2401_s5 + $0x3b8] sm:$0xff] }
  0xfc   :  { %1176 = vmatprep.subr.bf16.mxu1 %v1175_v48  ;;  %1304 = vmatprep.subr.bf16.mxu0 %v1303_v44  ;;  %v262_v48 = vrot.slane %v2093_v45, %v1798_v14  ;;  %v1317_v44 = vpack.c.bf16 %v540_v38, %v537_v37  ;;  %v572_v37 = vld [vmem:[%s2401_s5 + $0x4b8] sm:$0xff] }
  0xff   :  { %1178 = vmatpush1.bf16.msra.mxu1 %v1177_v53 }
 0x100   :  { %1180 = vmatprep.subr.bf16.mxu1 %v1179_v54 }
 0x103   :  { %1182 = vmatpush1.bf16.msra.mxu1 %v1181_v59 }
 0x104   :  { %1184 = vmatprep.subr.bf16.mxu1 %v1183_v60  ;;  %v524_v60 = vld [vmem:[%s2401_s5 + $0x338] sm:$0xff] }
 0x105   :  { %v1211_v10 = vpack.c.bf16 %v527_v62, %v524_v60  ;;  %v550_v60 = vld [vmem:[%s2401_s5 + $0x408] sm:$0xff] }
 0x107   :  { %1186 = vmatpush1.bf16.msra.mxu1 %v1185_v1 }
 0x108   :  { %1188 = vmatprep.subr.bf16.mxu1 %v1187_v2  ;;  %v1209_v2 = vpack.c.bf16 %v520_v56, %v517_v52  ;;  %v546_v52 = vld [vmem:[%s2401_s5 + $0x3e8] sm:$0xff]  ;;  %v600_v56 = vld [vmem:[%s2401_s5 + $0x598] sm:$0xff] }
 0x10b   :  { %1190 = vmatpush1.bf16.msra.mxu1 %v1189_v7  ;;  %v525_v7 = vld [vmem:[%s2401_s5 + $0x340] sm:$0xff] }
 0x10c   :  { %1192 = vmatprep.subr.bf16.mxu1 %v1191_v8  ;;  %v528_v8 = vld [vmem:[%s2401_s5 + $0x358] sm:$0xff] }
 0x10d   :  { %v1309_v20 = vpack.c.bf16 %v528_v8, %v525_v7  ;;  %v553_v7 = vld [vmem:[%s2401_s5 + $0x420] sm:$0xff]  ;;  %v556_v8 = vld [vmem:[%s2401_s5 + $0x438] sm:$0xff] }
 0x10f   :  { %1194 = vmatpush1.bf16.msra.mxu1 %v1193_v16  ;;  %v579_v16 = vld [vmem:[%s2401_s5 + $0x4f0] sm:$0xff] }
 0x110   :  { %1196 = vmatprep.subr.bf16.mxu1 %v1195_v17  ;;  %v582_v17 = vld [vmem:[%s2401_s5 + $0x508] sm:$0xff] }
 0x111   :  { %v1311_v24 = vpack.c.bf16 %v582_v17, %v579_v16  ;;  %v558_v16 = vld [vmem:[%s2401_s5 + $0x448] sm:$0xff]  ;;  %v560_v17 = vld [vmem:[%s2401_s5 + $0x458] sm:$0xff] }
 0x113   :  { %1198 = vmatpush1.bf16.msra.mxu1 %v1197_v22  ;;  %v532_v22 = vld [vmem:[%s2401_s5 + $0x378] sm:$0xff] }
 0x114   :  { %1200 = vmatprep.subr.bf16.mxu1 %v1199_v23  ;;  %v1215_v23 = vpack.c.bf16 %v533_v15, %v530_v9  ;;  %v1217_v31 = vpack.c.bf16 %v532_v22, %v529_v21  ;;  %v265_v9 = vsub.s32 2, %v1789_v11  ;;  %v555_v15 = vld [vmem:[%s2401_s5 + $0x430] sm:$0xff]  ;;  %v1233_v21 = vpack.c.bf16 %v556_v8, %v553_v7 }
 0x115   :  { %v1329_v22 = vpack.c.bf16 %v558_v16, %v555_v15  ;;  %v608_v15 = vld [vmem:[%s2401_s5 + $0x5d8] sm:$0xff]  ;;  %v611_v16 = vld [vmem:[%s2401_s5 + $0x5f0] sm:$0xff] }
 0x117   :  { %1202 = vmatpush1.bf16.msra.mxu1 %v1201_v26  ;;  %v534_v26 = vld [vmem:[%s2401_s5 + $0x388] sm:$0xff] }
 0x118   :  { %1204 = vmatprep.subr.bf16.mxu1 %v1203_v30  ;;  %v588_v30 = vld [vmem:[%s2401_s5 + $0x538] sm:$0xff]  ;;  %v1313_v32 = vpack.c.bf16 %v534_v26, %v531_v25 }
 0x119   :  { %v1315_v36 = vpack.c.bf16 %v588_v30, %v585_v29  ;;  %v564_v29 = vld [vmem:[%s2401_s5 + $0x478] sm:$0xff]  ;;  %v569_v30 = vld [vmem:[%s2401_s5 + $0x4a0] sm:$0xff] }
 0x11b   :  { %1206 = vmatpush1.bf16.msra.mxu1 %v1205_v35  ;;  %v1219_v35 = vpack.c.bf16 %v539_v28, %v536_v27  ;;  %v562_v27 = vld [vmem:[%s2401_s5 + $0x468] sm:$0xff]  ;;  %v561_v28 = vld [vmem:[%s2401_s5 + $0x460] sm:$0xff] }
 0x11c   :  { %1208 = vmatprep.subr.bf16.mxu1 %v1207_v42  ;;  %v594_v42 = vld [vmem:[%s2401_s5 + $0x568] sm:$0xff] }
 0x1b1   :  { %v341_v50 = vpop.f32.mrb[0].mxu1  ;;  %v2101_v51 = vpop.f32.mrb[2].mxu0 }
 0x1b2   :  { %v342_v53 = vadd.f32 %v341_v50, %v258_v47  ;;  %v343_v54 = vpop.f32.mrb[1].mxu1  ;;  %v414_v55 = vpop.f32.mrb[3].mxu0  ;;  %v544_v47 = vld [vmem:[%s2401_s5 + $0x3d8] sm:$0xff]  ;;  %v543_v50 = vld [vmem:[%s2401_s5 + $0x3d0] sm:$0xff] }
 0x1b3   :  { %v344_v59 = vadd.f32 %v343_v54, %v262_v48  ;;  %v415_v61 = vadd.f32 %v414_v55, %v270_v49  ;;  %v1223_v48 = vpack.c.bf16 %v545_v40, %v542_v39  ;;  %v1319_v49 = vpack.c.bf16 %v594_v42, %v591_v41  ;;  %v551_v54 = vld [vmem:[%s2401_s5 + $0x410] sm:$0xff]  ;;  %v597_v55 = vld [vmem:[%s2401_s5 + $0x580] sm:$0xff]  ;;  %v574_v42 = vld [vmem:[%s2401_s5 + $0x4c8] sm:$0xff] }
 0x1b4   :  { %v417_v6 = vmax.f32 %v342_v53, 0.0  ;;  %v548_v53 = vld [vmem:[%s2401_s5 + $0x3f8] sm:$0xff]  ;;  %v1225_v57 = vpack.c.bf16 %v544_v47, %v541_v46  ;;  %v1321_v58 = vpack.c.bf16 %v546_v52, %v543_v50  ;;  %v1323_v62 = vpack.c.bf16 %v600_v56, %v597_v55  ;;  %v571_v41 = vld [vmem:[%s2401_s5 + $0x4b0] sm:$0xff]  ;;  %v586_v56 = vld [vmem:[%s2401_s5 + $0x528] sm:$0xff] }
 0x1b5   :  { %v418_v1 = vmax.f32 %v344_v59, 0.0  ;;  %v420_v18 = vmax.f32 %v415_v61, 0.0  ;;  %v547_v59 = vld [vmem:[%s2401_s5 + $0x3f0] sm:$0xff]  ;;  %v1227_v61 = vpack.c.bf16 %v551_v54, %v548_v53  ;;  %v1245_v46 = vpack.c.bf16 %v574_v42, %v571_v41  ;;  %v584_v50 = vld [vmem:[%s2401_s5 + $0x518] sm:$0xff] }
 0x1b6   :  { %v1229_v5 = vpack.c.bf16 %v550_v60, %v547_v59  ;;  %v587_v52 = vld [vmem:[%s2401_s5 + $0x530] sm:$0xff] }
 0x1b7   :  { %694 = vmatprep.mubr.f32.mxu1 %v418_v1  ;;  %836 = vmatprep.mubr.f32.mxu0 %v418_v1  ;;  %v554_v1 = vld [vmem:[%s2401_s5 + $0x428] sm:$0xff]  ;;  %v1251_v54 = vpack.c.bf16 %v587_v52, %v584_v50  ;;  %v583_v55 = vld [vmem:[%s2401_s5 + $0x510] sm:$0xff] }
 0x1b8   :  { %695 = vmatmul.mubr.f32.vlgmr.msra.gmra.mrb[2].mxu1 %v417_v6  ;;  %837 = vmatmul.mubr.f32.vlgmr.msra.gmra.mrb[4].mxu0 %v417_v6  ;;  %v1325_v6 = vpack.c.bf16 %v552_v0, %v549_v63  ;;  %v1253_v59 = vpack.c.bf16 %v586_v56, %v583_v55  ;;  %v596_v63 = vld [vmem:[%s2401_s5 + $0x578] sm:$0xff]  ;;  %v599_v0 = vld [vmem:[%s2401_s5 + $0x590] sm:$0xff] }
 0x1b9   :  { %1210 = vmatpush1.bf16.msra.mxu1 %v1209_v2  ;;  %1306 = vmatpush3.bf16.msra.mxu0 %v1305_v3  ;;  %v557_v2 = vld [vmem:[%s2401_s5 + $0x440] sm:$0xff]  ;;  %v603_v3 = vld [vmem:[%s2401_s5 + $0x5b0] sm:$0xff] }
 0x1ba   :  { %765 = vmatprep.mubr.f32.mxu1 %v420_v18  ;;  %906 = vmatprep.mubr.f32.mxu0 %v420_v18  ;;  %v563_v18 = vld [vmem:[%s2401_s5 + $0x470] sm:$0xff] }
 0x1bb   :  { %1212 = vmatprep.subr.bf16.mxu1 %v1211_v10  ;;  %1308 = vmatprep.subr.bf16.mxu0 %v1307_v13  ;;  %v1231_v10 = vpack.c.bf16 %v557_v2, %v554_v1  ;;  %v1327_v13 = vpack.c.bf16 %v606_v4, %v603_v3  ;;  %v1235_v25 = vpack.c.bf16 %v563_v18, %v560_v17  ;;  %v595_v3 = vld [vmem:[%s2401_s5 + $0x570] sm:$0xff]  ;;  %v598_v4 = vld [vmem:[%s2401_s5 + $0x588] sm:$0xff] }
 0x1bc   :  { %v1259_v2 = vpack.c.bf16 %v599_v0, %v596_v63  ;;  %v1261_v7 = vpack.c.bf16 %v598_v4, %v595_v3  ;;  %v1267_v18 = vpack.c.bf16 %v611_v16, %v608_v15 }
 0x1bd   :  { %1214 = vmatpush1.bf16.msra.mxu1 %v1213_v19  ;;  %1310 = vmatpush3.bf16.msra.mxu0 %v1309_v20  ;;  %v609_v19 = vld [vmem:[%s2401_s5 + $0x5e0] sm:$0xff]  ;;  %v612_v20 = vld [vmem:[%s2401_s5 + $0x5f8] sm:$0xff] }
 0x1be   :  { %1216 = vmatprep.subr.bf16.mxu1 %v1215_v23  ;;  %1312 = vmatprep.subr.bf16.mxu0 %v1311_v24  ;;  %v559_v23 = vld [vmem:[%s2401_s5 + $0x450] sm:$0xff]  ;;  %v266_v24 = vrot.slane %v2093_v45, %v265_v9  ;;  %v1331_v26 = vpack.c.bf16 %v612_v20, %v609_v19  ;;  %v566_v45 = vld [vmem:[%s2401_s5 + $0x488] sm:$0xff] }
 0x1bf   :  { %v1239_v34 = vpack.c.bf16 %v569_v30, %v566_v45  ;;  %v607_v19 = vld [vmem:[%s2401_s5 + $0x5d0] sm:$0xff]  ;;  %v610_v20 = vld [vmem:[%s2401_s5 + $0x5e8] sm:$0xff] }
 0x1c0   :  { %v2294_v33 = vadd.f32 %v2101_v51, %v266_v24  ;;  %v575_v51 = vld [vmem:[%s2401_s5 + $0x4d0] sm:$0xff] }
 0x1c1   :  { %1218 = vmatpush1.bf16.msra.mxu1 %v1217_v31  ;;  %1314 = vmatpush3.bf16.msra.mxu0 %v1313_v32  ;;  %v1237_v31 = vpack.c.bf16 %v562_v27, %v559_v23  ;;  %v1333_v32 = vpack.c.bf16 %v564_v29, %v561_v28  ;;  %v1243_v40 = vpack.c.bf16 %v575_v51, %v572_v37 }
 0x1c2   :  { %1220 = vmatprep.subr.bf16.mxu1 %v1219_v35  ;;  %1316 = vmatprep.subr.bf16.mxu0 %v1315_v36  ;;  %v565_v35 = vld [vmem:[%s2401_s5 + $0x480] sm:$0xff]  ;;  %v568_v36 = vld [vmem:[%s2401_s5 + $0x498] sm:$0xff]  ;;  %v419_v39 = vmax.f32 %v2294_v33, 0.0 }
 0x1c3   :  { %v1241_v38 = vpack.c.bf16 %v568_v36, %v565_v35 }
 0x1c5   :  { %1222 = vmatpush1.bf16.msra.mxu1 %v1221_v43  ;;  %1318 = vmatpush3.bf16.msra.mxu0 %v1317_v44  ;;  %v578_v43 = vld [vmem:[%s2401_s5 + $0x4e8] sm:$0xff]  ;;  %v581_v44 = vld [vmem:[%s2401_s5 + $0x500] sm:$0xff] }
 0x1c6   :  { %1224 = vmatprep.subr.bf16.mxu1 %v1223_v48  ;;  %1320 = vmatprep.subr.bf16.mxu0 %v1319_v49  ;;  %v1247_v47 = vpack.c.bf16 %v581_v44, %v578_v43  ;;  %v577_v48 = vld [vmem:[%s2401_s5 + $0x4e0] sm:$0xff]  ;;  %v580_v49 = vld [vmem:[%s2401_s5 + $0x4f8] sm:$0xff] }
 0x1c7   :  { %v1249_v53 = vpack.c.bf16 %v580_v49, %v577_v48 }
 0x1c9   :  { %1226 = vmatpush1.bf16.msra.mxu1 %v1225_v57  ;;  %1322 = vmatpush3.bf16.msra.mxu0 %v1321_v58  ;;  %v590_v57 = vld [vmem:[%s2401_s5 + $0x548] sm:$0xff]  ;;  %v593_v58 = vld [vmem:[%s2401_s5 + $0x560] sm:$0xff] }
 0x1ca   :  { %1228 = vmatprep.subr.bf16.mxu1 %v1227_v61  ;;  %1324 = vmatprep.subr.bf16.mxu0 %v1323_v62  ;;  %v1255_v60 = vpack.c.bf16 %v593_v58, %v590_v57  ;;  %v589_v61 = vld [vmem:[%s2401_s5 + $0x540] sm:$0xff]  ;;  %v592_v62 = vld [vmem:[%s2401_s5 + $0x558] sm:$0xff] }
 0x1cb   :  { %v1257_v1 = vpack.c.bf16 %v592_v62, %v589_v61 }
 0x1cd   :  { %1230 = vmatpush1.bf16.msra.mxu1 %v1229_v5  ;;  %1326 = vmatpush3.bf16.msra.mxu0 %v1325_v6  ;;  %v602_v5 = vld [vmem:[%s2401_s5 + $0x5a8] sm:$0xff]  ;;  %v605_v6 = vld [vmem:[%s2401_s5 + $0x5c0] sm:$0xff] }
 0x1ce   :  { %1232 = vmatprep.subr.bf16.mxu1 %v1231_v10  ;;  %1328 = vmatprep.subr.bf16.mxu0 %v1327_v13  ;;  %v1263_v8 = vpack.c.bf16 %v605_v6, %v602_v5  ;;  %v601_v10 = vld [vmem:[%s2401_s5 + $0x5a0] sm:$0xff]  ;;  %v604_v13 = vld [vmem:[%s2401_s5 + $0x5b8] sm:$0xff] }
 0x1cf   :  { %v1265_v17 = vpack.c.bf16 %v604_v13, %v601_v10 }
 0x1d1   :  { %1234 = vmatpush1.bf16.msra.mxu1 %v1233_v21  ;;  %1330 = vmatpush3.bf16.msra.mxu0 %v1329_v22  ;;  %v1269_v21 = vpack.c.bf16 %v610_v20, %v607_v19 }
 0x1d2   :  { %1236 = vmatprep.subr.bf16.mxu1 %v1235_v25  ;;  %1332 = vmatprep.subr.bf16.mxu0 %v1331_v26  ;;  %v613_v25 = vld [vmem:[%s2404_s6] sm:$0x7] }
 0x1d3   :  { %v626_v26 = vrot.slane %v613_v25, %v265_v9  ;;  %v618_v33 = vrot.slane %v613_v25, %v1792_v12  ;;  %v622_v35 = vrot.slane %v613_v25, %v1798_v14 }
 0x1d5   :  { %1238 = vmatpush1.bf16.msra.mxu1 %v1237_v31  ;;  %1334 = vmatpush3.bf16.msra.mxu0 %v1333_v32  ;;  %v1342_v31 = vmov 1983009808  }
 0x1d6   :  { %1240 = vmatprep.subr.bf16.mxu1 %v1239_v34  ;;  %v917_v32 = vunpack.c.l.s4 %v1342_v31 }
 0x1d8   :  { %907 = vmatmul.mubr.f32.vlgmr.msra.gmra.mrb[6].mxu0 %v419_v39  ;;  %v918_v34 = vunpack.c.0.s8 %v917_v32 }
 0x1d9   :  { %1242 = vmatpush1.bf16.msra.mxu1 %v1241_v38 }
 0x1da   :  { %1244 = vmatprep.subr.bf16.mxu1 %v1243_v40  ;;  %v921_v38 = vsub.s32 %v918_v34, %v1789_v11 }
 0x1dd   :  { %1246 = vmatpush1.bf16.msra.mxu1 %v1245_v46 }
 0x1de   :  { %1248 = vmatprep.subr.bf16.mxu1 %v1247_v47 }
 0x1e1   :  { %1250 = vmatpush1.bf16.msra.mxu1 %v1249_v53 }
 0x1e2   :  { %1252 = vmatprep.subr.bf16.mxu1 %v1251_v54 }
 0x1e5   :  { %1254 = vmatpush1.bf16.msra.mxu1 %v1253_v59 }
 0x1e6   :  { %1256 = vmatprep.subr.bf16.mxu1 %v1255_v60 }
 0x1e9   :  { %1258 = vmatpush1.bf16.msra.mxu1 %v1257_v1 }
 0x1ea   :  { %1260 = vmatprep.subr.bf16.mxu1 %v1259_v2 }
 0x1ed   :  { %1262 = vmatpush1.bf16.msra.mxu1 %v1261_v7 }
 0x1ee   :  { %1264 = vmatprep.subr.bf16.mxu1 %v1263_v8 }
 0x1f1   :  { %1266 = vmatpush1.bf16.msra.mxu1 %v1265_v17 }
 0x1f2   :  { %1268 = vmatprep.subr.bf16.mxu1 %v1267_v18 }
 0x1f5   :  { %1270 = vmatpush1.bf16.msra.mxu1 %v1269_v21 }
 0x1f8   :  { %766 = vmatmul.mubr.f32.vlgmr.msra.gmra.mrb[2].mxu1 %v419_v39 }
 0x28b   :  { %v977_v22 = vpop.f32.mrb[4].mxu0 }
 0x28c   :  { %v978_v23 = vpop.f32.mrb[5].mxu0 }
 0x28d   :  { %v979_v24 = vadd.f32 %v978_v23, %v977_v22 }
 0x28f   :  { %v839_v29 = vadd.f32 %v979_v24, %v626_v26 }
 0x2ab   :  { %v1012_v27 = vpop.f32.mrb[6].mxu0 }
 0x2ac   :  { %v1013_v28 = vpop.f32.mrb[7].mxu0 }
 0x2ad   :  { %v1014_v45 = vadd.f32 %v1013_v28, %v1012_v27 }
 0x2af   :  { %v909_v30 = vadd.f32 %v1014_v45, %v839_v29 }
 0x2b1   :  { %v929_v40 = vrot.slane %v909_v30, %v921_v38 }
 0x2cb   :  { %v767_v36 = vpop.f32.mrb[2].mxu1 }
 0x2cc   :  { %v1335_v37 = vadd.f32 %v767_v36, %v618_v33  ;;  %v769_v51 = vpop.f32.mrb[3].mxu1 }
 0x2cd   :  { %v1336_v9 = vadd.f32 %v769_v51, %v622_v35 }
 0x2cf   :  { %v915_v39 = vcombine.low %v1335_v37, %v1336_v9 }
 0x2d1   :  { %v922_v41 = vrot.slane %v915_v39, %v921_v38 }
 0x2d3   :  { %v930_v42 = vcombine.low %v922_v41, %v929_v40 }
 0x2d5   :  { %937 = vst.msk [vmem:[%s2405_s7] sm:$0x3f] %vm936_vm6, %v930_v42 }

// kernel: learn_forward.10
= control target key start
LH: loop header
LB: loop body
LE: loop exit
PB: predicated region body
PF: predicated region fallthrough
CT: control target
= control target key end

     0   :  { %v128_v0 = vmov 0   ;;  %vm47_vm0 = vcmask 1041408   ;;  %v129_v12 = vmov 1983009808   ;;  %v69_v14 = vlaneseq  ;;  %s189_s3 = inlined_call_operand.vmem [shape: f32[2,1], index: 3, kind: input, shape index: {}]   ;;  %s190_s4 = inlined_call_operand.vmem [shape: f32[2,1], index: 4, kind: input, shape index: {}]   ;;  %s191_s5 = inlined_call_operand.vmem [shape: f32[2,1], index: 5, kind: input, shape index: {}]   ;;  %s192_s1 = inlined_call_operand.vmem [shape: f32[2,2,256], index: 1, kind: input, shape index: {}]   ;;  %s193_s2 = inlined_call_operand.vmem [shape: f32[2,256], index: 2, kind: input, shape index: {}]   ;;  %s194_s0 = inlined_call_operand.vmem [shape: f32[2,256], index: 0, kind: input, shape index: {}]   ;;  %s195_s6 = inlined_call_operand.vmem [shape: f32[2,256], index: 6, kind: output, shape index: {}]  }
   0x1   :  { %126 = vset.pattern.permute.xlu0 %v128_v0  ;;  %v55_v1 = vld [vmem:[%s189_s3] sm:$0x3]  ;;  %127 = vset.pattern.permute.xlu1 %v128_v0  ;;  %v122_v5 = vld.sshfl [vmem:[%s192_s1 + $0x4] sm:$0x33 pattern:$0x76325410]  ;;  %v67_v13 = vunpack.c.l.s4 %v129_v12 }
   0x2   :  { %v95_v2 = vld [vmem:[%s191_s5] sm:$0x3]  ;;  %58 = vperm.xlu0 %126, %v55_v1   ;;  %v42_v7 = vcombine.high %v122_v5, %v122_v5  ;;  %v49_v9 = vsel %vm47_vm0, %v122_v5, 0.0  ;;  %v70_v19 = vshrl.u32 %v69_v14, 7 }
   0x3   :  { %98 = vperm.xlu1 %127, %v95_v2   ;;  %v75_v3 = vld [vmem:[%s190_s4] sm:$0x3]  ;;  %v68_v18 = vunpack.c.0.s8 %v67_v13 }
   0x4   :  { %v121_v4 = vld.sshfl [vmem:[%s192_s1] sm:$0x33 pattern:$0x76325410]  ;;  %v52_v11 = vsel %vm47_vm0, %v42_v7, 0.0 }
   0x5   :  { %v34_v6 = vcombine.high %v121_v4, %v121_v4  ;;  %v48_v8 = vsel %vm47_vm0, %v121_v4, 0.0  ;;  %v123_v17 = vld.sshfl [vmem:[%s193_s2] sm:$0x33 pattern:$0x76325410]  ;;  %v71_v24 = vsub.s32 %v68_v18, %v70_v19 }
   0x6   :  { %79 = vperm.xlu0 %126, %v75_v3   ;;  %v50_v15 = vadd.f32 %v49_v9, %v48_v8  ;;  %v90_v23 = vcombine.high %v123_v17, %v123_v17  ;;  %v54_v33 = vld [vmem:[%s194_s0] sm:$0xf] }
   0x7   :  { %v51_v10 = vsel %vm47_vm0, %v34_v6, 0.0 }
   0x8   :  { %v53_v16 = vadd.f32 %v52_v11, %v51_v10 }
  0x81   :  { %v59_v20 = vpop.permute.xlu0 %58 }
  0x82   :  { %v61_v21 = vmul.f32 %v59_v20, %v50_v15  ;;  %v62_v22 = vmul.f32 %v59_v20, %v53_v16  ;;  %v99_v27 = vpop.permute.xlu1 %98 }
  0x84   :  { %v65_v25 = vcombine.low %v61_v21, %v62_v22 }
  0x85   :  { %v80_v26 = vpop.permute.xlu0 %79 }
  0x86   :  { %v93_v28 = vmul.f32 %v123_v17, %v80_v26  ;;  %v94_v29 = vmul.f32 %v90_v23, %v80_v26  ;;  %v72_v30 = vrot.slane %v65_v25, %v71_v24 }
  0x88   :  { %v101_v31 = vadd.f32 %v99_v27, %v93_v28  ;;  %v102_v32 = vadd.f32 %v99_v27, %v94_v29  ;;  %v74_v35 = vsub.f32 %v54_v33, %v72_v30 }
  0x8a   :  { %v105_v34 = vcombine.low %v101_v31, %v102_v32 }
  0x8c   :  { %v112_v36 = vrot.slane %v105_v34, %v71_v24 }
  0x8e   :  { %v114_v37 = vadd.f32 %v112_v36, %v74_v35 }
  0x90   :  { %v115_v38 = vmax.f32 %v114_v37, 0.0 }
  0x92   :  { %116 = vst [vmem:[%s195_s6] sm:$0xf] %v115_v38 }

// kernel: learn_forward.9
= control target key start
LH: loop header
LB: loop body
LE: loop exit
PB: predicated region body
PF: predicated region fallthrough
CT: control target
= control target key end

     0   :  { %s912_s12 = smov 0   ;;  %s914_s13 = smov 0   ;;  %s996_s0 = inlined_call_operand.vmem [shape: f32[2,256], index: 0, kind: input, shape index: {}]   ;;  %s997_s1 = inlined_call_operand.vmem [shape: f32[2,512], index: 1, kind: input, shape index: {}]   ;;  %s998_s2 = inlined_call_operand.vmem [shape: bf16[512,256], index: 2, kind: input, shape index: {}]   ;;  %s999_s3 = inlined_call_operand.vmem [shape: f32[2,2,256], index: 3, kind: output, shape index: {}]  }
   0x1   :  { %s916_s14 = smov 0  }
   0x2 LB: > { %s25_s15 = sadd.s32 1, %s884_s13  ;;  %p586_p0 = scmp.ge.s32.totalorder %s888_s14, 1  ;;  %s888_s14 = sphi %s916_s14, %s13_s14   ;;  %s884_s13 = sphi %s914_s13, %s1001_s13   ;;  %s880_s12 = sphi %s912_s12, %s1000_s12  }
   0x3   : > { %p27_p1 = scmp.ge.s32.totalorder %s25_s15, 2  ;;  %p170_p2 = scmp.lt.s32.totalorder %s888_s14, 3 }
   0x5   : > { %s1003_s15 = smov (%p27_p1, %s25_s15), 0  ;;  %p171_p3 = pnand %p586_p0, %p170_p2 }
   0x6   : > { %s589_s16 = sshll.u32 (!%p171_p3), %s880_s12, 5  ;;  %v936_v0 = vld.sshfl [vmem:[%s996_s0] sm:$0x33 pattern:$0x76325410] (!%p171_p3)  ;;  %s587_s23 = sshll.u32 (!%p171_p3), %s880_s12, 1  ;;  %v500_v43 = vlaneseq (!%p171_p3) }
   0x7   : > { %174 = sbr.rel (%p171_p3) target bundleno = 582 (0x246), region = 32  ;;  %p212_p4 = scmp.lt.s32.totalorder (!%p171_p3), %s589_s16, 63  ;;  %v334_v1 = vcombine.high (!%p171_p3), %v936_v0, %v936_v0  ;;  %v890_v40 = vmov (!%p171_p3), 0.0   ;;  %v891_v41 = vmov (!%p171_p3), 1983009808  }
   0x8   : > { %p204_p5 = scmp.lt.s32.totalorder (!%p171_p3), %s587_s23, 3  ;;  %p219_p6 = scmp.lt.s32.totalorder (!%p171_p3), %s880_s12, 1  ;;  %v498_v42 = vunpack.c.l.s4 (!%p171_p3), %v891_v41  ;;  %v501_v45 = vshrl.u32 (!%p171_p3), %v500_v43, 7 }
   0x9   : > { %401 = vmatprep.mubr.f32.mxu0 (!%p171_p3), %v334_v1 }
   0xa   : > { %v499_v44 = vunpack.c.0.s8 (!%p171_p3), %v498_v42 }
   0xc   : > { %v502_v47 = vsub.s32 (!%p171_p3), %v499_v44, %v501_v45 }
   0xe   : > { %s1005_s16 = smov (!%p212_p4, %s589_s16), 63  ;;  %s1007_s23 = smov (!%p204_p5, %s587_s23), 3 }
   0xf   : > { %s598_s19 = sshll.u32 %s1005_s16, 3  ;;  %s588_s24 = sshll.u32 %s1007_s23, 1 }
  0x10   : > { %s943_s22 = scalar_lea.vmem %s998_s2, %s598_s19  ;;  %s207_s27 = scalar_lea.vmem %s997_s1, %s588_s24 }
  0x11   : > { %v818_v2 = vld [vmem:[%s943_s22 + $0x4] ss:$8 sps:$4 sm:$0xff]   ;;  %v820_v3 = vld [vmem:[%s943_s22] ss:$8 sps:$4 sm:$0xff]   ;;  %v821_v4 = vld [vmem:[%s943_s22 + $0x14] ss:$8 sps:$4 sm:$0xff]  }
  0x12   : > { %601 = vmatprep.subr.bf16.mxu0 %v818_v2  ;;  %665 = vmatprep.subr.bf16.mxu1 %v818_v2  ;;  %v823_v5 = vld [vmem:[%s943_s22 + $0x10] ss:$8 sps:$4 sm:$0xff]   ;;  %v824_v6 = vld [vmem:[%s943_s22 + $0x24] ss:$8 sps:$4 sm:$0xff]   ;;  %v826_v7 = vld [vmem:[%s943_s22 + $0x20] ss:$8 sps:$4 sm:$0xff]  }
  0x13   : > { %603 = vmatpush1.bf16.xpose.msra.mxu0 %v820_v3  ;;  %667 = vmatpush1.bf16.msra.mxu1 %v820_v3  ;;  %v827_v8 = vld [vmem:[%s943_s22 + $0x34] ss:$8 sps:$4 sm:$0xff]   ;;  %v829_v9 = vld [vmem:[%s943_s22 + $0x30] ss:$8 sps:$4 sm:$0xff]   ;;  %v830_v10 = vld [vmem:[%s943_s22 + $0x44] ss:$8 sps:$4 sm:$0xff]  }
  0x14   : > { %605 = vmatprep.subr.bf16.mxu0 %v821_v4  ;;  %669 = vmatprep.subr.bf16.mxu1 %v821_v4  ;;  %v832_v11 = vld [vmem:[%s943_s22 + $0x40] ss:$8 sps:$4 sm:$0xff]   ;;  %v833_v12 = vld [vmem:[%s943_s22 + $0x54] ss:$8 sps:$4 sm:$0xff]   ;;  %v835_v13 = vld [vmem:[%s943_s22 + $0x50] ss:$8 sps:$4 sm:$0xff]  }
  0x15   : > { %v836_v14 = vld [vmem:[%s943_s22 + $0x64] ss:$8 sps:$4 sm:$0xff]   ;;  %v838_v15 = vld [vmem:[%s943_s22 + $0x60] ss:$8 sps:$4 sm:$0xff]   ;;  %v839_v16 = vld [vmem:[%s943_s22 + $0x74] ss:$8 sps:$4 sm:$0xff]  }
  0x16   : > { %v841_v17 = vld [vmem:[%s943_s22 + $0x70] ss:$8 sps:$4 sm:$0xff]   ;;  %v842_v18 = vld [vmem:[%s943_s22 + $0x84] ss:$8 sps:$4 sm:$0xff]   ;;  %v844_v19 = vld [vmem:[%s943_s22 + $0x80] ss:$8 sps:$4 sm:$0xff]  }
  0x17   : > { %671 = vmatpush1.bf16.msra.mxu1 %v823_v5  ;;  %v845_v20 = vld [vmem:[%s943_s22 + $0x94] ss:$8 sps:$4 sm:$0xff]   ;;  %v847_v21 = vld [vmem:[%s943_s22 + $0x90] ss:$8 sps:$4 sm:$0xff]   ;;  %v848_v22 = vld [vmem:[%s943_s22 + $0xa4] ss:$8 sps:$4 sm:$0xff]  }
  0x18   : > { %673 = vmatprep.subr.bf16.mxu1 %v824_v6  ;;  %v850_v23 = vld [vmem:[%s943_s22 + $0xa0] ss:$8 sps:$4 sm:$0xff]   ;;  %v851_v24 = vld [vmem:[%s943_s22 + $0xb4] ss:$8 sps:$4 sm:$0xff]   ;;  %v853_v25 = vld [vmem:[%s943_s22 + $0xb0] ss:$8 sps:$4 sm:$0xff]  }
  0x19   : > { %v854_v26 = vld [vmem:[%s943_s22 + $0xc4] ss:$8 sps:$4 sm:$0xff]   ;;  %v856_v27 = vld [vmem:[%s943_s22 + $0xc0] ss:$8 sps:$4 sm:$0xff]   ;;  %v857_v28 = vld [vmem:[%s943_s22 + $0xd4] ss:$8 sps:$4 sm:$0xff]  }
  0x1a   : > { %v859_v29 = vld [vmem:[%s943_s22 + $0xd0] ss:$8 sps:$4 sm:$0xff]   ;;  %v860_v30 = vld [vmem:[%s943_s22 + $0xe4] ss:$8 sps:$4 sm:$0xff]   ;;  %v862_v31 = vld [vmem:[%s943_s22 + $0xe0] ss:$8 sps:$4 sm:$0xff]  }
  0x1b   : > { %607 = vmatpush1.bf16.xpose.msra.mxu0 %v823_v5  ;;  %675 = vmatpush1.bf16.msra.mxu1 %v826_v7  ;;  %v863_v32 = vld [vmem:[%s943_s22 + $0xf4] ss:$8 sps:$4 sm:$0xff]   ;;  %v865_v33 = vld [vmem:[%s943_s22 + $0xf0] ss:$8 sps:$4 sm:$0xff]   ;;  %s1009_s12 = smov (!%p219_p6, %s880_s12), 1 }
  0x1c   : > { %609 = vmatprep.subr.bf16.mxu0 %v824_v6  ;;  %677 = vmatprep.subr.bf16.mxu1 %v827_v8  ;;  %v595_v34 = vld.sshfl [vmem:[%s207_s27] sm:$0x33 pattern:$0x76325410]  ;;  %s599_s28 = sshll.u32 %s1009_s12, 2 }
  0x1d   : > { %v417_v35 = vcombine.high %v595_v34, %v595_v34  ;;  %s223_s4 = scalar_lea.vmem %s999_s3, %s599_s28 }
  0x1e   : > { %228 = vst [vmem:[%s223_s4] sm:$0xf] %v890_v40 }
  0x1f   : > { %679 = vmatpush1.bf16.msra.mxu1 %v829_v9 }
  0x20   : > { %681 = vmatprep.subr.bf16.mxu1 %v830_v10 }
  0x23   : > { %611 = vmatpush1.bf16.xpose.msra.mxu0 %v826_v7  ;;  %683 = vmatpush1.bf16.msra.mxu1 %v832_v11 }
  0x24   : > { %613 = vmatprep.subr.bf16.mxu0 %v827_v8  ;;  %685 = vmatprep.subr.bf16.mxu1 %v833_v12 }
  0x25   : > { %v422_v50 = vld [vmem:[%s223_s4] sm:$0xf] }
  0x27   : > { %687 = vmatpush1.bf16.msra.mxu1 %v835_v13 }
  0x28   : > { %689 = vmatprep.subr.bf16.mxu1 %v836_v14 }
  0x2b   : > { %615 = vmatpush1.bf16.xpose.msra.mxu0 %v829_v9  ;;  %691 = vmatpush1.bf16.msra.mxu1 %v838_v15 }
  0x2c   : > { %617 = vmatprep.subr.bf16.mxu0 %v830_v10  ;;  %693 = vmatprep.subr.bf16.mxu1 %v839_v16 }
  0x2f   : > { %695 = vmatpush1.bf16.msra.mxu1 %v841_v17 }
  0x30   : > { %697 = vmatprep.subr.bf16.mxu1 %v842_v18 }
  0x33   : > { %619 = vmatpush1.bf16.xpose.msra.mxu0 %v832_v11  ;;  %699 = vmatpush1.bf16.msra.mxu1 %v844_v19 }
  0x34   : > { %621 = vmatprep.subr.bf16.mxu0 %v833_v12  ;;  %701 = vmatprep.subr.bf16.mxu1 %v845_v20 }
  0x37   : > { %703 = vmatpush1.bf16.msra.mxu1 %v847_v21 }
  0x38   : > { %705 = vmatprep.subr.bf16.mxu1 %v848_v22 }
  0x3b   : > { %623 = vmatpush1.bf16.xpose.msra.mxu0 %v835_v13  ;;  %707 = vmatpush1.bf16.msra.mxu1 %v850_v23 }
  0x3c   : > { %625 = vmatprep.subr.bf16.mxu0 %v836_v14  ;;  %709 = vmatprep.subr.bf16.mxu1 %v851_v24 }
  0x3f   : > { %711 = vmatpush1.bf16.msra.mxu1 %v853_v25 }
  0x40   : > { %713 = vmatprep.subr.bf16.mxu1 %v854_v26 }
  0x43   : > { %627 = vmatpush1.bf16.xpose.msra.mxu0 %v838_v15  ;;  %715 = vmatpush1.bf16.msra.mxu1 %v856_v27 }
  0x44   : > { %629 = vmatprep.subr.bf16.mxu0 %v839_v16  ;;  %717 = vmatprep.subr.bf16.mxu1 %v857_v28 }
  0x47   : > { %719 = vmatpush1.bf16.msra.mxu1 %v859_v29 }
  0x48   : > { %721 = vmatprep.subr.bf16.mxu1 %v860_v30 }
  0x4b   : > { %631 = vmatpush1.bf16.xpose.msra.mxu0 %v841_v17  ;;  %723 = vmatpush1.bf16.msra.mxu1 %v862_v31 }
  0x4c   : > { %633 = vmatprep.subr.bf16.mxu0 %v842_v18  ;;  %725 = vmatprep.subr.bf16.mxu1 %v863_v32 }
  0x4f   : > { %727 = vmatpush1.bf16.msra.mxu1 %v865_v33 }
  0x53   : > { %635 = vmatpush1.bf16.xpose.msra.mxu0 %v844_v19 }
  0x54   : > { %637 = vmatprep.subr.bf16.mxu0 %v845_v20 }
  0x5b   : > { %639 = vmatpush1.bf16.xpose.msra.mxu0 %v847_v21 }
  0x5c   : > { %641 = vmatprep.subr.bf16.mxu0 %v848_v22 }
  0x63   : > { %643 = vmatpush1.bf16.xpose.msra.mxu0 %v850_v23 }
  0x64   : > { %645 = vmatprep.subr.bf16.mxu0 %v851_v24 }
  0x6b   : > { %647 = vmatpush1.bf16.xpose.msra.mxu0 %v853_v25 }
  0x6c   : > { %649 = vmatprep.subr.bf16.mxu0 %v854_v26 }
  0x73   : > { %651 = vmatpush1.bf16.xpose.msra.mxu0 %v856_v27 }
  0x74   : > { %653 = vmatprep.subr.bf16.mxu0 %v857_v28 }
  0x7b   : > { %655 = vmatpush1.bf16.xpose.msra.mxu0 %v859_v29 }
  0x7c   : > { %657 = vmatprep.subr.bf16.mxu0 %v860_v30 }
  0x83   : > { %659 = vmatpush1.bf16.xpose.msra.mxu0 %v862_v31 }
  0x84   : > { %661 = vmatprep.subr.bf16.mxu0 %v863_v32 }
  0x8b   : > { %663 = vmatpush1.bf16.xpose.msra.mxu0 %v865_v33 }
  0x92   : > { %402 = vmatmul.mubr.f32.vlgmr.msra.gmra.mrb[0].mxu0 %v936_v0 }
 0x165   : > { %v403_v36 = vpop.f32.mrb[0].mxu0 }
 0x166   : > { %v405_v37 = vpop.f32.mrb[1].mxu0  ;;  %v420_v39 = vsub.f32 %v403_v36, %v595_v34 }
 0x167   : > { %v421_v38 = vsub.f32 %v405_v37, %v417_v35 }
 0x169   : > { %487 = vmatprep.mubr.f32.mxu1 %v421_v38 }
 0x16a   : > { %488 = vmatmul.mubr.f32.vlgmr.msra.gmra.mrb[0].mxu1 %v420_v39 }
 0x23d   : > { %v489_v46 = vpop.f32.mrb[0].mxu1 }
 0x23e   : > { %v491_v48 = vpop.f32.mrb[1].mxu1 }
 0x23f   : > { %v496_v49 = vcombine.low %v489_v46, %v491_v48 }
 0x241   : > { %v503_v51 = vrot.slane %v496_v49, %v502_v47 }
 0x243   : > { %v505_v52 = vadd.f32 %v503_v51, %v422_v50 }
 0x245   : > { %506 = vst [vmem:[%s223_s4] sm:$0xf] %v505_v52 }
 0x246 PF: > { %s13_s14 = sadd.s32 1, %s888_s14   ;;  %s1000_s12 = smov %s884_s13 }
 0x247   : > { %p10_p7 = scmp.ge.s32.totalorder %s13_s14, 4   ;;  %s1001_s13 = smov %s1003_s15 }
 0x249   :  { %12 = sbr.rel (!%p10_p7) target bundleno = 2 (0x2), region = 69 }

// kernel: learn_forward.8
= control target key start
LH: loop header
LB: loop body
LE: loop exit
PB: predicated region body
PF: predicated region fallthrough
CT: control target
= control target key end

     0   :  { %s9641_s15 = smov 0   ;;  %s13155_s0 = inlined_call_operand.vmem [shape: f32[2,1,324], index: 0, kind: input, shape index: {}]   ;;  %s13156_s1 = inlined_call_operand.vmem [shape: f32[2,128,1], index: 1, kind: input, shape index: {}]   ;;  %s13157_s2 = inlined_call_operand.vmem [shape: f32[2,128,1], index: 2, kind: input, shape index: {}]   ;;  %s13158_s3 = inlined_call_operand.vmem [shape: f32[64,9], index: 3, kind: input, shape index: {}]   ;;  %s13159_s4 = inlined_call_operand.vmem [shape: f32[64,1], index: 4, kind: input, shape index: {}]   ;;  %s13160_s5 = inlined_call_operand.vmem [shape: f32[9,64,64], index: 5, kind: input, shape index: {}]   ;;  %s13161_s6 = inlined_call_operand.vmem [shape: f32[64,1], index: 6, kind: input, shape index: {}]   ;;  %s13162_s7 = inlined_call_operand.vmem [shape: f32[9,64], index: 7, kind: input, shape index: {}]   ;;  %s13163_s8 = inlined_call_operand.<no memory space> [shape: f32[1,1], index: 8, kind: input, shape index: {}]   ;;  %s13164_s9 = inlined_call_operand.vmem [shape: f32[1,286], index: 9, kind: input, shape index: {}]   ;;  %s13165_s10 = inlined_call_operand.vmem [shape: f32[2,1,286], index: 10, kind: output, shape index: {}]  }
   0x1   :  { %v15_v0 = vstv %s13163_s8 }
   0x2   :  { %16 = vst [vmem:[#allocation3] sm:$0x1] %v15_v0 }
   0x3 LB: > { %s6905_s16 = sadd.s32 4294967295, %s9566_s15   ;;  %p6909_p0 = scmp.ge.s32.totalorder %s9566_s15, 1  ;;  %s9566_s15 = sphi %s9641_s15, %s22_s15  }
   0x4   : > { %p333_p1 = scmp.lt.s32.totalorder %s9566_s15, 3 }
   0x6   : > { %p334_p2 = pnand %p6909_p0, %p333_p1 }
   0x8   : > { %337 = sbr.rel (%p334_p2) target bundleno = 1887 (0x75f), region = 60 }
   0xf   : > { %p379_p3 = scmp.lt.s32.totalorder %s6905_s16, 1  ;;  %v13166_v1 = vlaneseq  ;;  %v9568_v2 = vmov 0   ;;  %s9569_s20 = smov 126   ;;  %v485_v16 = vld [vmem:[%s13159_s4] sm:$0xff]  ;;  %v486_v17 = vld [vmem:[%s13159_s4 + $0x8] sm:$0xff]  ;;  %v13167_v20 = vmov 0.0  }
  0x10   : > { %8582 = vset.pattern.permute.xlu1 %v9568_v2  ;;  %8598 = vset.pattern.permute.xlu0 %v9568_v2  ;;  %s9570_s21 = smov 127   ;;  %s9571_s23 = smov 110   ;;  %v488_v23 = vld [vmem:[%s13159_s4 + $0x18] sm:$0xff]  ;;  %v487_v24 = vld [vmem:[%s13159_s4 + $0x10] sm:$0xff]  ;;  %v489_v31 = vld [vmem:[%s13159_s4 + $0x20] sm:$0xff]  ;;  %vm771_vm0 = vcmask 1031168  }
  0x11   : > { %s13304_s16 = smov (!%p379_p3, %s6905_s16), 1  ;;  %v9652_v3 = vshrl.u32 %v13166_v1, 7  ;;  %s9572_s27 = smov 109   ;;  %1009 = vmatprep.mubr.f32.mxu0 %v13167_v20  ;;  %v490_v34 = vld [vmem:[%s13159_s4 + $0x28] sm:$0xff]  ;;  %v491_v39 = vld [vmem:[%s13159_s4 + $0x30] sm:$0xff]  ;;  %v492_v42 = vld [vmem:[%s13159_s4 + $0x38] sm:$0xff] }
  0x12   : > { %s8533_s8 = smul.u32 3, %s13304_s16  ;;  %s7097_s22 = sshll.u32 %s13304_s16, 7  ;;  %vm759_vm1 = vcmask 1039360   ;;  %v429_v2 = vld [vmem:[%s13158_s3] sm:$0xff]  ;;  %vm846_vm2 = vcmask 1040384   ;;  %vm850_vm3 = vcmask 1041408  }
  0x13   : > { %13217 = vst [vmem:[#allocation4_spill] sm:$0xff] %v9652_v3  ;;  %v744_v4 = vsub.s32 1, %v9652_v3  ;;  %v748_v5 = vsub.s32 2, %v9652_v3  ;;  %v9671_v9 = vsub.s32 0, %v9652_v3  ;;  %s9693_s26 = scalar_lea.vmem %s13156_s1, %s7097_s22  ;;  %s9573_s28 = smov 108   ;;  %vm783_vm4 = vcmask 900096  }
  0x14   : > { %s382_s19 = scalar_lea.vmem %s13155_s0, %s8533_s8  ;;  %v397_v12 = vld [vmem:[%s9693_s26] sm:$0xff]  ;;  %s9574_s29 = smov 92   ;;  %v398_v13 = vld [vmem:[%s9693_s26 + $0x8] sm:$0xff]  ;;  %v400_v14 = vld [vmem:[%s9693_s26 + $0x18] sm:$0xff]  ;;  %vm854_vm5 = vcmask 1042432   ;;  %vm795_vm6 = vcmask 891904  }
  0x15   : > { %v736_v6 = vld [vmem:[%s382_s19] sm:$0x7]  ;;  %13218 = vst [vmem:[#allocation5_spill] sm:$0xff] %v9671_v9  ;;  %s9575_s30 = smov 91   ;;  %s9576_s11 = smov 90   ;;  %v399_v15 = vld [vmem:[%s9693_s26 + $0x10] sm:$0xff]  ;;  %v493_v21 = vmul.f32 %v485_v16, %v397_v12  ;;  %v494_v22 = vmul.f32 %v486_v17, %v398_v13  ;;  %v496_v29 = vmul.f32 %v488_v23, %v400_v14 }
  0x16   : > { %v9664_v7 = vrot.slane %v736_v6, %v744_v4  ;;  %v9668_v8 = vrot.slane %v736_v6, %v748_v5  ;;  %v9678_v11 = vrot.slane %v736_v6, %v9671_v9  ;;  %v401_v18 = vld [vmem:[%s9693_s26 + $0x20] sm:$0xff]  ;;  %v402_v19 = vld [vmem:[%s9693_s26 + $0x28] sm:$0xff]  ;;  %s9728_s24 = scalar_lea.vmem %s13157_s2, %s7097_s22  ;;  %v403_v25 = vld [vmem:[%s9693_s26 + $0x30] sm:$0xff]  ;;  %v495_v30 = vmul.f32 %v487_v24, %v399_v15  ;;  %s9579_s18 = smov 19  }
  0x17   : > { %v404_v26 = vld [vmem:[%s9693_s26 + $0x38] sm:$0xff]  ;;  %v413_v27 = vld [vmem:[%s9728_s24] sm:$0xff]  ;;  %v414_v28 = vld [vmem:[%s9728_s24 + $0x8] sm:$0xff]  ;;  %v497_v37 = vmul.f32 %v489_v31, %v401_v18  ;;  %v498_v38 = vmul.f32 %v490_v34, %v402_v19  ;;  %v499_v45 = vmul.f32 %v491_v39, %v403_v25  ;;  %vm914_vm7 = vcmask 72704  }
  0x18   : > { %v8562_v10 = vpack.i.bf16 %v9668_v8, %v9664_v7  ;;  %v501_v32 = vadd.f32 %v493_v21, %v413_v27  ;;  %v502_v33 = vadd.f32 %v494_v22, %v414_v28  ;;  %v415_v35 = vld [vmem:[%s9728_s24 + $0x10] sm:$0xff]  ;;  %v416_v36 = vld [vmem:[%s9728_s24 + $0x18] sm:$0xff]  ;;  %v417_v43 = vld [vmem:[%s9728_s24 + $0x20] sm:$0xff]  ;;  %v500_v46 = vmul.f32 %v492_v42, %v404_v26 }
  0x19   : > { %v503_v40 = vadd.f32 %v495_v30, %v415_v35  ;;  %v504_v41 = vadd.f32 %v496_v29, %v416_v36  ;;  %v418_v44 = vld [vmem:[%s9728_s24 + $0x28] sm:$0xff]  ;;  %v505_v47 = vadd.f32 %v497_v37, %v417_v43  ;;  %v419_v49 = vld [vmem:[%s9728_s24 + $0x30] sm:$0xff]  ;;  %v420_v50 = vld [vmem:[%s9728_s24 + $0x38] sm:$0xff]  ;;  %vm858_vm8 = vcmask 1043456  }
  0x1a   : > { %8563 = vrot.lane.b32.xlu1 %v8562_v10, %s9569_s20  ;;  %8558 = vrot.lane.b32.xlu0 %v8562_v10, %s9570_s21  ;;  %v506_v48 = vadd.f32 %v498_v38, %v418_v44  ;;  %v507_v51 = vadd.f32 %v499_v45, %v419_v49  ;;  %v508_v52 = vadd.f32 %v500_v46, %v420_v50  ;;  %vm807_vm9 = vcmask 883712  }
  0x1b   : > { %vm862_vm10 = vcmask 1044480   ;;  %vm819_vm11 = vcmask 752640   ;;  %vm866_vm12 = vcmask 1045504   ;;  %vm870_vm13 = vcmask 1046528  }
  0x1c   : > { %vm831_vm14 = vcmask 744448   ;;  %vm843_vm15 = vcmask 736256  }
  0x1e   : > { %765 = vrot.lane.b32.xlu1 %v9678_v11, %s9569_s20  ;;  %753 = vrot.lane.b32.xlu0 %v9678_v11, %s9570_s21 }
  0x22   : > { %777 = vrot.lane.b32.xlu1 %v9678_v11, %s9571_s23  ;;  %8568 = vrot.lane.b32.xlu0 %v8562_v10, %s9571_s23 }
  0x26   : > { %789 = vrot.lane.b32.xlu1 %v9678_v11, %s9572_s27  ;;  %8573 = vrot.lane.b32.xlu0 %v8562_v10, %s9572_s27 }
  0x2a   : > { %439 = vperm.xlu1 %8582, %v397_v12   ;;  %8578 = vrot.lane.b32.xlu0 %v8562_v10, %s9573_s28 }
  0x2e   : > { %8584 = vrot.lane.b32.xlu1 %v8562_v10, %s9574_s29  ;;  %801 = vrot.lane.b32.xlu0 %v9678_v11, %s9573_s28 }
  0x32   : > { %8589 = vrot.lane.b32.xlu1 %v8562_v10, %s9575_s30  ;;  %813 = vrot.lane.b32.xlu0 %v9678_v11, %s9574_s29 }
  0x36   : > { %8594 = vrot.lane.b32.xlu1 %v8562_v10, %s9576_s11  ;;  %825 = vrot.lane.b32.xlu0 %v9678_v11, %s9575_s30 }
  0x3a   : > { %444 = vperm.xlu1 %8582, %v398_v13   ;;  %837 = vrot.lane.b32.xlu0 %v9678_v11, %s9576_s11 }
  0x3e   : > { %454 = vperm.xlu1 %8582, %v400_v14   ;;  %449 = vperm.xlu0 %8598, %v399_v15  }
  0x42   : > { %459 = vperm.xlu1 %8582, %v401_v18   ;;  %464 = vperm.xlu0 %8598, %v402_v19  }
  0x46   : > { %469 = vperm.xlu1 %8582, %v403_v25   ;;  %474 = vperm.xlu0 %8598, %v404_v26  }
  0x4a   : > { %876 = vperm.xlu1 %8582, %v501_v32   ;;  %881 = vperm.xlu0 %8598, %v502_v33  }
  0x4e   : > { %886 = vperm.xlu1 %8582, %v503_v40   ;;  %891 = vperm.xlu0 %8598, %v504_v41  }
  0x52   : > { %896 = vperm.xlu1 %8582, %v505_v47   ;;  %901 = vperm.xlu0 %8598, %v506_v48  }
  0x56   : > { %906 = vperm.xlu1 %8582, %v507_v51   ;;  %911 = vperm.xlu0 %8598, %v508_v52  }
  0x8c   : > { %v8559_v53 = vpop.permute.xlu0 %8558  ;;  %v8564_v55 = vpop.permute.xlu1 %8563 }
  0x8d   : > { %v8561_v62 = vunpack.i.h.bf16 %v8559_v53  ;;  %v8560_v63 = vunpack.i.l.bf16 %v8559_v53  ;;  %v8566_v6 = vunpack.i.h.bf16 %v8564_v55  ;;  %v8565_v10 = vunpack.i.l.bf16 %v8564_v55 }
  0x8f   : > { %v761_v13 = vsel %vm759_vm1, %v8560_v63, %v8561_v62  ;;  %v773_v17 = vsel %vm771_vm0, %v8565_v10, %v8566_v6  ;;  %v849_v22 = vsel %vm846_vm2, %v9668_v8, %v8561_v62 }
  0x90   : > { %v754_v54 = vpop.permute.xlu0 %753  ;;  %v766_v57 = vpop.permute.xlu1 %765  ;;  %v848_v21 = vsel %vm846_vm2, %v9664_v7, %v761_v13  ;;  %v853_v8 = vsel %vm850_vm3, %v849_v22, %v8566_v6  ;;  %v430_v13 = vld [vmem:[%s13158_s3 + $0x8] sm:$0xff] }
  0x91   : > { %v760_v15 = vsel %vm759_vm1, %v754_v54, %v8560_v63  ;;  %v772_v26 = vsel %vm771_vm0, %v766_v57, %v8565_v10  ;;  %v852_v7 = vsel %vm850_vm3, %v848_v21, %v773_v17  ;;  %v432_v21 = vld [vmem:[%s13158_s3 + $0x18] sm:$0xff] }
  0x92   : > { %v847_v27 = vsel %vm846_vm2, %v9678_v11, %v760_v15 }
  0x93   : > { %v851_v34 = vsel %vm850_vm3, %v847_v27, %v772_v26  ;;  %vm9578_vm3 = vmmov 1   ;;  %v434_v26 = vld [vmem:[%s13158_s3 + $0x28] sm:$0xff] }
  0x94   : > { %v8569_v56 = vpop.permute.xlu0 %8568  ;;  %v778_v59 = vpop.permute.xlu1 %777 }
  0x95   : > { %v8571_v18 = vunpack.i.h.bf16 %v8569_v56  ;;  %v8570_v19 = vunpack.i.l.bf16 %v8569_v56 }
  0x97   : > { %v784_v32 = vsel %vm783_vm4, %v778_v59, %v8570_v19  ;;  %v785_v33 = vsel %vm783_vm4, %v8570_v19, %v8571_v18  ;;  %v857_v35 = vsel %vm854_vm5, %v853_v8, %v8571_v18  ;;  %v431_v18 = vld [vmem:[%s13158_s3 + $0x10] sm:$0xff]  ;;  %v436_v8 = vld [vmem:[%s13158_s3 + $0x38] sm:$0xff] }
  0x98   : > { %v9758_v58 = vpop.permute.xlu0 %8573  ;;  %v790_v61 = vpop.permute.xlu1 %789  ;;  %v856_v43 = vsel %vm854_vm5, %v852_v7, %v785_v33  ;;  %v855_v45 = vsel %vm854_vm5, %v851_v34, %v784_v32  ;;  %vm9808_vm5 = vmpackc.low %vm846_vm2, %vm9578_vm3  ;;  %vm718_vm2 = vcmask 154624  }
  0x99   : > { %v8576_v23 = vunpack.i.h.bf16 %v9758_v58  ;;  %v8575_v24 = vunpack.i.l.bf16 %v9758_v58  ;;  %719 = vst.msk [vmem:[#allocation2] sm:$0xff] %vm718_vm2, %v13167_v20  ;;  %720 = vst.msk [vmem:[#allocation2 + $0x18] sm:$0xff] %vm718_vm2, %v13167_v20 }
  0x9a   : > { %721 = vst.msk [vmem:[#allocation2 + $0x30] sm:$0xff] %vm718_vm2, %v13167_v20  ;;  %722 = vst.msk [vmem:[#allocation2 + $0x48] sm:$0xff] %vm718_vm2, %v13167_v20 }
  0x9b   : > { %v796_v11 = vsel %vm795_vm6, %v790_v61, %v8575_v24  ;;  %v797_v36 = vsel %vm795_vm6, %v8575_v24, %v8576_v23  ;;  %v861_v44 = vsel %vm858_vm8, %v857_v35, %v8576_v23  ;;  %723 = vst.msk [vmem:[#allocation2 + $0x60] sm:$0xff] %vm718_vm2, %v13167_v20  ;;  %724 = vst.msk [vmem:[#allocation2 + $0x78] sm:$0xff] %vm718_vm2, %v13167_v20 }
  0x9c   : > { %v9760_v60 = vpop.permute.xlu0 %8578  ;;  %v859_v47 = vsel %vm858_vm8, %v855_v45, %v796_v11  ;;  %v860_v50 = vsel %vm858_vm8, %v856_v43, %v797_v36  ;;  %725 = vst.msk [vmem:[#allocation2 + $0x90] sm:$0xff] %vm718_vm2, %v13167_v20  ;;  %726 = vst.msk [vmem:[#allocation2 + $0xa8] sm:$0xff] %vm718_vm2, %v13167_v20  ;;  %v717_v11 = vld [vmem:[%s13164_s9] sm:$0x7]  ;;  %vm1339_vm8 = vcmask 1047704  }
  0x9d   : > { %v8581_v28 = vunpack.i.h.bf16 %v9760_v60  ;;  %v8580_v29 = vunpack.i.l.bf16 %v9760_v60 }
  0x9f   : > { %v809_v39 = vsel %vm807_vm9, %v8580_v29, %v8581_v28  ;;  %v865_v53 = vsel %vm862_vm10, %v861_v44, %v8581_v28 }
  0xa0   : > { %v802_v0 = vpop.permute.xlu0 %801  ;;  %v864_v54 = vsel %vm862_vm10, %v860_v50, %v809_v39 }
  0xa1   : > { %v808_v40 = vsel %vm807_vm9, %v802_v0, %v8580_v29 }
  0xa2   : > { %v863_v51 = vsel %vm862_vm10, %v859_v47, %v808_v40  ;;  %vm1342_vm10 = vcmask 400384  }
  0xa4   : > { %v814_v16 = vpop.permute.xlu0 %813 }
  0xa8   : > { %v826_v37 = vpop.permute.xlu0 %825 }
  0xa9   : > { %v440_v12 = vpop.permute.xlu1 %439 }
  0xaa   : > { %v9766_v14 = vmul.f32 %v440_v12, %v429_v2 }
  0xac   : > { %7338 = vmatprep.mubr.msk.f32.mxu1 %vm914_vm7, %v9766_v14  ;;  %v838_v60 = vpop.permute.xlu0 %837 }
  0xad   : > { %v8585_v25 = vpop.permute.xlu1 %8584 }
  0xae   : > { %v8587_v30 = vunpack.i.h.bf16 %v8585_v25  ;;  %v8586_v31 = vunpack.i.l.bf16 %v8585_v25  ;;  %v433_v25 = vld [vmem:[%s13158_s3 + $0x20] sm:$0xff] }
  0xb0   : > { %v821_v46 = vsel %vm819_vm11, %v8586_v31, %v8587_v30  ;;  %v820_v48 = vsel %vm819_vm11, %v814_v16, %v8586_v31  ;;  %v869_v58 = vsel %vm866_vm12, %v865_v53, %v8587_v30 }
  0xb1   : > { %v8590_v38 = vpop.permute.xlu1 %8589  ;;  %v868_v59 = vsel %vm866_vm12, %v864_v54, %v821_v46  ;;  %v867_v0 = vsel %vm866_vm12, %v863_v51, %v820_v48  ;;  %vm1501_vm12 = vcmask 523264  }
  0xb2   : > { %v8592_v41 = vunpack.i.h.bf16 %v8590_v38  ;;  %v8591_v42 = vunpack.i.l.bf16 %v8590_v38  ;;  %v9900_v38 = vrot.slane %v717_v11, %v748_v5  ;;  %v9909_v5 = vrot.slane %v717_v11, %v744_v4 }
  0xb4   : > { %v833_v49 = vsel %vm831_vm14, %v8591_v42, %v8592_v41  ;;  %v832_v55 = vsel %vm831_vm14, %v826_v37, %v8591_v42  ;;  %v873_v62 = vsel %vm870_vm13, %v869_v58, %v8592_v41  ;;  %13221 = vst [vmem:[#allocation6_spill] sm:$0xff] %v9900_v38  ;;  %v9903_v42 = vrot.slane %v717_v11, %v9671_v9 }
  0xb5   : > { %v8595_v52 = vpop.permute.xlu1 %8594  ;;  %v872_v63 = vsel %vm870_vm13, %v868_v59, %v833_v49  ;;  %v871_v12 = vsel %vm870_vm13, %v867_v0, %v832_v55  ;;  %13223 = vst [vmem:[#allocation8_spill] sm:$0xff] %v9909_v5  ;;  %vm9581_vm13 = vmmov 0  }
  0xb6   : > { %v8596_v56 = vunpack.i.l.bf16 %v8595_v52  ;;  %v8597_v57 = vunpack.i.h.bf16 %v8595_v52  ;;  %13222 = vst [vmem:[#allocation7_spill] sm:$0xff] %v9903_v42 }
  0xb8   : > { %v7779_v2 = vpack.c.bf16 %v8597_v57, %v873_v62  ;;  %v845_v6 = vsel %vm843_vm15, %v8596_v56, %v8597_v57  ;;  %v844_v10 = vsel %vm843_vm15, %v838_v60, %v8596_v56 }
  0xb9   : > { %v445_v15 = vpop.permute.xlu1 %444  ;;  %v7773_v16 = vpack.c.bf16 %v845_v6, %v872_v63  ;;  %v7776_v17 = vpack.c.bf16 %v844_v10, %v871_v12 }
  0xba   : > { %7781 = vmatprep.subr.msk.bf16.mxu1 %vm9808_vm5, %v7779_v2  ;;  %v478_v19 = vmul.f32 %v445_v15, %v430_v13 }
  0xbb   : > { %7775 = vmatprep.subr.msk.bf16.mxu0 %vm9808_vm5, %v7773_v16  ;;  %7784 = vmatpush3.bf16.msk.msra.mxu1 %vm9808_vm5, %v7779_v2 }
  0xbc   : > { %7778 = vmatpush1.bf16.msk.msra.mxu0 %vm9808_vm5, %v7776_v17 }
  0xbd   : > { %v455_v22 = vpop.permute.xlu1 %454  ;;  %v450_v23 = vpop.permute.xlu0 %449 }
  0xbe   : > { %v479_v24 = vmul.f32 %v450_v23, %v431_v18  ;;  %7339 = vmatmul.mubr.msk.f32.vlgmr.msra.gmra.mrb[0].mxu1 %vm914_vm7, %v478_v19  ;;  %v480_v27 = vmul.f32 %v455_v22, %v432_v21 }
  0xbf   : > { %6916 = vmatmul.mubr.msk.f32.vlgmr.msra.gmra.mrb[0].mxu0 %vm914_vm7, %v9766_v14  ;;  %v435_v14 = vld [vmem:[%s13158_s3 + $0x30] sm:$0xff] }
  0xc0   : > { %7341 = vmatprep.mubr.msk.f32.mxu1 %vm914_vm7, %v479_v24  ;;  %1015 = vmatprep.mubr.f32.mxu0 %v13167_v20 }
  0xc1   : > { %v460_v28 = vpop.permute.xlu1 %459  ;;  %v465_v29 = vpop.permute.xlu0 %464 }
  0xc2   : > { %v481_v30 = vmul.f32 %v460_v28, %v433_v25  ;;  %v482_v31 = vmul.f32 %v465_v29, %v434_v26  ;;  %7342 = vmatmul.mubr.msk.f32.gmra.mrb[2].mxu1 %vm914_vm7, %v480_v27 }
  0xc3   : > { %6917 = vmatmul.mubr.msk.f32.gmra.mrb[2].mxu0 %vm914_vm7, %v478_v19 }
  0xc4   : > { %7344 = vmatprep.mubr.msk.f32.mxu1 %vm914_vm7, %v481_v30  ;;  %1021 = vmatprep.mubr.f32.mxu0 %v13167_v20 }
  0xc5   : > { %v470_v7 = vpop.permute.xlu1 %469  ;;  %v475_v32 = vpop.permute.xlu0 %474 }
  0xc6   : > { %v483_v33 = vmul.f32 %v470_v7, %v435_v14  ;;  %7345 = vmatmul.mubr.msk.f32.gmra.mrb[4].mxu1 %vm914_vm7, %v482_v31  ;;  %v484_v34 = vmul.f32 %v475_v32, %v436_v8 }
  0xc7   : > { %6918 = vmatmul.mubr.msk.f32.gmra.mrb[4].mxu0 %vm914_vm7, %v479_v24 }
  0xc8   : > { %7347 = vmatprep.mubr.msk.f32.mxu1 %vm914_vm7, %v483_v33  ;;  %1027 = vmatprep.mubr.f32.mxu0 %v13167_v20 }
  0xc9   : > { %v877_v35 = vpop.permute.xlu1 %876  ;;  %v882_v36 = vpop.permute.xlu0 %881 }
  0xca   : > { %7348 = vmatmul.mubr.msk.f32.gmra.mrb[6].mxu1 %vm914_vm7, %v484_v34 }
  0xcb   : > { %6919 = vmatmul.mubr.msk.f32.gmra.mrb[6].mxu0 %vm914_vm7, %v480_v27  ;;  %1590 = vmatprep.mubr.f32.mxu1 %v13167_v20 }
  0xcc   : > { %1033 = vmatprep.mubr.f32.mxu0 %v13167_v20 }
  0xcd   : > { %v887_v46 = vpop.permute.xlu1 %886  ;;  %v9905_v49 = vpop.permute.xlu0 %891 }
  0xcf   : > { %6920 = vmatmul.mubr.msk.f32.gmra.mrb[8].mxu0 %vm914_vm7, %v481_v30 }
  0xd0   : > { %1039 = vmatprep.mubr.f32.mxu0 %v13167_v20 }
  0xd1   : > { %v902_v15 = vpop.permute.xlu0 %901  ;;  %v897_v27 = vpop.permute.xlu1 %896 }
  0xd3   : > { %6921 = vmatmul.mubr.msk.f32.gmra.mrb[10].mxu0 %vm914_vm7, %v482_v31 }
  0xd4   : > { %1045 = vmatprep.mubr.f32.mxu0 %v13167_v20 }
  0xd7   : > { %6922 = vmatmul.mubr.msk.f32.gmra.mrb[12].mxu0 %vm914_vm7, %v483_v33  ;;  %v907_v33 = vpop.permute.xlu1 %906 }
  0xd8   : > { %1051 = vmatprep.mubr.f32.mxu0 %v13167_v20 }
  0xdb   : > { %6923 = vmatmul.mubr.msk.f32.gmra.mrb[14].mxu0 %vm914_vm7, %v484_v34  ;;  %vm727_vm7 = vcmask 556424  }
  0xdc   : > { %728 = vst.msk [vmem:[#allocation2 + $0x10] sm:$0xff] %vm727_vm7, %v13167_v20  ;;  %729 = vst.msk [vmem:[#allocation2 + $0x28] sm:$0xff] %vm727_vm7, %v13167_v20 }
  0xdd   : > { %730 = vst.msk [vmem:[#allocation2 + $0x40] sm:$0xff] %vm727_vm7, %v13167_v20  ;;  %731 = vst.msk [vmem:[#allocation2 + $0x58] sm:$0xff] %vm727_vm7, %v13167_v20 }
  0xde   : > { %732 = vst.msk [vmem:[#allocation2 + $0x70] sm:$0xff] %vm727_vm7, %v13167_v20  ;;  %733 = vst.msk [vmem:[#allocation2 + $0x88] sm:$0xff] %vm727_vm7, %v13167_v20 }
  0xdf   : > { %734 = vst.msk [vmem:[#allocation2 + $0xa0] sm:$0xff] %vm727_vm7, %v13167_v20  ;;  %735 = vst.msk [vmem:[#allocation2 + $0xb8] sm:$0xff] %vm727_vm7, %v13167_v20 }
 0x191   : > { %v7340_v37 = vpop.f32.mrb[0].mxu1 }
 0x192   : > { %v1130_v39 = vadd.f32 %v7340_v37, %v882_v36  ;;  %v1011_v40 = vpop.f32.mrb[0].mxu0  ;;  %v1124_v41 = vpop.f32.mrb[1].mxu1 }
 0x193   : > { %v1012_v43 = vadd.f32 %v1011_v40, %v877_v35  ;;  %v1125_v44 = vadd.f32 %v1124_v41, %v877_v35  ;;  %v1013_v45 = vpop.f32.mrb[1].mxu0 }
 0x194   : > { %v1168_v47 = vmax.f32 %v1130_v39, 0.0  ;;  %v1014_v48 = vadd.f32 %v1013_v45, %v877_v35 }
 0x195   : > { %v1163_v50 = vmax.f32 %v1012_v43, 0.0  ;;  %v7343_v51 = vpop.f32.mrb[2].mxu1  ;;  %v1165_v58 = vmax.f32 %v1125_v44, 0.0 }
 0x196   : > { %v1208_v52 = vmul.f32 %v9900_v38, %v1168_v47  ;;  %v1164_v53 = vmax.f32 %v1014_v48, 0.0  ;;  %v1140_v54 = vadd.f32 %v7343_v51, %v9905_v49  ;;  %v1017_v55 = vpop.f32.mrb[2].mxu0  ;;  %v1134_v56 = vpop.f32.mrb[3].mxu1 }
 0x197   : > { %v1203_v57 = vmul.f32 %v9903_v42, %v1163_v50  ;;  %v1135_v59 = vadd.f32 %v1134_v56, %v887_v46  ;;  %v1019_v60 = vpop.f32.mrb[3].mxu0  ;;  %v1018_v63 = vadd.f32 %v1017_v55, %v882_v36  ;;  %v1205_v6 = vmul.f32 %v9900_v38, %v1165_v58 }
 0x198   : > { %1261 = vrot.lane.b32.xlu0 %v1208_v52, %s9579_s18  ;;  %v1204_v4 = vmul.f32 %v9909_v5, %v1164_v53  ;;  %v1174_v62 = vmax.f32 %v1140_v54, 0.0  ;;  %v1020_v12 = vadd.f32 %v1019_v60, %v882_v36 }
 0x199   : > { %v7346_v61 = vpop.f32.mrb[4].mxu1  ;;  %1251 = vrot.lane.b32.xlu1 %v1203_v57, %s9579_s18  ;;  %v1171_v10 = vmax.f32 %v1135_v59, 0.0  ;;  %v1166_v18 = vmax.f32 %v1018_v63, 0.0 }
 0x19a   : > { %v1023_v0 = vpop.f32.mrb[4].mxu0  ;;  %v1144_v2 = vpop.f32.mrb[5].mxu1  ;;  %v1214_v17 = vmul.f32 %v9900_v38, %v1174_v62  ;;  %v1150_v19 = vadd.f32 %v7346_v61, %v902_v15  ;;  %v1167_v24 = vmax.f32 %v1020_v12, 0.0 }
 0x19b   : > { %v1025_v13 = vpop.f32.mrb[5].mxu0  ;;  %v1211_v23 = vmul.f32 %v9900_v38, %v1171_v10  ;;  %v1024_v25 = vadd.f32 %v1023_v0, %v887_v46  ;;  %v1206_v28 = vmul.f32 %v9903_v42, %v1166_v18  ;;  %v1145_v8 = vadd.f32 %v1144_v2, %v897_v27  ;;  %v912_v0 = vpop.permute.xlu0 %911 }
 0x19c   : > { %1253 = vrot.lane.b32.xlu0 %v1204_v4, %s9579_s18  ;;  %v1180_v29 = vmax.f32 %v1150_v19, 0.0  ;;  %v1026_v30 = vadd.f32 %v1025_v13, %v887_v46  ;;  %v1207_v14 = vmul.f32 %v9909_v5, %v1167_v24 }
 0x19d   : > { %v9919_v16 = vpop.f32.mrb[6].mxu1  ;;  %1255 = vrot.lane.b32.xlu1 %v1205_v6, %s9579_s18  ;;  %v1169_v7 = vmax.f32 %v1024_v25, 0.0  ;;  %v1177_v39 = vmax.f32 %v1145_v8, 0.0 }
 0x19e   : > { %v1029_v21 = vpop.f32.mrb[6].mxu0  ;;  %v1154_v22 = vpop.f32.mrb[7].mxu1  ;;  %v1220_v34 = vmul.f32 %v9900_v38, %v1180_v29  ;;  %v1170_v35 = vmax.f32 %v1026_v30, 0.0  ;;  %v1160_v18 = vadd.f32 %v9919_v16, %v912_v0  ;;  %v405_v29 = vld [vmem:[%s9693_s26 + $0x40] sm:$0xff] }
 0x19f   : > { %v1031_v26 = vpop.f32.mrb[7].mxu0  ;;  %v1030_v11 = vadd.f32 %v1029_v21, %v9905_v49  ;;  %v1209_v37 = vmul.f32 %v9903_v42, %v1169_v7  ;;  %v1155_v40 = vadd.f32 %v1154_v22, %v907_v33  ;;  %v1217_v47 = vmul.f32 %v9900_v38, %v1177_v39 }
 0x1a0   : > { %1273 = vrot.lane.b32.xlu0 %v1214_v17, %s9579_s18  ;;  %v1210_v43 = vmul.f32 %v9909_v5, %v1170_v35  ;;  %v1032_v50 = vadd.f32 %v1031_v26, %v9905_v49  ;;  %v1186_v24 = vmax.f32 %v1160_v18, 0.0 }
 0x1a1   : > { %1267 = vrot.lane.b32.xlu1 %v1211_v23, %s9579_s18  ;;  %v1172_v44 = vmax.f32 %v1030_v11, 0.0  ;;  %v1183_v48 = vmax.f32 %v1155_v40, 0.0 }
 0x1a2   : > { %v1035_v31 = vpop.f32.mrb[8].mxu0  ;;  %v1173_v57 = vmax.f32 %v1032_v50, 0.0  ;;  %v1226_v16 = vmul.f32 %v9900_v38, %v1186_v24 }
 0x1a3   : > { %v1037_v32 = vpop.f32.mrb[9].mxu0  ;;  %v1212_v52 = vmul.f32 %v9903_v42, %v1172_v44  ;;  %v1223_v56 = vmul.f32 %v9900_v38, %v1183_v48  ;;  %v1036_v58 = vadd.f32 %v1035_v31, %v897_v27 }
 0x1a4   : > { %1257 = vrot.lane.b32.xlu0 %v1206_v28, %s9579_s18  ;;  %v1038_v45 = vadd.f32 %v1037_v32, %v897_v27  ;;  %v1213_v4 = vmul.f32 %v9909_v5, %v1173_v57 }
 0x1a5   : > { %1259 = vrot.lane.b32.xlu1 %v1207_v14, %s9579_s18  ;;  %v1175_v62 = vmax.f32 %v1036_v58, 0.0 }
 0x1a6   : > { %v1041_v36 = vpop.f32.mrb[10].mxu0  ;;  %v1176_v53 = vmax.f32 %v1038_v45, 0.0 }
 0x1a7   : > { %v1043_v41 = vpop.f32.mrb[11].mxu0  ;;  %v1042_v54 = vadd.f32 %v1041_v36, %v902_v15  ;;  %v1215_v12 = vmul.f32 %v9903_v42, %v1175_v62 }
 0x1a8   : > { %1285 = vrot.lane.b32.xlu0 %v1220_v34, %s9579_s18  ;;  %v1216_v49 = vmul.f32 %v9909_v5, %v1176_v53  ;;  %v1044_v63 = vadd.f32 %v1043_v41, %v902_v15 }
 0x1a9   : > { %1263 = vrot.lane.b32.xlu1 %v1209_v37, %s9579_s18  ;;  %v1178_v60 = vmax.f32 %v1042_v54, 0.0 }
 0x1aa   : > { %v1047_v46 = vpop.f32.mrb[12].mxu0  ;;  %v1179_v13 = vmax.f32 %v1044_v63, 0.0 }
 0x1ab   : > { %v1049_v51 = vpop.f32.mrb[13].mxu0  ;;  %v1218_v2 = vmul.f32 %v9903_v42, %v1178_v60  ;;  %v1048_v17 = vadd.f32 %v1047_v46, %v907_v33 }
 0x1ac   : > { %1265 = vrot.lane.b32.xlu0 %v1210_v43, %s9579_s18  ;;  %v1050_v61 = vadd.f32 %v1049_v51, %v907_v33  ;;  %v1219_v21 = vmul.f32 %v9909_v5, %v1179_v13 }
 0x1ad   : > { %1279 = vrot.lane.b32.xlu1 %v1217_v47, %s9579_s18  ;;  %v1181_v22 = vmax.f32 %v1048_v17, 0.0 }
 0x1ae   : > { %v1053_v55 = vpop.f32.mrb[14].mxu0  ;;  %v1182_v6 = vmax.f32 %v1050_v61, 0.0 }
 0x1af   : > { %v1055_v59 = vpop.f32.mrb[15].mxu0  ;;  %v1054_v10 = vadd.f32 %v1053_v55, %v912_v0  ;;  %v1221_v26 = vmul.f32 %v9903_v42, %v1181_v22 }
 0x1b0   : > { %1269 = vrot.lane.b32.xlu0 %v1212_v52, %s9579_s18  ;;  %v1222_v15 = vmul.f32 %v9909_v5, %v1182_v6  ;;  %v1056_v23 = vadd.f32 %v1055_v59, %v912_v0 }
 0x1b1   : > { %1291 = vrot.lane.b32.xlu1 %v1223_v56, %s9579_s18  ;;  %v1184_v19 = vmax.f32 %v1054_v10, 0.0 }
 0x1b2   : > { %v1185_v27 = vmax.f32 %v1056_v23, 0.0 }
 0x1b3   : > { %v1224_v25 = vmul.f32 %v9903_v42, %v1184_v19 }
 0x1b4   : > { %1277 = vrot.lane.b32.xlu0 %v1216_v49, %s9579_s18  ;;  %v1225_v28 = vmul.f32 %v9909_v5, %v1185_v27 }
 0x1b5   : > { %1271 = vrot.lane.b32.xlu1 %v1213_v4, %s9579_s18 }
 0x1b8   : > { %1281 = vrot.lane.b32.xlu0 %v1218_v2, %s9579_s18 }
 0x1b9   : > { %1275 = vrot.lane.b32.xlu1 %v1215_v12, %s9579_s18 }
 0x1bc   : > { %1289 = vrot.lane.b32.xlu0 %v1222_v15, %s9579_s18 }
 0x1bd   : > { %1283 = vrot.lane.b32.xlu1 %v1219_v21, %s9579_s18 }
 0x1c0   : > { %1293 = vrot.lane.b32.xlu0 %v1224_v25, %s9579_s18 }
 0x1c1   : > { %1287 = vrot.lane.b32.xlu1 %v1221_v26, %s9579_s18 }
 0x1c4   : > { %1297 = vrot.lane.b32.xlu0 %v1226_v16, %s9579_s18 }
 0x1c5   : > { %1295 = vrot.lane.b32.xlu1 %v1225_v28, %s9579_s18 }
 0x1c8   : > { %583 = vperm.xlu0 %8598, %v405_v29  }
 0x20a   : > { %v1262_v30 = vpop.permute.xlu0 %1261 }
 0x20b   : > { %v1252_v31 = vpop.permute.xlu1 %1251 }
 0x20c   : > { %1340 = vst.msk [vmem:[#allocation2] sm:$0xff] %vm1339_vm8, %v1252_v31 }
 0x20e   : > { %v1254_v14 = vpop.permute.xlu0 %1253 }
 0x20f   : > { %v1256_v7 = vpop.permute.xlu1 %1255  ;;  %v9971_v11 = vsel %vm718_vm2, %v1252_v31, %v1254_v14 }
 0x210   : > { %v1300_v8 = vsel %vm718_vm2, %v1254_v14, %v1256_v7 }
 0x211   : > { %1343 = vst.msk [vmem:[#allocation2 + $0x10] sm:$0xff] %vm1342_vm10, %v1300_v8 }
 0x212   : > { %v1274_v32 = vpop.permute.xlu0 %1273 }
 0x213   : > { %v1268_v33 = vpop.permute.xlu1 %1267  ;;  %v9989_v46 = vld [vmem:[#allocation2] sm:$0xff] }
 0x216   : > { %v1258_v34 = vpop.permute.xlu0 %1257 }
 0x217   : > { %1344 = vst.msk [vmem:[#allocation2 + $0x18] sm:$0xff] %vm1339_vm8, %v1258_v34  ;;  %v1260_v35 = vpop.permute.xlu1 %1259 }
 0x218   : > { %v9974_v36 = vsel %vm718_vm2, %v1258_v34, %v1260_v35  ;;  %v1302_v37 = vsel %vm718_vm2, %v1260_v35, %v1262_v30  ;;  %v9977_v39 = vld [vmem:[#allocation2 + $0x10] sm:$0xff] }
 0x219   : > { %1346 = vst.msk [vmem:[#allocation2 + $0x28] sm:$0xff] %vm1342_vm10, %v1302_v37  ;;  %v9982_v40 = vpack.i.bf16 %v9977_v39, %v9971_v11 }
 0x21a   : > { %v1286_v43 = vpop.permute.xlu0 %1285 }
 0x21b   : > { %8600 = vrot.lane.b32.xlu1 %v9982_v40, %s9570_s21  ;;  %v1264_v44 = vpop.permute.xlu1 %1263 }
 0x21c   : > { %1347 = vst.msk [vmem:[#allocation2 + $0x30] sm:$0xff] %vm1339_vm8, %v1264_v44 }
 0x21e   : > { %v1266_v45 = vpop.permute.xlu0 %1265  ;;  %v9991_v47 = vld [vmem:[#allocation2 + $0x18] sm:$0xff] }
 0x21f   : > { %v1304_v48 = vsel %vm718_vm2, %v1266_v45, %v1268_v33  ;;  %v1280_v50 = vpop.permute.xlu1 %1279  ;;  %v9996_v51 = vpack.i.bf16 %v9991_v47, %v9989_v46  ;;  %v10011_v57 = vsel %vm718_vm2, %v1264_v44, %v1266_v45 }
 0x220   : > { %1349 = vst.msk [vmem:[#allocation2 + $0x40] sm:$0xff] %vm1342_vm10, %v1304_v48  ;;  %v9999_v52 = vld [vmem:[#allocation2 + $0x28] sm:$0xff] }
 0x221   : > { %8605 = vrot.lane.b32.xlu1 %v9996_v51, %s9570_s21  ;;  %v10005_v53 = vpack.i.bf16 %v9999_v52, %v9974_v36 }
 0x222   : > { %v1270_v54 = vpop.permute.xlu0 %1269 }
 0x223   : > { %1350 = vst.msk [vmem:[#allocation2 + $0x48] sm:$0xff] %vm1339_vm8, %v1270_v54  ;;  %8610 = vrot.lane.b32.xlu0 %v10005_v53, %s9570_s21  ;;  %v1292_v55 = vpop.permute.xlu1 %1291  ;;  %v10030_v0 = vld [vmem:[#allocation2 + $0x30] sm:$0xff] }
 0x226   : > { %v1278_v56 = vpop.permute.xlu0 %1277 }
 0x227   : > { %v1308_v58 = vsel %vm718_vm2, %v1278_v56, %v1280_v50  ;;  %v1272_v59 = vpop.permute.xlu1 %1271  ;;  %v10014_v49 = vld [vmem:[#allocation2 + $0x40] sm:$0xff] }
 0x228   : > { %1355 = vst.msk [vmem:[#allocation2 + $0x70] sm:$0xff] %vm1342_vm10, %v1308_v58  ;;  %v10018_v60 = vsel %vm718_vm2, %v1270_v54, %v1272_v59  ;;  %v1306_v61 = vsel %vm718_vm2, %v1272_v59, %v1274_v32  ;;  %v10023_v4 = vpack.i.bf16 %v10014_v49, %v10011_v57  ;;  %v10127_v54 = vld [vmem:[%s9693_s26 + $0x50] sm:$0xff] }
 0x229   : > { %1352 = vst.msk [vmem:[#allocation2 + $0x58] sm:$0xff] %vm1342_vm10, %v1306_v61  ;;  %v10143_v61 = vld [vmem:[%s9693_s26 + $0x60] sm:$0xff] }
 0x22a   : > { %v1282_v63 = vpop.permute.xlu0 %1281  ;;  %8615 = vrot.lane.b32.xlu0 %v10023_v4, %s9570_s21  ;;  %v10032_v2 = vld [vmem:[#allocation2 + $0x48] sm:$0xff] }
 0x22b   : > { %1356 = vst.msk [vmem:[#allocation2 + $0x78] sm:$0xff] %vm1339_vm8, %v1282_v63  ;;  %v1276_v6 = vpop.permute.xlu1 %1275  ;;  %v10037_v10 = vpack.i.bf16 %v10032_v2, %v10030_v0 }
 0x22c   : > { %1353 = vst.msk [vmem:[#allocation2 + $0x60] sm:$0xff] %vm1339_vm8, %v1276_v6  ;;  %v10044_v18 = vsel %vm718_vm2, %v1276_v6, %v1278_v56  ;;  %v517_v56 = vld [vmem:[%s13160_s5 + $0x40] sm:$0xff]  ;;  %v10153_v6 = vld [vmem:[%s9693_s26 + $0x70] sm:$0xff] }
 0x22e   : > { %v1290_v12 = vpop.permute.xlu0 %1289  ;;  %8620 = vrot.lane.b32.xlu0 %v10037_v10, %s9570_s21 }
 0x22f   : > { %v1312_v13 = vsel %vm718_vm2, %v1290_v12, %v1292_v55  ;;  %v1284_v17 = vpop.permute.xlu1 %1283  ;;  %v10060_v25 = vld [vmem:[#allocation2 + $0x70] sm:$0xff]  ;;  %v10130_v55 = vld [vmem:[%s9693_s26 + $0x48] sm:$0xff] }
 0x230   : > { %1361 = vst.msk [vmem:[#allocation2 + $0xa0] sm:$0xff] %vm1342_vm10, %v1312_v13  ;;  %v10048_v15 = vsel %vm718_vm2, %v1282_v63, %v1284_v17  ;;  %v1310_v19 = vsel %vm718_vm2, %v1284_v17, %v1286_v43  ;;  %v10051_v21 = vld [vmem:[#allocation2 + $0x58] sm:$0xff]  ;;  %v10068_v27 = vpack.i.bf16 %v10060_v25, %v10044_v18 }
 0x231   : > { %1358 = vst.msk [vmem:[#allocation2 + $0x88] sm:$0xff] %vm1342_vm10, %v1310_v19  ;;  %v10056_v22 = vpack.i.bf16 %v10051_v21, %v10018_v60  ;;  %v10146_v63 = vld [vmem:[%s9693_s26 + $0x58] sm:$0xff] }
 0x232   : > { %v1294_v24 = vpop.permute.xlu0 %1293  ;;  %v10072_v29 = vld [vmem:[#allocation2 + $0x78] sm:$0xff] }
 0x233   : > { %1362 = vst.msk [vmem:[#allocation2 + $0xa8] sm:$0xff] %vm1339_vm8, %v1294_v24  ;;  %8625 = vrot.lane.b32.xlu1 %v10056_v22, %s9570_s21  ;;  %v1288_v26 = vpop.permute.xlu1 %1287  ;;  %v10070_v28 = vld [vmem:[#allocation2 + $0x60] sm:$0xff]  ;;  %v10161_v13 = vld [vmem:[%s9693_s26 + $0x78] sm:$0xff] }
 0x234   : > { %1359 = vst.msk [vmem:[#allocation2 + $0x90] sm:$0xff] %vm1339_vm8, %v1288_v26  ;;  %v10077_v31 = vsel %vm718_vm2, %v1288_v26, %v1290_v12  ;;  %v10088_v32 = vpack.i.bf16 %v10072_v29, %v10070_v28  ;;  %v10156_v12 = vld [vmem:[%s9693_s26 + $0x68] sm:$0xff] }
 0x236   : > { %v1298_v16 = vpop.permute.xlu0 %1297 }
 0x237   : > { %8630 = vrot.lane.b32.xlu1 %v10068_v27, %s9570_s21  ;;  %v1296_v30 = vpop.permute.xlu1 %1295  ;;  %v10096_v35 = vld [vmem:[#allocation2 + $0xa0] sm:$0xff] }
 0x238   : > { %v10080_v14 = vsel %vm718_vm2, %v1294_v24, %v1296_v30  ;;  %v1314_v7 = vsel %vm718_vm2, %v1296_v30, %v1298_v16  ;;  %v10083_v8 = vld [vmem:[#allocation2 + $0x88] sm:$0xff]  ;;  %v10104_v37 = vpack.i.bf16 %v10096_v35, %v10077_v31 }
 0x239   : > { %1364 = vst.msk [vmem:[#allocation2 + $0xb8] sm:$0xff] %vm1342_vm10, %v1314_v7  ;;  %v10092_v33 = vpack.i.bf16 %v10083_v8, %v10048_v15 }
 0x23a   : > { %v10108_v44 = vld [vmem:[#allocation2 + $0xa8] sm:$0xff] }
 0x23b   : > { %8635 = vrot.lane.b32.xlu1 %v10088_v32, %s9570_s21  ;;  %8640 = vrot.lane.b32.xlu0 %v10092_v33, %s9570_s21  ;;  %v10106_v43 = vld [vmem:[#allocation2 + $0x90] sm:$0xff] }
 0x23c   : > { %v10116_v48 = vpack.i.bf16 %v10108_v44, %v10106_v43 }
 0x23f   : > { %8645 = vrot.lane.b32.xlu1 %v10104_v37, %s9570_s21 }
 0x240   : > { %v10112_v45 = vld [vmem:[#allocation2 + $0xb8] sm:$0xff] }
 0x241   : > { %v10120_v50 = vpack.i.bf16 %v10112_v45, %v10080_v14 }
 0x243   : > { %8650 = vrot.lane.b32.xlu1 %v10116_v48, %s9570_s21  ;;  %8655 = vrot.lane.b32.xlu0 %v10120_v50, %s9570_s21 }
 0x247   : > { %v10135_v58 = vpop.permute.xlu0 %583  ;;  %593 = vperm.xlu1 %8582, %v10127_v54   ;;  %588 = vperm.xlu0 %8598, %v10130_v55  }
 0x248   : > { %v10140_v59 = vmul.f32 %v10135_v58, %v517_v56 }
 0x24a   : > { %7366 = vmatprep.mubr.msk.f32.mxu0 %vm1501_vm12, %v10140_v59 }
 0x24b   : > { %603 = vperm.xlu1 %8582, %v10143_v61   ;;  %598 = vperm.xlu0 %8598, %v10146_v63  }
 0x24f   : > { %613 = vperm.xlu1 %8582, %v10153_v6   ;;  %608 = vperm.xlu0 %8598, %v10156_v12  }
 0x253   : > { %8660 = vrot.lane.b32.xlu1 %v9982_v40, %s9569_s20  ;;  %618 = vperm.xlu0 %8598, %v10161_v13  }
 0x257   : > { %8670 = vrot.lane.b32.xlu1 %v9996_v51, %s9569_s20  ;;  %8665 = vrot.lane.b32.xlu0 %v10005_v53, %s9569_s20 }
 0x25b   : > { %8680 = vrot.lane.b32.xlu1 %v10056_v22, %s9569_s20  ;;  %8675 = vrot.lane.b32.xlu0 %v10023_v4, %s9569_s20 }
 0x25f   : > { %8690 = vrot.lane.b32.xlu1 %v10068_v27, %s9569_s20  ;;  %8685 = vrot.lane.b32.xlu0 %v10037_v10, %s9569_s20 }
 0x263   : > { %8700 = vrot.lane.b32.xlu1 %v10088_v32, %s9569_s20  ;;  %8695 = vrot.lane.b32.xlu0 %v10092_v33, %s9569_s20 }
 0x267   : > { %8710 = vrot.lane.b32.xlu1 %v10120_v50, %s9569_s20  ;;  %8705 = vrot.lane.b32.xlu0 %v10104_v37, %s9569_s20 }
 0x26b   : > { %8720 = vrot.lane.b32.xlu1 %v9982_v40, %s9571_s23  ;;  %8715 = vrot.lane.b32.xlu0 %v10116_v48, %s9569_s20 }
 0x26f   : > { %8730 = vrot.lane.b32.xlu1 %v9996_v51, %s9571_s23  ;;  %8725 = vrot.lane.b32.xlu0 %v10005_v53, %s9571_s23 }
 0x273   : > { %8740 = vrot.lane.b32.xlu1 %v10056_v22, %s9571_s23  ;;  %8735 = vrot.lane.b32.xlu0 %v10023_v4, %s9571_s23 }
 0x277   : > { %8750 = vrot.lane.b32.xlu1 %v10068_v27, %s9571_s23  ;;  %8745 = vrot.lane.b32.xlu0 %v10037_v10, %s9571_s23 }
 0x27b   : > { %8760 = vrot.lane.b32.xlu1 %v10088_v32, %s9571_s23  ;;  %8755 = vrot.lane.b32.xlu0 %v10092_v33, %s9571_s23 }
 0x27f   : > { %8770 = vrot.lane.b32.xlu1 %v10120_v50, %s9571_s23  ;;  %8765 = vrot.lane.b32.xlu0 %v10104_v37, %s9571_s23 }
 0x283   : > { %8780 = vrot.lane.b32.xlu1 %v9982_v40, %s9572_s27  ;;  %8775 = vrot.lane.b32.xlu0 %v10116_v48, %s9571_s23 }
 0x287   : > { %8790 = vrot.lane.b32.xlu1 %v9996_v51, %s9572_s27  ;;  %8785 = vrot.lane.b32.xlu0 %v10005_v53, %s9572_s27 }
 0x28b   : > { %8800 = vrot.lane.b32.xlu1 %v10056_v22, %s9572_s27  ;;  %8795 = vrot.lane.b32.xlu0 %v10023_v4, %s9572_s27 }
 0x28d   : > { %v8601_v17 = vpop.permute.xlu1 %8600 }
 0x28e   : > { %v8603_v19 = vunpack.i.h.bf16 %v8601_v17  ;;  %v8602_v24 = vunpack.i.l.bf16 %v8601_v17 }
 0x28f   : > { %8810 = vrot.lane.b32.xlu1 %v10068_v27, %s9572_s27  ;;  %8805 = vrot.lane.b32.xlu0 %v10037_v10, %s9572_s27 }
 0x290   : > { %v1462_v17 = vsel %vm759_vm1, %v8602_v24, %v8603_v19 }
 0x293   : > { %8820 = vrot.lane.b32.xlu1 %v10088_v32, %s9572_s27  ;;  %8815 = vrot.lane.b32.xlu0 %v10092_v33, %s9572_s27  ;;  %v8606_v26 = vpop.permute.xlu1 %8605 }
 0x294   : > { %v8607_v16 = vunpack.i.l.bf16 %v8606_v26  ;;  %v8608_v7 = vunpack.i.h.bf16 %v8606_v26 }
 0x295   : > { %v8611_v30 = vpop.permute.xlu0 %8610 }
 0x296   : > { %v8613_v56 = vunpack.i.h.bf16 %v8611_v30  ;;  %v8612_v1 = vunpack.i.l.bf16 %v8611_v30  ;;  %v1461_v34 = vsel %vm759_vm1, %v8607_v16, %v8602_v24 }
 0x297   : > { %8830 = vrot.lane.b32.xlu1 %v10120_v50, %s9572_s27  ;;  %8825 = vrot.lane.b32.xlu0 %v10104_v37, %s9572_s27 }
 0x298   : > { %v1463_v23 = vsel %vm759_vm1, %v8608_v7, %v8612_v1  ;;  %v7801_v62 = vpack.c.bf16 %v8613_v56, %v8603_v19  ;;  %v1464_v20 = vsel %vm759_vm1, %v8612_v1, %v8613_v56 }
 0x299   : > { %v7785_v41 = vpack.c.bf16 %v1464_v20, %v1462_v17  ;;  %v7787_v3 = vpack.c.bf16 %v1463_v23, %v1461_v34 }
 0x29a   : > { %7802 = vmatprep.subr.bf16.mxu0 %v7801_v62 }
 0x29b   : > { %8840 = vrot.lane.b32.xlu1 %v9982_v40, %s9573_s28  ;;  %8835 = vrot.lane.b32.xlu0 %v10116_v48, %s9572_s27 }
 0x29c   : > { %7786 = vmatprep.subr.bf16.mxu1 %v7785_v41  ;;  %7804 = vmatpush3.bf16.msra.mxu0 %v7801_v62  ;;  %v8616_v26 = vpop.permute.xlu0 %8615 }
 0x29d   : > { %7788 = vmatpush1.bf16.msra.mxu1 %v7787_v3  ;;  %v8618_v20 = vunpack.i.h.bf16 %v8616_v26  ;;  %v8617_v23 = vunpack.i.l.bf16 %v8616_v26 }
 0x29f   : > { %8850 = vrot.lane.b32.xlu1 %v9996_v51, %s9573_s28  ;;  %8845 = vrot.lane.b32.xlu0 %v10005_v53, %s9573_s28  ;;  %v1466_v24 = vsel %vm759_vm1, %v8617_v23, %v8618_v20 }
 0x2a0   : > { %v8621_v1 = vpop.permute.xlu0 %8620 }
 0x2a1   : > { %v8622_v34 = vunpack.i.l.bf16 %v8621_v1  ;;  %v8623_v62 = vunpack.i.h.bf16 %v8621_v1 }
 0x2a3   : > { %8860 = vrot.lane.b32.xlu1 %v10056_v22, %s9573_s28  ;;  %8855 = vrot.lane.b32.xlu0 %v10023_v4, %s9573_s28  ;;  %v1465_v16 = vsel %vm759_vm1, %v8622_v34, %v8617_v23 }
 0x2a5   : > { %v8626_v41 = vpop.permute.xlu1 %8625 }
 0x2a6   : > { %v8628_v19 = vunpack.i.h.bf16 %v8626_v41  ;;  %v8627_v3 = vunpack.i.l.bf16 %v8626_v41 }
 0x2a7   : > { %8870 = vrot.lane.b32.xlu1 %v10068_v27, %s9573_s28  ;;  %8865 = vrot.lane.b32.xlu0 %v10037_v10, %s9573_s28 }
 0x2a8   : > { %v1467_v30 = vsel %vm759_vm1, %v8623_v62, %v8627_v3  ;;  %v7805_v7 = vpack.c.bf16 %v8628_v19, %v8618_v20  ;;  %v1468_v56 = vsel %vm759_vm1, %v8627_v3, %v8628_v19 }
 0x2a9   : > { %v8631_v17 = vpop.permute.xlu1 %8630  ;;  %v7789_v26 = vpack.c.bf16 %v1468_v56, %v1466_v24  ;;  %v7791_v1 = vpack.c.bf16 %v1467_v30, %v1465_v16 }
 0x2aa   : > { %7806 = vmatprep.subr.bf16.mxu0 %v7805_v7  ;;  %v8633_v41 = vunpack.i.h.bf16 %v8631_v17  ;;  %v8632_v9 = vunpack.i.l.bf16 %v8631_v17 }
 0x2ab   : > { %8880 = vrot.lane.b32.xlu1 %v10088_v32, %s9573_s28  ;;  %8875 = vrot.lane.b32.xlu0 %v10092_v33, %s9573_s28 }
 0x2ac   : > { %7790 = vmatprep.subr.bf16.mxu1 %v7789_v26  ;;  %7808 = vmatpush3.bf16.msra.mxu0 %v7805_v7  ;;  %v1470_v24 = vsel %vm759_vm1, %v8632_v9, %v8633_v41 }
 0x2ad   : > { %7792 = vmatpush1.bf16.msra.mxu1 %v7791_v1  ;;  %v8641_v23 = vpop.permute.xlu0 %8640  ;;  %v8636_v34 = vpop.permute.xlu1 %8635 }
 0x2ae   : > { %v8643_v20 = vunpack.i.h.bf16 %v8641_v23  ;;  %v8642_v62 = vunpack.i.l.bf16 %v8641_v23  ;;  %v8638_v19 = vunpack.i.h.bf16 %v8636_v34  ;;  %v8637_v3 = vunpack.i.l.bf16 %v8636_v34 }
 0x2af   : > { %8890 = vrot.lane.b32.xlu1 %v10120_v50, %s9573_s28  ;;  %8885 = vrot.lane.b32.xlu0 %v10104_v37, %s9573_s28 }
 0x2b0   : > { %v1471_v16 = vsel %vm759_vm1, %v8638_v19, %v8642_v62  ;;  %v1469_v30 = vsel %vm759_vm1, %v8637_v3, %v8632_v9  ;;  %v7809_v7 = vpack.c.bf16 %v8643_v20, %v8633_v41  ;;  %v1472_v56 = vsel %vm759_vm1, %v8642_v62, %v8643_v20 }
 0x2b1   : > { %v8646_v17 = vpop.permute.xlu1 %8645  ;;  %v7793_v26 = vpack.c.bf16 %v1472_v56, %v1470_v24  ;;  %v7795_v1 = vpack.c.bf16 %v1471_v16, %v1469_v30 }
 0x2b2   : > { %7810 = vmatprep.subr.bf16.mxu0 %v7809_v7  ;;  %v8648_v23 = vunpack.i.h.bf16 %v8646_v17  ;;  %v8647_v34 = vunpack.i.l.bf16 %v8646_v17 }
 0x2b3   : > { %8900 = vrot.lane.b32.xlu1 %v9982_v40, %s9574_s29  ;;  %8895 = vrot.lane.b32.xlu0 %v10116_v48, %s9573_s28 }
 0x2b4   : > { %7794 = vmatprep.subr.bf16.mxu1 %v7793_v26  ;;  %7812 = vmatpush3.bf16.msra.mxu0 %v7809_v7  ;;  %v1474_v24 = vsel %vm759_vm1, %v8647_v34, %v8648_v23 }
 0x2b5   : > { %7796 = vmatpush1.bf16.msra.mxu1 %v7795_v1  ;;  %v8656_v19 = vpop.permute.xlu0 %8655  ;;  %v8651_v9 = vpop.permute.xlu1 %8650  ;;  %v7833_v1 = vpack.c.bf16 %v9999_v52, %v9977_v39  ;;  %v13225_v39 = vmov 0.0   ;;  %v13226_v52 = vpack.c.bf16 %v10018_v60, %v10011_v57 }
 0x2b6   : > { %v8658_v41 = vunpack.i.h.bf16 %v8656_v19  ;;  %v8657_v3 = vunpack.i.l.bf16 %v8656_v19  ;;  %v8653_v20 = vunpack.i.h.bf16 %v8651_v9  ;;  %v8652_v62 = vunpack.i.l.bf16 %v8651_v9 }
 0x2b7   : > { %8910 = vrot.lane.b32.xlu1 %v9996_v51, %s9574_s29  ;;  %8905 = vrot.lane.b32.xlu0 %v10005_v53, %s9574_s29  ;;  %v7837_v9 = vpack.c.bf16 %v10051_v21, %v10014_v49  ;;  %v523_v49 = vld [vmem:[%s13160_s5 + $0x70] sm:$0xff] }
 0x2b8   : > { %v1475_v16 = vsel %vm759_vm1, %v8653_v20, %v8657_v3  ;;  %v1473_v30 = vsel %vm759_vm1, %v8652_v62, %v8647_v34  ;;  %v7813_v7 = vpack.c.bf16 %v8658_v41, %v8648_v23  ;;  %v1476_v56 = vsel %vm759_vm1, %v8657_v3, %v8658_v41  ;;  %v522_v3 = vld [vmem:[%s13160_s5 + $0x68] sm:$0xff] }
 0x2b9   : > { %v7797_v17 = vpack.c.bf16 %v1476_v56, %v1474_v24  ;;  %v7799_v26 = vpack.c.bf16 %v1475_v16, %v1473_v30  ;;  %v13224_v23 = vpack.c.bf16 %v9974_v36, %v9971_v11  ;;  %v7819_v34 = vpack.c.bf16 %v9991_v47, %v9989_v46  ;;  %v518_v36 = vld [vmem:[%s13160_s5 + $0x48] sm:$0xff]  ;;  %v519_v46 = vld [vmem:[%s13160_s5 + $0x50] sm:$0xff]  ;;  %v524_v24 = vld [vmem:[%s13160_s5 + $0x78] sm:$0xff] }
 0x2ba   : > { %7814 = vmatprep.subr.bf16.mxu0 %v7813_v7  ;;  %v7823_v11 = vpack.c.bf16 %v10032_v2, %v10030_v0  ;;  %v13227_v47 = vpack.c.bf16 %v10048_v15, %v10044_v18  ;;  %v7827_v0 = vpack.c.bf16 %v10072_v29, %v10070_v28  ;;  %v520_v18 = vld [vmem:[%s13160_s5 + $0x58] sm:$0xff]  ;;  %v521_v15 = vld [vmem:[%s13160_s5 + $0x60] sm:$0xff]  ;;  %v13228_v28 = vpack.c.bf16 %v10080_v14, %v10077_v31 }
 0x2bb   : > { %8920 = vrot.lane.b32.xlu1 %v10056_v22, %s9574_s29  ;;  %8915 = vrot.lane.b32.xlu0 %v10023_v4, %s9574_s29  ;;  %v7831_v31 = vpack.c.bf16 %v10108_v44, %v10106_v43  ;;  %v7841_v44 = vpack.c.bf16 %v10083_v8, %v10060_v25  ;;  %v7845_v16 = vpack.c.bf16 %v10112_v45, %v10096_v35  ;;  %v510_v35 = vld [vmem:[%s13160_s5 + $0x8] sm:$0xff] }
 0x2bc   : > { %7798 = vmatprep.subr.bf16.mxu1 %v7797_v17  ;;  %7816 = vmatpush3.bf16.msra.mxu0 %v7813_v7  ;;  %v509_v7 = vld [vmem:[%s13160_s5] sm:$0xff] }
 0x2bd   : > { %7800 = vmatpush1.bf16.msra.mxu1 %v7799_v26  ;;  %7834 = vmatprep.subr.bf16.mxu0 %v7833_v1  ;;  %v10411_v17 = vmul.f32 %v10135_v58, %v509_v7  ;;  %v511_v26 = vld [vmem:[%s13160_s5 + $0x10] sm:$0xff] }
 0x2be   : > { %7818 = vmatprep.subr.bf16.mxu1 %v13224_v23 }
 0x2bf   : > { %8930 = vrot.lane.b32.xlu1 %v10068_v27, %s9574_s29  ;;  %8925 = vrot.lane.b32.xlu0 %v10037_v10, %s9574_s29 }
 0x2c0   : > { %6933 = vmatmul.mubr.msk.f32.vlgmr.msra.gmra.mrb[8].mxu1 %vm1501_vm12, %v10140_v59 }
 0x2c1   : > { %7820 = vmatpush1.bf16.msra.mxu1 %v7819_v34  ;;  %1596 = vmatprep.mubr.f32.mxu1 %v13225_v39 }
 0x2c2   : > { %7822 = vmatprep.subr.bf16.mxu1 %v13226_v52 }
 0x2c3   : > { %8940 = vrot.lane.b32.xlu1 %v10088_v32, %s9574_s29  ;;  %8935 = vrot.lane.b32.xlu0 %v10092_v33, %s9574_s29 }
 0x2c5   : > { %7824 = vmatpush1.bf16.msra.mxu1 %v7823_v11 }
 0x2c6   : > { %7826 = vmatprep.subr.bf16.mxu1 %v13227_v47  ;;  %v10318_v57 = vpop.permute.xlu0 %588  ;;  %v10320_v60 = vpop.permute.xlu1 %593 }
 0x2c7   : > { %8950 = vrot.lane.b32.xlu1 %v10120_v50, %s9574_s29  ;;  %8945 = vrot.lane.b32.xlu0 %v10104_v37, %s9574_s29  ;;  %v630_v2 = vmul.f32 %v10318_v57, %v518_v36  ;;  %v631_v59 = vmul.f32 %v10320_v60, %v519_v46  ;;  %v10423_v11 = vmul.f32 %v10318_v57, %v510_v35  ;;  %v515_v35 = vld [vmem:[%s13160_s5 + $0x30] sm:$0xff] }
 0x2c8   : > { %v10430_v36 = vmul.f32 %v10320_v60, %v511_v26 }
 0x2c9   : > { %7828 = vmatpush1.bf16.msra.mxu1 %v7827_v0  ;;  %7367 = vmatmul.mubr.msk.f32.vlgmr.msra.gmra.mrb[16].mxu0 %vm1501_vm12, %v630_v2 }
 0x2ca   : > { %6934 = vmatmul.mubr.msk.f32.gmra.mrb[10].mxu1 %vm1501_vm12, %v630_v2  ;;  %7830 = vmatprep.subr.bf16.mxu1 %v13228_v28  ;;  %v10341_v29 = vpop.permute.xlu0 %598  ;;  %v10343_v19 = vpop.permute.xlu1 %603 }
 0x2cb   : > { %7836 = vmatpush3.bf16.msra.mxu0 %v7833_v1  ;;  %7369 = vmatprep.mubr.msk.f32.mxu0 %vm1501_vm12, %v631_v59  ;;  %v632_v41 = vmul.f32 %v10341_v29, %v520_v18  ;;  %v633_v14 = vmul.f32 %v10343_v19, %v521_v15 }
 0x2cc   : > { %7838 = vmatprep.subr.bf16.mxu0 %v7837_v9  ;;  %8960 = vrot.lane.b32.xlu1 %v9982_v40, %s9575_s30 }
 0x2cd   : > { %8955 = vrot.lane.b32.xlu0 %v10116_v48, %s9574_s29  ;;  %1602 = vmatprep.mubr.f32.mxu1 %v13225_v39 }
 0x2ce   : > { %7832 = vmatpush1.bf16.msra.mxu1 %v7831_v31  ;;  %7370 = vmatmul.mubr.msk.f32.gmra.mrb[18].mxu0 %vm1501_vm12, %v632_v41  ;;  %v10364_v21 = vpop.permute.xlu0 %608  ;;  %v10366_v43 = vpop.permute.xlu1 %613 }
 0x2cf   : > { %6935 = vmatmul.mubr.msk.f32.gmra.mrb[12].mxu1 %vm1501_vm12, %v631_v59  ;;  %7840 = vmatpush3.bf16.msra.mxu0 %v7837_v9  ;;  %v634_v20 = vmul.f32 %v10364_v21, %v522_v3  ;;  %v10374_v62 = vmul.f32 %v10366_v43, %v523_v49  ;;  %v512_v59 = vld [vmem:[%s13160_s5 + $0x18] sm:$0xff]  ;;  %v513_v9 = vld [vmem:[%s13160_s5 + $0x20] sm:$0xff] }
 0x2d0   : > { %7372 = vmatprep.mubr.msk.f32.mxu0 %vm1501_vm12, %v633_v14  ;;  %7842 = vmatprep.subr.bf16.mxu0 %v7841_v44  ;;  %v10457_v3 = vmul.f32 %v10341_v29, %v512_v59  ;;  %v10467_v7 = vmul.f32 %v10343_v19, %v513_v9 }
 0x2d1   : > { %8970 = vrot.lane.b32.xlu1 %v9996_v51, %s9575_s30  ;;  %8965 = vrot.lane.b32.xlu0 %v10005_v53, %s9575_s30 }
 0x2d2   : > { %1608 = vmatprep.mubr.f32.mxu1 %v13225_v39  ;;  %7373 = vmatmul.mubr.msk.f32.gmra.mrb[20].mxu0 %vm1501_vm12, %v634_v20  ;;  %v10385_v25 = vpop.permute.xlu0 %618  ;;  %v10387_v8 = vpop.permute.xlu1 %8660 }
 0x2d3   : > { %6936 = vmatmul.mubr.msk.f32.gmra.mrb[14].mxu1 %vm1501_vm12, %v632_v41  ;;  %7844 = vmatpush3.bf16.msra.mxu0 %v7841_v44  ;;  %v10393_v30 = vmul.f32 %v10385_v25, %v524_v24  ;;  %v8663_v1 = vunpack.i.h.bf16 %v10387_v8  ;;  %v8662_v23 = vunpack.i.l.bf16 %v10387_v8  ;;  %v514_v44 = vld [vmem:[%s13160_s5 + $0x28] sm:$0xff] }
 0x2d4   : > { %7375 = vmatprep.mubr.msk.f32.mxu0 %vm1501_vm12, %v10374_v62  ;;  %7846 = vmatprep.subr.bf16.mxu0 %v7845_v16 }
 0x2d5   : > { %8980 = vrot.lane.b32.xlu1 %v10056_v22, %s9575_s30  ;;  %8975 = vrot.lane.b32.xlu0 %v10023_v4, %s9575_s30  ;;  %v2035_v28 = vsel %vm771_vm0, %v8662_v23, %v8663_v1 }
 0x2d6   : > { %1614 = vmatprep.mubr.f32.mxu1 %v13225_v39  ;;  %7376 = vmatmul.mubr.msk.f32.gmra.mrb[22].mxu0 %vm1501_vm12, %v10393_v30  ;;  %v8666_v45 = vpop.permute.xlu0 %8665  ;;  %v8671_v56 = vpop.permute.xlu1 %8670 }
 0x2d7   : > { %6937 = vmatmul.mubr.msk.f32.gmra.mrb[16].mxu1 %vm1501_vm12, %v633_v14  ;;  %7848 = vmatpush3.bf16.msra.mxu0 %v7845_v16  ;;  %v8668_v34 = vunpack.i.h.bf16 %v8666_v45  ;;  %v8667_v52 = vunpack.i.l.bf16 %v8666_v45  ;;  %v8673_v31 = vunpack.i.h.bf16 %v8671_v56  ;;  %v8672_v14 = vunpack.i.l.bf16 %v8671_v56 }
 0x2d8   : > { %7394 = vmatprep.mubr.msk.f32.mxu0 %vm1501_vm12, %v10411_v17  ;;  %1620 = vmatprep.mubr.f32.mxu1 %v13225_v39  ;;  %v10479_v45 = vmul.f32 %v10364_v21, %v514_v44 }
 0x2d9   : > { %8990 = vrot.lane.b32.xlu1 %v10068_v27, %s9575_s30  ;;  %8985 = vrot.lane.b32.xlu0 %v10037_v10, %s9575_s30  ;;  %v7865_v46 = vpack.c.bf16 %v8668_v34, %v8663_v1  ;;  %v2037_v2 = vsel %vm771_vm0, %v8667_v52, %v8668_v34  ;;  %v2036_v56 = vsel %vm771_vm0, %v8673_v31, %v8667_v52  ;;  %v525_v1 = vld [vmem:[%s13160_s5 + $0x80] sm:$0xff] }
 0x2da   : > { %7395 = vmatmul.mubr.msk.f32.vlgmr.msra.gmra.mrb[16].mxu0 %vm1501_vm12, %v10423_v11  ;;  %v10434_v47 = vpop.permute.xlu0 %8675  ;;  %v10436_v0 = vpop.permute.xlu1 %8680  ;;  %v7849_v41 = vpack.c.bf16 %v2037_v2, %v2035_v28  ;;  %v2034_v26 = vsel %vm771_vm0, %v8672_v14, %v8662_v23  ;;  %v10508_v9 = vmul.f32 %v10135_v58, %v525_v1 }
 0x2db   : > { %6938 = vmatmul.mubr.msk.f32.gmra.mrb[18].mxu1 %vm1501_vm12, %v634_v20  ;;  %v8678_v18 = vunpack.i.h.bf16 %v10434_v47  ;;  %v8683_v15 = vunpack.i.h.bf16 %v10436_v0  ;;  %7397 = vmatprep.mubr.msk.f32.mxu0 %vm1501_vm12, %v10430_v36  ;;  %v8677_v20 = vunpack.i.l.bf16 %v10434_v47  ;;  %v8682_v24 = vunpack.i.l.bf16 %v10436_v0  ;;  %v516_v47 = vld [vmem:[%s13160_s5 + $0x38] sm:$0xff] }
 0x2dc   : > { %7866 = vmatprep.subr.bf16.mxu0 %v7865_v46  ;;  %1626 = vmatprep.mubr.f32.mxu1 %v13225_v39 }
 0x2dd   : > { %9000 = vrot.lane.b32.xlu1 %v10088_v32, %s9575_s30  ;;  %8995 = vrot.lane.b32.xlu0 %v10092_v33, %s9575_s30  ;;  %v7869_v49 = vpack.c.bf16 %v8683_v15, %v8678_v18  ;;  %v2039_v0 = vsel %vm771_vm0, %v8677_v20, %v8678_v18  ;;  %v2041_v2 = vsel %vm771_vm0, %v8682_v24, %v8683_v15 }
 0x2de   : > { %7850 = vmatprep.subr.bf16.mxu1 %v7849_v41  ;;  %7868 = vmatpush3.bf16.msra.mxu0 %v7865_v46  ;;  %v8686_v8 = vpop.permute.xlu0 %8685  ;;  %v10464_v16 = vpop.permute.xlu1 %8690  ;;  %v7851_v15 = vpack.c.bf16 %v2036_v56, %v2034_v26  ;;  %v7853_v41 = vpack.c.bf16 %v2041_v2, %v2039_v0 }
 0x2df   : > { %6939 = vmatmul.mubr.msk.f32.gmra.mrb[20].mxu1 %vm1501_vm12, %v10374_v62  ;;  %7398 = vmatmul.mubr.msk.f32.gmra.mrb[18].mxu0 %vm1501_vm12, %v10457_v3  ;;  %v10488_v62 = vmul.f32 %v10366_v43, %v515_v35  ;;  %v8688_v34 = vunpack.i.h.bf16 %v8686_v8  ;;  %v8687_v46 = vunpack.i.l.bf16 %v8686_v8  ;;  %v8693_v28 = vunpack.i.h.bf16 %v10464_v16 }
 0x2e0   : > { %7400 = vmatprep.mubr.msk.f32.mxu0 %vm1501_vm12, %v10467_v7  ;;  %7870 = vmatprep.subr.bf16.mxu0 %v7869_v49 }
 0x2e1   : > { %9010 = vrot.lane.b32.xlu1 %v10120_v50, %s9575_s30  ;;  %9005 = vrot.lane.b32.xlu0 %v10104_v37, %s9575_s30  ;;  %v2038_v31 = vsel %vm771_vm0, %v8687_v46, %v8677_v20  ;;  %v2040_v14 = vsel %vm771_vm0, %v8688_v34, %v8682_v24 }
 0x2e2   : > { %1632 = vmatprep.mubr.f32.mxu1 %v13225_v39  ;;  %7872 = vmatpush3.bf16.msra.mxu0 %v7869_v49  ;;  %v8696_v52 = vpop.permute.xlu0 %8695  ;;  %v8701_v23 = vpop.permute.xlu1 %8700  ;;  %v8692_v49 = vunpack.i.l.bf16 %v10464_v16 }
 0x2e3   : > { %6940 = vmatmul.mubr.msk.f32.gmra.mrb[22].mxu1 %vm1501_vm12, %v10393_v30  ;;  %7401 = vmatmul.mubr.msk.f32.gmra.mrb[20].mxu0 %vm1501_vm12, %v10479_v45  ;;  %v8698_v59 = vunpack.i.h.bf16 %v8696_v52  ;;  %v8697_v18 = vunpack.i.l.bf16 %v8696_v52  ;;  %v10515_v30 = vmul.f32 %v10385_v25, %v516_v47  ;;  %v8703_v1 = vunpack.i.h.bf16 %v8701_v23 }
 0x2e4   : > { %7403 = vmatprep.mubr.msk.f32.mxu0 %vm1501_vm12, %v10488_v62  ;;  %1832 = vmatprep.mubr.f32.mxu1 %v13225_v39  ;;  %v8702_v52 = vunpack.i.l.bf16 %v8701_v23  ;;  %v2043_v23 = vsel %vm771_vm0, %v8692_v49, %v8693_v28 }
 0x2e5   : > { %9020 = vrot.lane.b32.xlu1 %v9982_v40, %s9576_s11  ;;  %9015 = vrot.lane.b32.xlu0 %v10116_v48, %s9575_s30  ;;  %v7873_v35 = vpack.c.bf16 %v8698_v59, %v8693_v28  ;;  %v2045_v16 = vsel %vm771_vm0, %v8697_v18, %v8698_v59  ;;  %v2044_v47 = vsel %vm771_vm0, %v8703_v1, %v8697_v18 }
 0x2e6   : > { %v8706_v44 = vpop.permute.xlu0 %8705  ;;  %v8711_v8 = vpop.permute.xlu1 %8710  ;;  %v2042_v0 = vsel %vm771_vm0, %v8702_v52, %v8692_v49 }
 0x2e7   : > { %6949 = vmatmul.mubr.msk.f32.vlgmr.msra.gmra.mrb[8].mxu1 %vm1501_vm12, %v10411_v17  ;;  %7404 = vmatmul.mubr.msk.f32.gmra.mrb[22].mxu0 %vm1501_vm12, %v10515_v30  ;;  %v8708_v40 = vunpack.i.h.bf16 %v8706_v44  ;;  %v8713_v56 = vunpack.i.h.bf16 %v8711_v8  ;;  %v8707_v20 = vunpack.i.l.bf16 %v8706_v44  ;;  %v8712_v24 = vunpack.i.l.bf16 %v8711_v8  ;;  %v527_v8 = vld [vmem:[%s13160_s5 + $0x90] sm:$0xff] }
 0x2e8   : > { %7852 = vmatpush1.bf16.msra.mxu1 %v7851_v15  ;;  %7422 = vmatprep.mubr.msk.f32.mxu0 %vm1501_vm12, %v10508_v9  ;;  %v7855_v17 = vpack.c.bf16 %v2040_v14, %v2038_v31 }
 0x2e9   : > { %7854 = vmatprep.subr.bf16.mxu1 %v7853_v41  ;;  %9030 = vrot.lane.b32.xlu1 %v9996_v51, %s9576_s11  ;;  %v7877_v26 = vpack.c.bf16 %v8713_v56, %v8708_v40  ;;  %v2047_v59 = vsel %vm771_vm0, %v8707_v20, %v8708_v40  ;;  %v2049_v28 = vsel %vm771_vm0, %v8712_v24, %v8713_v56 }
 0x2ea   : > { %9025 = vrot.lane.b32.xlu0 %v10005_v53, %s9576_s11  ;;  %7874 = vmatprep.subr.bf16.mxu0 %v7873_v35  ;;  %v8716_v34 = vpop.permute.xlu0 %8715  ;;  %v10531_v46 = vpop.permute.xlu1 %8720  ;;  %v7857_v53 = vpack.c.bf16 %v2045_v16, %v2043_v23  ;;  %v7859_v41 = vpack.c.bf16 %v2044_v47, %v2042_v0  ;;  %v10572_v40 = vmul.f32 %v10320_v60, %v527_v8  ;;  %v695_v47 = vld [vmem:[%s13161_s6 + $0x10] sm:$0xff] }
 0x2eb   : > { %1838 = vmatprep.mubr.f32.mxu1 %v13225_v39  ;;  %7876 = vmatpush3.bf16.msra.mxu0 %v7873_v35  ;;  %v8718_v51 = vunpack.i.h.bf16 %v8716_v34  ;;  %v8717_v2 = vunpack.i.l.bf16 %v8716_v34  ;;  %v8723_v14 = vunpack.i.h.bf16 %v10531_v46  ;;  %v8722_v49 = vunpack.i.l.bf16 %v10531_v46 }
 0x2ec   : > { %6950 = vmatmul.mubr.msk.f32.gmra.mrb[10].mxu1 %vm1501_vm12, %v10423_v11  ;;  %7878 = vmatprep.subr.bf16.mxu0 %v7877_v26  ;;  %v7861_v35 = vpack.c.bf16 %v2049_v28, %v2047_v59  ;;  %v421_v28 = vld [vmem:[%s9728_s24 + $0x40] sm:$0xff] }
 0x2ed   : > { %7856 = vmatpush1.bf16.msra.mxu1 %v7855_v17  ;;  %9040 = vrot.lane.b32.xlu1 %v10056_v22, %s9576_s11  ;;  %v2046_v18 = vsel %vm771_vm0, %v8717_v2, %v8707_v20  ;;  %v2048_v15 = vsel %vm771_vm0, %v8718_v51, %v8712_v24  ;;  %v526_v22 = vld [vmem:[%s13160_s5 + $0x88] sm:$0xff]  ;;  %v529_v17 = vld [vmem:[%s13160_s5 + $0xa0] sm:$0xff]  ;;  %v2389_v34 = vsel %vm783_vm4, %v8722_v49, %v8723_v14 }
 0x2ee   : > { %7858 = vmatprep.subr.bf16.mxu1 %v7857_v53  ;;  %9035 = vrot.lane.b32.xlu0 %v10023_v4, %s9576_s11  ;;  %v10547_v11 = vpop.permute.xlu0 %8725  ;;  %v10549_v31 = vpop.permute.xlu1 %8730  ;;  %v10567_v1 = vmul.f32 %v10318_v57, %v526_v22  ;;  %v7863_v52 = vpack.c.bf16 %v2048_v15, %v2046_v18  ;;  %v9559_v51 = vld [vmem:[%s9693_s26 + $0x40] sm:$0xff]  ;;  %v694_v18 = vld [vmem:[%s13161_s6 + $0x8] sm:$0xff]  ;;  %v531_v15 = vld [vmem:[%s13160_s5 + $0xb0] sm:$0xff] }
 0x2ef   : > { %1844 = vmatprep.mubr.f32.mxu1 %v13225_v39  ;;  %7880 = vmatpush3.bf16.msra.mxu0 %v7877_v26  ;;  %v8728_v44 = vunpack.i.h.bf16 %v10547_v11  ;;  %v8727_v4 = vunpack.i.l.bf16 %v10547_v11  ;;  %v423_v22 = vld [vmem:[%s9728_s24 + $0x50] sm:$0xff]  ;;  %v702_v8 = vmul.f32 %v694_v18, %v10130_v55  ;;  %v532_v55 = vld [vmem:[%s13160_s5 + $0xb8] sm:$0xff] }
 0x2f0   : > { %6951 = vmatmul.mubr.msk.f32.gmra.mrb[12].mxu1 %vm1501_vm12, %v10430_v36  ;;  %v528_v36 = vld [vmem:[%s13160_s5 + $0x98] sm:$0xff]  ;;  %v699_v18 = vld [vmem:[%s13161_s6 + $0x30] sm:$0xff] }
 0x2f1   : > { %7860 = vmatpush1.bf16.msra.mxu1 %v7859_v41  ;;  %9050 = vrot.lane.b32.xlu1 %v10068_v27, %s9576_s11  ;;  %v7897_v27 = vpack.c.bf16 %v8728_v44, %v8723_v14  ;;  %v2391_v24 = vsel %vm783_vm4, %v8727_v4, %v8728_v44  ;;  %v10608_v0 = vmul.f32 %v10341_v29, %v528_v36  ;;  %v422_v36 = vld [vmem:[%s9728_s24 + $0x48] sm:$0xff] }
 0x2f2   : > { %7862 = vmatprep.subr.bf16.mxu1 %v7861_v35  ;;  %9045 = vrot.lane.b32.xlu0 %v10037_v10, %s9576_s11  ;;  %v10574_v56 = vpop.permute.xlu0 %8735  ;;  %v10576_v20 = vpop.permute.xlu1 %8740  ;;  %v693_v10 = vld [vmem:[%s13161_s6] sm:$0xff]  ;;  %v7881_v23 = vpack.c.bf16 %v2391_v24, %v2389_v34  ;;  %v703_v41 = vmul.f32 %v695_v47, %v10127_v54  ;;  %v10655_v35 = vmul.f32 %v10366_v43, %v531_v15  ;;  %v700_v15 = vld [vmem:[%s13161_s6 + $0x38] sm:$0xff] }
 0x2f3   : > { %7423 = vmatmul.mubr.msk.f32.vlgmr.msra.gmra.mrb[16].mxu0 %vm1501_vm12, %v10567_v1  ;;  %1850 = vmatprep.mubr.f32.mxu1 %v13225_v39  ;;  %v8738_v16 = vunpack.i.h.bf16 %v10574_v56  ;;  %v8743_v26 = vunpack.i.h.bf16 %v10576_v20  ;;  %v701_v2 = vmul.f32 %v9559_v51, %v693_v10  ;;  %v697_v54 = vld [vmem:[%s13161_s6 + $0x20] sm:$0xff]  ;;  %v10682_v34 = vmul.f32 %v10385_v25, %v532_v55 }
 0x2f4   : > { %7425 = vmatprep.mubr.msk.f32.mxu0 %vm1501_vm12, %v10572_v40  ;;  %6952 = vmatmul.mubr.msk.f32.gmra.mrb[14].mxu1 %vm1501_vm12, %v10457_v3  ;;  %v10614_v3 = vmul.f32 %v10343_v19, %v529_v17  ;;  %v533_v24 = vld [vmem:[%s13160_s5 + $0xc0] sm:$0xff]  ;;  %v711_v10 = vadd.f32 %v703_v41, %v423_v22  ;;  %v705_v17 = vmul.f32 %v697_v54, %v10143_v61  ;;  %v8733_v41 = vunpack.i.h.bf16 %v10549_v31 }
 0x2f5   : > { %7864 = vmatpush1.bf16.msra.mxu1 %v7863_v52  ;;  %9060 = vrot.lane.b32.xlu1 %v10088_v32, %s9576_s11  ;;  %v530_v32 = vld [vmem:[%s13160_s5 + $0xa8] sm:$0xff]  ;;  %v709_v44 = vadd.f32 %v701_v2, %v421_v28  ;;  %v710_v47 = vadd.f32 %v702_v8, %v422_v36  ;;  %v425_v51 = vld [vmem:[%s9728_s24 + $0x60] sm:$0xff]  ;;  %v10693_v61 = vmul.f32 %v10135_v58, %v533_v24  ;;  %v424_v28 = vld [vmem:[%s9728_s24 + $0x58] sm:$0xff]  ;;  %v8732_v22 = vunpack.i.l.bf16 %v10549_v31 }
 0x2f6   : > { %9055 = vrot.lane.b32.xlu0 %v10092_v33, %s9576_s11  ;;  %7898 = vmatprep.subr.bf16.mxu0 %v7897_v27  ;;  %v10616_v53 = vpop.permute.xlu0 %8745  ;;  %v10618_v59 = vpop.permute.xlu1 %8750  ;;  %v7901_v33 = vpack.c.bf16 %v8743_v26, %v8738_v16  ;;  %v10644_v14 = vmul.f32 %v10364_v21, %v530_v32  ;;  %v8737_v8 = vunpack.i.l.bf16 %v10574_v56  ;;  %v8742_v54 = vunpack.i.l.bf16 %v10576_v20 }
 0x2f7   : > { %7426 = vmatmul.mubr.msk.f32.gmra.mrb[18].mxu0 %vm1501_vm12, %v10608_v0  ;;  %1856 = vmatprep.mubr.f32.mxu1 %v13225_v39  ;;  %v707_v36 = vmul.f32 %v699_v18, %v10153_v6  ;;  %v428_v6 = vld [vmem:[%s9728_s24 + $0x78] sm:$0xff] }
 0x2f8   : > { %7428 = vmatprep.mubr.msk.f32.mxu0 %vm1501_vm12, %v10614_v3  ;;  %7882 = vmatprep.subr.bf16.mxu1 %v7881_v23  ;;  %v2393_v11 = vsel %vm783_vm4, %v8737_v8, %v8738_v16  ;;  %v2395_v46 = vsel %vm783_vm4, %v8742_v54, %v8743_v26 }
 0x2f9   : > { %7900 = vmatpush3.bf16.msra.mxu0 %v7897_v27  ;;  %6953 = vmatmul.mubr.msk.f32.gmra.mrb[16].mxu1 %vm1501_vm12, %v10467_v7  ;;  %v8753_v27 = vunpack.i.h.bf16 %v10618_v59 }
 0x2fa   : > { %9065 = vrot.lane.b32.xlu0 %v10104_v37, %s9576_s11  ;;  %9070 = vrot.lane.b32.xlu1 %v10120_v50, %s9576_s11  ;;  %v10657_v7 = vpop.permute.xlu0 %8755  ;;  %v10659_v52 = vpop.permute.xlu1 %8760  ;;  %v696_v37 = vld [vmem:[%s13161_s6 + $0x18] sm:$0xff] }
 0x2fb   : > { %7429 = vmatmul.mubr.msk.f32.gmra.mrb[20].mxu0 %vm1501_vm12, %v10644_v14  ;;  %7902 = vmatprep.subr.bf16.mxu0 %v7901_v33  ;;  %v8758_v50 = vunpack.i.h.bf16 %v10657_v7  ;;  %v704_v2 = vmul.f32 %v696_v37, %v10146_v63  ;;  %v698_v63 = vld [vmem:[%s13161_s6 + $0x28] sm:$0xff]  ;;  %v8757_v18 = vunpack.i.l.bf16 %v10657_v7 }
 0x2fc   : > { %1862 = vmatprep.mubr.f32.mxu1 %v13225_v39  ;;  %7431 = vmatprep.mubr.msk.f32.mxu0 %vm1501_vm12, %v10655_v35  ;;  %v706_v37 = vmul.f32 %v698_v63, %v10156_v12  ;;  %v2390_v12 = vsel %vm783_vm4, %v8733_v41, %v8727_v4  ;;  %v8752_v41 = vunpack.i.l.bf16 %v10618_v59 }
 0x2fd   : > { %7904 = vmatpush3.bf16.msra.mxu0 %v7901_v33  ;;  %6954 = vmatmul.mubr.msk.f32.gmra.mrb[18].mxu1 %vm1501_vm12, %v10479_v45  ;;  %v7905_v23 = vpack.c.bf16 %v8758_v50, %v8753_v27  ;;  %v712_v55 = vadd.f32 %v704_v2, %v424_v28  ;;  %v534_v2 = vld [vmem:[%s13160_s5 + $0xc8] sm:$0xff]  ;;  %v8747_v28 = vunpack.i.l.bf16 %v10616_v53 }
 0x2fe   : > { %9075 = vrot.lane.b32.xlu0 %v10116_v48, %s9576_s11  ;;  %4466 = vperm.xlu1 %8582, %v709_v44   ;;  %v10695_v45 = vpop.permute.xlu0 %8765  ;;  %v10697_v32 = vpop.permute.xlu1 %8770  ;;  %v713_v44 = vadd.f32 %v705_v17, %v425_v51  ;;  %v427_v51 = vld [vmem:[%s9728_s24 + $0x70] sm:$0xff]  ;;  %v2397_v7 = vsel %vm783_vm4, %v8752_v41, %v8753_v27 }
 0x2ff   : > { %7432 = vmatmul.mubr.msk.f32.gmra.mrb[22].mxu0 %vm1501_vm12, %v10682_v34  ;;  %1868 = vmatprep.mubr.f32.mxu1 %v13225_v39  ;;  %v8768_v48 = vunpack.i.h.bf16 %v10695_v45  ;;  %v8773_v33 = vunpack.i.h.bf16 %v10697_v32 }
 0x300   : > { %7450 = vmatprep.mubr.msk.f32.mxu0 %vm1501_vm12, %v10693_v61  ;;  %7906 = vmatprep.subr.bf16.mxu0 %v7905_v23 }
 0x301   : > { %6955 = vmatmul.mubr.msk.f32.gmra.mrb[20].mxu1 %vm1501_vm12, %v10488_v62  ;;  %7908 = vmatpush3.bf16.msra.mxu0 %v7905_v23  ;;  %v7909_v31 = vpack.c.bf16 %v8773_v33, %v8768_v48  ;;  %v426_v62 = vld [vmem:[%s9728_s24 + $0x68] sm:$0xff]  ;;  %v708_v23 = vmul.f32 %v700_v15, %v10161_v13  ;;  %v535_v13 = vld [vmem:[%s13160_s5 + $0xd0] sm:$0xff]  ;;  %v536_v15 = vld [vmem:[%s13160_s5 + $0xd8] sm:$0xff] }
 0x302   : > { %4471 = vperm.xlu0 %8598, %v710_v47   ;;  %4476 = vperm.xlu1 %8582, %v711_v10   ;;  %v10728_v24 = vpop.permute.xlu0 %8775  ;;  %v10730_v17 = vpop.permute.xlu1 %8780  ;;  %v2388_v10 = vsel %vm783_vm4, %v8732_v22, %v8722_v49  ;;  %v8748_v47 = vunpack.i.h.bf16 %v10616_v53  ;;  %v715_v49 = vadd.f32 %v707_v36, %v427_v51  ;;  %v714_v4 = vadd.f32 %v706_v37, %v426_v62 }
 0x303   : > { %1874 = vmatprep.mubr.f32.mxu1 %v13225_v39  ;;  %7910 = vmatprep.subr.bf16.mxu0 %v7909_v31  ;;  %v716_v56 = vadd.f32 %v708_v23, %v428_v6  ;;  %v8783_v16 = vunpack.i.h.bf16 %v10730_v17  ;;  %v10771_v26 = vmul.f32 %v10320_v60, %v535_v13  ;;  %v8763_v22 = vunpack.i.h.bf16 %v10659_v52 }
 0x304   : > { %v2392_v36 = vsel %vm783_vm4, %v8747_v28, %v8737_v8  ;;  %v2394_v37 = vsel %vm783_vm4, %v8748_v47, %v8742_v54  ;;  %v8762_v51 = vunpack.i.l.bf16 %v10659_v52  ;;  %v8767_v23 = vunpack.i.l.bf16 %v10695_v45  ;;  %v539_v45 = vld [vmem:[%s13160_s5 + $0xf0] sm:$0xff] }
 0x305   : > { %6956 = vmatmul.mubr.msk.f32.gmra.mrb[22].mxu1 %vm1501_vm12, %v10515_v30  ;;  %7912 = vmatpush3.bf16.msra.mxu0 %v7909_v31  ;;  %v10765_v30 = vmul.f32 %v10318_v57, %v534_v2  ;;  %v7885_v31 = vpack.c.bf16 %v2395_v46, %v2393_v11  ;;  %v8772_v2 = vunpack.i.l.bf16 %v10697_v32  ;;  %v10804_v54 = vmul.f32 %v10341_v29, %v536_v15 }
 0x306   : > { %4481 = vperm.xlu0 %8598, %v712_v55   ;;  %4486 = vperm.xlu1 %8582, %v713_v44   ;;  %v10760_v63 = vpop.permute.xlu0 %8785  ;;  %v10762_v53 = vpop.permute.xlu1 %8790  ;;  %v7883_v44 = vpack.c.bf16 %v2390_v12, %v2388_v10  ;;  %v537_v55 = vld [vmem:[%s13160_s5 + $0xe0] sm:$0xff]  ;;  %v2398_v13 = vsel %vm783_vm4, %v8763_v22, %v8757_v18  ;;  %v7887_v47 = vpack.c.bf16 %v2394_v37, %v2392_v36  ;;  %v8778_v11 = vunpack.i.h.bf16 %v10728_v24 }
 0x307   : > { %2162 = vmatprep.mubr.f32.mxu1 %v13225_v39  ;;  %v8788_v20 = vunpack.i.h.bf16 %v10760_v63  ;;  %v10809_v10 = vmul.f32 %v10343_v19, %v537_v55  ;;  %v2396_v28 = vsel %vm783_vm4, %v8762_v51, %v8752_v41  ;;  %v8777_v46 = vunpack.i.l.bf16 %v10728_v24 }
 0x308   : > { %7451 = vmatmul.mubr.msk.f32.vlgmr.msra.gmra.mrb[16].mxu0 %vm1501_vm12, %v10765_v30  ;;  %v8787_v59 = vunpack.i.l.bf16 %v10760_v63  ;;  %v2403_v24 = vsel %vm783_vm4, %v8772_v2, %v8773_v33  ;;  %v7891_v32 = vpack.c.bf16 %v2398_v13, %v2396_v28  ;;  %v540_v33 = vld [vmem:[%s13160_s5 + $0xf8] sm:$0xff]  ;;  %v2402_v41 = vsel %vm783_vm4, %v8778_v11, %v8772_v2 }
 0x309   : > { %6965 = vmatmul.mubr.msk.f32.vlgmr.msra.gmra.mrb[8].mxu1 %vm1501_vm12, %v10508_v9  ;;  %7453 = vmatprep.mubr.msk.f32.mxu0 %vm1501_vm12, %v10771_v26  ;;  %v7929_v62 = vpack.c.bf16 %v8788_v20, %v8783_v16  ;;  %v2399_v9 = vsel %vm783_vm4, %v8757_v18, %v8758_v50  ;;  %v538_v50 = vld [vmem:[%s13160_s5 + $0xe8] sm:$0xff]  ;;  %v2401_v18 = vsel %vm783_vm4, %v8767_v23, %v8768_v48  ;;  %v8782_v48 = vunpack.i.l.bf16 %v10730_v17 }
 0x30a   : > { %7884 = vmatpush1.bf16.msra.mxu1 %v7883_v44  ;;  %4491 = vperm.xlu0 %8598, %v714_v4   ;;  %v10796_v8 = vpop.permute.xlu0 %8795  ;;  %v10798_v52 = vpop.permute.xlu1 %8800  ;;  %v2400_v15 = vsel %vm783_vm4, %v8777_v46, %v8767_v23  ;;  %v7893_v22 = vpack.c.bf16 %v2403_v24, %v2401_v18  ;;  %v10861_v44 = vmul.f32 %v10366_v43, %v539_v45  ;;  %v542_v46 = vld [vmem:[%s13160_s5 + $0x108] sm:$0xff] }
 0x30b   : > { %7886 = vmatprep.subr.bf16.mxu1 %v7885_v31  ;;  %4496 = vperm.xlu1 %8582, %v715_v49   ;;  %v8798_v6 = vunpack.i.h.bf16 %v10796_v8  ;;  %v8803_v12 = vunpack.i.h.bf16 %v10798_v52  ;;  %v7889_v49 = vpack.c.bf16 %v2399_v9, %v2397_v7  ;;  %v2745_v36 = vsel %vm795_vm6, %v8787_v59, %v8788_v20 }
 0x30c   : > { %2168 = vmatprep.mubr.f32.mxu1 %v13225_v39  ;;  %7454 = vmatmul.mubr.msk.f32.gmra.mrb[18].mxu0 %vm1501_vm12, %v10804_v54  ;;  %v7895_v23 = vpack.c.bf16 %v2402_v41, %v2400_v15  ;;  %v2743_v20 = vsel %vm795_vm6, %v8782_v48, %v8783_v16  ;;  %v10933_v24 = vmul.f32 %v10318_v57, %v542_v46  ;;  %v545_v15 = vld [vmem:[%s13160_s5 + $0x120] sm:$0xff]  ;;  %v8792_v41 = vunpack.i.l.bf16 %v10762_v53 }
 0x30d   : > { %6966 = vmatmul.mubr.msk.f32.gmra.mrb[10].mxu1 %vm1501_vm12, %v10567_v1  ;;  %7930 = vmatprep.subr.bf16.mxu0 %v7929_v62  ;;  %v7933_v1 = vpack.c.bf16 %v8803_v12, %v8798_v6  ;;  %v7913_v2 = vpack.c.bf16 %v2745_v36, %v2743_v20  ;;  %v8797_v36 = vunpack.i.l.bf16 %v10796_v8 }
 0x30e   : > { %7888 = vmatpush1.bf16.msra.mxu1 %v7887_v47  ;;  %4501 = vperm.xlu0 %8598, %v716_v56   ;;  %v10827_v27 = vpop.permute.xlu0 %8805  ;;  %v10829_v4 = vpop.permute.xlu1 %8810  ;;  %v10843_v56 = vmul.f32 %v10364_v21, %v538_v50 }
 0x30f   : > { %7890 = vmatprep.subr.bf16.mxu1 %v7889_v49  ;;  %2174 = vmatprep.mubr.f32.mxu1 %v13225_v39  ;;  %v8813_v37 = vunpack.i.h.bf16 %v10829_v4 }
 0x310   : > { %7456 = vmatprep.mubr.msk.f32.mxu0 %vm1501_vm12, %v10809_v10  ;;  %7932 = vmatpush3.bf16.msra.mxu0 %v7929_v62  ;;  %v10879_v62 = vmul.f32 %v10385_v25, %v540_v33  ;;  %v8793_v33 = vunpack.i.h.bf16 %v10762_v53 }
 0x311   : > { %6967 = vmatmul.mubr.msk.f32.gmra.mrb[12].mxu1 %vm1501_vm12, %v10572_v40  ;;  %7457 = vmatmul.mubr.msk.f32.gmra.mrb[20].mxu0 %vm1501_vm12, %v10843_v56  ;;  %v541_v40 = vld [vmem:[%s13160_s5 + $0x100] sm:$0xff] }
 0x312   : > { %7892 = vmatpush1.bf16.msra.mxu1 %v7891_v32  ;;  %7934 = vmatprep.subr.bf16.mxu0 %v7933_v1  ;;  %v10863_v31 = vpop.permute.xlu0 %8815  ;;  %v10865_v55 = vpop.permute.xlu1 %8820  ;;  %v10893_v9 = vmul.f32 %v10135_v58, %v541_v40  ;;  %v8802_v40 = vunpack.i.l.bf16 %v10798_v52  ;;  %v2744_v46 = vsel %vm795_vm6, %v8793_v33, %v8787_v59 }
 0x313   : > { %7894 = vmatprep.subr.bf16.mxu1 %v7893_v22  ;;  %2180 = vmatprep.mubr.f32.mxu1 %v13225_v39  ;;  %v8818_v51 = vunpack.i.h.bf16 %v10863_v31  ;;  %v8817_v59 = vunpack.i.l.bf16 %v10863_v31  ;;  %v8823_v8 = vunpack.i.h.bf16 %v10865_v55 }
 0x314   : > { %7459 = vmatprep.mubr.msk.f32.mxu0 %vm1501_vm12, %v10861_v44  ;;  %7936 = vmatpush3.bf16.msra.mxu0 %v7933_v1 }
 0x315   : > { %6968 = vmatmul.mubr.msk.f32.gmra.mrb[14].mxu1 %vm1501_vm12, %v10608_v0  ;;  %7460 = vmatmul.mubr.msk.f32.gmra.mrb[22].mxu0 %vm1501_vm12, %v10879_v62  ;;  %v7937_v13 = vpack.c.bf16 %v8818_v51, %v8813_v37 }
 0x316   : > { %7896 = vmatpush1.bf16.msra.mxu1 %v7895_v23  ;;  %2186 = vmatprep.mubr.f32.mxu1 %v13225_v39  ;;  %v10900_v47 = vpop.permute.xlu0 %8825  ;;  %v10902_v16 = vpop.permute.xlu1 %8830 }
 0x317   : > { %7914 = vmatprep.subr.bf16.mxu1 %v7913_v2  ;;  %7478 = vmatprep.mubr.msk.f32.mxu0 %vm1501_vm12, %v10893_v9  ;;  %v8828_v0 = vunpack.i.h.bf16 %v10900_v47  ;;  %v8833_v7 = vunpack.i.h.bf16 %v10902_v16 }
 0x318   : > { %7938 = vmatprep.subr.bf16.mxu0 %v7937_v13 }
 0x319   : > { %6969 = vmatmul.mubr.msk.f32.gmra.mrb[16].mxu1 %vm1501_vm12, %v10614_v3  ;;  %7940 = vmatpush3.bf16.msra.mxu0 %v7937_v13  ;;  %v7941_v50 = vpack.c.bf16 %v8833_v7, %v8828_v0  ;;  %v543_v3 = vld [vmem:[%s13160_s5 + $0x110] sm:$0xff]  ;;  %v10971_v13 = vmul.f32 %v10343_v19, %v545_v15  ;;  %v8808_v15 = vunpack.i.h.bf16 %v10827_v27 }
 0x31a   : > { %2192 = vmatprep.mubr.f32.mxu1 %v13225_v39  ;;  %v10915_v28 = vpop.permute.xlu0 %8835  ;;  %v10917_v11 = vpop.permute.xlu1 %8840  ;;  %v10938_v32 = vmul.f32 %v10320_v60, %v543_v3  ;;  %v547_v3 = vld [vmem:[%s13160_s5 + $0x130] sm:$0xff] }
 0x31b   : > { %7942 = vmatprep.subr.bf16.mxu0 %v7941_v50  ;;  %v13171_v1 = vunpack.i.h.bf16 %v10917_v11 }
 0x31d   : > { %6970 = vmatmul.mubr.msk.f32.gmra.mrb[18].mxu1 %vm1501_vm12, %v10644_v14  ;;  %7944 = vmatpush3.bf16.msra.mxu0 %v7941_v50  ;;  %v544_v14 = vld [vmem:[%s13160_s5 + $0x118] sm:$0xff]  ;;  %v546_v50 = vld [vmem:[%s13160_s5 + $0x128] sm:$0xff] }
 0x31e   : > { %2198 = vmatprep.mubr.f32.mxu1 %v13225_v39  ;;  %v10928_v49 = vpop.permute.xlu0 %8845  ;;  %v10930_v18 = vpop.permute.xlu1 %8850  ;;  %v11010_v33 = vmul.f32 %v10364_v21, %v546_v50 }
 0x31f   : > { %v13174_v45 = vunpack.i.h.bf16 %v10928_v49 }
 0x320   : > { %7479 = vmatmul.mubr.msk.f32.vlgmr.msra.gmra.mrb[16].mxu0 %vm1501_vm12, %v10933_v24 }
 0x321   : > { %6971 = vmatmul.mubr.msk.f32.gmra.mrb[20].mxu1 %vm1501_vm12, %v10655_v35  ;;  %7481 = vmatprep.mubr.msk.f32.mxu0 %vm1501_vm12, %v10938_v32  ;;  %v7961_v22 = vpack.c.bf16 %v13174_v45, %v13171_v1  ;;  %v10966_v35 = vmul.f32 %v10341_v29, %v544_v14  ;;  %v2742_v14 = vsel %vm795_vm6, %v8792_v41, %v8782_v48  ;;  %v8807_v1 = vunpack.i.l.bf16 %v10827_v27 }
 0x322   : > { %2204 = vmatprep.mubr.f32.mxu1 %v13225_v39  ;;  %v10961_v23 = vpop.permute.xlu0 %8855  ;;  %v10963_v53 = vpop.permute.xlu1 %8860  ;;  %v2749_v27 = vsel %vm795_vm6, %v8802_v40, %v8803_v12  ;;  %v11013_v41 = vmul.f32 %v10366_v43, %v547_v3  ;;  %v7915_v52 = vpack.c.bf16 %v2744_v46, %v2742_v14  ;;  %v549_v12 = vld [vmem:[%s13160_s5 + $0x140] sm:$0xff]  ;;  %v2748_v3 = vsel %vm795_vm6, %v8808_v15, %v8802_v40 }
 0x323   : > { %v13173_v20 = vunpack.i.h.bf16 %v10961_v23  ;;  %v13172_v2 = vunpack.i.h.bf16 %v10963_v53  ;;  %7962 = vmatprep.subr.bf16.mxu0 %v7961_v22  ;;  %v2746_v50 = vsel %vm795_vm6, %v8807_v1, %v8797_v36  ;;  %v8832_v46 = vunpack.i.l.bf16 %v10902_v16 }
 0x324   : > { %7482 = vmatmul.mubr.msk.f32.gmra.mrb[18].mxu0 %vm1501_vm12, %v10966_v35  ;;  %v2753_v1 = vsel %vm795_vm6, %v8817_v59, %v8818_v51  ;;  %v11048_v15 = vmul.f32 %v10135_v58, %v549_v12  ;;  %v8838_v51 = vunpack.i.h.bf16 %v10915_v28 }
 0x325   : > { %6972 = vmatmul.mubr.msk.f32.gmra.mrb[22].mxu1 %vm1501_vm12, %v10682_v34  ;;  %7484 = vmatprep.mubr.msk.f32.mxu0 %vm1501_vm12, %v10971_v13  ;;  %v7965_v63 = vpack.c.bf16 %v13172_v2, %v13173_v20  ;;  %v2747_v34 = vsel %vm795_vm6, %v8797_v36, %v8798_v6  ;;  %v8812_v2 = vunpack.i.l.bf16 %v10829_v4  ;;  %v8822_v6 = vunpack.i.l.bf16 %v10865_v55 }
 0x326   : > { %2516 = vmatprep.mubr.f32.mxu1 %v13225_v39  ;;  %7964 = vmatpush3.bf16.msra.mxu0 %v7961_v22  ;;  %v10999_v17 = vpop.permute.xlu0 %8865  ;;  %v11001_v48 = vpop.permute.xlu1 %8870  ;;  %v548_v22 = vld [vmem:[%s13160_s5 + $0x138] sm:$0xff]  ;;  %v7917_v20 = vpack.c.bf16 %v2749_v27, %v2747_v34  ;;  %v8827_v55 = vunpack.i.l.bf16 %v10900_v47  ;;  %v2752_v34 = vsel %vm795_vm6, %v8823_v8, %v8817_v59  ;;  %v2757_v59 = vsel %vm795_vm6, %v8832_v46, %v8833_v7 }
 0x327   : > { %7966 = vmatprep.subr.bf16.mxu0 %v7965_v63  ;;  %v13181_v36 = vunpack.i.h.bf16 %v11001_v48  ;;  %v2750_v27 = vsel %vm795_vm6, %v8822_v6, %v8812_v2  ;;  %v2751_v31 = vsel %vm795_vm6, %v8812_v2, %v8813_v37  ;;  %v8847_v37 = vunpack.i.l.bf16 %v10928_v49 }
 0x328   : > { %7485 = vmatmul.mubr.msk.f32.gmra.mrb[20].mxu0 %vm1501_vm12, %v11010_v33  ;;  %v8842_v6 = vunpack.i.l.bf16 %v10917_v11  ;;  %v7923_v12 = vpack.c.bf16 %v2752_v34, %v2750_v27  ;;  %v2756_v47 = vsel %vm795_vm6, %v8838_v51, %v8832_v46  ;;  %v13230_v27 = vunpack.i.h.bf16 %v10917_v11 }
 0x329   : > { %6981 = vmatmul.mubr.msk.f32.vlgmr.msra.gmra.mrb[8].mxu1 %vm1501_vm12, %v10693_v61  ;;  %7487 = vmatprep.mubr.msk.f32.mxu0 %vm1501_vm12, %v11013_v41  ;;  %v11043_v61 = vmul.f32 %v10385_v25, %v548_v22 }
 0x32a   : > { %7916 = vmatpush1.bf16.msra.mxu1 %v7915_v52  ;;  %2522 = vmatprep.mubr.f32.mxu1 %v13225_v39  ;;  %v11035_v14 = vpop.permute.xlu0 %8875  ;;  %v11037_v45 = vpop.permute.xlu1 %8880  ;;  %v7919_v52 = vpack.c.bf16 %v2748_v3, %v2746_v50 }
 0x32b   : > { %7918 = vmatprep.subr.bf16.mxu1 %v7917_v20  ;;  %7968 = vmatpush3.bf16.msra.mxu0 %v7965_v63  ;;  %v13182_v40 = vunpack.i.h.bf16 %v11035_v14  ;;  %v8837_v20 = vunpack.i.l.bf16 %v10915_v28  ;;  %v7921_v63 = vpack.c.bf16 %v2753_v1, %v2751_v31  ;;  %v551_v1 = vld [vmem:[%s13160_s5 + $0x150] sm:$0xff]  ;;  %v8882_v5 = vunpack.i.l.bf16 %v11037_v45 }
 0x32c   : > { %7488 = vmatmul.mubr.msk.f32.gmra.mrb[22].mxu0 %vm1501_vm12, %v11043_v61 }
 0x32d   : > { %6982 = vmatmul.mubr.msk.f32.gmra.mrb[10].mxu1 %vm1501_vm12, %v10765_v30  ;;  %7506 = vmatprep.mubr.msk.f32.mxu0 %vm1501_vm12, %v11048_v15  ;;  %v7969_v4 = vpack.c.bf16 %v13182_v40, %v13181_v36  ;;  %v2755_v30 = vsel %vm795_vm6, %v8827_v55, %v8828_v0  ;;  %v2754_v50 = vsel %vm795_vm6, %v8837_v20, %v8827_v55  ;;  %v13229_v55 = vunpack.i.h.bf16 %v10928_v49 }
 0x32e   : > { %7920 = vmatpush1.bf16.msra.mxu1 %v7919_v52  ;;  %2528 = vmatprep.mubr.f32.mxu1 %v13225_v39  ;;  %v11069_v2 = vpop.permute.xlu0 %8885  ;;  %v11071_v28 = vpop.permute.xlu1 %8890  ;;  %v7925_v16 = vpack.c.bf16 %v2757_v59, %v2755_v30  ;;  %v7927_v34 = vpack.c.bf16 %v2756_v47, %v2754_v50  ;;  %v3097_v52 = vsel %vm807_vm9, %v8842_v6, %v13230_v27  ;;  %v552_v30 = vld [vmem:[%s13160_s5 + $0x158] sm:$0xff]  ;;  %v8868_v36 = vunpack.i.h.bf16 %v10999_v17 }
 0x32f   : > { %7922 = vmatprep.subr.bf16.mxu1 %v7921_v63  ;;  %v13180_v22 = vunpack.i.h.bf16 %v11069_v2  ;;  %v13179_v8 = vunpack.i.h.bf16 %v11071_v28  ;;  %7970 = vmatprep.subr.bf16.mxu0 %v7969_v4  ;;  %v3099_v46 = vsel %vm807_vm9, %v8847_v37, %v13229_v55  ;;  %v11139_v50 = vmul.f32 %v10341_v29, %v552_v30 }
 0x330   : > { %7972 = vmatpush3.bf16.msra.mxu0 %v7969_v4  ;;  %v7945_v31 = vpack.c.bf16 %v3099_v46, %v3097_v52  ;;  %v11122_v4 = vmul.f32 %v10320_v60, %v551_v1  ;;  %v555_v1 = vld [vmem:[%s13160_s5 + $0x170] sm:$0xff]  ;;  %v8867_v40 = vunpack.i.l.bf16 %v10999_v17  ;;  %v13232_v49 = vunpack.i.h.bf16 %v10963_v53 }
 0x331   : > { %6983 = vmatmul.mubr.msk.f32.gmra.mrb[12].mxu1 %vm1501_vm12, %v10771_v26  ;;  %v7973_v0 = vpack.c.bf16 %v13179_v8, %v13180_v22  ;;  %v550_v26 = vld [vmem:[%s13160_s5 + $0x148] sm:$0xff]  ;;  %v11180_v30 = vmul.f32 %v10366_v43, %v555_v1  ;;  %v8862_v1 = vunpack.i.l.bf16 %v10963_v53  ;;  %v8872_v53 = vunpack.i.l.bf16 %v11001_v48 }
 0x332   : > { %7924 = vmatpush1.bf16.msra.mxu1 %v7923_v12  ;;  %2534 = vmatprep.mubr.f32.mxu1 %v13225_v39  ;;  %v11091_v7 = vpop.permute.xlu0 %8895  ;;  %v11093_v3 = vpop.permute.xlu1 %8900  ;;  %v11114_v51 = vmul.f32 %v10318_v57, %v550_v26  ;;  %v553_v12 = vld [vmem:[%s13160_s5 + $0x160] sm:$0xff] }
 0x333   : > { %7926 = vmatprep.subr.bf16.mxu1 %v7925_v16  ;;  %7974 = vmatprep.subr.bf16.mxu0 %v7973_v0  ;;  %v11151_v55 = vmul.f32 %v10343_v19, %v553_v12  ;;  %v557_v12 = vld [vmem:[%s13160_s5 + $0x180] sm:$0xff]  ;;  %v3103_v11 = vsel %vm807_vm9, %v8862_v1, %v13232_v49 }
 0x334   : > { %7976 = vmatpush3.bf16.msra.mxu0 %v7973_v0 }
 0x335   : > { %6984 = vmatmul.mubr.msk.f32.gmra.mrb[14].mxu1 %vm1501_vm12, %v10804_v54  ;;  %v13177_v54 = vunpack.i.h.bf16 %v11093_v3 }
 0x336   : > { %7928 = vmatpush1.bf16.msra.mxu1 %v7927_v34  ;;  %2540 = vmatprep.mubr.f32.mxu1 %v13225_v39  ;;  %v11117_v20 = vpop.permute.xlu0 %8905  ;;  %v11119_v63 = vpop.permute.xlu1 %8910 }
 0x337   : > { %7946 = vmatprep.subr.bf16.mxu1 %v7945_v31  ;;  %v13178_v59 = vunpack.i.h.bf16 %v11117_v20  ;;  %7507 = vmatmul.mubr.msk.f32.vlgmr.msra.gmra.mrb[16].mxu0 %vm1501_vm12, %v11114_v51 }
 0x338   : > { %7509 = vmatprep.mubr.msk.f32.mxu0 %vm1501_vm12, %v11122_v4 }
 0x339   : > { %6985 = vmatmul.mubr.msk.f32.gmra.mrb[16].mxu1 %vm1501_vm12, %v10809_v10  ;;  %v7993_v47 = vpack.c.bf16 %v13178_v59, %v13177_v54  ;;  %v554_v10 = vld [vmem:[%s13160_s5 + $0x168] sm:$0xff] }
 0x33a   : > { %2546 = vmatprep.mubr.f32.mxu1 %v13225_v39  ;;  %v11146_v16 = vpop.permute.xlu0 %8915  ;;  %v11148_v0 = vpop.permute.xlu1 %8920  ;;  %v11168_v34 = vmul.f32 %v10364_v21, %v554_v10  ;;  %v8852_v10 = vunpack.i.l.bf16 %v10930_v18 }
 0x33b   : > { %v13176_v46 = vunpack.i.h.bf16 %v11146_v16  ;;  %v13175_v26 = vunpack.i.h.bf16 %v11148_v0  ;;  %7510 = vmatmul.mubr.msk.f32.gmra.mrb[18].mxu0 %vm1501_vm12, %v11139_v50  ;;  %7994 = vmatprep.subr.bf16.mxu0 %v7993_v47 }
 0x33c   : > { %7512 = vmatprep.mubr.msk.f32.mxu0 %vm1501_vm12, %v11151_v55  ;;  %7996 = vmatpush3.bf16.msra.mxu0 %v7993_v47  ;;  %v8853_v47 = vunpack.i.h.bf16 %v10930_v18  ;;  %v11207_v18 = vmul.f32 %v10135_v58, %v557_v12  ;;  %v13231_v12 = vunpack.i.h.bf16 %v10961_v23 }
 0x33d   : > { %6986 = vmatmul.mubr.msk.f32.gmra.mrb[18].mxu1 %vm1501_vm12, %v10843_v56  ;;  %v7997_v27 = vpack.c.bf16 %v13175_v26, %v13176_v46  ;;  %v556_v56 = vld [vmem:[%s13160_s5 + $0x178] sm:$0xff]  ;;  %v8857_v26 = vunpack.i.l.bf16 %v10961_v23  ;;  %v8877_v23 = vunpack.i.l.bf16 %v11035_v14 }
 0x33e   : > { %2552 = vmatprep.mubr.f32.mxu1 %v13225_v39  ;;  %v11175_v52 = vpop.permute.xlu0 %8925  ;;  %v11177_v31 = vpop.permute.xlu1 %8930  ;;  %v11199_v46 = vmul.f32 %v10385_v25, %v556_v56  ;;  %v3096_v56 = vsel %vm807_vm9, %v8852_v10, %v8842_v6  ;;  %v8883_v10 = vunpack.i.h.bf16 %v11037_v45 }
 0x33f   : > { %7513 = vmatmul.mubr.msk.f32.gmra.mrb[20].mxu0 %vm1501_vm12, %v11168_v34  ;;  %7998 = vmatprep.subr.bf16.mxu0 %v7997_v27  ;;  %v13183_v8 = vunpack.i.h.bf16 %v11177_v31  ;;  %v3101_v22 = vsel %vm807_vm9, %v8857_v26, %v13231_v12  ;;  %v8928_v38 = vunpack.i.h.bf16 %v11175_v52 }
 0x340   : > { %7515 = vmatprep.mubr.msk.f32.mxu0 %vm1501_vm12, %v11180_v30  ;;  %8000 = vmatpush3.bf16.msra.mxu0 %v7997_v27  ;;  %v7949_v49 = vpack.c.bf16 %v3103_v11, %v3101_v22  ;;  %v8887_v22 = vunpack.i.l.bf16 %v11069_v2 }
 0x341   : > { %6987 = vmatmul.mubr.msk.f32.gmra.mrb[20].mxu1 %vm1501_vm12, %v10861_v44  ;;  %v3098_v44 = vsel %vm807_vm9, %v8853_v47, %v8847_v37 }
 0x342   : > { %2558 = vmatprep.mubr.f32.mxu1 %v13225_v39  ;;  %v11202_v54 = vpop.permute.xlu0 %8935  ;;  %v11204_v59 = vpop.permute.xlu1 %8940  ;;  %v7947_v12 = vpack.c.bf16 %v3098_v44, %v3096_v56  ;;  %v558_v44 = vld [vmem:[%s13160_s5 + $0x188] sm:$0xff]  ;;  %v3106_v56 = vsel %vm807_vm9, %v8883_v10, %v8877_v23 }
 0x343   : > { %v13184_v27 = vunpack.i.h.bf16 %v11202_v54  ;;  %7516 = vmatmul.mubr.msk.f32.gmra.mrb[22].mxu0 %vm1501_vm12, %v11199_v46 }
 0x344   : > { %7534 = vmatprep.mubr.msk.f32.mxu0 %vm1501_vm12, %v11207_v18 }
 0x345   : > { %6988 = vmatmul.mubr.msk.f32.gmra.mrb[22].mxu1 %vm1501_vm12, %v10879_v62  ;;  %v8001_v37 = vpack.c.bf16 %v13184_v27, %v13183_v8  ;;  %v3100_v8 = vsel %vm807_vm9, %v8867_v40, %v8857_v26  ;;  %v3102_v27 = vsel %vm807_vm9, %v8868_v36, %v8862_v1  ;;  %v8892_v40 = vunpack.i.l.bf16 %v11071_v28  ;;  %v559_v1 = vld [vmem:[%s13160_s5 + $0x190] sm:$0xff] }
 0x346   : > { %2870 = vmatprep.mubr.f32.mxu1 %v13225_v39  ;;  %v11237_v6 = vpop.permute.xlu0 %8945  ;;  %v11239_v47 = vpop.permute.xlu1 %8950  ;;  %v7951_v11 = vpack.c.bf16 %v3102_v27, %v3100_v8  ;;  %v8907_v8 = vunpack.i.l.bf16 %v11117_v20  ;;  %v13235_v27 = vunpack.i.h.bf16 %v11069_v2  ;;  %v561_v2 = vld [vmem:[%s13160_s5 + $0x1a0] sm:$0xff] }
 0x347   : > { %v13190_v17 = vunpack.i.h.bf16 %v11237_v6  ;;  %v13189_v62 = vunpack.i.h.bf16 %v11239_v47  ;;  %8002 = vmatprep.subr.bf16.mxu0 %v8001_v37 }
 0x348   : > { %8004 = vmatpush3.bf16.msra.mxu0 %v8001_v37  ;;  %v13234_v37 = vunpack.i.h.bf16 %v11001_v48  ;;  %v560_v48 = vld [vmem:[%s13160_s5 + $0x198] sm:$0xff] }
 0x349   : > { %6997 = vmatmul.mubr.msk.f32.vlgmr.msra.gmra.mrb[8].mxu1 %vm1501_vm12, %v10893_v9  ;;  %v8005_v42 = vpack.c.bf16 %v13189_v62, %v13190_v17  ;;  %v13233_v9 = vunpack.i.h.bf16 %v11035_v14  ;;  %v11275_v62 = vmul.f32 %v10318_v57, %v558_v44  ;;  %v3104_v14 = vsel %vm807_vm9, %v8882_v5, %v8872_v53 }
 0x34a   : > { %7948 = vmatpush1.bf16.msra.mxu1 %v7947_v12  ;;  %2876 = vmatprep.mubr.f32.mxu1 %v13225_v39  ;;  %v11260_v45 = vpop.permute.xlu0 %8955  ;;  %v11262_v36 = vpop.permute.xlu1 %8960  ;;  %v3105_v12 = vsel %vm807_vm9, %v8872_v53, %v13234_v37  ;;  %v11298_v53 = vmul.f32 %v10320_v60, %v559_v1  ;;  %v11311_v1 = vmul.f32 %v10341_v29, %v560_v48 }
 0x34b   : > { %v3107_v26 = vsel %vm807_vm9, %v8877_v23, %v13233_v9  ;;  %7950 = vmatprep.subr.bf16.mxu1 %v7949_v49  ;;  %8006 = vmatprep.subr.bf16.mxu0 %v8005_v42  ;;  %v8898_v49 = vunpack.i.h.bf16 %v11091_v7  ;;  %v8897_v9 = vunpack.i.l.bf16 %v11091_v7  ;;  %v3109_v7 = vsel %vm807_vm9, %v8887_v22, %v13235_v27  ;;  %v563_v27 = vld [vmem:[%s13160_s5 + $0x1b0] sm:$0xff] }
 0x34c   : > { %8008 = vmatpush3.bf16.msra.mxu0 %v8005_v42  ;;  %v7953_v17 = vpack.c.bf16 %v3107_v26, %v3105_v12  ;;  %v13195_v10 = vunpack.i.h.bf16 %v11262_v36  ;;  %v8902_v26 = vunpack.i.l.bf16 %v11093_v3 }
 0x34d   : > { %6998 = vmatmul.mubr.msk.f32.gmra.mrb[10].mxu1 %vm1501_vm12, %v10933_v24  ;;  %v13236_v24 = vunpack.i.h.bf16 %v11071_v28  ;;  %v7955_v28 = vpack.c.bf16 %v3106_v56, %v3104_v14 }
 0x34e   : > { %7952 = vmatpush1.bf16.msra.mxu1 %v7951_v11  ;;  %2882 = vmatprep.mubr.f32.mxu1 %v13225_v39  ;;  %v11287_v42 = vpop.permute.xlu0 %8965  ;;  %v11289_v5 = vpop.permute.xlu1 %8970  ;;  %v3110_v11 = vsel %vm807_vm9, %v8898_v49, %v8892_v40  ;;  %v562_v49 = vld [vmem:[%s13160_s5 + $0x1a8] sm:$0xff] }
 0x34f   : > { %v3111_v23 = vsel %vm807_vm9, %v8892_v40, %v13236_v24  ;;  %7954 = vmatprep.subr.bf16.mxu1 %v7953_v17  ;;  %v13198_v44 = vunpack.i.h.bf16 %v11287_v42  ;;  %7535 = vmatmul.mubr.msk.f32.vlgmr.msra.gmra.mrb[16].mxu0 %vm1501_vm12, %v11275_v62  ;;  %v3108_v17 = vsel %vm807_vm9, %v8897_v9, %v8887_v22  ;;  %v13237_v22 = vunpack.i.h.bf16 %v11117_v20 }
 0x350   : > { %7537 = vmatprep.mubr.msk.f32.mxu0 %vm1501_vm12, %v11298_v53  ;;  %v7957_v37 = vpack.c.bf16 %v3111_v23, %v3109_v7  ;;  %v7959_v7 = vpack.c.bf16 %v3110_v11, %v3108_v17  ;;  %v13238_v24 = vunpack.i.h.bf16 %v11093_v3 }
 0x351   : > { %6999 = vmatmul.mubr.msk.f32.gmra.mrb[12].mxu1 %vm1501_vm12, %v10938_v32  ;;  %v8025_v12 = vpack.c.bf16 %v13198_v44, %v13195_v10  ;;  %v3453_v40 = vsel %vm819_vm11, %v8907_v8, %v13237_v22  ;;  %v11332_v32 = vmul.f32 %v10343_v19, %v561_v2  ;;  %v11366_v22 = vmul.f32 %v10366_v43, %v563_v27 }
 0x352   : > { %7956 = vmatpush1.bf16.msra.mxu1 %v7955_v28  ;;  %2888 = vmatprep.mubr.f32.mxu1 %v13225_v39  ;;  %v11322_v56 = vpop.permute.xlu0 %8975  ;;  %v11324_v14 = vpop.permute.xlu1 %8980  ;;  %v3451_v23 = vsel %vm819_vm11, %v8902_v26, %v13238_v24  ;;  %v11354_v28 = vmul.f32 %v10364_v21, %v562_v49 }
 0x353   : > { %7958 = vmatprep.subr.bf16.mxu1 %v7957_v37  ;;  %v13194_v9 = vunpack.i.h.bf16 %v11322_v56  ;;  %v13191_v48 = vunpack.i.h.bf16 %v11324_v14  ;;  %7538 = vmatmul.mubr.msk.f32.gmra.mrb[18].mxu0 %vm1501_vm12, %v11311_v1  ;;  %v7977_v2 = vpack.c.bf16 %v3453_v40, %v3451_v23  ;;  %13240 = vst [vmem:[#allocation10_spill] sm:$0xff] %v11366_v22 }
 0x354   : > { %8026 = vmatprep.subr.bf16.mxu0 %v8025_v12  ;;  %7540 = vmatprep.mubr.msk.f32.mxu0 %vm1501_vm12, %v11332_v32  ;;  %13239 = vst [vmem:[#allocation9_spill] sm:$0xff] %v11354_v28 }
 0x355   : > { %7000 = vmatmul.mubr.msk.f32.gmra.mrb[14].mxu1 %vm1501_vm12, %v10966_v35  ;;  %8028 = vmatpush3.bf16.msra.mxu0 %v8025_v12  ;;  %v8029_v17 = vpack.c.bf16 %v13191_v48, %v13194_v9  ;;  %v564_v35 = vld [vmem:[%s13160_s5 + $0x1b8] sm:$0xff]  ;;  %v565_v12 = vld [vmem:[%s13160_s5 + $0x1c0] sm:$0xff]  ;;  %v8913_v48 = vunpack.i.h.bf16 %v11119_v63  ;;  %v8917_v9 = vunpack.i.l.bf16 %v11146_v16 }
 0x356   : > { %7960 = vmatpush1.bf16.msra.mxu1 %v7959_v7  ;;  %2894 = vmatprep.mubr.f32.mxu1 %v13225_v39  ;;  %v11361_v11 = vpop.permute.xlu0 %8985  ;;  %v11363_v37 = vpop.permute.xlu1 %8990  ;;  %v11381_v40 = vmul.f32 %v10385_v25, %v564_v35  ;;  %v11389_v7 = vmul.f32 %v10135_v58, %v565_v12 }
 0x357   : > { %7978 = vmatprep.subr.bf16.mxu1 %v7977_v2  ;;  %7541 = vmatmul.mubr.msk.f32.gmra.mrb[20].mxu0 %vm1501_vm12, %v11354_v28  ;;  %v13192_v24 = vunpack.i.h.bf16 %v11363_v37 }
 0x358   : > { %8030 = vmatprep.subr.bf16.mxu0 %v8029_v17  ;;  %7543 = vmatprep.mubr.msk.f32.mxu0 %vm1501_vm12, %v11366_v22  ;;  %13241 = vst [vmem:[#allocation11_spill] sm:$0xff] %v11381_v40  ;;  %13242 = vst [vmem:[#allocation12_spill] sm:$0xff] %v11389_v7  ;;  %v570_v22 = vld [vmem:[%s13160_s5 + $0x1e8] sm:$0xff] }
 0x359   : > { %7001 = vmatmul.mubr.msk.f32.gmra.mrb[16].mxu1 %vm1501_vm12, %v10971_v13  ;;  %8032 = vmatpush3.bf16.msra.mxu0 %v8029_v17 }
 0x35a   : > { %2900 = vmatprep.mubr.f32.mxu1 %v13225_v39  ;;  %v11384_v49 = vpop.permute.xlu0 %8995  ;;  %v11386_v27 = vpop.permute.xlu1 %9000 }
 0x35b   : > { %v13193_v23 = vunpack.i.h.bf16 %v11384_v49  ;;  %7544 = vmatmul.mubr.msk.f32.gmra.mrb[22].mxu0 %vm1501_vm12, %v11381_v40 }
 0x35c   : > { %7562 = vmatprep.mubr.msk.f32.mxu0 %vm1501_vm12, %v11389_v7  ;;  %v8927_v7 = vunpack.i.l.bf16 %v11175_v52  ;;  %v13246_v52 = vunpack.i.h.bf16 %v11148_v0 }
 0x35d   : > { %7002 = vmatmul.mubr.msk.f32.gmra.mrb[18].mxu1 %vm1501_vm12, %v11010_v33  ;;  %v8033_v13 = vpack.c.bf16 %v13193_v23, %v13192_v24  ;;  %v8912_v33 = vunpack.i.l.bf16 %v11119_v63  ;;  %v566_v23 = vld [vmem:[%s13160_s5 + $0x1c8] sm:$0xff] }
 0x35e   : > { %2906 = vmatprep.mubr.f32.mxu1 %v13225_v39  ;;  %v11404_v2 = vpop.permute.xlu0 %9005  ;;  %v11406_v17 = vpop.permute.xlu1 %9010  ;;  %v3454_v40 = vsel %vm819_vm11, %v8927_v7, %v8917_v9 }
 0x35f   : > { %v13197_v35 = vunpack.i.h.bf16 %v11404_v2  ;;  %v13196_v12 = vunpack.i.h.bf16 %v11406_v17  ;;  %8034 = vmatprep.subr.bf16.mxu0 %v8033_v13  ;;  %v3450_v44 = vsel %vm819_vm11, %v8912_v33, %v8902_v26  ;;  %v8932_v33 = vunpack.i.l.bf16 %v11177_v31 }
 0x360   : > { %8036 = vmatpush3.bf16.msra.mxu0 %v8033_v13  ;;  %v8922_v13 = vunpack.i.l.bf16 %v11148_v0  ;;  %v8943_v0 = vunpack.i.h.bf16 %v11204_v59 }
 0x361   : > { %7003 = vmatmul.mubr.msk.f32.gmra.mrb[20].mxu1 %vm1501_vm12, %v11013_v41  ;;  %v8037_v24 = vpack.c.bf16 %v13196_v12, %v13197_v35  ;;  %v567_v41 = vld [vmem:[%s13160_s5 + $0x1d0] sm:$0xff]  ;;  %v11432_v12 = vmul.f32 %v10318_v57, %v566_v23  ;;  %v3452_v35 = vsel %vm819_vm11, %v8913_v48, %v8907_v8  ;;  %v8937_v23 = vunpack.i.l.bf16 %v11202_v54 }
 0x362   : > { %2912 = vmatprep.mubr.f32.mxu1 %v13225_v39  ;;  %v11424_v10 = vpop.permute.xlu0 %9015  ;;  %v11426_v63 = vpop.permute.xlu1 %9020  ;;  %v13245_v8 = vunpack.i.h.bf16 %v11146_v16  ;;  %v11460_v48 = vmul.f32 %v10320_v60, %v567_v41  ;;  %v569_v16 = vld [vmem:[%s13160_s5 + $0x1e0] sm:$0xff] }
 0x363   : > { %8038 = vmatprep.subr.bf16.mxu0 %v8037_v24  ;;  %13243 = vst [vmem:[#allocation13_spill] sm:$0xff] %v11432_v12  ;;  %v11499_v7 = vmul.f32 %v10343_v19, %v569_v16 }
 0x364   : > { %8040 = vmatpush3.bf16.msra.mxu0 %v8037_v24  ;;  %v568_v24 = vld [vmem:[%s13160_s5 + $0x1d8] sm:$0xff]  ;;  %v3455_v26 = vsel %vm819_vm11, %v8917_v9, %v13245_v8  ;;  %13247 = vst [vmem:[#allocation15_spill] sm:$0xff] %v11460_v48  ;;  %v8942_v8 = vunpack.i.l.bf16 %v11204_v59  ;;  %v13248_v59 = vunpack.i.h.bf16 %v11426_v63 }
 0x365   : > { %7004 = vmatmul.mubr.msk.f32.gmra.mrb[22].mxu1 %vm1501_vm12, %v11043_v61  ;;  %v3457_v61 = vsel %vm819_vm11, %v8922_v13, %v13246_v52  ;;  %v7979_v52 = vpack.c.bf16 %v3452_v35, %v3450_v44  ;;  %v11475_v41 = vmul.f32 %v10341_v29, %v568_v24  ;;  %v8947_v24 = vunpack.i.l.bf16 %v11237_v6 }
 0x366   : > { %3224 = vmatprep.mubr.f32.mxu1 %v13225_v39  ;;  %v11449_v20 = vpop.permute.xlu0 %9025  ;;  %v11451_v3 = vpop.permute.xlu1 %9030  ;;  %v3458_v16 = vsel %vm819_vm11, %v8942_v8, %v8932_v33  ;;  %v13253_v8 = vunpack.i.h.bf16 %v11239_v47 }
 0x367   : > { %13244 = vst [vmem:[#allocation14_spill] sm:$0xff] %v11451_v3  ;;  %7563 = vmatmul.mubr.msk.f32.vlgmr.msra.gmra.mrb[16].mxu0 %vm1501_vm12, %v11432_v12  ;;  %v3456_v12 = vsel %vm819_vm11, %v8928_v38, %v8922_v13  ;;  %v7981_v3 = vpack.c.bf16 %v3457_v61, %v3455_v26  ;;  %v13249_v44 = vunpack.i.h.bf16 %v11449_v20  ;;  %v13250_v38 = vunpack.i.h.bf16 %v11202_v54  ;;  %v571_v54 = vld [vmem:[%s13160_s5 + $0x1f0] sm:$0xff] }
 0x368   : > { %7565 = vmatprep.mubr.msk.f32.mxu0 %vm1501_vm12, %v11460_v48  ;;  %v8952_v48 = vunpack.i.l.bf16 %v11239_v47  ;;  %v13251_v61 = vunpack.i.h.bf16 %v11177_v31  ;;  %v8958_v31 = vunpack.i.h.bf16 %v11260_v45 }
 0x369   : > { %7013 = vmatmul.mubr.msk.f32.vlgmr.msra.gmra.mrb[8].mxu1 %vm1501_vm12, %v11048_v15  ;;  %v8057_v35 = vpack.c.bf16 %v13249_v44, %v13248_v59  ;;  %v3461_v15 = vsel %vm819_vm11, %v8937_v23, %v13250_v38  ;;  %v11509_v59 = vmul.f32 %v10364_v21, %v570_v22  ;;  %v7983_v44 = vpack.c.bf16 %v3456_v12, %v3454_v40  ;;  %v572_v40 = vld [vmem:[%s13160_s5 + $0x1f8] sm:$0xff] }
 0x36a   : > { %7980 = vmatpush1.bf16.msra.mxu1 %v7979_v52  ;;  %3230 = vmatprep.mubr.f32.mxu1 %v13225_v39  ;;  %v11491_v28 = vpop.permute.xlu0 %9035  ;;  %v11493_v9 = vpop.permute.xlu1 %9040  ;;  %v3459_v52 = vsel %vm819_vm11, %v8932_v33, %v13251_v61  ;;  %v8957_v38 = vunpack.i.l.bf16 %v11260_v45  ;;  %v8967_v12 = vunpack.i.l.bf16 %v11287_v42  ;;  %v573_v61 = vld [vmem:[%s13160_s5 + $0x200] sm:$0xff]  ;;  %v11553_v47 = vmul.f32 %v10385_v25, %v572_v40 }
 0x36b   : > { %7982 = vmatprep.subr.bf16.mxu1 %v7981_v3  ;;  %v9038_v13 = vunpack.i.h.bf16 %v11491_v28  ;;  %v9043_v26 = vunpack.i.h.bf16 %v11493_v9  ;;  %7566 = vmatmul.mubr.msk.f32.gmra.mrb[18].mxu0 %vm1501_vm12, %v11475_v41  ;;  %v3460_v3 = vsel %vm819_vm11, %v8943_v0, %v8937_v23  ;;  %v7985_v22 = vpack.c.bf16 %v3461_v15, %v3459_v52 }
 0x36c   : > { %8058 = vmatprep.subr.bf16.mxu0 %v8057_v35  ;;  %7568 = vmatprep.mubr.msk.f32.mxu0 %vm1501_vm12, %v11499_v7  ;;  %v11542_v15 = vmul.f32 %v10366_v43, %v571_v54  ;;  %v8962_v52 = vunpack.i.l.bf16 %v11262_v36  ;;  %v3462_v54 = vsel %vm819_vm11, %v8957_v38, %v8947_v24 }
 0x36d   : > { %7014 = vmatmul.mubr.msk.f32.gmra.mrb[10].mxu1 %vm1501_vm12, %v11114_v51  ;;  %8060 = vmatpush3.bf16.msra.mxu0 %v8057_v35  ;;  %v8061_v23 = vpack.c.bf16 %v9043_v26, %v9038_v13  ;;  %v13252_v51 = vunpack.i.h.bf16 %v11237_v6  ;;  %v3465_v35 = vsel %vm819_vm11, %v8952_v48, %v13253_v8  ;;  %v7987_v6 = vpack.c.bf16 %v3460_v3, %v3458_v16 }
 0x36e   : > { %7984 = vmatpush1.bf16.msra.mxu1 %v7983_v44  ;;  %3236 = vmatprep.mubr.f32.mxu1 %v13225_v39  ;;  %v11531_v45 = vpop.permute.xlu0 %9045  ;;  %v11533_v33 = vpop.permute.xlu1 %9050  ;;  %v3464_v44 = vsel %vm819_vm11, %v8958_v31, %v8952_v48  ;;  %v11570_v48 = vmul.f32 %v10135_v58, %v573_v61 }
 0x36f   : > { %v3463_v0 = vsel %vm819_vm11, %v8947_v24, %v13252_v51  ;;  %7986 = vmatprep.subr.bf16.mxu1 %v7985_v22  ;;  %7569 = vmatmul.mubr.msk.f32.gmra.mrb[20].mxu0 %vm1501_vm12, %v11509_v59  ;;  %v13254_v51 = vunpack.i.h.bf16 %v11287_v42  ;;  %v7991_v38 = vpack.c.bf16 %v3464_v44, %v3462_v54  ;;  %v574_v54 = vld [vmem:[%s13160_s5 + $0x208] sm:$0xff]  ;;  %v575_v44 = vld [vmem:[%s13160_s5 + $0x210] sm:$0xff]  ;;  %v13256_v42 = vunpack.i.h.bf16 %v11322_v56 }
 0x370   : > { %8062 = vmatprep.subr.bf16.mxu0 %v8061_v23  ;;  %7571 = vmatprep.mubr.msk.f32.mxu0 %vm1501_vm12, %v11542_v15  ;;  %v7989_v22 = vpack.c.bf16 %v3465_v35, %v3463_v0 }
 0x371   : > { %7015 = vmatmul.mubr.msk.f32.gmra.mrb[12].mxu1 %vm1501_vm12, %v11122_v4  ;;  %8064 = vmatpush3.bf16.msra.mxu0 %v8061_v23  ;;  %v3807_v24 = vsel %vm831_vm14, %v8967_v12, %v13254_v51  ;;  %v9053_v4 = vunpack.i.h.bf16 %v11533_v33  ;;  %v13255_v23 = vunpack.i.h.bf16 %v11262_v36  ;;  %v576_v51 = vld [vmem:[%s13160_s5 + $0x218] sm:$0xff] }
 0x372   : > { %7988 = vmatpush1.bf16.msra.mxu1 %v7987_v6  ;;  %3242 = vmatprep.mubr.f32.mxu1 %v13225_v39  ;;  %v11560_v3 = vpop.permute.xlu0 %9055  ;;  %v11562_v16 = vpop.permute.xlu1 %9060 }
 0x373   : > { %7990 = vmatprep.subr.bf16.mxu1 %v7989_v22  ;;  %v9058_v31 = vunpack.i.h.bf16 %v11560_v3  ;;  %7572 = vmatmul.mubr.msk.f32.gmra.mrb[22].mxu0 %vm1501_vm12, %v11553_v47  ;;  %v3805_v40 = vsel %vm831_vm14, %v8962_v52, %v13255_v23  ;;  %v11616_v22 = vmul.f32 %v10320_v60, %v575_v44  ;;  %v11633_v60 = vmul.f32 %v10341_v29, %v576_v51  ;;  %v579_v29 = vld [vmem:[%s13160_s5 + $0x230] sm:$0xff] }
 0x374   : > { %7590 = vmatprep.mubr.msk.f32.mxu0 %vm1501_vm12, %v11570_v48  ;;  %v8009_v58 = vpack.c.bf16 %v3807_v24, %v3805_v40  ;;  %v577_v24 = vld [vmem:[%s13160_s5 + $0x220] sm:$0xff]  ;;  %v8977_v23 = vunpack.i.l.bf16 %v11322_v56  ;;  %v8982_v40 = vunpack.i.l.bf16 %v11324_v14  ;;  %v9003_v44 = vunpack.i.h.bf16 %v11386_v27 }
 0x375   : > { %7016 = vmatmul.mubr.msk.f32.gmra.mrb[14].mxu1 %vm1501_vm12, %v11139_v50  ;;  %v8065_v0 = vpack.c.bf16 %v9058_v31, %v9053_v4 }
 0x376   : > { %7992 = vmatpush1.bf16.msra.mxu1 %v7991_v38  ;;  %3248 = vmatprep.mubr.f32.mxu1 %v13225_v39  ;;  %v11590_v8 = vpop.permute.xlu0 %9065  ;;  %v11592_v35 = vpop.permute.xlu1 %9070  ;;  %v578_v38 = vld [vmem:[%s13160_s5 + $0x228] sm:$0xff]  ;;  %v3809_v36 = vsel %vm831_vm14, %v8977_v23, %v13256_v42 }
 0x377   : > { %8010 = vmatprep.subr.bf16.mxu1 %v8009_v58  ;;  %v9068_v61 = vunpack.i.h.bf16 %v11590_v8  ;;  %v9073_v6 = vunpack.i.h.bf16 %v11592_v35  ;;  %8066 = vmatprep.subr.bf16.mxu0 %v8065_v0  ;;  %v11642_v58 = vmul.f32 %v10343_v19, %v577_v24 }
 0x378   : > { %8068 = vmatpush3.bf16.msra.mxu0 %v8065_v0  ;;  %v8988_v0 = vunpack.i.h.bf16 %v11361_v11 }
 0x379   : > { %7017 = vmatmul.mubr.msk.f32.gmra.mrb[16].mxu1 %vm1501_vm12, %v11151_v55  ;;  %v8069_v50 = vpack.c.bf16 %v9073_v6, %v9068_v61  ;;  %v11612_v55 = vmul.f32 %v10318_v57, %v574_v54  ;;  %v8973_v57 = vunpack.i.h.bf16 %v11289_v5  ;;  %v8997_v54 = vunpack.i.l.bf16 %v11384_v49 }
 0x37a   : > { %3254 = vmatprep.mubr.f32.mxu1 %v13225_v39  ;;  %v3810_v24 = vsel %vm831_vm14, %v8988_v0, %v8982_v40 }
 0x37b   : > { %8070 = vmatprep.subr.bf16.mxu0 %v8069_v50 }
 0x37c   : > { %8072 = vmatpush3.bf16.msra.mxu0 %v8069_v50  ;;  %v8987_v50 = vunpack.i.l.bf16 %v11361_v11  ;;  %v11676_v11 = vmul.f32 %v10366_v43, %v579_v29  ;;  %v9002_v43 = vunpack.i.l.bf16 %v11386_v27  ;;  %v3814_v27 = vsel %vm831_vm14, %v9003_v44, %v8997_v54 }
 0x37d   : > { %7018 = vmatmul.mubr.msk.f32.gmra.mrb[18].mxu1 %vm1501_vm12, %v11168_v34  ;;  %v8972_v34 = vunpack.i.l.bf16 %v11289_v5  ;;  %v3806_v5 = vsel %vm831_vm14, %v8973_v57, %v8967_v12  ;;  %v13257_v12 = vunpack.i.h.bf16 %v11324_v14  ;;  %v13263_v44 = vunpack.i.h.bf16 %v11426_v63 }
 0x37e   : > { %3260 = vmatprep.mubr.f32.mxu1 %v13225_v39  ;;  %v3808_v14 = vsel %vm831_vm14, %v8987_v50, %v8977_v23  ;;  %v9027_v50 = vunpack.i.l.bf16 %v11449_v20 }
 0x37f   : > { %7591 = vmatmul.mubr.msk.f32.vlgmr.msra.gmra.mrb[16].mxu0 %vm1501_vm12, %v11612_v55  ;;  %v3804_v19 = vsel %vm831_vm14, %v8972_v34, %v8962_v52  ;;  %v3811_v52 = vsel %vm831_vm14, %v8982_v40, %v13257_v12  ;;  %v9007_v34 = vunpack.i.l.bf16 %v11404_v2  ;;  %v8015_v23 = vpack.c.bf16 %v3810_v24, %v3808_v14 }
 0x380   : > { %7593 = vmatprep.mubr.msk.f32.mxu0 %vm1501_vm12, %v11616_v22  ;;  %v8011_v51 = vpack.c.bf16 %v3806_v5, %v3804_v19  ;;  %v8013_v57 = vpack.c.bf16 %v3811_v52, %v3809_v36  ;;  %v9018_v19 = vunpack.i.h.bf16 %v11424_v10 }
 0x381   : > { %7019 = vmatmul.mubr.msk.f32.gmra.mrb[20].mxu1 %vm1501_vm12, %v11180_v30  ;;  %v11652_v30 = vmul.f32 %v10364_v21, %v578_v38  ;;  %v580_v21 = vld [vmem:[%s13160_s5 + $0x238] sm:$0xff]  ;;  %v9012_v38 = vunpack.i.l.bf16 %v11406_v17 }
 0x382   : > { %3266 = vmatprep.mubr.f32.mxu1 %v13225_v39  ;;  %v11685_v56 = vmul.f32 %v10385_v25, %v580_v21  ;;  %v13258_v25 = vunpack.i.h.bf16 %v11384_v49  ;;  %v9017_v49 = vunpack.i.l.bf16 %v11424_v10  ;;  %v9022_v10 = vunpack.i.l.bf16 %v11426_v63  ;;  %v13265_v63 = vld [vmem:[#allocation14_spill] sm:$0xff] }
 0x383   : > { %7594 = vmatmul.mubr.msk.f32.gmra.mrb[18].mxu0 %vm1501_vm12, %v11633_v60  ;;  %v3818_v12 = vsel %vm831_vm14, %v9018_v19, %v9012_v38  ;;  %v9032_v24 = vunpack.i.l.bf16 %v13265_v63 }
 0x384   : > { %7596 = vmatprep.mubr.msk.f32.mxu0 %vm1501_vm12, %v11642_v58  ;;  %v3815_v29 = vsel %vm831_vm14, %v8997_v54, %v13258_v25  ;;  %v13261_v54 = vunpack.i.h.bf16 %v11406_v17  ;;  %v9047_v25 = vunpack.i.l.bf16 %v11531_v45 }
 0x385   : > { %7020 = vmatmul.mubr.msk.f32.gmra.mrb[22].mxu1 %vm1501_vm12, %v11199_v46  ;;  %v8992_v46 = vunpack.i.l.bf16 %v11363_v37 }
 0x386   : > { %3578 = vmatprep.mubr.f32.mxu1 %v13225_v39  ;;  %v3819_v42 = vsel %vm831_vm14, %v9012_v38, %v13261_v54  ;;  %v9048_v38 = vunpack.i.h.bf16 %v11531_v45 }
 0x387   : > { %7597 = vmatmul.mubr.msk.f32.gmra.mrb[20].mxu0 %vm1501_vm12, %v11652_v30  ;;  %v3812_v5 = vsel %vm831_vm14, %v9002_v43, %v8992_v46  ;;  %v9037_v43 = vunpack.i.l.bf16 %v11491_v28 }
 0x388   : > { %7599 = vmatprep.mubr.msk.f32.mxu0 %vm1501_vm12, %v11676_v11  ;;  %v8019_v36 = vpack.c.bf16 %v3814_v27, %v3812_v5  ;;  %v9057_v27 = vunpack.i.l.bf16 %v11560_v3  ;;  %v9063_v5 = vunpack.i.h.bf16 %v11562_v16 }
 0x389   : > { %7029 = vmatmul.mubr.msk.f32.vlgmr.msra.gmra.mrb[8].mxu1 %vm1501_vm12, %v11207_v18  ;;  %v13259_v18 = vunpack.i.h.bf16 %v11363_v37  ;;  %v13260_v37 = vunpack.i.h.bf16 %v11404_v2  ;;  %v13262_v2 = vunpack.i.h.bf16 %v11449_v20  ;;  %v9033_v20 = vunpack.i.h.bf16 %v13265_v63 }
 0x38a   : > { %8012 = vmatpush1.bf16.msra.mxu1 %v8011_v51  ;;  %3584 = vmatprep.mubr.f32.mxu1 %v13225_v39  ;;  %v4159_v51 = vsel %vm843_vm15, %v9022_v10, %v13263_v44  ;;  %v4162_v19 = vsel %vm843_vm15, %v9047_v25, %v9037_v43 }
 0x38b   : > { %8014 = vmatprep.subr.bf16.mxu1 %v8013_v57  ;;  %7600 = vmatmul.mubr.msk.f32.gmra.mrb[22].mxu0 %vm1501_vm12, %v11685_v56  ;;  %v3813_v40 = vsel %vm831_vm14, %v8992_v46, %v13259_v18  ;;  %v3817_v21 = vsel %vm831_vm14, %v9007_v34, %v13260_v37  ;;  %v4161_v17 = vsel %vm843_vm15, %v9027_v50, %v13262_v2  ;;  %v9042_v57 = vunpack.i.l.bf16 %v11493_v9  ;;  %v13270_v2 = vld [vmem:[#allocation15_spill] sm:$0xff] }
 0x38c   : > { %4918 = vmatprep.mubr.f32.mxu0 %v13225_v39  ;;  %v8017_v0 = vpack.c.bf16 %v3815_v29, %v3813_v40  ;;  %v8021_v52 = vpack.c.bf16 %v3819_v42, %v3817_v21  ;;  %v8041_v14 = vpack.c.bf16 %v4161_v17, %v4159_v51  ;;  %v13267_v29 = vld [vmem:[#allocation11_spill] sm:$0xff]  ;;  %v9052_v40 = vunpack.i.l.bf16 %v11533_v33 }
 0x38d   : > { %7030 = vmatmul.mubr.msk.f32.gmra.mrb[10].mxu1 %vm1501_vm12, %v11275_v62  ;;  %v3816_v62 = vsel %vm831_vm14, %v9017_v49, %v9007_v34  ;;  %v4158_v34 = vsel %vm843_vm15, %v9032_v24, %v9022_v10  ;;  %v4165_v18 = vsel %vm843_vm15, %v9042_v57, %v9043_v26  ;;  %v4164_v49 = vsel %vm843_vm15, %v9048_v38, %v9042_v57  ;;  %v9076_v26 = vpop.permute.xlu0 %9075 }
 0x38e   : > { %8016 = vmatpush1.bf16.msra.mxu1 %v8015_v23  ;;  %3590 = vmatprep.mubr.f32.mxu1 %v13225_v39  ;;  %v8023_v46 = vpack.c.bf16 %v3818_v12, %v3816_v62  ;;  %v4163_v23 = vsel %vm843_vm15, %v9037_v43, %v9038_v13  ;;  %v9067_v13 = vunpack.i.l.bf16 %v11590_v8  ;;  %v9072_v9 = vunpack.i.l.bf16 %v11592_v35  ;;  %v13269_v62 = vld [vmem:[#allocation13_spill] sm:$0xff] }
 0x38f   : > { %8018 = vmatprep.subr.bf16.mxu1 %v8017_v0  ;;  %v9062_v0 = vunpack.i.l.bf16 %v11562_v16  ;;  %v8045_v28 = vpack.c.bf16 %v4165_v18, %v4163_v23  ;;  %v4169_v37 = vsel %vm843_vm15, %v9057_v27, %v9058_v31  ;;  %v4168_v21 = vsel %vm843_vm15, %v9063_v5, %v9057_v27 }
 0x390   : > { %v8047_v16 = vpack.c.bf16 %v4164_v49, %v4162_v19  ;;  %v4167_v54 = vsel %vm843_vm15, %v9052_v40, %v9053_v4  ;;  %v9078_v10 = vunpack.i.h.bf16 %v9076_v26  ;;  %v4171_v3 = vsel %vm843_vm15, %v9067_v13, %v9068_v61 }
 0x391   : > { %7031 = vmatmul.mubr.msk.f32.gmra.mrb[12].mxu1 %vm1501_vm12, %v11298_v53  ;;  %v13264_v53 = vld [vmem:[#allocation9_spill] sm:$0xff]  ;;  %v4166_v42 = vsel %vm843_vm15, %v9062_v0, %v9052_v40  ;;  %v8049_v12 = vpack.c.bf16 %v4169_v37, %v4167_v54  ;;  %v4173_v33 = vsel %vm843_vm15, %v9072_v9, %v9073_v6 }
 0x392   : > { %8020 = vmatpush1.bf16.msra.mxu1 %v8019_v36  ;;  %3596 = vmatprep.mubr.f32.mxu1 %v13225_v39  ;;  %v9077_v36 = vunpack.i.l.bf16 %v9076_v26  ;;  %v8051_v4 = vpack.c.bf16 %v4168_v21, %v4166_v42  ;;  %v8053_v17 = vpack.c.bf16 %v4173_v33, %v4171_v3 }
 0x393   : > { %8022 = vmatprep.subr.bf16.mxu1 %v8021_v52  ;;  %v4172_v52 = vsel %vm843_vm15, %v9078_v10, %v9072_v9  ;;  %v13272_v9 = vld [vmem:[#allocation7_spill] sm:$0xff] }
 0x394   : > { %v4170_v31 = vsel %vm843_vm15, %v9077_v36, %v9067_v13 }
 0x395   : > { %7032 = vmatmul.mubr.msk.f32.gmra.mrb[14].mxu1 %vm1501_vm12, %v11311_v1  ;;  %v13266_v1 = vld [vmem:[#allocation10_spill] sm:$0xff]  ;;  %v8055_v8 = vpack.c.bf16 %v4172_v52, %v4170_v31 }
 0x396   : > { %8024 = vmatpush1.bf16.msra.mxu1 %v8023_v46  ;;  %3602 = vmatprep.mubr.f32.mxu1 %v13225_v39 }
 0x397   : > { %8042 = vmatprep.subr.bf16.mxu1 %v8041_v14 }
 0x399   : > { %7033 = vmatmul.mubr.msk.f32.gmra.mrb[16].mxu1 %vm1501_vm12, %v11332_v32  ;;  %v4160_v32 = vsel %vm843_vm15, %v9033_v20, %v9027_v50  ;;  %v13268_v50 = vld [vmem:[#allocation12_spill] sm:$0xff] }
 0x39a   : > { %3608 = vmatprep.mubr.f32.mxu1 %v13225_v39  ;;  %v8043_v45 = vpack.c.bf16 %v4160_v32, %v4158_v34 }
 0x39d   : > { %7034 = vmatmul.mubr.msk.f32.gmra.mrb[18].mxu1 %vm1501_vm12, %v13264_v53 }
 0x39e   : > { %3614 = vmatprep.mubr.f32.mxu1 %v13225_v39 }
 0x3a1   : > { %7035 = vmatmul.mubr.msk.f32.gmra.mrb[20].mxu1 %vm1501_vm12, %v13266_v1 }
 0x3a2   : > { %3620 = vmatprep.mubr.f32.mxu1 %v13225_v39 }
 0x3a5   : > { %7036 = vmatmul.mubr.msk.f32.gmra.mrb[22].mxu1 %vm1501_vm12, %v13267_v29 }
 0x3a6   : > { %3932 = vmatprep.mubr.f32.mxu1 %v13225_v39 }
 0x3a9   : > { %7045 = vmatmul.mubr.msk.f32.vlgmr.msra.gmra.mrb[8].mxu1 %vm1501_vm12, %v13268_v50 }
 0x3aa   : > { %8044 = vmatpush1.bf16.msra.mxu1 %v8043_v45  ;;  %3938 = vmatprep.mubr.f32.mxu1 %v13225_v39 }
 0x3ab   : > { %8046 = vmatprep.subr.bf16.mxu1 %v8045_v28 }
 0x3ad   : > { %7046 = vmatmul.mubr.msk.f32.gmra.mrb[10].mxu1 %vm1501_vm12, %v13269_v62 }
 0x3ae   : > { %8048 = vmatpush1.bf16.msra.mxu1 %v8047_v16  ;;  %3944 = vmatprep.mubr.f32.mxu1 %v13225_v39  ;;  %v13273_v16 = vld [vmem:[#allocation8_spill] sm:$0xff] }
 0x3af   : > { %8050 = vmatprep.subr.bf16.mxu1 %v8049_v12 }
 0x3b1   : > { %7047 = vmatmul.mubr.msk.f32.gmra.mrb[12].mxu1 %vm1501_vm12, %v13270_v2 }
 0x3b2   : > { %8052 = vmatpush1.bf16.msra.mxu1 %v8051_v4  ;;  %3950 = vmatprep.mubr.f32.mxu1 %v13225_v39 }
 0x3b3   : > { %8054 = vmatprep.subr.bf16.mxu1 %v8053_v17 }
 0x3b5   : > { %7048 = vmatmul.mubr.msk.f32.gmra.mrb[14].mxu1 %vm1501_vm12, %v11475_v41  ;;  %v4467_v41 = vpop.permute.xlu1 %4466 }
 0x3b6   : > { %8056 = vmatpush1.bf16.msra.mxu1 %v8055_v8  ;;  %3956 = vmatprep.mubr.f32.mxu1 %v13225_v39 }
 0x3b9   : > { %7049 = vmatmul.mubr.msk.f32.gmra.mrb[16].mxu1 %vm1501_vm12, %v11499_v7  ;;  %v4472_v7 = vpop.permute.xlu0 %4471 }
 0x3ba   : > { %3962 = vmatprep.mubr.f32.mxu1 %v13225_v39 }
 0x3bd   : > { %7050 = vmatmul.mubr.msk.f32.gmra.mrb[18].mxu1 %vm1501_vm12, %v11509_v59  ;;  %v11830_v35 = vpop.permute.xlu0 %4481 }
 0x3be   : > { %3968 = vmatprep.mubr.f32.mxu1 %v13225_v39 }
 0x3c1   : > { %7051 = vmatmul.mubr.msk.f32.gmra.mrb[20].mxu1 %vm1501_vm12, %v11542_v15  ;;  %v4477_v15 = vpop.permute.xlu1 %4476  ;;  %v11838_v14 = vpop.permute.xlu0 %4491 }
 0x3c2   : > { %3974 = vmatprep.mubr.f32.mxu1 %v13225_v39 }
 0x3c5   : > { %7052 = vmatmul.mubr.msk.f32.gmra.mrb[22].mxu1 %vm1501_vm12, %v11553_v47  ;;  %v11835_v44 = vpop.permute.xlu1 %4486 }
 0x3c6   : > { %4286 = vmatprep.mubr.f32.mxu1 %v13225_v39 }
 0x3c9   : > { %7061 = vmatmul.mubr.msk.f32.vlgmr.msra.gmra.mrb[8].mxu1 %vm1501_vm12, %v11570_v48  ;;  %v11849_v25 = vpop.permute.xlu1 %4496 }
 0x3ca   : > { %4292 = vmatprep.mubr.f32.mxu1 %v13225_v39 }
 0x3cd   : > { %7062 = vmatmul.mubr.msk.f32.gmra.mrb[10].mxu1 %vm1501_vm12, %v11612_v55 }
 0x3ce   : > { %4298 = vmatprep.mubr.f32.mxu1 %v13225_v39 }
 0x3d1   : > { %7063 = vmatmul.mubr.msk.f32.gmra.mrb[12].mxu1 %vm1501_vm12, %v11616_v22 }
 0x3d2   : > { %4304 = vmatprep.mubr.f32.mxu1 %v13225_v39 }
 0x3d5   : > { %7064 = vmatmul.mubr.msk.f32.gmra.mrb[14].mxu1 %vm1501_vm12, %v11633_v60  ;;  %v13271_v60 = vld [vmem:[#allocation6_spill] sm:$0xff] }
 0x3d6   : > { %4310 = vmatprep.mubr.f32.mxu1 %v13225_v39 }
 0x3d9   : > { %7065 = vmatmul.mubr.msk.f32.gmra.mrb[16].mxu1 %vm1501_vm12, %v11642_v58 }
 0x3da   : > { %4316 = vmatprep.mubr.f32.mxu1 %v13225_v39 }
 0x3dd   : > { %7066 = vmatmul.mubr.msk.f32.gmra.mrb[18].mxu1 %vm1501_vm12, %v11652_v30 }
 0x3de   : > { %4322 = vmatprep.mubr.f32.mxu1 %v13225_v39 }
 0x3e1   : > { %7067 = vmatmul.mubr.msk.f32.gmra.mrb[20].mxu1 %vm1501_vm12, %v11676_v11 }
 0x3e2   : > { %4328 = vmatprep.mubr.f32.mxu1 %v13225_v39 }
 0x3e5   : > { %7068 = vmatmul.mubr.msk.f32.gmra.mrb[22].mxu1 %vm1501_vm12, %v11685_v56 }
 0x3e6   : > { %7694 = vmatprep.mubr.msk.f32.mxu1 %vm9581_vm13, %v13225_v39 }
 0x452   : > { %v7592_v59 = vpop.f32.mrb[16].mxu0 }
 0x453   : > { %v4509_v47 = vadd.f32 %v7592_v59, %v4472_v7  ;;  %v4401_v48 = vpop.f32.mrb[17].mxu0 }
 0x454   : > { %v4506_v61 = vadd.f32 %v4467_v41, %v4401_v48 }
 0x455   : > { %v4533_v6 = vmax.f32 %v4509_v47, 0.0 }
 0x456   : > { %v4530_v55 = vmax.f32 %v4506_v61, 0.0  ;;  %v7595_v22 = vpop.f32.mrb[18].mxu0 }
 0x457   : > { %v4557_v58 = vmul.f32 %v4533_v6, %v13271_v60  ;;  %v4515_v30 = vadd.f32 %v7595_v22, %v11830_v35  ;;  %v4411_v11 = vpop.f32.mrb[19].mxu0 }
 0x458   : > { %v4554_v46 = vmul.f32 %v4530_v55, %v13271_v60  ;;  %v4512_v56 = vadd.f32 %v4477_v15, %v4411_v11 }
 0x459   : > { %v4539_v51 = vmax.f32 %v4515_v30, 0.0  ;;  %4610 = vrot.lane.b32.xlu0 %v4557_v58, %s9579_s18 }
 0x45a   : > { %v4536_v53 = vmax.f32 %v4512_v56, 0.0  ;;  %4604 = vrot.lane.b32.xlu1 %v4554_v46, %s9579_s18  ;;  %v7598_v63 = vpop.f32.mrb[20].mxu0 }
 0x45b   : > { %v4563_v20 = vmul.f32 %v4539_v51, %v13271_v60  ;;  %v4521_v24 = vadd.f32 %v7598_v63, %v11838_v14  ;;  %v4421_v1 = vpop.f32.mrb[21].mxu0 }
 0x45c   : > { %v4560_v43 = vmul.f32 %v4536_v53, %v13271_v60  ;;  %v4518_v57 = vadd.f32 %v11835_v44, %v4421_v1 }
 0x45d   : > { %v4545_v32 = vmax.f32 %v4521_v24, 0.0  ;;  %4622 = vrot.lane.b32.xlu0 %v4563_v20, %s9579_s18 }
 0x45e   : > { %v4542_v34 = vmax.f32 %v4518_v57, 0.0  ;;  %4616 = vrot.lane.b32.xlu1 %v4560_v43, %s9579_s18  ;;  %v11847_v38 = vpop.f32.mrb[22].mxu0 }
 0x45f   : > { %v4569_v29 = vmul.f32 %v4545_v32, %v13271_v60  ;;  %v4431_v27 = vpop.f32.mrb[23].mxu0 }
 0x460   : > { %v4566_v23 = vmul.f32 %v4542_v34, %v13271_v60  ;;  %v4524_v18 = vadd.f32 %v11849_v25, %v4431_v27 }
 0x461   : > { %4634 = vrot.lane.b32.xlu0 %v4569_v29, %s9579_s18 }
 0x462   : > { %v4548_v40 = vmax.f32 %v4524_v18, 0.0  ;;  %4628 = vrot.lane.b32.xlu1 %v4566_v23, %s9579_s18  ;;  %v4502_v23 = vpop.permute.xlu0 %4501 }
 0x464   : > { %v4572_v5 = vmul.f32 %v4548_v40, %v13271_v60 }
 0x466   : > { %4640 = vrot.lane.b32.xlu1 %v4572_v5, %s9579_s18 }
 0x49c   : > { %v4288_v45 = vpop.f32.mrb[8].mxu1 }
 0x49d   : > { %v4504_v19 = vadd.f32 %v4467_v41, %v4288_v45  ;;  %v4290_v49 = vpop.f32.mrb[9].mxu1 }
 0x49e   : > { %v4505_v0 = vadd.f32 %v4467_v41, %v4290_v49 }
 0x49f   : > { %v4528_v50 = vmax.f32 %v4504_v19, 0.0  ;;  %v4527_v19 = vadd.f32 %v11847_v38, %v4502_v23 }
 0x4a0   : > { %v4529_v28 = vmax.f32 %v4505_v0, 0.0  ;;  %v4294_v13 = vpop.f32.mrb[10].mxu1 }
 0x4a1   : > { %v4552_v26 = vmul.f32 %v4528_v50, %v13272_v9  ;;  %v4507_v37 = vadd.f32 %v4472_v7, %v4294_v13  ;;  %v4296_v21 = vpop.f32.mrb[11].mxu1  ;;  %v4551_v13 = vmax.f32 %v4527_v19, 0.0 }
 0x4a2   : > { %v4553_v54 = vmul.f32 %v4529_v28, %v13273_v16  ;;  %v4508_v42 = vadd.f32 %v4472_v7, %v4296_v21 }
 0x4a3   : > { %v4531_v10 = vmax.f32 %v4507_v37, 0.0  ;;  %4600 = vrot.lane.b32.xlu1 %v4552_v26, %s9579_s18  ;;  %v4575_v38 = vmul.f32 %v4551_v13, %v13271_v60 }
 0x4a4   : > { %v4532_v36 = vmax.f32 %v4508_v42, 0.0  ;;  %4602 = vrot.lane.b32.xlu0 %v4553_v54, %s9579_s18  ;;  %v4300_v62 = vpop.f32.mrb[12].mxu1 }
 0x4a5   : > { %v4555_v12 = vmul.f32 %v4531_v10, %v13272_v9  ;;  %v4510_v3 = vadd.f32 %v4477_v15, %v4300_v62  ;;  %v4302_v33 = vpop.f32.mrb[13].mxu1 }
 0x4a6   : > { %v4556_v4 = vmul.f32 %v4532_v36, %v13273_v16  ;;  %v4511_v31 = vadd.f32 %v4477_v15, %v4302_v33 }
 0x4a7   : > { %v4534_v52 = vmax.f32 %v4510_v3, 0.0 }
 0x4a8   : > { %v4535_v2 = vmax.f32 %v4511_v31, 0.0  ;;  %4606 = vrot.lane.b32.xlu0 %v4555_v12, %s9579_s18  ;;  %4608 = vrot.lane.b32.xlu1 %v4556_v4, %s9579_s18  ;;  %v4306_v17 = vpop.f32.mrb[14].mxu1 }
 0x4a9   : > { %v4558_v8 = vmul.f32 %v4534_v52, %v13272_v9  ;;  %v4513_v41 = vadd.f32 %v11830_v35, %v4306_v17  ;;  %v4308_v7 = vpop.f32.mrb[15].mxu1 }
 0x4aa   : > { %v4559_v59 = vmul.f32 %v4535_v2, %v13273_v16  ;;  %v4514_v47 = vadd.f32 %v11830_v35, %v4308_v7 }
 0x4ab   : > { %v4537_v48 = vmax.f32 %v4513_v41, 0.0 }
 0x4ac   : > { %v4538_v61 = vmax.f32 %v4514_v47, 0.0  ;;  %4612 = vrot.lane.b32.xlu1 %v4558_v8, %s9579_s18  ;;  %4614 = vrot.lane.b32.xlu0 %v4559_v59, %s9579_s18  ;;  %v4312_v15 = vpop.f32.mrb[16].mxu1 }
 0x4ad   : > { %v4561_v6 = vmul.f32 %v4537_v48, %v13272_v9  ;;  %v4516_v55 = vadd.f32 %v11835_v44, %v4312_v15  ;;  %v4314_v22 = vpop.f32.mrb[17].mxu1 }
 0x4ae   : > { %v4562_v58 = vmul.f32 %v4538_v61, %v13273_v16  ;;  %v4517_v30 = vadd.f32 %v11835_v44, %v4314_v22 }
 0x4af   : > { %v4540_v11 = vmax.f32 %v4516_v55, 0.0 }
 0x4b0   : > { %v4541_v46 = vmax.f32 %v4517_v30, 0.0  ;;  %4618 = vrot.lane.b32.xlu0 %v4561_v6, %s9579_s18  ;;  %4620 = vrot.lane.b32.xlu1 %v4562_v58, %s9579_s18  ;;  %v4318_v35 = vpop.f32.mrb[18].mxu1 }
 0x4b1   : > { %v4564_v56 = vmul.f32 %v4540_v11, %v13272_v9  ;;  %v4519_v51 = vadd.f32 %v11838_v14, %v4318_v35  ;;  %v4320_v53 = vpop.f32.mrb[19].mxu1 }
 0x4b2   : > { %v4565_v63 = vmul.f32 %v4541_v46, %v13273_v16  ;;  %v4520_v20 = vadd.f32 %v11838_v14, %v4320_v53 }
 0x4b3   : > { %v4543_v24 = vmax.f32 %v4519_v51, 0.0 }
 0x4b4   : > { %v4544_v1 = vmax.f32 %v4520_v20, 0.0  ;;  %4624 = vrot.lane.b32.xlu1 %v4564_v56, %s9579_s18  ;;  %4626 = vrot.lane.b32.xlu0 %v4565_v63, %s9579_s18  ;;  %v4324_v44 = vpop.f32.mrb[20].mxu1 }
 0x4b5   : > { %v4567_v43 = vmul.f32 %v4543_v24, %v13272_v9  ;;  %v4522_v57 = vadd.f32 %v11849_v25, %v4324_v44  ;;  %v4326_v32 = vpop.f32.mrb[21].mxu1 }
 0x4b6   : > { %v4568_v34 = vmul.f32 %v4544_v1, %v13273_v16  ;;  %v4523_v29 = vadd.f32 %v11849_v25, %v4326_v32 }
 0x4b7   : > { %v4546_v27 = vmax.f32 %v4522_v57, 0.0 }
 0x4b8   : > { %v4547_v18 = vmax.f32 %v4523_v29, 0.0  ;;  %4630 = vrot.lane.b32.xlu0 %v4567_v43, %s9579_s18  ;;  %4632 = vrot.lane.b32.xlu1 %v4568_v34, %s9579_s18  ;;  %v4330_v14 = vpop.f32.mrb[22].mxu1 }
 0x4b9   : > { %v4570_v40 = vmul.f32 %v4546_v27, %v13272_v9  ;;  %v4525_v5 = vadd.f32 %v4502_v23, %v4330_v14  ;;  %v4332_v45 = vpop.f32.mrb[23].mxu1 }
 0x4ba   : > { %v4571_v49 = vmul.f32 %v4547_v18, %v13273_v16  ;;  %v4526_v0 = vadd.f32 %v4502_v23, %v4332_v45 }
 0x4bb   : > { %v4549_v50 = vmax.f32 %v4525_v5, 0.0 }
 0x4bc   : > { %v4550_v28 = vmax.f32 %v4526_v0, 0.0  ;;  %4636 = vrot.lane.b32.xlu1 %v4570_v40, %s9579_s18  ;;  %4638 = vrot.lane.b32.xlu0 %v4571_v49, %s9579_s18 }
 0x4bd   : > { %v4573_v25 = vmul.f32 %v4549_v50, %v13272_v9 }
 0x4be   : > { %v4574_v26 = vmul.f32 %v4550_v28, %v13273_v16 }
 0x4c0   : > { %4642 = vrot.lane.b32.xlu0 %v4573_v25, %s9579_s18  ;;  %4644 = vrot.lane.b32.xlu1 %v4574_v26, %s9579_s18 }
 0x4c4   : > { %4646 = vrot.lane.b32.xlu0 %v4575_v38, %s9579_s18 }
 0x4cb   : > { %v4611_v54 = vpop.permute.xlu0 %4610 }
 0x4cc   : > { %v4605_v37 = vpop.permute.xlu1 %4604 }
 0x4cf   : > { %v4623_v10 = vpop.permute.xlu0 %4622 }
 0x4d0   : > { %v4617_v21 = vpop.permute.xlu1 %4616 }
 0x4d3   : > { %v4635_v62 = vpop.permute.xlu0 %4634 }
 0x4d4   : > { %v4629_v42 = vpop.permute.xlu1 %4628 }
 0x4d8   : > { %v11901_v36 = vpop.permute.xlu1 %4640 }
 0x515   : > { %v4601_v9 = vpop.permute.xlu1 %4600 }
 0x516   : > { %4688 = vst.msk [vmem:[#allocation2] sm:$0xff] %vm1339_vm8, %v4601_v9  ;;  %v4603_v16 = vpop.permute.xlu0 %4602 }
 0x517   : > { %v11905_v12 = vsel %vm718_vm2, %v4601_v9, %v4603_v16  ;;  %v4649_v3 = vsel %vm718_vm2, %v4603_v16, %v4605_v37 }
 0x518   : > { %4690 = vst.msk [vmem:[#allocation2 + $0x10] sm:$0xff] %vm1342_vm10, %v4649_v3 }
 0x51a   : > { %v4607_v60 = vpop.permute.xlu0 %4606  ;;  %v4609_v33 = vpop.permute.xlu1 %4608 }
 0x51b   : > { %4691 = vst.msk [vmem:[#allocation2 + $0x18] sm:$0xff] %vm1339_vm8, %v4607_v60  ;;  %v11911_v4 = vsel %vm718_vm2, %v4607_v60, %v4609_v33  ;;  %v4651_v31 = vsel %vm718_vm2, %v4609_v33, %v4611_v54 }
 0x51c   : > { %4693 = vst.msk [vmem:[#allocation2 + $0x28] sm:$0xff] %vm1342_vm10, %v4651_v31 }
 0x51d   : > { %v11931_v61 = vld [vmem:[#allocation2] sm:$0xff] }
 0x51e   : > { %v4613_v2 = vpop.permute.xlu1 %4612  ;;  %v4615_v17 = vpop.permute.xlu0 %4614 }
 0x51f   : > { %4694 = vst.msk [vmem:[#allocation2 + $0x30] sm:$0xff] %vm1339_vm8, %v4613_v2  ;;  %v11919_v8 = vsel %vm718_vm2, %v4613_v2, %v4615_v17  ;;  %v4653_v41 = vsel %vm718_vm2, %v4615_v17, %v4617_v21  ;;  %v11922_v7 = vld [vmem:[#allocation2 + $0x10] sm:$0xff] }
 0x520   : > { %4696 = vst.msk [vmem:[#allocation2 + $0x40] sm:$0xff] %vm1342_vm10, %v4653_v41  ;;  %v11927_v59 = vpack.i.bf16 %v11922_v7, %v11905_v12 }
 0x522   : > { %v4619_v47 = vpop.permute.xlu0 %4618  ;;  %v4621_v48 = vpop.permute.xlu1 %4620  ;;  %9080 = vrot.lane.b32.xlu1 %v11927_v59, %s9570_s21  ;;  %v11933_v15 = vld [vmem:[#allocation2 + $0x18] sm:$0xff] }
 0x523   : > { %4697 = vst.msk [vmem:[#allocation2 + $0x48] sm:$0xff] %vm1339_vm8, %v4619_v47  ;;  %v11937_v6 = vsel %vm718_vm2, %v4619_v47, %v4621_v48  ;;  %v4655_v55 = vsel %vm718_vm2, %v4621_v48, %v4623_v10  ;;  %v11940_v22 = vld [vmem:[#allocation2 + $0x28] sm:$0xff]  ;;  %v11944_v58 = vpack.i.bf16 %v11933_v15, %v11931_v61  ;;  %v9580_v48 = vmov 0.0|0.0  }
 0x524   : > { %4699 = vst.msk [vmem:[#allocation2 + $0x58] sm:$0xff] %vm1342_vm10, %v4655_v55  ;;  %v11949_v30 = vpack.i.bf16 %v11940_v22, %v11911_v4  ;;  %8201 = vmatprep.subr.bf16.mxu1 %v9580_v48 }
 0x526   : > { %v4625_v35 = vpop.permute.xlu1 %4624  ;;  %v4627_v56 = vpop.permute.xlu0 %4626  ;;  %9090 = vrot.lane.b32.xlu0 %v11949_v30, %s9570_s21  ;;  %9085 = vrot.lane.b32.xlu1 %v11944_v58, %s9570_s21  ;;  %v11975_v43 = vld [vmem:[#allocation2 + $0x30] sm:$0xff] }
 0x527   : > { %4700 = vst.msk [vmem:[#allocation2 + $0x60] sm:$0xff] %vm1339_vm8, %v4625_v35  ;;  %v11963_v53 = vsel %vm718_vm2, %v4625_v35, %v4627_v56  ;;  %v4657_v63 = vsel %vm718_vm2, %v4627_v56, %v4629_v42  ;;  %v11966_v20 = vld [vmem:[#allocation2 + $0x40] sm:$0xff] }
 0x528   : > { %4702 = vst.msk [vmem:[#allocation2 + $0x70] sm:$0xff] %vm1342_vm10, %v4657_v63  ;;  %v11971_v24 = vpack.i.bf16 %v11966_v20, %v11919_v8 }
 0x52a   : > { %v4631_v1 = vpop.permute.xlu0 %4630  ;;  %v4633_v44 = vpop.permute.xlu1 %4632  ;;  %9095 = vrot.lane.b32.xlu0 %v11971_v24, %s9570_s21  ;;  %v11977_v57 = vld [vmem:[#allocation2 + $0x48] sm:$0xff] }
 0x52b   : > { %4703 = vst.msk [vmem:[#allocation2 + $0x78] sm:$0xff] %vm1339_vm8, %v4631_v1  ;;  %v11981_v32 = vsel %vm718_vm2, %v4631_v1, %v4633_v44  ;;  %v4659_v34 = vsel %vm718_vm2, %v4633_v44, %v4635_v62  ;;  %v11986_v29 = vpack.i.bf16 %v11977_v57, %v11975_v43  ;;  %v11988_v27 = vld [vmem:[#allocation2 + $0x58] sm:$0xff] }
 0x52c   : > { %4705 = vst.msk [vmem:[#allocation2 + $0x88] sm:$0xff] %vm1342_vm10, %v4659_v34  ;;  %v11993_v23 = vpack.i.bf16 %v11988_v27, %v11937_v6 }
 0x52e   : > { %v4637_v40 = vpop.permute.xlu1 %4636  ;;  %v4639_v5 = vpop.permute.xlu0 %4638  ;;  %9100 = vrot.lane.b32.xlu0 %v11986_v29, %s9570_s21  ;;  %9105 = vrot.lane.b32.xlu1 %v11993_v23, %s9570_s21  ;;  %v12020_v13 = vld [vmem:[#allocation2 + $0x60] sm:$0xff] }
 0x52f   : > { %4706 = vst.msk [vmem:[#allocation2 + $0x90] sm:$0xff] %vm1339_vm8, %v4637_v40  ;;  %v12007_v19 = vsel %vm718_vm2, %v4637_v40, %v4639_v5  ;;  %v4661_v49 = vsel %vm718_vm2, %v4639_v5, %v11901_v36  ;;  %v12011_v0 = vld [vmem:[#allocation2 + $0x70] sm:$0xff] }
 0x530   : > { %4708 = vst.msk [vmem:[#allocation2 + $0xa0] sm:$0xff] %vm1342_vm10, %v4661_v49  ;;  %v12016_v50 = vpack.i.bf16 %v12011_v0, %v11963_v53 }
 0x532   : > { %v4643_v28 = vpop.permute.xlu0 %4642  ;;  %9110 = vrot.lane.b32.xlu1 %v12016_v50, %s9570_s21  ;;  %v4645_v25 = vpop.permute.xlu1 %4644  ;;  %v12022_v26 = vld [vmem:[#allocation2 + $0x78] sm:$0xff] }
 0x533   : > { %4709 = vst.msk [vmem:[#allocation2 + $0xa8] sm:$0xff] %vm1339_vm8, %v4643_v28  ;;  %v12026_v38 = vsel %vm718_vm2, %v4643_v28, %v4645_v25  ;;  %v12028_v37 = vld [vmem:[#allocation2 + $0x88] sm:$0xff]  ;;  %v12032_v21 = vpack.i.bf16 %v12022_v26, %v12020_v13 }
 0x534   : > { %v12036_v54 = vpack.i.bf16 %v12028_v37, %v11981_v32 }
 0x536   : > { %9120 = vrot.lane.b32.xlu0 %v12036_v54, %s9570_s21  ;;  %v4647_v36 = vpop.permute.xlu0 %4646  ;;  %9115 = vrot.lane.b32.xlu1 %v12032_v21, %s9570_s21  ;;  %v12058_v60 = vld [vmem:[#allocation2 + $0x90] sm:$0xff] }
 0x537   : > { %v4663_v9 = vsel %vm718_vm2, %v4645_v25, %v4647_v36  ;;  %v12049_v16 = vld [vmem:[#allocation2 + $0xa0] sm:$0xff] }
 0x538   : > { %4711 = vst.msk [vmem:[#allocation2 + $0xb8] sm:$0xff] %vm1342_vm10, %v4663_v9  ;;  %v12054_v3 = vpack.i.bf16 %v12049_v16, %v12007_v19 }
 0x53a   : > { %9125 = vrot.lane.b32.xlu0 %v12054_v3, %s9570_s21  ;;  %v12060_v33 = vld [vmem:[#allocation2 + $0xa8] sm:$0xff] }
 0x53b   : > { %v12064_v31 = vpack.i.bf16 %v12060_v33, %v12058_v60 }
 0x53e   : > { %9135 = vrot.lane.b32.xlu0 %v12064_v31, %s9570_s21 }
 0x53f   : > { %v12070_v17 = vld [vmem:[#allocation2 + $0xb8] sm:$0xff] }
 0x540   : > { %v12074_v41 = vpack.i.bf16 %v12070_v17, %v12026_v38 }
 0x542   : > { %9145 = vrot.lane.b32.xlu0 %v11949_v30, %s9569_s20  ;;  %9130 = vrot.lane.b32.xlu1 %v12074_v41, %s9570_s21 }
 0x546   : > { %9155 = vrot.lane.b32.xlu0 %v11971_v24, %s9569_s20  ;;  %9140 = vrot.lane.b32.xlu1 %v11927_v59, %s9569_s20 }
 0x54a   : > { %9165 = vrot.lane.b32.xlu0 %v11986_v29, %s9569_s20  ;;  %9150 = vrot.lane.b32.xlu1 %v11944_v58, %s9569_s20 }
 0x54e   : > { %9175 = vrot.lane.b32.xlu0 %v12036_v54, %s9569_s20  ;;  %9160 = vrot.lane.b32.xlu1 %v11993_v23, %s9569_s20 }
 0x552   : > { %9185 = vrot.lane.b32.xlu0 %v12054_v3, %s9569_s20  ;;  %9170 = vrot.lane.b32.xlu1 %v12016_v50, %s9569_s20 }
 0x556   : > { %9190 = vrot.lane.b32.xlu0 %v12064_v31, %s9569_s20  ;;  %9180 = vrot.lane.b32.xlu1 %v12032_v21, %s9569_s20 }
 0x55a   : > { %9200 = vrot.lane.b32.xlu0 %v11949_v30, %s9571_s23  ;;  %9195 = vrot.lane.b32.xlu1 %v11927_v59, %s9571_s23 }
 0x55e   : > { %9210 = vrot.lane.b32.xlu0 %v11971_v24, %s9571_s23  ;;  %9205 = vrot.lane.b32.xlu1 %v11944_v58, %s9571_s23 }
 0x562   : > { %9220 = vrot.lane.b32.xlu0 %v11986_v29, %s9571_s23  ;;  %9215 = vrot.lane.b32.xlu1 %v11993_v23, %s9571_s23 }
 0x566   : > { %9230 = vrot.lane.b32.xlu0 %v12036_v54, %s9571_s23  ;;  %9225 = vrot.lane.b32.xlu1 %v12016_v50, %s9571_s23 }
 0x56a   : > { %9245 = vrot.lane.b32.xlu0 %v12054_v3, %s9571_s23  ;;  %9235 = vrot.lane.b32.xlu1 %v12074_v41, %s9569_s20 }
 0x56e   : > { %9250 = vrot.lane.b32.xlu0 %v12064_v31, %s9571_s23  ;;  %9240 = vrot.lane.b32.xlu1 %v12032_v21, %s9571_s23 }
 0x572   : > { %9260 = vrot.lane.b32.xlu0 %v11949_v30, %s9572_s27  ;;  %9255 = vrot.lane.b32.xlu1 %v11927_v59, %s9572_s27 }
 0x576   : > { %9270 = vrot.lane.b32.xlu0 %v11971_v24, %s9572_s27  ;;  %9265 = vrot.lane.b32.xlu1 %v11944_v58, %s9572_s27 }
 0x57a   : > { %9280 = vrot.lane.b32.xlu0 %v11986_v29, %s9572_s27  ;;  %9275 = vrot.lane.b32.xlu1 %v11993_v23, %s9572_s27 }
 0x57e   : > { %9290 = vrot.lane.b32.xlu0 %v12036_v54, %s9572_s27  ;;  %9285 = vrot.lane.b32.xlu1 %v12016_v50, %s9572_s27 }
 0x582   : > { %9300 = vrot.lane.b32.xlu0 %v12054_v3, %s9572_s27  ;;  %9295 = vrot.lane.b32.xlu1 %v12032_v21, %s9572_s27 }
 0x586   : > { %9305 = vrot.lane.b32.xlu0 %v12064_v31, %s9572_s27  ;;  %9310 = vrot.lane.b32.xlu1 %v11927_v59, %s9573_s28 }
 0x58a   : > { %9315 = vrot.lane.b32.xlu0 %v11949_v30, %s9573_s28  ;;  %9320 = vrot.lane.b32.xlu1 %v12074_v41, %s9571_s23 }
 0x58e   : > { %9330 = vrot.lane.b32.xlu0 %v11971_v24, %s9573_s28  ;;  %9325 = vrot.lane.b32.xlu1 %v11944_v58, %s9573_s28 }
 0x592   : > { %9340 = vrot.lane.b32.xlu0 %v11986_v29, %s9573_s28  ;;  %9335 = vrot.lane.b32.xlu1 %v11993_v23, %s9573_s28 }
 0x594   : > { %v12165_v55 = vpop.permute.xlu1 %9080 }
 0x595   : > { %v9083_v35 = vunpack.i.h.bf16 %v12165_v55  ;;  %v9082_v56 = vunpack.i.l.bf16 %v12165_v55 }
 0x596   : > { %9350 = vrot.lane.b32.xlu0 %v12036_v54, %s9573_s28  ;;  %9345 = vrot.lane.b32.xlu1 %v12016_v50, %s9573_s28 }
 0x597   : > { %v4813_v25 = vsel %vm759_vm1, %v9082_v56, %v9083_v35 }
 0x598   : > { %v12173_v63 = vpop.permute.xlu0 %9090  ;;  %v9086_v1 = vpop.permute.xlu1 %9085 }
 0x599   : > { %v9093_v44 = vunpack.i.h.bf16 %v12173_v63  ;;  %v9092_v34 = vunpack.i.l.bf16 %v12173_v63  ;;  %v9088_v40 = vunpack.i.h.bf16 %v9086_v1  ;;  %v9087_v5 = vunpack.i.l.bf16 %v9086_v1 }
 0x59a   : > { %9360 = vrot.lane.b32.xlu0 %v12054_v3, %s9573_s28  ;;  %9355 = vrot.lane.b32.xlu1 %v12032_v21, %s9573_s28 }
 0x59b   : > { %v4814_v49 = vsel %vm759_vm1, %v9088_v40, %v9092_v34  ;;  %v4812_v28 = vsel %vm759_vm1, %v9087_v5, %v9082_v56  ;;  %v4815_v36 = vsel %vm759_vm1, %v9092_v34, %v9093_v44 }
 0x59c   : > { %v8075_v9 = vpack.c.bf16 %v4814_v49, %v4812_v28  ;;  %v12189_v1 = vpop.permute.xlu0 %9095  ;;  %v8073_v47 = vpack.c.bf16 %v4815_v36, %v4813_v25 }
 0x59d   : > { %v9098_v40 = vunpack.i.h.bf16 %v12189_v1  ;;  %v9097_v5 = vunpack.i.l.bf16 %v12189_v1 }
 0x59e   : > { %9365 = vrot.lane.b32.xlu0 %v12064_v31, %s9573_s28  ;;  %9370 = vrot.lane.b32.xlu1 %v11927_v59, %s9574_s29 }
 0x59f   : > { %8074 = vmatprep.subr.bf16.mxu0 %v8073_v47 }
 0x5a0   : > { %8076 = vmatpush1.bf16.msra.mxu0 %v8075_v9  ;;  %v9101_v56 = vpop.permute.xlu0 %9100  ;;  %v12197_v62 = vpop.permute.xlu1 %9105  ;;  %v4817_v9 = vsel %vm759_vm1, %v9097_v5, %v9098_v40 }
 0x5a1   : > { %v9103_v34 = vunpack.i.h.bf16 %v9101_v56  ;;  %v9102_v49 = vunpack.i.l.bf16 %v9101_v56  ;;  %v9108_v28 = vunpack.i.h.bf16 %v12197_v62  ;;  %v9107_v25 = vunpack.i.l.bf16 %v12197_v62 }
 0x5a2   : > { %9375 = vrot.lane.b32.xlu0 %v11949_v30, %s9574_s29  ;;  %9380 = vrot.lane.b32.xlu1 %v11944_v58, %s9574_s29 }
 0x5a3   : > { %v4816_v36 = vsel %vm759_vm1, %v9102_v49, %v9097_v5  ;;  %v4818_v47 = vsel %vm759_vm1, %v9103_v34, %v9107_v25  ;;  %v4819_v56 = vsel %vm759_vm1, %v9107_v25, %v9108_v28  ;;  %v8093_v55 = vpack.c.bf16 %v9108_v28, %v9098_v40 }
 0x5a4   : > { %v8079_v45 = vpack.c.bf16 %v4818_v47, %v4816_v36  ;;  %v12213_v51 = vpop.permute.xlu1 %9110  ;;  %v8077_v2 = vpack.c.bf16 %v4819_v56, %v4817_v9 }
 0x5a5   : > { %v13209_v34 = vunpack.i.h.bf16 %v12213_v51  ;;  %v9112_v49 = vunpack.i.l.bf16 %v12213_v51 }
 0x5a6   : > { %9385 = vrot.lane.b32.xlu0 %v11971_v24, %s9574_s29  ;;  %9390 = vrot.lane.b32.xlu1 %v11993_v23, %s9574_s29 }
 0x5a7   : > { %8078 = vmatprep.subr.bf16.mxu0 %v8077_v2 }
 0x5a8   : > { %8080 = vmatpush1.bf16.msra.mxu0 %v8079_v45  ;;  %v12221_v5 = vpop.permute.xlu0 %9120  ;;  %v9116_v10 = vpop.permute.xlu1 %9115  ;;  %v4821_v45 = vsel %vm759_vm1, %v9112_v49, %v13209_v34  ;;  %v12262_v34 = vld [vmem:[%s13162_s7] sm:$0xff] }
 0x5a9   : > { %v13208_v25 = vunpack.i.h.bf16 %v12221_v5  ;;  %v9122_v36 = vunpack.i.l.bf16 %v12221_v5  ;;  %v9118_v47 = vunpack.i.h.bf16 %v9116_v10  ;;  %v9117_v9 = vunpack.i.l.bf16 %v9116_v10 }
 0x5aa   : > { %9395 = vrot.lane.b32.xlu0 %v11986_v29, %s9574_s29  ;;  %9400 = vrot.lane.b32.xlu1 %v12074_v41, %s9572_s27  ;;  %v13275_v1 = vunpack.i.h.bf16 %v12221_v5 }
 0x5ab   : > { %v4822_v56 = vsel %vm759_vm1, %v9118_v47, %v9122_v36  ;;  %v4820_v2 = vsel %vm759_vm1, %v9117_v9, %v9112_v49  ;;  %v4823_v42 = vsel %vm759_vm1, %v9122_v36, %v13208_v25 }
 0x5ac   : > { %v8083_v14 = vpack.c.bf16 %v4822_v56, %v4820_v2  ;;  %v9126_v10 = vpop.permute.xlu0 %9125  ;;  %v8081_v18 = vpack.c.bf16 %v4823_v42, %v4821_v45 }
 0x5ad   : > { %v9128_v49 = vunpack.i.h.bf16 %v9126_v10  ;;  %v9127_v36 = vunpack.i.l.bf16 %v9126_v10 }
 0x5ae   : > { %9410 = vrot.lane.b32.xlu0 %v12036_v54, %s9574_s29  ;;  %9405 = vrot.lane.b32.xlu1 %v12016_v50, %s9574_s29 }
 0x5af   : > { %8082 = vmatprep.subr.bf16.mxu0 %v8081_v18  ;;  %v4825_v11 = vsel %vm759_vm1, %v9127_v36, %v9128_v49 }
 0x5b0   : > { %8084 = vmatpush1.bf16.msra.mxu0 %v8083_v14  ;;  %v9136_v47 = vpop.permute.xlu0 %9135 }
 0x5b1   : > { %v9137_v9 = vunpack.i.l.bf16 %v9136_v47  ;;  %v9138_v2 = vunpack.i.h.bf16 %v9136_v47 }
 0x5b2   : > { %9420 = vrot.lane.b32.xlu0 %v12054_v3, %s9574_s29  ;;  %9415 = vrot.lane.b32.xlu1 %v12032_v21, %s9574_s29 }
 0x5b3   : > { %v4824_v18 = vsel %vm759_vm1, %v9137_v9, %v9127_v36 }
 0x5b4   : > { %v12245_v56 = vpop.permute.xlu0 %9145  ;;  %v9131_v42 = vpop.permute.xlu1 %9130 }
 0x5b5   : > { %v9133_v45 = vunpack.i.h.bf16 %v9131_v42  ;;  %v9132_v46 = vunpack.i.l.bf16 %v9131_v42 }
 0x5b6   : > { %9425 = vrot.lane.b32.xlu0 %v12064_v31, %s9574_s29  ;;  %9430 = vrot.lane.b32.xlu1 %v11927_v59, %s9575_s30 }
 0x5b7   : > { %v4826_v14 = vsel %vm759_vm1, %v9138_v2, %v9132_v46  ;;  %v4827_v10 = vsel %vm759_vm1, %v9132_v46, %v9133_v45  ;;  %v4739_v46 = vrot.slane %v12262_v34, 1  ;;  %v8099_v28 = vpack.c.bf16 %v9133_v45, %v9128_v49 }
 0x5b8   : > { %v8087_v52 = vpack.c.bf16 %v4826_v14, %v4824_v18  ;;  %v12255_v25 = vpop.permute.xlu0 %9155  ;;  %v12257_v47 = vpop.permute.xlu1 %9140  ;;  %v8085_v42 = vpack.c.bf16 %v4827_v10, %v4825_v11  ;;  %v8090_v11 = vpack.c.bf16 %v9093_v44, %v9083_v35  ;;  %v13274_v44 = vunpack.i.h.bf16 %v12213_v51 }
 0x5b9   : > { %v13276_v14 = vpack.c.bf16 %v11911_v4, %v11905_v12  ;;  %v13277_v49 = vpack.c.bf16 %v11933_v15, %v11931_v61  ;;  %v13278_v12 = vpack.c.bf16 %v11937_v6, %v11919_v8  ;;  %v13279_v4 = vpack.c.bf16 %v11977_v57, %v11975_v43 }
 0x5ba   : > { %9435 = vrot.lane.b32.xlu0 %v11949_v30, %s9575_s30  ;;  %9440 = vrot.lane.b32.xlu1 %v12074_v41, %s9573_s28  ;;  %v8096_v18 = vpack.c.bf16 %v13275_v1, %v13274_v44  ;;  %v13281_v8 = vpack.c.bf16 %v12022_v26, %v12020_v13  ;;  %v9148_v43 = vunpack.i.h.bf16 %v12245_v56  ;;  %v9147_v57 = vunpack.i.l.bf16 %v12245_v56 }
 0x5bb   : > { %8086 = vmatprep.subr.bf16.mxu0 %v8085_v42  ;;  %v13280_v42 = vpack.c.bf16 %v11981_v32, %v11963_v53  ;;  %v9158_v32 = vunpack.i.h.bf16 %v12255_v25  ;;  %v9142_v13 = vunpack.i.l.bf16 %v12257_v47  ;;  %v13284_v26 = vpack.c.bf16 %v11940_v22, %v11922_v7 }
 0x5bc   : > { %8088 = vmatpush1.bf16.msra.mxu0 %v8087_v52  ;;  %v12269_v36 = vpop.permute.xlu0 %9165  ;;  %v12271_v9 = vpop.permute.xlu1 %9150  ;;  %v13285_v22 = vpack.c.bf16 %v11988_v27, %v11966_v20 }
 0x5bd   : > { %8089 = vmatprep.subr.bf16.mxu0 %v9580_v48  ;;  %v9168_v27 = vunpack.i.h.bf16 %v12269_v36  ;;  %v9167_v1 = vunpack.i.l.bf16 %v12269_v36 }
 0x5be   : > { %9450 = vrot.lane.b32.xlu0 %v11971_v24, %s9575_s30  ;;  %9445 = vrot.lane.b32.xlu1 %v11944_v58, %s9575_s30 }
 0x5bf   : > { %7077 = vmatmul.mubr.msk.f32.vlgmr.msra.gmra.mrb[24].mxu0 %vm1501_vm12, %v4739_v46 }
 0x5c0   : > { %8091 = vmatpush3.bf16.msra.mxu0 %v8090_v11  ;;  %v12283_v52 = vpop.permute.xlu0 %9175  ;;  %v12285_v2 = vpop.permute.xlu1 %9160  ;;  %7618 = vmatprep.mubr.msk.f32.mxu0 %vm9581_vm13, %v13225_v39 }
 0x5c1   : > { %8092 = vmatprep.subr.bf16.mxu0 %v9580_v48  ;;  %v9162_v7 = vunpack.i.l.bf16 %v12285_v2  ;;  %v9178_v36 = vunpack.i.h.bf16 %v12283_v52 }
 0x5c2   : > { %9460 = vrot.lane.b32.xlu0 %v11986_v29, %s9575_s30  ;;  %9455 = vrot.lane.b32.xlu1 %v11993_v23, %s9575_s30 }
 0x5c4   : > { %8094 = vmatpush3.bf16.msra.mxu0 %v8093_v55  ;;  %v12298_v35 = vpop.permute.xlu0 %9185  ;;  %v12300_v63 = vpop.permute.xlu1 %9170 }
 0x5c5   : > { %8095 = vmatprep.subr.bf16.mxu0 %v9580_v48 }
 0x5c6   : > { %9470 = vrot.lane.b32.xlu0 %v12036_v54, %s9575_s30  ;;  %9465 = vrot.lane.b32.xlu1 %v12016_v50, %s9575_s30 }
 0x5c8   : > { %8097 = vmatpush3.bf16.msra.mxu0 %v8096_v18  ;;  %v12311_v62 = vpop.permute.xlu0 %9190  ;;  %v12313_v40 = vpop.permute.xlu1 %9180 }
 0x5c9   : > { %8098 = vmatprep.subr.bf16.mxu0 %v9580_v48 }
 0x5ca   : > { %9485 = vrot.lane.b32.xlu0 %v12054_v3, %s9575_s30  ;;  %9475 = vrot.lane.b32.xlu1 %v12074_v41, %s9574_s29 }
 0x5cc   : > { %8100 = vmatpush3.bf16.msra.mxu0 %v8099_v28  ;;  %v12320_v51 = vpop.permute.xlu0 %9200  ;;  %v12322_v5 = vpop.permute.xlu1 %9195 }
 0x5cd   : > { %8102 = vmatprep.subr.bf16.mxu0 %v13276_v14  ;;  %v9163_v14 = vunpack.i.h.bf16 %v12285_v2  ;;  %v9203_v56 = vunpack.i.h.bf16 %v12320_v51 }
 0x5ce   : > { %9490 = vrot.lane.b32.xlu0 %v12064_v31, %s9575_s30  ;;  %9480 = vrot.lane.b32.xlu1 %v12032_v21, %s9575_s30 }
 0x5cf   : > { %7619 = vmatmul.mubr.msk.f32.vlgmr.msra.gmra.mrb[26].mxu0 %vm1501_vm12, %v4739_v46 }
 0x5d0   : > { %8104 = vmatpush1.bf16.msra.mxu0 %v13277_v49  ;;  %v12335_v45 = vpop.permute.xlu0 %9210  ;;  %v12337_v10 = vpop.permute.xlu1 %9205  ;;  %5061 = vmatprep.mubr.f32.mxu0 %v13225_v39 }
 0x5d1   : > { %8106 = vmatprep.subr.bf16.mxu0 %v13278_v12 }
 0x5d2   : > { %9500 = vrot.lane.b32.xlu0 %v11949_v30, %s9576_s11  ;;  %9495 = vrot.lane.b32.xlu1 %v11927_v59, %s9576_s11  ;;  %v13282_v30 = vpack.c.bf16 %v12026_v38, %v12007_v19  ;;  %v9143_v19 = vunpack.i.h.bf16 %v12257_v47  ;;  %v9202_v47 = vunpack.i.l.bf16 %v12320_v51 }
 0x5d4   : > { %8108 = vmatpush1.bf16.msra.mxu0 %v13279_v4  ;;  %v12350_v61 = vpop.permute.xlu0 %9220  ;;  %v12352_v15 = vpop.permute.xlu1 %9215  ;;  %v5188_v11 = vsel %vm771_vm0, %v9142_v13, %v9143_v19 }
 0x5d5   : > { %8110 = vmatprep.subr.bf16.mxu0 %v13280_v42  ;;  %v9177_v42 = vunpack.i.l.bf16 %v12283_v52 }
 0x5d6   : > { %9510 = vrot.lane.b32.xlu0 %v11971_v24, %s9576_s11  ;;  %9505 = vrot.lane.b32.xlu1 %v11944_v58, %s9576_s11  ;;  %v13283_v58 = vpack.c.bf16 %v12060_v33, %v12058_v60  ;;  %v9152_v60 = vunpack.i.l.bf16 %v12271_v9 }
 0x5d8   : > { %8112 = vmatpush1.bf16.msra.mxu0 %v13281_v8  ;;  %v12364_v59 = vpop.permute.xlu0 %9230  ;;  %v12366_v6 = vpop.permute.xlu1 %9225  ;;  %v5187_v28 = vsel %vm771_vm0, %v9152_v60, %v9142_v13  ;;  %v12445_v8 = vsel %vm771_vm0, %v9168_v27, %v9162_v7 }
 0x5d9   : > { %8114 = vmatprep.subr.bf16.mxu0 %v13282_v30 }
 0x5da   : > { %9525 = vrot.lane.b32.xlu0 %v11986_v29, %s9576_s11  ;;  %9515 = vrot.lane.b32.xlu1 %v12074_v41, %s9575_s30  ;;  %v9157_v29 = vunpack.i.l.bf16 %v12255_v25  ;;  %s396_s30 = scalar_lea.vmem %s13165_s10, %s8533_s8 }
 0x5dc   : > { %8116 = vmatpush1.bf16.msra.mxu0 %v13283_v58  ;;  %v12378_v53 = vpop.permute.xlu0 %9245  ;;  %v12380_v24 = vpop.permute.xlu1 %9235  ;;  %v5191_v60 = vsel %vm771_vm0, %v9167_v1, %v9157_v29  ;;  %v5198_v1 = vsel %vm771_vm0, %v9177_v42, %v9178_v36 }
 0x5dd   : > { %8117 = vmatprep.subr.bf16.mxu0 %v9580_v48 }
 0x5de   : > { %9535 = vrot.lane.b32.xlu0 %v12036_v54, %s9576_s11  ;;  %9520 = vrot.lane.b32.xlu1 %v11993_v23, %s9576_s11  ;;  %v9153_v54 = vunpack.i.h.bf16 %v12271_v9  ;;  %v5190_v9 = vsel %vm771_vm0, %v9147_v57, %v9148_v43 }
 0x5df   : > { %7079 = vmatmul.mubr.msk.f32.vlgmr.msra.gmra.mrb[24].mxu0 %vm1501_vm12, %v12262_v34 }
 0x5e0   : > { %8119 = vmatpush3.bf16.msra.mxu0 %v13284_v26  ;;  %v12398_v23 = vpop.permute.xlu0 %9250  ;;  %v12400_v38 = vpop.permute.xlu1 %9240  ;;  %7637 = vmatprep.mubr.msk.f32.mxu0 %vm9581_vm13, %v13225_v39  ;;  %v5189_v18 = vsel %vm771_vm0, %v9153_v54, %v9147_v57 }
 0x5e1   : > { %8120 = vmatprep.subr.bf16.mxu0 %v9580_v48  ;;  %v8131_v27 = vpack.c.bf16 %v5189_v18, %v5187_v28  ;;  %v9183_v18 = vunpack.i.h.bf16 %v12313_v40  ;;  %v9182_v28 = vunpack.i.l.bf16 %v12313_v40  ;;  %v9238_v40 = vunpack.i.h.bf16 %v12380_v24 }
 0x5e2   : > { %9545 = vrot.lane.b32.xlu0 %v12054_v3, %s9576_s11  ;;  %9530 = vrot.lane.b32.xlu1 %v12016_v50, %s9576_s11  ;;  %v12424_v50 = vsel %vm771_vm0, %v9157_v29, %v9158_v32  ;;  %v5194_v29 = vsel %vm771_vm0, %v9162_v7, %v9163_v14 }
 0x5e4   : > { %8122 = vmatpush3.bf16.msra.mxu0 %v13285_v22  ;;  %v9261_v33 = vpop.permute.xlu0 %9260  ;;  %v9256_v46 = vpop.permute.xlu1 %9255  ;;  %v9173_v22 = vunpack.i.h.bf16 %v12300_v63 }
 0x5e5   : > { %v9263_v3 = vunpack.i.h.bf16 %v9261_v33  ;;  %v9262_v55 = vunpack.i.l.bf16 %v9261_v33  ;;  %v9258_v44 = vunpack.i.h.bf16 %v9256_v46  ;;  %v9257_v20 = vunpack.i.l.bf16 %v9256_v46  ;;  %8123 = vmatprep.subr.bf16.mxu0 %v9580_v48 }
 0x5e6   : > { %9555 = vrot.lane.b32.xlu0 %v12064_v31, %s9576_s11  ;;  %9540 = vrot.lane.b32.xlu1 %v12032_v21, %s9576_s11  ;;  %v13286_v31 = vpack.c.bf16 %v12028_v37, %v12011_v0  ;;  %v9172_v33 = vunpack.i.l.bf16 %v12300_v63  ;;  %v8129_v0 = vpack.c.bf16 %v5190_v9, %v5188_v11  ;;  %v13287_v9 = vpack.c.bf16 %v12070_v17, %v12049_v16 }
 0x5e7   : > { %v8202_v49 = vpack.c.bf16 %v9263_v3, %v9258_v44  ;;  %v12437_v12 = vsel %vm795_vm6, %v9257_v20, %v9258_v44  ;;  %v12440_v4 = vsel %vm795_vm6, %v9262_v55, %v9263_v3  ;;  %v6783_v3 = vld [vmem:[#allocation3] sm:$0x1]  ;;  %v8152_v25 = vpack.c.bf16 %v9178_v36, %v9173_v22 }
 0x5e8   : > { %8125 = vmatpush3.bf16.msra.mxu0 %v13286_v31  ;;  %v9271_v21 = vpop.permute.xlu0 %9270  ;;  %v9266_v30 = vpop.permute.xlu1 %9265  ;;  %v5196_v16 = vsel %vm771_vm0, %v9172_v33, %v9173_v22  ;;  %v9213_v22 = vunpack.i.h.bf16 %v12335_v45 }
 0x5e9   : > { %v9273_v57 = vunpack.i.h.bf16 %v9271_v21  ;;  %v9272_v13 = vunpack.i.l.bf16 %v9271_v21  ;;  %v9268_v26 = vunpack.i.h.bf16 %v9266_v30  ;;  %v9267_v54 = vunpack.i.l.bf16 %v9266_v30  ;;  %8203 = vmatpush3.bf16.msra.mxu1 %v8202_v49  ;;  %8126 = vmatprep.subr.bf16.mxu0 %v9580_v48 }
 0x5ea   : > { %9550 = vrot.lane.b32.xlu1 %v12074_v41, %s9576_s11  ;;  %8204 = vmatprep.subr.bf16.mxu1 %v9580_v48  ;;  %v8135_v41 = vpack.c.bf16 %v12445_v8, %v5191_v60  ;;  %v8133_v8 = vpack.c.bf16 %v5194_v29, %v12424_v50  ;;  %v9237_v50 = vunpack.i.l.bf16 %v12380_v24 }
 0x5eb   : > { %v12460_v37 = vsel %vm795_vm6, %v9268_v26, %v9262_v55  ;;  %v12463_v46 = vsel %vm795_vm6, %v9267_v54, %v9257_v20  ;;  %v12469_v44 = vsel %vm795_vm6, %v9272_v13, %v9273_v57 }
 0x5ec   : > { %8128 = vmatpush3.bf16.msra.mxu0 %v13287_v9  ;;  %v9281_v55 = vpop.permute.xlu0 %9280  ;;  %v9276_v20 = vpop.permute.xlu1 %9275 }
 0x5ed   : > { %v9283_v7 = vunpack.i.h.bf16 %v9281_v55  ;;  %v9282_v49 = vunpack.i.l.bf16 %v9281_v55  ;;  %v9278_v31 = vunpack.i.h.bf16 %v9276_v20  ;;  %v9277_v21 = vunpack.i.l.bf16 %v9276_v20  ;;  %8130 = vmatprep.subr.bf16.mxu0 %v8129_v0 }
 0x5ee   : > { %6786 = vperm.xlu1 %8582, %v6783_v3   ;;  %v9187_v20 = vunpack.i.l.bf16 %v12298_v35  ;;  %v9228_v0 = vunpack.i.h.bf16 %v12366_v6 }
 0x5ef   : > { %v12487_v17 = vsel %vm795_vm6, %v9282_v49, %v9272_v13  ;;  %v8205_v30 = vpack.c.bf16 %v9278_v31, %v9273_v57  ;;  %v12490_v26 = vsel %vm795_vm6, %v9283_v7, %v9277_v21  ;;  %7638 = vmatmul.mubr.msk.f32.vlgmr.msra.gmra.mrb[28].mxu0 %vm1501_vm12, %v12262_v34  ;;  %v12495_v54 = vsel %vm795_vm6, %v9277_v21, %v9278_v31 }
 0x5f0   : > { %8132 = vmatpush1.bf16.msra.mxu0 %v8131_v27  ;;  %v12501_v13 = vpop.permute.xlu0 %9290  ;;  %v12503_v57 = vpop.permute.xlu1 %9285  ;;  %5293 = vmatprep.mubr.f32.mxu0 %v13225_v39  ;;  %v9188_v27 = vunpack.i.h.bf16 %v12298_v35  ;;  %v5197_v7 = vsel %vm771_vm0, %v9183_v18, %v9177_v42  ;;  %v8137_v49 = vpack.c.bf16 %v5198_v1, %v5196_v16  ;;  %v5195_v31 = vsel %vm771_vm0, %v9182_v28, %v9172_v33 }
 0x5f1   : > { %v9293_v3 = vunpack.i.h.bf16 %v12501_v13  ;;  %v13211_v29 = vunpack.i.l.bf16 %v12501_v13  ;;  %v9288_v9 = vunpack.i.h.bf16 %v12503_v57  ;;  %v13210_v55 = vunpack.i.l.bf16 %v12503_v57  ;;  %8134 = vmatprep.subr.bf16.mxu0 %v8133_v8  ;;  %8206 = vmatpush3.bf16.msra.mxu1 %v8205_v30 }
 0x5f2   : > { %8207 = vmatprep.subr.bf16.mxu1 %v9580_v48  ;;  %v5202_v33 = vsel %vm771_vm0, %v9237_v50, %v9238_v40  ;;  %v9193_v18 = vunpack.i.h.bf16 %v12311_v62  ;;  %v9192_v28 = vunpack.i.l.bf16 %v12311_v62  ;;  %v8139_v16 = vpack.c.bf16 %v5197_v7, %v5195_v31 }
 0x5f3   : > { %v8208_v21 = vpack.c.bf16 %v9293_v3, %v9288_v9  ;;  %v12520_v60 = vsel %vm795_vm6, %v13210_v55, %v9288_v9  ;;  %v12525_v8 = vsel %vm795_vm6, %v13211_v29, %v9293_v3  ;;  %v5138_v7 = vrot.slane %v12262_v34, 2 }
 0x5f4   : > { %8136 = vmatpush1.bf16.msra.mxu0 %v8135_v41  ;;  %v12527_v30 = vpop.permute.xlu0 %9300  ;;  %v12529_v42 = vpop.permute.xlu1 %9295  ;;  %v5200_v41 = vsel %vm771_vm0, %v9187_v20, %v9188_v27  ;;  %v5201_v3 = vsel %vm771_vm0, %v9193_v18, %v9237_v50  ;;  %v5199_v29 = vsel %vm771_vm0, %v9192_v28, %v9187_v20  ;;  %v8146_v50 = vpack.c.bf16 %v9148_v43, %v9143_v19 }
 0x5f5   : > { %8138 = vmatprep.subr.bf16.mxu0 %v8137_v49  ;;  %8209 = vmatpush3.bf16.msra.mxu1 %v8208_v21  ;;  %v8141_v9 = vpack.c.bf16 %v5202_v33, %v5200_v41  ;;  %v8143_v62 = vpack.c.bf16 %v5201_v3, %v5199_v29  ;;  %v8149_v21 = vpack.c.bf16 %v9163_v14, %v9158_v32  ;;  %v9198_v43 = vunpack.i.h.bf16 %v12322_v5 }
 0x5f6   : > { %8210 = vmatprep.subr.bf16.mxu1 %v9580_v48  ;;  %v9197_v19 = vunpack.i.l.bf16 %v12322_v5  ;;  %v5425_v32 = vsel %vm783_vm4, %v9202_v47, %v9203_v56  ;;  %v9208_v14 = vunpack.i.h.bf16 %v12337_v10  ;;  %v9207_v28 = vunpack.i.l.bf16 %v12337_v10 }
 0x5f7   : > { %v9217_v41 = vunpack.i.l.bf16 %v12352_v15  ;;  %v9212_v3 = vunpack.i.l.bf16 %v12335_v45  ;;  %v8155_v10 = vpack.c.bf16 %v9238_v40, %v9188_v27  ;;  %v9227_v35 = vunpack.i.l.bf16 %v12366_v6 }
 0x5f8   : > { %8140 = vmatpush1.bf16.msra.mxu0 %v8139_v16  ;;  %v12543_v55 = vpop.permute.xlu0 %9305  ;;  %v12545_v1 = vpop.permute.xlu1 %9310  ;;  %v5423_v2 = vsel %vm783_vm4, %v9197_v19, %v9198_v43  ;;  %v9218_v16 = vunpack.i.h.bf16 %v12352_v15  ;;  %v13288_v15 = vunpack.i.h.bf16 %v12364_v59 }
 0x5f9   : > { %8142 = vmatprep.subr.bf16.mxu0 %v8141_v9  ;;  %v8157_v36 = vpack.c.bf16 %v5425_v32, %v5423_v2  ;;  %v9222_v9 = vunpack.i.l.bf16 %v12350_v61  ;;  %v13212_v2 = vunpack.i.h.bf16 %v12364_v59  ;;  %v9232_v32 = vunpack.i.l.bf16 %v12364_v59 }
 0x5fa   : > { %v9313_v51 = vunpack.i.h.bf16 %v12545_v1  ;;  %v8177_v5 = vpack.c.bf16 %v9218_v16, %v9213_v22 }
 0x5fc   : > { %8144 = vmatpush1.bf16.msra.mxu0 %v8143_v62  ;;  %v12549_v49 = vpop.permute.xlu0 %9315  ;;  %v12551_v31 = vpop.permute.xlu1 %9320  ;;  %v5424_v62 = vsel %vm783_vm4, %v9208_v14, %v9202_v47  ;;  %v5427_v47 = vsel %vm783_vm4, %v9212_v3, %v9213_v22  ;;  %v9243_v14 = vunpack.i.h.bf16 %v12400_v38 }
 0x5fd   : > { %8145 = vmatprep.subr.bf16.mxu0 %v9580_v48  ;;  %v9323_v11 = vunpack.i.h.bf16 %v12551_v31 }
 0x5ff   : > { %7081 = vmatmul.mubr.msk.f32.vlgmr.msra.gmra.mrb[24].mxu0 %vm1501_vm12, %v5138_v7 }
 0x600   : > { %8147 = vmatpush3.bf16.msra.mxu0 %v8146_v50  ;;  %v12559_v20 = vpop.permute.xlu0 %9330  ;;  %v12561_v29 = vpop.permute.xlu1 %9325  ;;  %7656 = vmatprep.mubr.msk.f32.mxu0 %vm9581_vm13, %v13225_v39  ;;  %v5422_v50 = vsel %vm783_vm4, %v9207_v28, %v9197_v19  ;;  %v9242_v28 = vunpack.i.l.bf16 %v12400_v38  ;;  %v5433_v38 = vsel %vm783_vm4, %v9232_v32, %v13212_v2 }
 0x601   : > { %8148 = vmatprep.subr.bf16.mxu0 %v9580_v48  ;;  %v8159_v27 = vpack.c.bf16 %v5424_v62, %v5422_v50  ;;  %v9247_v50 = vunpack.i.l.bf16 %v12378_v53  ;;  %v9333_v45 = vunpack.i.h.bf16 %v12559_v20 }
 0x604   : > { %8150 = vmatpush3.bf16.msra.mxu0 %v8149_v21  ;;  %v12574_v33 = vpop.permute.xlu0 %9340  ;;  %v12576_v18 = vpop.permute.xlu1 %9335  ;;  %v9223_v21 = vunpack.i.h.bf16 %v12350_v61  ;;  %v5426_v61 = vsel %vm783_vm4, %v9222_v9, %v9212_v3  ;;  %v9248_v3 = vunpack.i.h.bf16 %v12378_v53  ;;  %v13289_v53 = vpack.c.bf16 %v12440_v4, %v12437_v12 }
 0x605   : > { %8151 = vmatprep.subr.bf16.mxu0 %v9580_v48  ;;  %v13290_v4 = vpack.c.bf16 %v12460_v37, %v12463_v46  ;;  %v13292_v37 = vunpack.i.l.bf16 %v12501_v13  ;;  %v13294_v13 = vpack.c.bf16 %v12490_v26, %v12487_v17  ;;  %v9308_v17 = vunpack.i.h.bf16 %v12543_v55 }
 0x606   : > { %v5428_v19 = vsel %vm783_vm4, %v9223_v21, %v9217_v41  ;;  %v5432_v21 = vsel %vm783_vm4, %v9243_v14, %v9232_v32  ;;  %v5435_v32 = vsel %vm783_vm4, %v9247_v50, %v9248_v3  ;;  %v8183_v59 = vpack.c.bf16 %v9323_v11, %v9248_v3 }
 0x607   : > { %v9307_v26 = vunpack.i.l.bf16 %v12543_v55 }
 0x608   : > { %8153 = vmatpush3.bf16.msra.mxu0 %v8152_v25  ;;  %v12593_v63 = vpop.permute.xlu0 %9350  ;;  %v12595_v52 = vpop.permute.xlu1 %9345  ;;  %v5429_v25 = vsel %vm783_vm4, %v9217_v41, %v9218_v16  ;;  %v5431_v41 = vsel %vm783_vm4, %v9227_v35, %v9228_v0  ;;  %v8180_v16 = vpack.c.bf16 %v13288_v15, %v9228_v0 }
 0x609   : > { %8154 = vmatprep.subr.bf16.mxu0 %v9580_v48 }
 0x60c   : > { %8156 = vmatpush3.bf16.msra.mxu0 %v8155_v10  ;;  %v12615_v24 = vpop.permute.xlu0 %9360  ;;  %v12617_v40 = vpop.permute.xlu1 %9355  ;;  %v8161_v10 = vpack.c.bf16 %v5429_v25, %v5427_v47  ;;  %v5430_v25 = vsel %vm783_vm4, %v9242_v28, %v9227_v35 }
 0x60d   : > { %8158 = vmatprep.subr.bf16.mxu0 %v8157_v36  ;;  %v9322_v36 = vunpack.i.l.bf16 %v12551_v31  ;;  %v9297_v31 = vunpack.i.l.bf16 %v12529_v42 }
 0x60f   : > { %7657 = vmatmul.mubr.msk.f32.vlgmr.msra.gmra.mrb[30].mxu0 %vm1501_vm12, %v5138_v7  ;;  %v8163_v7 = vpack.c.bf16 %v5428_v19, %v5426_v61  ;;  %v5437_v2 = vsel %vm783_vm4, %v9322_v36, %v9323_v11  ;;  %v9253_v61 = vunpack.i.h.bf16 %v12398_v23  ;;  %v9252_v19 = vunpack.i.l.bf16 %v12398_v23 }
 0x610   : > { %8160 = vmatpush1.bf16.msra.mxu0 %v8159_v27  ;;  %v12629_v62 = vpop.permute.xlu0 %9365  ;;  %v12631_v9 = vpop.permute.xlu1 %9370  ;;  %5528 = vmatprep.mubr.f32.mxu0 %v13225_v39  ;;  %v8165_v27 = vpack.c.bf16 %v5433_v38, %v5431_v41  ;;  %v8169_v14 = vpack.c.bf16 %v5437_v2, %v5435_v32  ;;  %v5373_v23 = vrot.slane %v12262_v34, 3  ;;  %v5608_v32 = vrot.slane %v12262_v34, 4 }
 0x611   : > { %8162 = vmatprep.subr.bf16.mxu0 %v8161_v10  ;;  %v8167_v10 = vpack.c.bf16 %v5432_v21, %v5430_v25  ;;  %v5436_v35 = vsel %vm783_vm4, %v9253_v61, %v9322_v36  ;;  %v5434_v38 = vsel %vm783_vm4, %v9252_v19, %v9247_v50  ;;  %v8174_v36 = vpack.c.bf16 %v9203_v56, %v9198_v43 }
 0x612   : > { %v9318_v50 = vunpack.i.h.bf16 %v12549_v49  ;;  %v9338_v43 = vunpack.i.h.bf16 %v12576_v18  ;;  %v9298_v11 = vunpack.i.h.bf16 %v12529_v42 }
 0x614   : > { %8164 = vmatpush1.bf16.msra.mxu0 %v8163_v7  ;;  %v12644_v47 = vpop.permute.xlu0 %9375  ;;  %v12646_v58 = vpop.permute.xlu1 %9380  ;;  %v8171_v7 = vpack.c.bf16 %v5436_v35, %v5434_v38  ;;  %v8230_v56 = vpack.c.bf16 %v9318_v50, %v9313_v51  ;;  %v8233_v22 = vpack.c.bf16 %v9338_v43, %v9333_v45  ;;  %v13215_v38 = vunpack.i.h.bf16 %v12593_v63 }
 0x615   : > { %8166 = vmatprep.subr.bf16.mxu0 %v8165_v27  ;;  %v9303_v27 = vunpack.i.h.bf16 %v12527_v30  ;;  %v9378_v3 = vunpack.i.h.bf16 %v12644_v47  ;;  %v5667_v46 = vsel %vm795_vm6, %v9298_v11, %v13292_v37  ;;  %v13295_v37 = vpack.c.bf16 %v12525_v8, %v12520_v60 }
 0x618   : > { %8168 = vmatpush1.bf16.msra.mxu0 %v8167_v10  ;;  %v12657_v28 = vpop.permute.xlu0 %9385  ;;  %v12659_v41 = vpop.permute.xlu1 %9390 }
 0x619   : > { %8170 = vmatprep.subr.bf16.mxu0 %v8169_v14 }
 0x61c   : > { %8172 = vmatpush1.bf16.msra.mxu0 %v8171_v7  ;;  %v12663_v21 = vpop.permute.xlu0 %9395  ;;  %v12665_v25 = vpop.permute.xlu1 %9400  ;;  %v13216_v7 = vunpack.i.h.bf16 %v12595_v52 }
 0x61d   : > { %v9403_v2 = vunpack.i.h.bf16 %v12665_v25  ;;  %8173 = vmatprep.subr.bf16.mxu0 %v9580_v48  ;;  %v9402_v12 = vunpack.i.l.bf16 %v12665_v25  ;;  %v9327_v25 = vunpack.i.l.bf16 %v12561_v29 }
 0x61e   : > { %v8236_v0 = vpack.c.bf16 %v13215_v38, %v13216_v7  ;;  %v9388_v38 = vunpack.i.h.bf16 %v12657_v28  ;;  %v9393_v7 = vunpack.i.h.bf16 %v12659_v41 }
 0x61f   : > { %v8211_v61 = vpack.c.bf16 %v9403_v2, %v9303_v27  ;;  %7083 = vmatmul.mubr.msk.f32.vlgmr.msra.gmra.mrb[24].mxu0 %vm1501_vm12, %v5373_v23  ;;  %v5671_v60 = vsel %vm795_vm6, %v9308_v17, %v9402_v12 }
 0x620   : > { %8175 = vmatpush3.bf16.msra.mxu0 %v8174_v36  ;;  %v12680_v19 = vpop.permute.xlu0 %9410  ;;  %v12682_v10 = vpop.permute.xlu1 %9405  ;;  %7675 = vmatprep.mubr.msk.f32.mxu0 %vm9581_vm13, %v13225_v39  ;;  %v8261_v55 = vpack.c.bf16 %v9393_v7, %v9388_v38 }
 0x621   : > { %8212 = vmatpush3.bf16.msra.mxu1 %v8211_v61  ;;  %8176 = vmatprep.subr.bf16.mxu0 %v9580_v48  ;;  %v9413_v8 = vunpack.i.h.bf16 %v12680_v19 }
 0x622   : > { %8229 = vmatprep.subr.bf16.mxu1 %v9580_v48 }
 0x624   : > { %8178 = vmatpush3.bf16.msra.mxu0 %v8177_v5  ;;  %v12699_v35 = vpop.permute.xlu0 %9420  ;;  %v12701_v14 = vpop.permute.xlu1 %9415  ;;  %7695 = vmatmul.mubr.msk.f32.vlgmr.msra.gmra.mrb[24].mxu1 %vm1501_vm12, %v5608_v32 }
 0x625   : > { %8231 = vmatpush3.bf16.msra.mxu1 %v8230_v56  ;;  %8179 = vmatprep.subr.bf16.mxu0 %v9580_v48  ;;  %v13213_v56 = vunpack.i.h.bf16 %v12615_v24 }
 0x626   : > { %8232 = vmatprep.subr.bf16.mxu1 %v9580_v48  ;;  %7713 = vmatprep.mubr.msk.f32.mxu1 %vm9581_vm13, %v13225_v39 }
 0x628   : > { %8181 = vmatpush3.bf16.msra.mxu0 %v8180_v16  ;;  %v12721_v36 = vpop.permute.xlu0 %9425  ;;  %v12723_v6 = vpop.permute.xlu1 %9430 }
 0x629   : > { %8234 = vmatpush3.bf16.msra.mxu1 %v8233_v22  ;;  %8182 = vmatprep.subr.bf16.mxu0 %v9580_v48  ;;  %v9302_v22 = vunpack.i.l.bf16 %v12527_v30 }
 0x62a   : > { %8235 = vmatprep.subr.bf16.mxu1 %v9580_v48 }
 0x62b   : > { %v5670_v11 = vsel %vm795_vm6, %v9302_v22, %v9303_v27  ;;  %v9328_v27 = vunpack.i.h.bf16 %v12561_v29  ;;  %v9332_v29 = vunpack.i.l.bf16 %v12559_v20 }
 0x62c   : > { %8184 = vmatpush3.bf16.msra.mxu0 %v8183_v59  ;;  %v12735_v61 = vpop.permute.xlu0 %9435  ;;  %v12737_v5 = vpop.permute.xlu1 %9440 }
 0x62d   : > { %v13214_v15 = vunpack.i.h.bf16 %v12737_v5  ;;  %8186 = vmatprep.subr.bf16.mxu0 %v13289_v53  ;;  %8237 = vmatpush3.bf16.msra.mxu1 %v8236_v0  ;;  %v5843_v0 = vrot.slane %v12262_v34, 5  ;;  %v9317_v53 = vunpack.i.l.bf16 %v12549_v49  ;;  %v9408_v49 = vunpack.i.h.bf16 %v12682_v10 }
 0x62e   : > { %8238 = vmatprep.subr.bf16.mxu1 %v9580_v48  ;;  %v9438_v20 = vunpack.i.h.bf16 %v12735_v61 }
 0x62f   : > { %v8239_v16 = vpack.c.bf16 %v13214_v15, %v13213_v56  ;;  %7676 = vmatmul.mubr.msk.f32.vlgmr.msra.gmra.mrb[32].mxu0 %vm1501_vm12, %v5373_v23  ;;  %v9373_v23 = vunpack.i.h.bf16 %v12631_v9  ;;  %v13291_v56 = vpack.c.bf16 %v12495_v54, %v12469_v44  ;;  %v9312_v54 = vunpack.i.l.bf16 %v12545_v1 }
 0x630   : > { %8188 = vmatpush1.bf16.msra.mxu0 %v13290_v4  ;;  %v12758_v42 = vpop.permute.xlu0 %9450  ;;  %v12760_v59 = vpop.permute.xlu1 %9445  ;;  %5763 = vmatprep.mubr.f32.mxu0 %v13225_v39  ;;  %v13293_v4 = vunpack.i.l.bf16 %v12503_v57  ;;  %v5895_v30 = vsel %vm807_vm9, %v9317_v53, %v9318_v50  ;;  %v9352_v1 = vunpack.i.l.bf16 %v12593_v63 }
 0x631   : > { %8190 = vmatprep.subr.bf16.mxu0 %v13291_v56  ;;  %8240 = vmatpush3.bf16.msra.mxu1 %v8239_v16  ;;  %v8258_v44 = vpack.c.bf16 %v9378_v3, %v9373_v23 }
 0x632   : > { %v5665_v15 = vsel %vm795_vm6, %v9297_v31, %v13293_v4  ;;  %8257 = vmatprep.subr.bf16.mxu1 %v9580_v48  ;;  %v5672_v31 = vsel %vm795_vm6, %v9402_v12, %v9403_v2  ;;  %v9337_v2 = vunpack.i.l.bf16 %v12576_v18  ;;  %v5893_v4 = vsel %vm807_vm9, %v9312_v54, %v9313_v51 }
 0x633   : > { %v8195_v16 = vpack.c.bf16 %v5667_v46, %v5665_v15  ;;  %v8197_v50 = vpack.c.bf16 %v5672_v31, %v5670_v11  ;;  %v9342_v12 = vunpack.i.l.bf16 %v12574_v33  ;;  %v5894_v11 = vsel %vm807_vm9, %v9328_v27, %v9317_v53 }
 0x634   : > { %8192 = vmatpush1.bf16.msra.mxu0 %v13294_v13  ;;  %v12786_v57 = vpop.permute.xlu0 %9460  ;;  %v12788_v56 = vpop.permute.xlu1 %9455  ;;  %7714 = vmatmul.mubr.msk.f32.vlgmr.msra.gmra.mrb[26].mxu1 %vm1501_vm12, %v5843_v0  ;;  %v8213_v13 = vpack.c.bf16 %v5895_v30, %v5893_v4  ;;  %v5892_v31 = vsel %vm807_vm9, %v9327_v25, %v9312_v54  ;;  %v9347_v51 = vunpack.i.l.bf16 %v12595_v52  ;;  %v5899_v53 = vsel %vm807_vm9, %v9337_v2, %v9338_v43 }
 0x635   : > { %8194 = vmatprep.subr.bf16.mxu0 %v13295_v37  ;;  %8259 = vmatpush3.bf16.msra.mxu1 %v8258_v44  ;;  %v5669_v44 = vsel %vm795_vm6, %v9307_v26, %v9302_v22  ;;  %v8264_v22 = vpack.c.bf16 %v9413_v8, %v9408_v49  ;;  %v5897_v26 = vsel %vm807_vm9, %v9332_v29, %v9333_v45  ;;  %v9423_v27 = vunpack.i.h.bf16 %v12699_v35 }
 0x636   : > { %8260 = vmatprep.subr.bf16.mxu1 %v9580_v48  ;;  %7732 = vmatprep.mubr.msk.f32.mxu1 %vm9581_vm13, %v13225_v39  ;;  %v8199_v17 = vpack.c.bf16 %v5671_v60, %v5669_v44  ;;  %v8215_v37 = vpack.c.bf16 %v5894_v11, %v5892_v31  ;;  %v5896_v30 = vsel %vm807_vm9, %v9342_v12, %v9332_v29  ;;  %v9358_v43 = vunpack.i.h.bf16 %v12617_v40 }
 0x637   : > { %v8217_v60 = vpack.c.bf16 %v5899_v53, %v5897_v26  ;;  %v9442_v4 = vunpack.i.l.bf16 %v12737_v5  ;;  %v9458_v26 = vunpack.i.h.bf16 %v12788_v56 }
 0x638   : > { %8196 = vmatpush1.bf16.msra.mxu0 %v8195_v16  ;;  %v12821_v15 = vpop.permute.xlu0 %9470  ;;  %v12823_v46 = vpop.permute.xlu1 %9465  ;;  %v9343_v16 = vunpack.i.h.bf16 %v12574_v33  ;;  %v5902_v11 = vsel %vm807_vm9, %v9358_v43, %v9352_v1 }
 0x639   : > { %8198 = vmatprep.subr.bf16.mxu0 %v8197_v50  ;;  %8262 = vmatpush3.bf16.msra.mxu1 %v8261_v55  ;;  %v9357_v55 = vunpack.i.l.bf16 %v12617_v40  ;;  %v13297_v40 = vunpack.i.h.bf16 %v12593_v63  ;;  %v9362_v63 = vunpack.i.l.bf16 %v12615_v24 }
 0x63a   : > { %8263 = vmatprep.subr.bf16.mxu1 %v9580_v48  ;;  %v5898_v18 = vsel %vm807_vm9, %v9343_v16, %v9337_v2  ;;  %v13296_v2 = vunpack.i.h.bf16 %v12595_v52  ;;  %v9433_v52 = vunpack.i.h.bf16 %v12723_v6 }
 0x63b   : > { %v5903_v29 = vsel %vm807_vm9, %v9352_v1, %v13297_v40  ;;  %v5900_v31 = vsel %vm807_vm9, %v9357_v55, %v9347_v51  ;;  %v9377_v1 = vunpack.i.l.bf16 %v12644_v47  ;;  %v9382_v55 = vunpack.i.l.bf16 %v12646_v58 }
 0x63c   : > { %8200 = vmatpush1.bf16.msra.mxu0 %v8199_v17  ;;  %v12843_v54 = vpop.permute.xlu0 %9485  ;;  %v12845_v33 = vpop.permute.xlu1 %9475  ;;  %v5901_v50 = vsel %vm807_vm9, %v9347_v51, %v13296_v2  ;;  %v9368_v17 = vunpack.i.h.bf16 %v12629_v62  ;;  %v8286_v53 = vpack.c.bf16 %v9438_v20, %v9433_v52  ;;  %v9383_v51 = vunpack.i.h.bf16 %v12646_v58 }
 0x63d   : > { %v9478_v25 = vunpack.i.h.bf16 %v12845_v33  ;;  %8214 = vmatprep.subr.bf16.mxu0 %v8213_v13  ;;  %8265 = vmatpush3.bf16.msra.mxu1 %v8264_v22  ;;  %v6078_v13 = vrot.slane %v12262_v34, 6  ;;  %v8221_v16 = vpack.c.bf16 %v5903_v29, %v5901_v50  ;;  %v9367_v22 = vunpack.i.l.bf16 %v12629_v62 }
 0x63e   : > { %8266 = vmatprep.subr.bf16.mxu1 %v9580_v48  ;;  %v13298_v62 = vunpack.i.h.bf16 %v12737_v5  ;;  %v9453_v2 = vunpack.i.h.bf16 %v12758_v42  ;;  %v8223_v50 = vpack.c.bf16 %v5902_v11, %v5900_v31  ;;  %v5906_v40 = vsel %vm807_vm9, %v9368_v17, %v9442_v4 }
 0x63f   : > { %v8267_v45 = vpack.c.bf16 %v9478_v25, %v9423_v27  ;;  %7085 = vmatmul.mubr.msk.f32.vlgmr.msra.gmra.mrb[24].mxu0 %vm1501_vm12, %v5608_v32  ;;  %v8219_v32 = vpack.c.bf16 %v5898_v18, %v5896_v30  ;;  %v13299_v29 = vunpack.i.h.bf16 %v12615_v24  ;;  %v9473_v5 = vunpack.i.h.bf16 %v12821_v15 }
 0x640   : > { %8216 = vmatpush1.bf16.msra.mxu0 %v8215_v37  ;;  %v12872_v44 = vpop.permute.xlu0 %9490  ;;  %v12874_v12 = vpop.permute.xlu1 %9480  ;;  %5998 = vmatprep.mubr.f32.mxu0 %v13225_v39  ;;  %v9372_v37 = vunpack.i.l.bf16 %v12631_v9  ;;  %v5907_v43 = vsel %vm807_vm9, %v9442_v4, %v13298_v62  ;;  %v8289_v58 = vpack.c.bf16 %v9458_v26, %v9453_v2  ;;  %v9468_v11 = vunpack.i.h.bf16 %v12823_v46 }
 0x641   : > { %8218 = vmatprep.subr.bf16.mxu0 %v8217_v60  ;;  %8268 = vmatpush3.bf16.msra.mxu1 %v8267_v45  ;;  %v9387_v60 = vunpack.i.l.bf16 %v12657_v28  ;;  %v9392_v45 = vunpack.i.l.bf16 %v12659_v41  ;;  %v5904_v4 = vsel %vm807_vm9, %v9367_v22, %v9362_v63  ;;  %v6129_v24 = vsel %vm819_vm11, %v9383_v51, %v9377_v1 }
 0x642   : > { %8285 = vmatprep.subr.bf16.mxu1 %v9580_v48  ;;  %v6130_v62 = vsel %vm819_vm11, %v9377_v1, %v9378_v3  ;;  %v9412_v47 = vunpack.i.l.bf16 %v12680_v19  ;;  %v9407_v3 = vunpack.i.l.bf16 %v12682_v10  ;;  %v8227_v22 = vpack.c.bf16 %v5906_v40, %v5904_v4 }
 0x643   : > { %v6134_v9 = vsel %vm819_vm11, %v9392_v45, %v9393_v7  ;;  %v8292_v28 = vpack.c.bf16 %v9473_v5, %v9468_v11  ;;  %v9477_v10 = vunpack.i.l.bf16 %v12845_v33 }
 0x644   : > { %8220 = vmatpush1.bf16.msra.mxu0 %v8219_v32  ;;  %v12893_v30 = vpop.permute.xlu0 %9500  ;;  %v12895_v18 = vpop.permute.xlu1 %9495  ;;  %7733 = vmatmul.mubr.msk.f32.vlgmr.msra.gmra.mrb[28].mxu1 %vm1501_vm12, %v6078_v13  ;;  %v5905_v32 = vsel %vm807_vm9, %v9362_v63, %v13299_v29  ;;  %v6127_v29 = vsel %vm819_vm11, %v9382_v55, %v9372_v37  ;;  %v6132_v63 = vsel %vm819_vm11, %v9387_v60, %v9388_v38 }
 0x645   : > { %8222 = vmatprep.subr.bf16.mxu0 %v8221_v16  ;;  %8287 = vmatpush3.bf16.msra.mxu1 %v8286_v53  ;;  %v8225_v31 = vpack.c.bf16 %v5907_v43, %v5905_v32  ;;  %v6128_v53 = vsel %vm819_vm11, %v9372_v37, %v9373_v23  ;;  %v9397_v43 = vunpack.i.l.bf16 %v12663_v21  ;;  %v9398_v23 = vunpack.i.h.bf16 %v12663_v21 }
 0x646   : > { %8288 = vmatprep.subr.bf16.mxu1 %v9580_v48  ;;  %7751 = vmatprep.mubr.msk.f32.mxu1 %vm9581_vm13, %v13225_v39  ;;  %v8241_v37 = vpack.c.bf16 %v6130_v62, %v6128_v53  ;;  %v8243_v38 = vpack.c.bf16 %v6129_v24, %v6127_v29  ;;  %v9488_v21 = vunpack.i.h.bf16 %v12843_v54  ;;  %v8245_v51 = vpack.c.bf16 %v6134_v9, %v6132_v63 }
 0x647   : > { %v6131_v7 = vsel %vm819_vm11, %v9397_v43, %v9387_v60  ;;  %v6133_v55 = vsel %vm819_vm11, %v9398_v23, %v9392_v45  ;;  %v6136_v32 = vsel %vm819_vm11, %v9407_v3, %v9408_v49  ;;  %v6138_v60 = vsel %vm819_vm11, %v9412_v47, %v9413_v8 }
 0x648   : > { %8224 = vmatpush1.bf16.msra.mxu0 %v8223_v50  ;;  %v12922_v16 = vpop.permute.xlu0 %9510  ;;  %v12924_v17 = vpop.permute.xlu1 %9505  ;;  %v9418_v50 = vunpack.i.h.bf16 %v12701_v14  ;;  %v9498_v45 = vunpack.i.h.bf16 %v12895_v18  ;;  %v8247_v8 = vpack.c.bf16 %v6133_v55, %v6131_v7  ;;  %v9422_v49 = vunpack.i.l.bf16 %v12699_v35 }
 0x649   : > { %8226 = vmatprep.subr.bf16.mxu0 %v8225_v31  ;;  %8290 = vmatpush3.bf16.msra.mxu1 %v8289_v58  ;;  %v9417_v58 = vunpack.i.l.bf16 %v12701_v14  ;;  %v9503_v31 = vunpack.i.h.bf16 %v12893_v30  ;;  %v6313_v14 = vrot.slane %v12262_v34, 7  ;;  %v8249_v24 = vpack.c.bf16 %v6138_v60, %v6136_v32 }
 0x64a   : > { %8291 = vmatprep.subr.bf16.mxu1 %v9580_v48  ;;  %v6137_v53 = vsel %vm819_vm11, %v9418_v50, %v9412_v47  ;;  %v9437_v43 = vunpack.i.l.bf16 %v12735_v61  ;;  %v6142_v23 = vsel %vm819_vm11, %v9477_v10, %v9478_v25  ;;  %v9428_v47 = vunpack.i.h.bf16 %v12721_v36 }
 0x64b   : > { %v8314_v62 = vpack.c.bf16 %v9503_v31, %v9498_v45  ;;  %v9447_v7 = vunpack.i.l.bf16 %v12760_v59  ;;  %v6140_v33 = vsel %vm819_vm11, %v9422_v49, %v9423_v27 }
 0x64c   : > { %8228 = vmatpush1.bf16.msra.mxu0 %v8227_v22  ;;  %v12948_v41 = vpop.permute.xlu1 %9515  ;;  %v12955_v40 = vpop.permute.xlu0 %9525  ;;  %v9432_v22 = vunpack.i.l.bf16 %v12723_v6  ;;  %v8253_v55 = vpack.c.bf16 %v6142_v23, %v6140_v33  ;;  %v6365_v27 = vsel %vm831_vm14, %v9437_v43, %v9438_v20 }
 0x64d   : > { %v9518_v1 = vunpack.i.h.bf16 %v12948_v41  ;;  %8242 = vmatprep.subr.bf16.mxu0 %v8241_v37  ;;  %8293 = vmatpush3.bf16.msra.mxu1 %v8292_v28  ;;  %v9513_v28 = vunpack.i.h.bf16 %v12922_v16 }
 0x64e   : > { %8294 = vmatprep.subr.bf16.mxu1 %v9580_v48  ;;  %v6363_v60 = vsel %vm831_vm14, %v9432_v22, %v9433_v52 }
 0x64f   : > { %v8295_v4 = vpack.c.bf16 %v9518_v1, %v9488_v21  ;;  %7087 = vmatmul.mubr.msk.f32.vlgmr.msra.gmra.mrb[24].mxu0 %vm1501_vm12, %v5843_v0  ;;  %v6135_v0 = vsel %vm819_vm11, %v9417_v58, %v9407_v3  ;;  %v9427_v3 = vunpack.i.l.bf16 %v12721_v36  ;;  %v6141_v36 = vsel %vm819_vm11, %v9428_v47, %v9477_v10 }
 0x650   : > { %8244 = vmatpush1.bf16.msra.mxu0 %v8243_v38  ;;  %v12975_v19 = vpop.permute.xlu1 %9520  ;;  %6233 = vmatprep.mubr.f32.mxu0 %v13225_v39  ;;  %v12989_v63 = vpop.permute.xlu0 %9535  ;;  %v8251_v37 = vpack.c.bf16 %v6137_v53, %v6135_v0  ;;  %v9448_v38 = vunpack.i.h.bf16 %v12760_v59  ;;  %v9457_v59 = vunpack.i.l.bf16 %v12788_v56  ;;  %v9452_v58 = vunpack.i.l.bf16 %v12758_v42 }
 0x651   : > { %8246 = vmatprep.subr.bf16.mxu0 %v8245_v51  ;;  %8296 = vmatpush3.bf16.msra.mxu1 %v8295_v4  ;;  %v9523_v29 = vunpack.i.h.bf16 %v12975_v19  ;;  %v6139_v50 = vsel %vm819_vm11, %v9427_v3, %v9422_v49  ;;  %v9538_v32 = vunpack.i.h.bf16 %v12989_v63  ;;  %v9463_v4 = vunpack.i.h.bf16 %v12786_v57 }
 0x652   : > { %8313 = vmatprep.subr.bf16.mxu1 %v9580_v48  ;;  %v9462_v10 = vunpack.i.l.bf16 %v12786_v57  ;;  %v6364_v20 = vsel %vm831_vm14, %v9448_v38, %v9437_v43  ;;  %v6362_v49 = vsel %vm831_vm14, %v9447_v7, %v9432_v22  ;;  %v8269_v52 = vpack.c.bf16 %v6365_v27, %v6363_v60 }
 0x653   : > { %v8317_v25 = vpack.c.bf16 %v9523_v29, %v9513_v28  ;;  %v9467_v53 = vunpack.i.l.bf16 %v12823_v46  ;;  %v6369_v0 = vsel %vm831_vm14, %v9457_v59, %v9458_v26  ;;  %v8271_v23 = vpack.c.bf16 %v6364_v20, %v6362_v49 }
 0x654   : > { %8248 = vmatpush1.bf16.msra.mxu0 %v8247_v8  ;;  %v12991_v9 = vpop.permute.xlu1 %9530  ;;  %7752 = vmatmul.mubr.msk.f32.vlgmr.msra.gmra.mrb[30].mxu1 %vm1501_vm12, %v6313_v14  ;;  %v8255_v8 = vpack.c.bf16 %v6141_v36, %v6139_v50  ;;  %v13031_v61 = vpop.permute.xlu0 %9545  ;;  %v6366_v47 = vsel %vm831_vm14, %v9462_v10, %v9452_v58  ;;  %v6368_v3 = vsel %vm831_vm14, %v9463_v4, %v9457_v59  ;;  %v9483_v56 = vunpack.i.h.bf16 %v12874_v12 }
 0x655   : > { %8250 = vmatprep.subr.bf16.mxu0 %v8249_v24  ;;  %8315 = vmatpush3.bf16.msra.mxu1 %v8314_v62  ;;  %v9533_v51 = vunpack.i.h.bf16 %v12991_v9  ;;  %v9472_v24 = vunpack.i.l.bf16 %v12821_v15  ;;  %v9548_v62 = vunpack.i.h.bf16 %v13031_v61  ;;  %v6367_v22 = vsel %vm831_vm14, %v9452_v58, %v9453_v2 }
 0x656   : > { %8316 = vmatprep.subr.bf16.mxu1 %v9580_v48  ;;  %7770 = vmatprep.mubr.msk.f32.mxu1 %vm9581_vm13, %v13225_v39  ;;  %v9482_v26 = vunpack.i.l.bf16 %v12874_v12  ;;  %v8273_v38 = vpack.c.bf16 %v6369_v0, %v6367_v22  ;;  %v9517_v42 = vunpack.i.l.bf16 %v12948_v41  ;;  %v8275_v2 = vpack.c.bf16 %v6368_v3, %v6366_v47 }
 0x657   : > { %v8320_v6 = vpack.c.bf16 %v9538_v32, %v9533_v51  ;;  %v6373_v12 = vsel %vm831_vm14, %v9472_v24, %v9473_v5  ;;  %v9487_v7 = vunpack.i.l.bf16 %v12843_v54  ;;  %v6372_v46 = vsel %vm831_vm14, %v9483_v56, %v9472_v24 }
 0x658   : > { %8252 = vmatpush1.bf16.msra.mxu0 %v8251_v37  ;;  %v13018_v35 = vpop.permute.xlu1 %9540  ;;  %v9502_v15 = vunpack.i.l.bf16 %v12893_v30  ;;  %v9497_v5 = vunpack.i.l.bf16 %v12895_v18  ;;  %v6377_v36 = vsel %vm831_vm14, %v9517_v42, %v9518_v1  ;;  %v9508_v50 = vunpack.i.h.bf16 %v12924_v17 }
 0x659   : > { %8254 = vmatprep.subr.bf16.mxu0 %v8253_v55  ;;  %8318 = vmatpush3.bf16.msra.mxu1 %v8317_v25  ;;  %v9493_v25 = vunpack.i.h.bf16 %v12872_v44  ;;  %v9492_v55 = vunpack.i.l.bf16 %v12872_v44  ;;  %v6375_v27 = vsel %vm831_vm14, %v9487_v7, %v9488_v21  ;;  %v9507_v60 = vunpack.i.l.bf16 %v12924_v17 }
 0x65a   : > { %8319 = vmatprep.subr.bf16.mxu1 %v9580_v48  ;;  %v8281_v4 = vpack.c.bf16 %v6377_v36, %v6375_v27  ;;  %v9522_v41 = vunpack.i.l.bf16 %v12975_v19  ;;  %v6597_v44 = vsel %vm843_vm15, %v9497_v5, %v9498_v45  ;;  %v6599_v54 = vsel %vm843_vm15, %v9502_v15, %v9503_v31 }
 0x65b   : > { %v6376_v58 = vsel %vm831_vm14, %v9493_v25, %v9517_v42  ;;  %v6374_v21 = vsel %vm831_vm14, %v9492_v55, %v9487_v7  ;;  %v9512_v1 = vunpack.i.l.bf16 %v12922_v16  ;;  %v6598_v10 = vsel %vm843_vm15, %v9508_v50, %v9502_v15 }
 0x65c   : > { %8256 = vmatpush1.bf16.msra.mxu0 %v8255_v8  ;;  %v13042_v57 = vpop.permute.xlu1 %9550  ;;  %v8283_v17 = vpack.c.bf16 %v6376_v58, %v6374_v21  ;;  %v6596_v8 = vsel %vm843_vm15, %v9507_v60, %v9497_v5  ;;  %v8297_v20 = vpack.c.bf16 %v6599_v54, %v6597_v44  ;;  %v9532_v49 = vunpack.i.l.bf16 %v12991_v9 }
 0x65d   : > { %v9553_v43 = vunpack.i.h.bf16 %v13042_v57  ;;  %8270 = vmatprep.subr.bf16.mxu0 %v8269_v52  ;;  %8321 = vmatpush3.bf16.msra.mxu1 %v8320_v6  ;;  %v6603_v30 = vsel %vm843_vm15, %v9522_v41, %v9523_v29  ;;  %v9528_v18 = vunpack.i.h.bf16 %v12955_v40  ;;  %v9527_v31 = vunpack.i.l.bf16 %v12955_v40 }
 0x65e   : > { %8322 = vmatprep.subr.bf16.mxu1 %v9580_v48  ;;  %v6371_v48 = vsel %vm831_vm14, %v9467_v53, %v9468_v11  ;;  %v6370_v11 = vsel %vm831_vm14, %v9482_v26, %v9467_v53  ;;  %v8299_v45 = vpack.c.bf16 %v6598_v10, %v6596_v8  ;;  %v9537_v6 = vunpack.i.l.bf16 %v12989_v63 }
 0x65f   : > { %v8323_v37 = vpack.c.bf16 %v9553_v43, %v9548_v62  ;;  %7089 = vmatmul.mubr.msk.f32.vlgmr.msra.gmra.mrb[24].mxu0 %vm1501_vm12, %v6078_v13  ;;  %v13075_v13 = vld [vmem:[%s13162_s7 + $0x8] sm:$0x1]  ;;  %v8277_v33 = vpack.c.bf16 %v6373_v12, %v6371_v48  ;;  %v8279_v59 = vpack.c.bf16 %v6372_v46, %v6370_v11  ;;  %v6601_v52 = vsel %vm843_vm15, %v9512_v1, %v9513_v28 }
 0x660   : > { %8272 = vmatpush1.bf16.msra.mxu0 %v8271_v23  ;;  %6468 = vmatprep.mubr.f32.mxu0 %v13225_v39  ;;  %v6602_v24 = vsel %vm843_vm15, %v9528_v18, %v9522_v41  ;;  %v9543_v53 = vunpack.i.h.bf16 %v13018_v35  ;;  %v9542_v19 = vunpack.i.l.bf16 %v13018_v35  ;;  %v8301_v29 = vpack.c.bf16 %v6603_v30, %v6601_v52  ;;  %v9556_v23 = vpop.permute.xlu0 %9555  ;;  %v13301_v18 = vld [vmem:[#allocation4_spill] sm:$0xff] }
 0x661   : > { %8274 = vmatprep.subr.bf16.mxu0 %v8273_v38  ;;  %8324 = vmatpush3.bf16.msra.mxu1 %v8323_v37  ;;  %v9552_v40 = vunpack.i.l.bf16 %v13042_v57  ;;  %v6605_v16 = vsel %vm843_vm15, %v9532_v49, %v9533_v51  ;;  %v6600_v28 = vsel %vm843_vm15, %v9527_v31, %v9512_v1  ;;  %v9547_v35 = vunpack.i.l.bf16 %v13031_v61 }
 0x662   : > { %v8303_v0 = vpack.c.bf16 %v6602_v24, %v6600_v28  ;;  %v6607_v34 = vsel %vm843_vm15, %v9537_v6, %v9538_v32  ;;  %v6604_v47 = vsel %vm843_vm15, %v9542_v19, %v9532_v49  ;;  %v9558_v51 = vunpack.i.h.bf16 %v9556_v23 }
 0x663   : > { %v8305_v9 = vpack.c.bf16 %v6607_v34, %v6605_v16  ;;  %v9557_v3 = vunpack.i.l.bf16 %v9556_v23  ;;  %v6609_v63 = vsel %vm843_vm15, %v9547_v35, %v9548_v62  ;;  %v9582_v44 = vmov 1966171168  }
 0x664   : > { %8276 = vmatpush1.bf16.msra.mxu0 %v8275_v2  ;;  %7771 = vmatmul.mubr.msk.f32.vlgmr.msra.gmra.mrb[32].mxu1 %vm1501_vm12, %v13075_v13  ;;  %v6610_v32 = vsel %vm843_vm15, %v9558_v51, %v9552_v40  ;;  %v6801_v54 = vunpack.c.l.s4 %v9582_v44  ;;  %v13302_v19 = vlaneseq }
 0x665   : > { %8278 = vmatprep.subr.bf16.mxu0 %v8277_v33  ;;  %v6608_v26 = vsel %vm843_vm15, %v9557_v3, %v9547_v35 }
 0x666   : > { %v8311_v37 = vpack.c.bf16 %v6610_v32, %v6608_v26  ;;  %v6802_v1 = vunpack.c.0.s8 %v6801_v54  ;;  %vm6825_vm0 = vcmp.lt.s32.totalorder %v13302_v19, 286 }
 0x668   : > { %8280 = vmatpush1.bf16.msra.mxu0 %v8279_v59  ;;  %v6805_v31 = vsub.s32 %v6802_v1, %v13301_v18 }
 0x669   : > { %8282 = vmatprep.subr.bf16.mxu0 %v8281_v4 }
 0x66c   : > { %8284 = vmatpush1.bf16.msra.mxu0 %v8283_v17  ;;  %v13300_v17 = vld [vmem:[#allocation5_spill] sm:$0xff] }
 0x66d   : > { %8298 = vmatprep.subr.bf16.mxu0 %v8297_v20  ;;  %v6787_v21 = vpop.permute.xlu1 %6786 }
 0x66e   : > { %v6792_v10 = vrot.slane %v6787_v21, %v13300_v17 }
 0x66f   : > { %7091 = vmatmul.mubr.msk.f32.vlgmr.msra.gmra.mrb[24].mxu0 %vm1501_vm12, %v6313_v14  ;;  %v6606_v14 = vsel %vm843_vm15, %v9543_v53, %v9537_v6 }
 0x670   : > { %8300 = vmatpush1.bf16.msra.mxu0 %v8299_v45  ;;  %6703 = vmatprep.mubr.f32.mxu0 %v13225_v39  ;;  %v6611_v39 = vsel %vm843_vm15, %v9552_v40, %v9553_v43  ;;  %v8307_v22 = vpack.c.bf16 %v6606_v14, %v6604_v47 }
 0x671   : > { %8302 = vmatprep.subr.bf16.mxu0 %v8301_v29  ;;  %v8309_v56 = vpack.c.bf16 %v6611_v39, %v6609_v63 }
 0x674   : > { %8304 = vmatpush1.bf16.msra.mxu0 %v8303_v0 }
 0x675   : > { %8306 = vmatprep.subr.bf16.mxu0 %v8305_v9 }
 0x678   : > { %8308 = vmatpush1.bf16.msra.mxu0 %v8307_v22 }
 0x679   : > { %8310 = vmatprep.subr.bf16.mxu0 %v8309_v56 }
 0x67c   : > { %8312 = vmatpush1.bf16.msra.mxu0 %v8311_v37 }
 0x67f   : > { %7093 = vmatmul.mubr.msk.f32.vlgmr.msra.gmra.mrb[24].mxu0 %vm1501_vm12, %v13075_v13 }
 0x6a2   : > { %v4991_v57 = vpop.f32.mrb[26].mxu0 }
 0x6a3   : > { %v7620_v43 = vpop.f32.mrb[27].mxu0 }
 0x6c2   : > { %v5134_v38 = vpop.f32.mrb[28].mxu0 }
 0x6c3   : > { %v5135_v42 = vadd.f32 %v5134_v38, %v4991_v57  ;;  %v7639_v48 = vpop.f32.mrb[29].mxu0 }
 0x6e2   : > { %v5366_v61 = vpop.f32.mrb[30].mxu0 }
 0x6e3   : > { %v5372_v12 = vadd.f32 %v5366_v61, %v5135_v42  ;;  %v7658_v62 = vpop.f32.mrb[31].mxu0 }
 0x6f7   : > { %v5836_v2 = vpop.f32.mrb[24].mxu1 }
 0x6f8   : > { %v7696_v7 = vpop.f32.mrb[25].mxu1 }
 0x702   : > { %v5601_v46 = vpop.f32.mrb[32].mxu0 }
 0x703   : > { %v5607_v11 = vadd.f32 %v5601_v46, %v5372_v12  ;;  %v7677_v33 = vpop.f32.mrb[33].mxu0 }
 0x705   : > { %v5842_v15 = vadd.f32 %v5836_v2, %v5607_v11 }
 0x707   : > { %v6071_v5 = vpop.f32.mrb[26].mxu1 }
 0x708   : > { %v6077_v36 = vadd.f32 %v6071_v5, %v5842_v15  ;;  %v7715_v25 = vpop.f32.mrb[27].mxu1 }
 0x717   : > { %v6306_v55 = vpop.f32.mrb[28].mxu1 }
 0x718   : > { %v6312_v59 = vadd.f32 %v6306_v55, %v6077_v36  ;;  %v7734_v13 = vpop.f32.mrb[29].mxu1 }
 0x727   : > { %v6541_v27 = vpop.f32.mrb[30].mxu1 }
 0x728   : > { %v6547_v50 = vadd.f32 %v6541_v27, %v6312_v59  ;;  %v7753_v60 = vpop.f32.mrb[31].mxu1 }
 0x737   : > { %v6776_v58 = vpop.f32.mrb[32].mxu1 }
 0x738   : > { %v6782_v4 = vadd.f32 %v6776_v58, %v6547_v50  ;;  %v7772_v41 = vpop.f32.mrb[33].mxu1 }
 0x73a   : > { %v6795_v30 = vadd.f32 %v6792_v10, %v6782_v4 }
 0x73c   : > { %v6813_v52 = vrot.slane %v6795_v30, %v6805_v31 }
 0x752   : > { %v6705_v8 = vpop.f32.mrb[24].mxu0 }
 0x753   : > { %v6793_v20 = vadd.f32 %v6792_v10, %v6705_v8  ;;  %v6707_v49 = vpop.f32.mrb[25].mxu0 }
 0x754   : > { %v6794_v45 = vadd.f32 %v6792_v10, %v6707_v49 }
 0x756   : > { %v6799_v6 = vcombine.low %v6793_v20, %v6794_v45 }
 0x758   : > { %v6806_v24 = vrot.slane %v6799_v6, %v6805_v31 }
 0x75a   : > { %v6814_v53 = vcombine.low %v6806_v24, %v6813_v52 }
 0x75c   : > { %v6821_v29 = vrot.slane %v6814_v53, %v6805_v31 }
 0x75e   : > { %6827 = vst.msk [vmem:[%s396_s30] sm:$0x7] %vm6825_vm0, %v6821_v29 }
 0x75f PF: > { %s22_s15 = sadd.s32 1, %s9566_s15  }
 0x760   : > { %p19_p4 = scmp.ge.s32.totalorder %s22_s15, 4  }
 0x762   :  { %21 = sbr.rel (!%p19_p4) target bundleno = 3 (0x3), region = 96 }

</bundles_post_ra>
